<compile_context>
chip_gen: v7x
topology: tpu7x:2x2x1
jax: 0.10.0
libtpu: 0.0.40
codegen_flags: <defaults>
</compile_context>

<pallas_src>
import math

import jax
import jax.numpy as jnp
import numpy as np
from jax import lax
from jax.experimental import pallas as pl
from jax.experimental.pallas import tpu as pltpu

# ---------------- small config consistent with ConditionalUnet1D ----------------
INPUT_DIM = 4
GLOBAL_COND_DIM = 8
DSED = 32                    # diffusion_step_embed_dim
DOWN_DIMS = (32, 64)
KS = 5                       # kernel_size
NG = 8                       # n_groups
B = 2
T = 16                       # horizon (divisible by 2 for the one Downsample1d)
COND_DIM = DSED + GLOBAL_COND_DIM
FILM_SLOT = 256              # 128-lane scale slot + 128-lane bias slot per residual block


def _mish(x):
    # x * tanh(softplus(x)); softplus threshold 20 as in PyTorch; log1p for accuracy
    sp = jnp.where(x > 20.0, x, jnp.log1p(jnp.exp(jnp.minimum(x, 20.0))))
    return x * jnp.tanh(sp)


def network_structure():
    """Mirror of the PyTorch module construction (block prefixes, channel sizes)."""
    all_dims = [INPUT_DIM] + list(DOWN_DIMS)
    in_out = list(zip(all_dims[:-1], all_dims[1:]))
    mid_dim = all_dims[-1]

    downs = []
    for ind, (din, dout) in enumerate(in_out):
        is_last = ind >= len(in_out) - 1
        downs.append(dict(
            blocks=[('d%d_r1' % ind, din, dout), ('d%d_r2' % ind, dout, dout)],
            down=None if is_last else ('down%d' % ind, dout)))

    mids = [('mid%d' % i, mid_dim, mid_dim) for i in range(2)]

    ups = []
    for ind, (din, dout) in enumerate(reversed(in_out[1:])):
        is_last = ind >= len(in_out) - 1
        ups.append(dict(
            blocks=[('u%d_r1' % ind, dout * 2, din), ('u%d_r2' % ind, din, din)],
            up=None if is_last else ('up%d' % ind, din)))
    return downs, mids, ups


# ---------------- host-side parameter packing ----------------
class MatPack:
    """Pack 2D matrices (cols <= 128) into one (R,128) blob; row offsets are 8-aligned."""

    def __init__(self):
        self.chunks, self.index, self.off = [], {}, 0

    def add(self, name, arr):
        arr = np.asarray(arr, np.float32)
        r, c = arr.shape
        assert c <= 128, name
        rp = -(-r // 8) * 8
        buf = np.zeros((rp, 128), np.float32)
        buf[:r, :c] = arr
        self.index[name] = (self.off, r, c)
        self.chunks.append(buf)
        self.off += rp

    def finalize(self):
        return np.concatenate(self.chunks, axis=0)


class VecPack:
    """Pack 1D vectors (len <= 128) as rows of one (NV,128) f32 blob."""

    def __init__(self):
        self.rows, self.index = [], {}

    def add(self, name, arr):
        arr = np.asarray(arr, np.float32).reshape(-1)
        assert arr.shape[0] <= 128, name
        row = np.zeros((128,), np.float32)
        row[:arr.shape[0]] = arr
        self.index[name] = (len(self.rows), arr.shape[0])
        self.rows.append(row)

    def finalize(self):
        n = len(self.rows)
        out = np.zeros((-(-n // 8) * 8, 128), np.float32)
        out[:n] = np.stack(self.rows)
        return out


def _randn(key, shape, scale=0.1):
    return np.asarray(scale * jax.random.normal(key, shape, jnp.float32))


def init_and_pack(key):
    downs, mids, ups = network_structure()
    keys = iter(jax.random.split(key, 128))
    mp, vp = MatPack(), VecPack()

    # GroupNorm group-average maps (A[i,j] = 1 iff same group) and time-axis select/scatter
    for C in sorted(set(DOWN_DIMS)):
        grp = np.arange(C) // (C // NG)
        mp.add('gn_A_%d' % C, (grp[:, None] == grp[None, :]).astype(np.float32))
    mp.add('down_sel', (np.arange(T)[None, :] == 2 * np.arange(T // 2)[:, None]).astype(np.float32))
    t_in = T // 2
    rows = 2 * t_in - 1 + 4          # zero-dilated length + (K-1-padding)=2 pad on each side
    mp.add('up_scatter', (np.arange(rows)[:, None]
                          == (2 + 2 * np.arange(t_in))[None, :]).astype(np.float32))

    # diffusion step encoder
    mp.add('dse_w1', _randn(next(keys), (DSED, DSED * 4)))
    vp.add('dse_b1', _randn(next(keys), (DSED * 4,)))
    mp.add('dse_w2', _randn(next(keys), (DSED * 4, DSED)))
    vp.add('dse_b2', _randn(next(keys), (DSED,)))

    blocks = ([b for lvl in downs for b in lvl['blocks']] + list(mids)
              + [b for lvl in ups for b in lvl['blocks']])
    nblk = len(blocks)

    # all FiLM cond-encoder projections in one matrix; last row = bias (ones-augmented input)
    Wc = np.zeros((COND_DIM + 1, nblk * FILM_SLOT), np.float32)

    def add_block(prefix, cin, cout, blk_idx):
        mp.add(prefix + '_c0_w', _randn(next(keys), (KS, cin, cout)).reshape(KS * cin, cout))
        vp.add(prefix + '_c0_b', _randn(next(keys), (cout,)))
        vp.add(prefix + '_g0_g', np.ones((cout,), np.float32))
        vp.add(prefix + '_g0_b', np.zeros((cout,), np.float32))
        mp.add(prefix + '_c1_w', _randn(next(keys), (KS, cout, cout)).reshape(KS * cout, cout))
        vp.add(prefix + '_c1_b', _randn(next(keys), (cout,)))
        vp.add(prefix + '_g1_g', np.ones((cout,), np.float32))
        vp.add(prefix + '_g1_b', np.zeros((cout,), np.float32))
        if cin != cout:
            mp.add(prefix + '_res_w', _randn(next(keys), (cin, cout)))
            vp.add(prefix + '_res_b', _randn(next(keys), (cout,)))
        cw = _randn(next(keys), (COND_DIM, 2 * cout))
        cb = _randn(next(keys), (2 * cout,))
        s = blk_idx * FILM_SLOT
        Wc[:COND_DIM, s:s + cout] = cw[:, :cout]           # scale slot (128-aligned)
        Wc[COND_DIM, s:s + cout] = cb[:cout]
        Wc[:COND_DIM, s + 128:s + 128 + cout] = cw[:, cout:]   # bias slot (128-aligned)
        Wc[COND_DIM, s + 128:s + 128 + cout] = cb[cout:]

    for i, (pref, cin, cout) in enumerate(blocks):
        add_block(pref, cin, cout, i)

    for lvl in downs:
        if lvl['down'] is not None:
            dname, dc = lvl['down']
            mp.add(dname + '_w', _randn(next(keys), (3, dc, dc)).reshape(3 * dc, dc))
            vp.add(dname + '_b', _randn(next(keys), (dc,)))
    for lvl in ups:
        if lvl['up'] is not None:
            uname, uc = lvl['up']
            # regular-conv equivalent of ConvTranspose1d(uc, uc, 4, 2, 1); weights synthetic,
            # so the flipped-kernel conversion is implicit (w[k,i,o] = w_T[i,o,K-1-k]).
            mp.add(uname + '_w', _randn(next(keys), (4, uc, uc)).reshape(4 * uc, uc))
            vp.add(uname + '_b', _randn(next(keys), (uc,)))

    start_dim = DOWN_DIMS[0]
    mp.add('final_c_w', _randn(next(keys), (KS, start_dim, start_dim)).reshape(KS * start_dim, start_dim))
    vp.add('final_c_b', _randn(next(keys), (start_dim,)))
    vp.add('final_g_g', np.ones((start_dim,), np.float32))
    vp.add('final_g_b', np.zeros((start_dim,), np.float32))
    # final 1x1 projection padded to 128 output lanes -> lane-dense output store
    pw = np.zeros((start_dim, 128), np.float32)
    pw[:, :INPUT_DIM] = _randn(next(keys), (start_dim, INPUT_DIM))
    mp.add('final_pw_w', pw)
    pwb = np.zeros((128,), np.float32)
    pwb[:INPUT_DIM] = _randn(next(keys), (INPUT_DIM,))
    vp.add('final_pw_b', pwb)

    W = jnp.asarray(mp.finalize()).astype(jnp.bfloat16)
    V = jnp.asarray(vp.finalize())                      # f32
    Wc = jnp.asarray(Wc).astype(jnp.bfloat16)
    return W, Wc, V, mp.index, vp.index


# ---------------- the single fused kernel ----------------
def make_unet_kernel(matidx, vecidx):
    downs, mids, ups = network_structure()
    nblk = sum(len(l['blocks']) for l in downs) + len(mids) + sum(len(l['blocks']) for l in ups)
    pad = KS // 2

    def kernel(emb_ref, gc_ref, x_ref, w_ref, wc_ref, v_ref, o_ref):
        def mat(name):                                   # bf16 (rows, cols) weight view
            off, r, c = matidx[name]
            return w_ref[off:off + r, 0:c]

        def vec(name):                                   # f32 (1, cols) bias/affine view
            row, c = vecidx[name]
            return v_ref[row:row + 1, 0:c]

        def bdot(a, b):                                  # bf16 MXU matmul, f32 accumulation
            return jnp.dot(a.astype(jnp.bfloat16), b.astype(jnp.bfloat16),
                           preferred_element_type=jnp.float32)

        def conv1d(x, wname, bname, padding, K):
            # one matmul per conv: im2col operand (To, K*Cin) x weight (K*Cin, Cout)
            cin = x.shape[1]
            if padding > 0:
                z = jnp.zeros((padding, cin), jnp.float32)
                xp = jnp.concatenate([z, x, z], axis=0)
            else:
                xp = x
            To = xp.shape[0] - K + 1
            xi = jnp.concatenate([xp[k:k + To, :] for k in range(K)], axis=1)
            return bdot(xi, mat(wname)) + vec(bname)

        def groupnorm(h, gname, bname):
            # two-pass (subtract mean first); group average via one (C,C) same-group map
            C = h.shape[1]
            A = mat('gn_A_%d' % C)
            inv_cnt = 1.0 / float(h.shape[0] * (C // NG))
            chs = jnp.sum(h, axis=0, keepdims=True)
            mean_c = bdot(chs, A) * inv_cnt
            hc = h - mean_c
            q = jnp.sum(hc * hc, axis=0, keepdims=True)
            var_c = bdot(q, A) * inv_cnt
            return hc * lax.rsqrt(var_c + 1e-5) * vec(gname) + vec(bname)

        # ---------- diffusion step encoder + global cond feature ----------
        gf = _mish(bdot(emb_ref[0], mat('dse_w1')) + vec('dse_b1'))
        gf = bdot(gf, mat('dse_w2')) + vec('dse_b2')
        cond = jnp.concatenate([gf, gc_ref[0]], axis=-1)              # (1, COND_DIM)

        # ---------- every block's FiLM projection in ONE matmul (bias via ones-augment) ----
        cond_aug = jnp.concatenate([_mish(cond), jnp.ones((1, 1), jnp.float32)], axis=1)
        film = jnp.dot(cond_aug.astype(jnp.bfloat16), wc_ref[...],
                       preferred_element_type=jnp.float32)            # (1, nblk*256)

        blk = [0]

        def cond_res_block(prefix, cin, cout, x):
            i = blk[0]
            blk[0] = i + 1
            h = conv1d(x, prefix + '_c0_w', prefix + '_c0_b', pad, KS)
            h = _mish(groupnorm(h, prefix + '_g0_g', prefix + '_g0_b'))
            s = i * FILM_SLOT                                          # 128-aligned slices
            scale = film[:, s:s + cout]
            bias = film[:, s + 128:s + 128 + cout]
            h = scale * h + bias                                       # FiLM
            h = conv1d(h, prefix + '_c1_w', prefix + '_c1_b', pad, KS)
            h = _mish(groupnorm(h, prefix + '_g1_g', prefix + '_g1_b'))
            if cin != cout:                                            # fused 1x1 residual conv
                res = bdot(x, mat(prefix + '_res_w')) + vec(prefix + '_res_b')
            else:
                res = x
            return h + res

        # ---------- UNet (one batch element per grid step) ----------
        x = x_ref[0]                                                   # (T, INPUT_DIM)
        skips = []
        for lvl in downs:
            for (pref, cin, cout) in lvl['blocks']:
                x = cond_res_block(pref, cin, cout, x)
            skips.append(x)
            if lvl['down'] is not None:
                dname, _ = lvl['down']
                # Conv1d(dim, dim, 3, stride=2, padding=1): stride-1 conv + even-row select
                y = conv1d(x, dname + '_w', dname + '_b', 1, 3)
                x = bdot(mat('down_sel'), y)

        for (pref, cin, cout) in mids:
            x = cond_res_block(pref, cin, cout, x)

        for lvl in ups:
            x = jnp.concatenate([x, skips.pop()], axis=-1)             # in-kernel skip concat
            for (pref, cin, cout) in lvl['blocks']:
                x = cond_res_block(pref, cin, cout, x)
            if lvl['up'] is not None:
                uname, _ = lvl['up']
                # ConvTranspose1d(dim, dim, 4, 2, 1) == zero-dilate+pad scatter + regular conv
                z = bdot(mat('up_scatter'), x)
                x = conv1d(z, uname + '_w', uname + '_b', 0, 4)

        assert blk[0] == nblk                                          # trace-time check

        # final_conv: Conv1dBlock(start_dim, start_dim, KS) + lane-dense-padded 1x1 projection
        x = conv1d(x, 'final_c_w', 'final_c_b', pad, KS)
        x = _mish(groupnorm(x, 'final_g_g', 'final_g_b'))
        x = bdot(x, mat('final_pw_w')) + vec('final_pw_b')             # (T, 128), lanes dense
        o_ref[0] = x

    return kernel


# ---------------- wrapper: one pallas_call for the whole forward ----------------
def build_forward(matidx, vecidx):
    kernel = make_unet_kernel(matidx, vecidx)

    @jax.jit
    def forward(W, Wc, V, sample, timestep, global_cond):
        Bn, Tn, _ = sample.shape
        t = jnp.broadcast_to(jnp.asarray(timestep, jnp.float32).reshape(-1), (Bn,))

        # SinusoidalPosEmb (scalar-sized glue outside the kernel)
        half = DSED // 2
        freqs = jnp.exp(jnp.arange(half, dtype=jnp.float32) * -(math.log(10000.0) / (half - 1)))
        emb = t[:, None] * freqs[None, :]
        emb = jnp.concatenate([jnp.sin(emb), jnp.cos(emb)], axis=-1)[:, None, :]   # (B,1,DSED)
        gc = global_cond[:, None, :]

        out = pl.pallas_call(
            kernel,
            out_shape=jax.ShapeDtypeStruct((Bn, Tn, 128), jnp.float32),
            grid=(Bn,),
            in_specs=[
                pl.BlockSpec((1, 1, DSED), lambda b: (b, 0, 0)),
                pl.BlockSpec((1, 1, GLOBAL_COND_DIM), lambda b: (b, 0, 0)),
                pl.BlockSpec((1, Tn, INPUT_DIM), lambda b: (b, 0, 0)),
                pl.BlockSpec(W.shape, lambda b: (0, 0)),
                pl.BlockSpec(Wc.shape, lambda b: (0, 0)),
                pl.BlockSpec(V.shape, lambda b: (0, 0)),
            ],
            out_specs=pl.BlockSpec((1, Tn, 128), lambda b: (b, 0, 0)),
            compiler_params=pltpu.CompilerParams(dimension_semantics=("parallel",)),
        )(emb, gc, sample, W, Wc, V)
        return out[..., :INPUT_DIM]                     # lane-dense kernel output -> (B,T,4)

    return forward


if __name__ == "__main__":
    assert T % 2 == 0
    key = jax.random.PRNGKey(0)
    kp, ks, kc = jax.random.split(key, 3)

    W, Wc, V, matidx, vecidx = init_and_pack(kp)
    forward = build_forward(matidx, vecidx)

    sample = jax.random.normal(ks, (B, T, INPUT_DIM), jnp.float32)      # (B, T, input_dim)
    global_cond = jax.random.normal(kc, (B, GLOBAL_COND_DIM), jnp.float32)
    timestep = jnp.asarray(10, jnp.int32)

    out = jax.block_until_ready(forward(W, Wc, V, sample, timestep, global_cond))
    assert out.shape == (B, T, INPUT_DIM)
    assert bool(jnp.all(jnp.isfinite(out)))
    print("KERNEL_OK")
</pallas_src>

<mosaic_0001>
module attributes {stable_mosaic.version = 11 : i64} {
  func.func @kernel(%arg0: i32, %arg1: memref<1x1x32xf32, #tpu.memory_space<vmem>>, %arg2: memref<1x1x8xf32, #tpu.memory_space<vmem>>, %arg3: memref<1x16x4xf32, #tpu.memory_space<vmem>>, %arg4: memref<4896x128xbf16, #tpu.memory_space<vmem>>, %arg5: memref<41x2048xbf16, #tpu.memory_space<vmem>>, %arg6: memref<64x128xf32, #tpu.memory_space<vmem>>, %arg7: memref<1x16x128xf32, #tpu.memory_space<vmem>>) attributes {dimension_semantics = [#tpu.dimension_semantics<parallel>], iteration_bounds = array<i64: 2>, scalar_prefetch = 0 : i64, scratch_operands = 0 : i64, tpu.core_type = #tpu.core_type<tc>, window_params = [{transform_indices = @transform_0, window_bounds = array<i64: 1, 1, 32>}, {transform_indices = @transform_1, window_bounds = array<i64: 1, 1, 8>}, {transform_indices = @transform_2, window_bounds = array<i64: 1, 16, 4>}, {pipeline_mode = #tpu.pipeline_mode<synchronous>, transform_indices = @transform_3, window_bounds = array<i64: 4896, 128>}, {pipeline_mode = #tpu.pipeline_mode<synchronous>, transform_indices = @transform_4, window_bounds = array<i64: 41, 2048>}, {pipeline_mode = #tpu.pipeline_mode<synchronous>, transform_indices = @transform_5, window_bounds = array<i64: 64, 128>}, {transform_indices = @transform_6, window_bounds = array<i64: 1, 16, 128>}]} {
    %c0 = arith.constant 0 : index
    %c0_0 = arith.constant 0 : index
    %c0_1 = arith.constant 0 : index
    %0 = vector.load %arg1[%c0, %c0_0, %c0_1] : memref<1x1x32xf32, #tpu.memory_space<vmem>>, vector<1x1x32xf32>
    %1 = vector.shape_cast %0 : vector<1x1x32xf32> to vector<1x32xf32>
    %c128 = arith.constant 128 : index
    %c0_2 = arith.constant 0 : index
    %2 = vector.load %arg4[%c128, %c0_2] : memref<4896x128xbf16, #tpu.memory_space<vmem>>, vector<32x128xbf16>
    %3 = arith.truncf %1 : vector<1x32xf32> to vector<1x32xbf16>
    %cst = arith.constant dense<0.000000e+00> : vector<1x128xf32>
    %4 = tpu.matmul %3, %2, %cst {dimension_numbers = #tpu.dot_dimension_numbers<[1], [0], [0], [1], [0, 0, 1, 1], [], []>} : vector<1x32xbf16>, vector<32x128xbf16>, vector<1x128xf32> -> vector<1x128xf32>
    %c0_3 = arith.constant 0 : index
    %c0_4 = arith.constant 0 : index
    %5 = vector.load %arg6[%c0_3, %c0_4] : memref<64x128xf32, #tpu.memory_space<vmem>>, vector<1x128xf32>
    %6 = arith.addf %4, %5 : vector<1x128xf32>
    %cst_5 = arith.constant 2.000000e+01 : f32
    %7 = vector.broadcast %cst_5 : f32 to vector<1x128xf32>
    %8 = arith.cmpf ogt, %6, %7 : vector<1x128xf32>
    %cst_6 = arith.constant 2.000000e+01 : f32
    %9 = vector.broadcast %cst_6 : f32 to vector<1x128xf32>
    %10 = arith.minimumf %6, %9 : vector<1x128xf32>
    %11 = math.exp %10 : vector<1x128xf32>
    %12 = math.log1p %11 : vector<1x128xf32>
    %13 = arith.select %8, %6, %12 : vector<1x128xi1>, vector<1x128xf32>
    %14 = math.tanh %13 : vector<1x128xf32>
    %15 = arith.mulf %6, %14 : vector<1x128xf32>
    %c160 = arith.constant 160 : index
    %c0_7 = arith.constant 0 : index
    %16 = vector.load %arg4[%c160, %c0_7] : memref<4896x128xbf16, #tpu.memory_space<vmem>>, vector<128x32xbf16>
    %17 = arith.truncf %15 : vector<1x128xf32> to vector<1x128xbf16>
    %cst_8 = arith.constant dense<0.000000e+00> : vector<1x32xf32>
    %18 = tpu.matmul %17, %16, %cst_8 {dimension_numbers = #tpu.dot_dimension_numbers<[1], [0], [0], [1], [0, 0, 1, 1], [], []>} : vector<1x128xbf16>, vector<128x32xbf16>, vector<1x32xf32> -> vector<1x32xf32>
    %c1 = arith.constant 1 : index
    %c0_9 = arith.constant 0 : index
    %19 = vector.load %arg6[%c1, %c0_9] : memref<64x128xf32, #tpu.memory_space<vmem>>, vector<1x32xf32>
    %20 = arith.addf %18, %19 : vector<1x32xf32>
    %c0_10 = arith.constant 0 : index
    %c0_11 = arith.constant 0 : index
    %c0_12 = arith.constant 0 : index
    %21 = vector.load %arg2[%c0_10, %c0_11, %c0_12] : memref<1x1x8xf32, #tpu.memory_space<vmem>>, vector<1x1x8xf32>
    %22 = vector.shape_cast %21 : vector<1x1x8xf32> to vector<1x8xf32>
    %23 = tpu.concatenate %20, %22 in 1 : vector<1x32xf32>, vector<1x8xf32> -> vector<1x40xf32>
    %cst_13 = arith.constant 2.000000e+01 : f32
    %24 = vector.broadcast %cst_13 : f32 to vector<1x40xf32>
    %25 = arith.cmpf ogt, %23, %24 : vector<1x40xf32>
    %cst_14 = arith.constant 2.000000e+01 : f32
    %26 = vector.broadcast %cst_14 : f32 to vector<1x40xf32>
    %27 = arith.minimumf %23, %26 : vector<1x40xf32>
    %28 = math.exp %27 : vector<1x40xf32>
    %29 = math.log1p %28 : vector<1x40xf32>
    %30 = arith.select %25, %23, %29 : vector<1x40xi1>, vector<1x40xf32>
    %31 = math.tanh %30 : vector<1x40xf32>
    %32 = arith.mulf %23, %31 : vector<1x40xf32>
    %cst_15 = arith.constant 1.000000e+00 : f32
    %33 = vector.broadcast %cst_15 : f32 to vector<1x1xf32>
    %34 = tpu.concatenate %32, %33 in 1 : vector<1x40xf32>, vector<1x1xf32> -> vector<1x41xf32>
    %35 = arith.truncf %34 : vector<1x41xf32> to vector<1x41xbf16>
    %c0_16 = arith.constant 0 : index
    %c0_17 = arith.constant 0 : index
    %36 = vector.load %arg5[%c0_16, %c0_17] : memref<41x2048xbf16, #tpu.memory_space<vmem>>, vector<41x2048xbf16>
    %cst_18 = arith.constant dense<0.000000e+00> : vector<1x2048xf32>
    %37 = tpu.matmul %35, %36, %cst_18 {dimension_numbers = #tpu.dot_dimension_numbers<[1], [0], [0], [1], [0, 0, 1, 1], [], []>} : vector<1x41xbf16>, vector<41x2048xbf16>, vector<1x2048xf32> -> vector<1x2048xf32>
    %c0_19 = arith.constant 0 : index
    %c0_20 = arith.constant 0 : index
    %c0_21 = arith.constant 0 : index
    %38 = vector.load %arg3[%c0_19, %c0_20, %c0_21] : memref<1x16x4xf32, #tpu.memory_space<vmem>>, vector<1x16x4xf32>
    %39 = vector.shape_cast %38 : vector<1x16x4xf32> to vector<16x4xf32>
    %cst_22 = arith.constant 0.000000e+00 : f32
    %40 = vector.broadcast %cst_22 : f32 to vector<2x4xf32>
    %41 = tpu.concatenate %40, %39, %40 in 0 : vector<2x4xf32>, vector<16x4xf32>, vector<2x4xf32> -> vector<20x4xf32>
    %42 = vector.extract_strided_slice %41 {offsets = [0, 0], sizes = [16, 4], strides = [1, 1]} : vector<20x4xf32> to vector<16x4xf32>
    %43 = vector.extract_strided_slice %41 {offsets = [1, 0], sizes = [16, 4], strides = [1, 1]} : vector<20x4xf32> to vector<16x4xf32>
    %44 = vector.extract_strided_slice %41 {offsets = [2, 0], sizes = [16, 4], strides = [1, 1]} : vector<20x4xf32> to vector<16x4xf32>
    %45 = vector.extract_strided_slice %41 {offsets = [3, 0], sizes = [16, 4], strides = [1, 1]} : vector<20x4xf32> to vector<16x4xf32>
    %46 = vector.extract_strided_slice %41 {offsets = [4, 0], sizes = [16, 4], strides = [1, 1]} : vector<20x4xf32> to vector<16x4xf32>
    %47 = tpu.concatenate %42, %43, %44, %45, %46 in 1 : vector<16x4xf32>, vector<16x4xf32>, vector<16x4xf32>, vector<16x4xf32>, vector<16x4xf32> -> vector<16x20xf32>
    %c288 = arith.constant 288 : index
    %c0_23 = arith.constant 0 : index
    %48 = vector.load %arg4[%c288, %c0_23] : memref<4896x128xbf16, #tpu.memory_space<vmem>>, vector<20x32xbf16>
    %49 = arith.truncf %47 : vector<16x20xf32> to vector<16x20xbf16>
    %cst_24 = arith.constant dense<0.000000e+00> : vector<16x32xf32>
    %50 = tpu.matmul %49, %48, %cst_24 {dimension_numbers = #tpu.dot_dimension_numbers<[1], [0], [0], [1], [0, 0, 1, 1], [], []>} : vector<16x20xbf16>, vector<20x32xbf16>, vector<16x32xf32> -> vector<16x32xf32>
    %c2 = arith.constant 2 : index
    %c0_25 = arith.constant 0 : index
    %51 = vector.load %arg6[%c2, %c0_25] : memref<64x128xf32, #tpu.memory_space<vmem>>, vector<1x32xf32>
    %52 = vector.broadcast %51 : vector<1x32xf32> to vector<16x32xf32>
    %53 = arith.addf %50, %52 : vector<16x32xf32>
    %c0_26 = arith.constant 0 : index
    %c0_27 = arith.constant 0 : index
    %54 = vector.load %arg4[%c0_26, %c0_27] : memref<4896x128xbf16, #tpu.memory_space<vmem>>, vector<32x32xbf16>
    %cst_28 = arith.constant dense<0.000000e+00> : vector<32xf32>
    %55 = vector.multi_reduction <add>, %53, %cst_28 [0] : vector<16x32xf32> to vector<32xf32>
    %56 = vector.shape_cast %55 : vector<32xf32> to vector<1x32xf32>
    %57 = arith.truncf %56 : vector<1x32xf32> to vector<1x32xbf16>
    %cst_29 = arith.constant dense<0.000000e+00> : vector<1x32xf32>
    %58 = tpu.matmul %57, %54, %cst_29 {dimension_numbers = #tpu.dot_dimension_numbers<[1], [0], [0], [1], [0, 0, 1, 1], [], []>} : vector<1x32xbf16>, vector<32x32xbf16>, vector<1x32xf32> -> vector<1x32xf32>
    %cst_30 = arith.constant 1.562500e-02 : f32
    %59 = vector.broadcast %cst_30 : f32 to vector<1x32xf32>
    %60 = arith.mulf %58, %59 : vector<1x32xf32>
    %61 = vector.broadcast %60 : vector<1x32xf32> to vector<16x32xf32>
    %62 = arith.subf %53, %61 : vector<16x32xf32>
    %63 = arith.mulf %62, %62 : vector<16x32xf32>
    %cst_31 = arith.constant dense<0.000000e+00> : vector<32xf32>
    %64 = vector.multi_reduction <add>, %63, %cst_31 [0] : vector<16x32xf32> to vector<32xf32>
    %65 = vector.shape_cast %64 : vector<32xf32> to vector<1x32xf32>
    %66 = arith.truncf %65 : vector<1x32xf32> to vector<1x32xbf16>
    %cst_32 = arith.constant dense<0.000000e+00> : vector<1x32xf32>
    %67 = tpu.matmul %66, %54, %cst_32 {dimension_numbers = #tpu.dot_dimension_numbers<[1], [0], [0], [1], [0, 0, 1, 1], [], []>} : vector<1x32xbf16>, vector<32x32xbf16>, vector<1x32xf32> -> vector<1x32xf32>
    %cst_33 = arith.constant 1.562500e-02 : f32
    %68 = vector.broadcast %cst_33 : f32 to vector<1x32xf32>
    %69 = arith.mulf %67, %68 : vector<1x32xf32>
    %cst_34 = arith.constant 9.99999974E-6 : f32
    %70 = vector.broadcast %cst_34 : f32 to vector<1x32xf32>
    %71 = arith.addf %69, %70 : vector<1x32xf32>
    %72 = math.rsqrt %71 : vector<1x32xf32>
    %73 = vector.broadcast %72 : vector<1x32xf32> to vector<16x32xf32>
    %74 = arith.mulf %62, %73 : vector<16x32xf32>
    %c3 = arith.constant 3 : index
    %c0_35 = arith.constant 0 : index
    %75 = vector.load %arg6[%c3, %c0_35] : memref<64x128xf32, #tpu.memory_space<vmem>>, vector<1x32xf32>
    %76 = vector.broadcast %75 : vector<1x32xf32> to vector<16x32xf32>
    %77 = arith.mulf %74, %76 : vector<16x32xf32>
    %c4 = arith.constant 4 : index
    %c0_36 = arith.constant 0 : index
    %78 = vector.load %arg6[%c4, %c0_36] : memref<64x128xf32, #tpu.memory_space<vmem>>, vector<1x32xf32>
    %79 = vector.broadcast %78 : vector<1x32xf32> to vector<16x32xf32>
    %80 = arith.addf %77, %79 : vector<16x32xf32>
    %cst_37 = arith.constant 2.000000e+01 : f32
    %81 = vector.broadcast %cst_37 : f32 to vector<16x32xf32>
    %82 = arith.cmpf ogt, %80, %81 : vector<16x32xf32>
    %cst_38 = arith.constant 2.000000e+01 : f32
    %83 = vector.broadcast %cst_38 : f32 to vector<16x32xf32>
    %84 = arith.minimumf %80, %83 : vector<16x32xf32>
    %85 = math.exp %84 : vector<16x32xf32>
    %86 = math.log1p %85 : vector<16x32xf32>
    %87 = arith.select %82, %80, %86 : vector<16x32xi1>, vector<16x32xf32>
    %88 = math.tanh %87 : vector<16x32xf32>
    %89 = arith.mulf %80, %88 : vector<16x32xf32>
    %90 = vector.extract_strided_slice %37 {offsets = [0, 0], sizes = [1, 32], strides = [1, 1]} : vector<1x2048xf32> to vector<1x32xf32>
    %91 = vector.extract_strided_slice %37 {offsets = [0, 128], sizes = [1, 32], strides = [1, 1]} : vector<1x2048xf32> to vector<1x32xf32>
    %92 = vector.broadcast %90 : vector<1x32xf32> to vector<16x32xf32>
    %93 = arith.mulf %92, %89 : vector<16x32xf32>
    %94 = vector.broadcast %91 : vector<1x32xf32> to vector<16x32xf32>
    %95 = arith.addf %93, %94 : vector<16x32xf32>
    %cst_39 = arith.constant 0.000000e+00 : f32
    %96 = vector.broadcast %cst_39 : f32 to vector<2x32xf32>
    %97 = tpu.concatenate %96, %95, %96 in 0 : vector<2x32xf32>, vector<16x32xf32>, vector<2x32xf32> -> vector<20x32xf32>
    %98 = vector.extract_strided_slice %97 {offsets = [0, 0], sizes = [16, 32], strides = [1, 1]} : vector<20x32xf32> to vector<16x32xf32>
    %99 = vector.extract_strided_slice %97 {offsets = [1, 0], sizes = [16, 32], strides = [1, 1]} : vector<20x32xf32> to vector<16x32xf32>
    %100 = vector.extract_strided_slice %97 {offsets = [2, 0], sizes = [16, 32], strides = [1, 1]} : vector<20x32xf32> to vector<16x32xf32>
    %101 = vector.extract_strided_slice %97 {offsets = [3, 0], sizes = [16, 32], strides = [1, 1]} : vector<20x32xf32> to vector<16x32xf32>
    %102 = vector.extract_strided_slice %97 {offsets = [4, 0], sizes = [16, 32], strides = [1, 1]} : vector<20x32xf32> to vector<16x32xf32>
    %103 = tpu.concatenate %98, %99, %100, %101, %102 in 1 : vector<16x32xf32>, vector<16x32xf32>, vector<16x32xf32>, vector<16x32xf32>, vector<16x32xf32> -> vector<16x160xf32>
    %c312 = arith.constant 312 : index
    %c0_40 = arith.constant 0 : index
    %104 = vector.load %arg4[%c312, %c0_40] : memref<4896x128xbf16, #tpu.memory_space<vmem>>, vector<160x32xbf16>
    %105 = arith.truncf %103 : vector<16x160xf32> to vector<16x160xbf16>
    %cst_41 = arith.constant dense<0.000000e+00> : vector<16x32xf32>
    %106 = tpu.matmul %105, %104, %cst_41 {dimension_numbers = #tpu.dot_dimension_numbers<[1], [0], [0], [1], [0, 0, 1, 1], [], []>} : vector<16x160xbf16>, vector<160x32xbf16>, vector<16x32xf32> -> vector<16x32xf32>
    %c5 = arith.constant 5 : index
    %c0_42 = arith.constant 0 : index
    %107 = vector.load %arg6[%c5, %c0_42] : memref<64x128xf32, #tpu.memory_space<vmem>>, vector<1x32xf32>
    %108 = vector.broadcast %107 : vector<1x32xf32> to vector<16x32xf32>
    %109 = arith.addf %106, %108 : vector<16x32xf32>
    %c0_43 = arith.constant 0 : index
    %c0_44 = arith.constant 0 : index
    %110 = vector.load %arg4[%c0_43, %c0_44] : memref<4896x128xbf16, #tpu.memory_space<vmem>>, vector<32x32xbf16>
    %cst_45 = arith.constant dense<0.000000e+00> : vector<32xf32>
    %111 = vector.multi_reduction <add>, %109, %cst_45 [0] : vector<16x32xf32> to vector<32xf32>
    %112 = vector.shape_cast %111 : vector<32xf32> to vector<1x32xf32>
    %113 = arith.truncf %112 : vector<1x32xf32> to vector<1x32xbf16>
    %cst_46 = arith.constant dense<0.000000e+00> : vector<1x32xf32>
    %114 = tpu.matmul %113, %110, %cst_46 {dimension_numbers = #tpu.dot_dimension_numbers<[1], [0], [0], [1], [0, 0, 1, 1], [], []>} : vector<1x32xbf16>, vector<32x32xbf16>, vector<1x32xf32> -> vector<1x32xf32>
    %cst_47 = arith.constant 1.562500e-02 : f32
    %115 = vector.broadcast %cst_47 : f32 to vector<1x32xf32>
    %116 = arith.mulf %114, %115 : vector<1x32xf32>
    %117 = vector.broadcast %116 : vector<1x32xf32> to vector<16x32xf32>
    %118 = arith.subf %109, %117 : vector<16x32xf32>
    %119 = arith.mulf %118, %118 : vector<16x32xf32>
    %cst_48 = arith.constant dense<0.000000e+00> : vector<32xf32>
    %120 = vector.multi_reduction <add>, %119, %cst_48 [0] : vector<16x32xf32> to vector<32xf32>
    %121 = vector.shape_cast %120 : vector<32xf32> to vector<1x32xf32>
    %122 = arith.truncf %121 : vector<1x32xf32> to vector<1x32xbf16>
    %cst_49 = arith.constant dense<0.000000e+00> : vector<1x32xf32>
    %123 = tpu.matmul %122, %110, %cst_49 {dimension_numbers = #tpu.dot_dimension_numbers<[1], [0], [0], [1], [0, 0, 1, 1], [], []>} : vector<1x32xbf16>, vector<32x32xbf16>, vector<1x32xf32> -> vector<1x32xf32>
    %cst_50 = arith.constant 1.562500e-02 : f32
    %124 = vector.broadcast %cst_50 : f32 to vector<1x32xf32>
    %125 = arith.mulf %123, %124 : vector<1x32xf32>
    %cst_51 = arith.constant 9.99999974E-6 : f32
    %126 = vector.broadcast %cst_51 : f32 to vector<1x32xf32>
    %127 = arith.addf %125, %126 : vector<1x32xf32>
    %128 = math.rsqrt %127 : vector<1x32xf32>
    %129 = vector.broadcast %128 : vector<1x32xf32> to vector<16x32xf32>
    %130 = arith.mulf %118, %129 : vector<16x32xf32>
    %c6 = arith.constant 6 : index
    %c0_52 = arith.constant 0 : index
    %131 = vector.load %arg6[%c6, %c0_52] : memref<64x128xf32, #tpu.memory_space<vmem>>, vector<1x32xf32>
    %132 = vector.broadcast %131 : vector<1x32xf32> to vector<16x32xf32>
    %133 = arith.mulf %130, %132 : vector<16x32xf32>
    %c7 = arith.constant 7 : index
    %c0_53 = arith.constant 0 : index
    %134 = vector.load %arg6[%c7, %c0_53] : memref<64x128xf32, #tpu.memory_space<vmem>>, vector<1x32xf32>
    %135 = vector.broadcast %134 : vector<1x32xf32> to vector<16x32xf32>
    %136 = arith.addf %133, %135 : vector<16x32xf32>
    %cst_54 = arith.constant 2.000000e+01 : f32
    %137 = vector.broadcast %cst_54 : f32 to vector<16x32xf32>
    %138 = arith.cmpf ogt, %136, %137 : vector<16x32xf32>
    %cst_55 = arith.constant 2.000000e+01 : f32
    %139 = vector.broadcast %cst_55 : f32 to vector<16x32xf32>
    %140 = arith.minimumf %136, %139 : vector<16x32xf32>
    %141 = math.exp %140 : vector<16x32xf32>
    %142 = math.log1p %141 : vector<16x32xf32>
    %143 = arith.select %138, %136, %142 : vector<16x32xi1>, vector<16x32xf32>
    %144 = math.tanh %143 : vector<16x32xf32>
    %145 = arith.mulf %136, %144 : vector<16x32xf32>
    %c472 = arith.constant 472 : index
    %c0_56 = arith.constant 0 : index
    %146 = vector.load %arg4[%c472, %c0_56] : memref<4896x128xbf16, #tpu.memory_space<vmem>>, vector<4x32xbf16>
    %147 = arith.truncf %39 : vector<16x4xf32> to vector<16x4xbf16>
    %cst_57 = arith.constant dense<0.000000e+00> : vector<16x32xf32>
    %148 = tpu.matmul %147, %146, %cst_57 {dimension_numbers = #tpu.dot_dimension_numbers<[1], [0], [0], [1], [0, 0, 1, 1], [], []>} : vector<16x4xbf16>, vector<4x32xbf16>, vector<16x32xf32> -> vector<16x32xf32>
    %c8 = arith.constant 8 : index
    %c0_58 = arith.constant 0 : index
    %149 = vector.load %arg6[%c8, %c0_58] : memref<64x128xf32, #tpu.memory_space<vmem>>, vector<1x32xf32>
    %150 = vector.broadcast %149 : vector<1x32xf32> to vector<16x32xf32>
    %151 = arith.addf %148, %150 : vector<16x32xf32>
    %152 = arith.addf %145, %151 : vector<16x32xf32>
    %cst_59 = arith.constant 0.000000e+00 : f32
    %153 = vector.broadcast %cst_59 : f32 to vector<2x32xf32>
    %154 = tpu.concatenate %153, %152, %153 in 0 : vector<2x32xf32>, vector<16x32xf32>, vector<2x32xf32> -> vector<20x32xf32>
    %155 = vector.extract_strided_slice %154 {offsets = [0, 0], sizes = [16, 32], strides = [1, 1]} : vector<20x32xf32> to vector<16x32xf32>
    %156 = vector.extract_strided_slice %154 {offsets = [1, 0], sizes = [16, 32], strides = [1, 1]} : vector<20x32xf32> to vector<16x32xf32>
    %157 = vector.extract_strided_slice %154 {offsets = [2, 0], sizes = [16, 32], strides = [1, 1]} : vector<20x32xf32> to vector<16x32xf32>
    %158 = vector.extract_strided_slice %154 {offsets = [3, 0], sizes = [16, 32], strides = [1, 1]} : vector<20x32xf32> to vector<16x32xf32>
    %159 = vector.extract_strided_slice %154 {offsets = [4, 0], sizes = [16, 32], strides = [1, 1]} : vector<20x32xf32> to vector<16x32xf32>
    %160 = tpu.concatenate %155, %156, %157, %158, %159 in 1 : vector<16x32xf32>, vector<16x32xf32>, vector<16x32xf32>, vector<16x32xf32>, vector<16x32xf32> -> vector<16x160xf32>
    %c480 = arith.constant 480 : index
    %c0_60 = arith.constant 0 : index
    %161 = vector.load %arg4[%c480, %c0_60] : memref<4896x128xbf16, #tpu.memory_space<vmem>>, vector<160x32xbf16>
    %162 = arith.truncf %160 : vector<16x160xf32> to vector<16x160xbf16>
    %cst_61 = arith.constant dense<0.000000e+00> : vector<16x32xf32>
    %163 = tpu.matmul %162, %161, %cst_61 {dimension_numbers = #tpu.dot_dimension_numbers<[1], [0], [0], [1], [0, 0, 1, 1], [], []>} : vector<16x160xbf16>, vector<160x32xbf16>, vector<16x32xf32> -> vector<16x32xf32>
    %c9 = arith.constant 9 : index
    %c0_62 = arith.constant 0 : index
    %164 = vector.load %arg6[%c9, %c0_62] : memref<64x128xf32, #tpu.memory_space<vmem>>, vector<1x32xf32>
    %165 = vector.broadcast %164 : vector<1x32xf32> to vector<16x32xf32>
    %166 = arith.addf %163, %165 : vector<16x32xf32>
    %c0_63 = arith.constant 0 : index
    %c0_64 = arith.constant 0 : index
    %167 = vector.load %arg4[%c0_63, %c0_64] : memref<4896x128xbf16, #tpu.memory_space<vmem>>, vector<32x32xbf16>
    %cst_65 = arith.constant dense<0.000000e+00> : vector<32xf32>
    %168 = vector.multi_reduction <add>, %166, %cst_65 [0] : vector<16x32xf32> to vector<32xf32>
    %169 = vector.shape_cast %168 : vector<32xf32> to vector<1x32xf32>
    %170 = arith.truncf %169 : vector<1x32xf32> to vector<1x32xbf16>
    %cst_66 = arith.constant dense<0.000000e+00> : vector<1x32xf32>
    %171 = tpu.matmul %170, %167, %cst_66 {dimension_numbers = #tpu.dot_dimension_numbers<[1], [0], [0], [1], [0, 0, 1, 1], [], []>} : vector<1x32xbf16>, vector<32x32xbf16>, vector<1x32xf32> -> vector<1x32xf32>
    %cst_67 = arith.constant 1.562500e-02 : f32
    %172 = vector.broadcast %cst_67 : f32 to vector<1x32xf32>
    %173 = arith.mulf %171, %172 : vector<1x32xf32>
    %174 = vector.broadcast %173 : vector<1x32xf32> to vector<16x32xf32>
    %175 = arith.subf %166, %174 : vector<16x32xf32>
    %176 = arith.mulf %175, %175 : vector<16x32xf32>
    %cst_68 = arith.constant dense<0.000000e+00> : vector<32xf32>
    %177 = vector.multi_reduction <add>, %176, %cst_68 [0] : vector<16x32xf32> to vector<32xf32>
    %178 = vector.shape_cast %177 : vector<32xf32> to vector<1x32xf32>
    %179 = arith.truncf %178 : vector<1x32xf32> to vector<1x32xbf16>
    %cst_69 = arith.constant dense<0.000000e+00> : vector<1x32xf32>
    %180 = tpu.matmul %179, %167, %cst_69 {dimension_numbers = #tpu.dot_dimension_numbers<[1], [0], [0], [1], [0, 0, 1, 1], [], []>} : vector<1x32xbf16>, vector<32x32xbf16>, vector<1x32xf32> -> vector<1x32xf32>
    %cst_70 = arith.constant 1.562500e-02 : f32
    %181 = vector.broadcast %cst_70 : f32 to vector<1x32xf32>
    %182 = arith.mulf %180, %181 : vector<1x32xf32>
    %cst_71 = arith.constant 9.99999974E-6 : f32
    %183 = vector.broadcast %cst_71 : f32 to vector<1x32xf32>
    %184 = arith.addf %182, %183 : vector<1x32xf32>
    %185 = math.rsqrt %184 : vector<1x32xf32>
    %186 = vector.broadcast %185 : vector<1x32xf32> to vector<16x32xf32>
    %187 = arith.mulf %175, %186 : vector<16x32xf32>
    %c10 = arith.constant 10 : index
    %c0_72 = arith.constant 0 : index
    %188 = vector.load %arg6[%c10, %c0_72] : memref<64x128xf32, #tpu.memory_space<vmem>>, vector<1x32xf32>
    %189 = vector.broadcast %188 : vector<1x32xf32> to vector<16x32xf32>
    %190 = arith.mulf %187, %189 : vector<16x32xf32>
    %c11 = arith.constant 11 : index
    %c0_73 = arith.constant 0 : index
    %191 = vector.load %arg6[%c11, %c0_73] : memref<64x128xf32, #tpu.memory_space<vmem>>, vector<1x32xf32>
    %192 = vector.broadcast %191 : vector<1x32xf32> to vector<16x32xf32>
    %193 = arith.addf %190, %192 : vector<16x32xf32>
    %cst_74 = arith.constant 2.000000e+01 : f32
    %194 = vector.broadcast %cst_74 : f32 to vector<16x32xf32>
    %195 = arith.cmpf ogt, %193, %194 : vector<16x32xf32>
    %cst_75 = arith.constant 2.000000e+01 : f32
    %196 = vector.broadcast %cst_75 : f32 to vector<16x32xf32>
    %197 = arith.minimumf %193, %196 : vector<16x32xf32>
    %198 = math.exp %197 : vector<16x32xf32>
    %199 = math.log1p %198 : vector<16x32xf32>
    %200 = arith.select %195, %193, %199 : vector<16x32xi1>, vector<16x32xf32>
    %201 = math.tanh %200 : vector<16x32xf32>
    %202 = arith.mulf %193, %201 : vector<16x32xf32>
    %203 = vector.extract_strided_slice %37 {offsets = [0, 256], sizes = [1, 32], strides = [1, 1]} : vector<1x2048xf32> to vector<1x32xf32>
    %204 = vector.extract_strided_slice %37 {offsets = [0, 384], sizes = [1, 32], strides = [1, 1]} : vector<1x2048xf32> to vector<1x32xf32>
    %205 = vector.broadcast %203 : vector<1x32xf32> to vector<16x32xf32>
    %206 = arith.mulf %205, %202 : vector<16x32xf32>
    %207 = vector.broadcast %204 : vector<1x32xf32> to vector<16x32xf32>
    %208 = arith.addf %206, %207 : vector<16x32xf32>
    %cst_76 = arith.constant 0.000000e+00 : f32
    %209 = vector.broadcast %cst_76 : f32 to vector<2x32xf32>
    %210 = tpu.concatenate %209, %208, %209 in 0 : vector<2x32xf32>, vector<16x32xf32>, vector<2x32xf32> -> vector<20x32xf32>
    %211 = vector.extract_strided_slice %210 {offsets = [0, 0], sizes = [16, 32], strides = [1, 1]} : vector<20x32xf32> to vector<16x32xf32>
    %212 = vector.extract_strided_slice %210 {offsets = [1, 0], sizes = [16, 32], strides = [1, 1]} : vector<20x32xf32> to vector<16x32xf32>
    %213 = vector.extract_strided_slice %210 {offsets = [2, 0], sizes = [16, 32], strides = [1, 1]} : vector<20x32xf32> to vector<16x32xf32>
    %214 = vector.extract_strided_slice %210 {offsets = [3, 0], sizes = [16, 32], strides = [1, 1]} : vector<20x32xf32> to vector<16x32xf32>
    %215 = vector.extract_strided_slice %210 {offsets = [4, 0], sizes = [16, 32], strides = [1, 1]} : vector<20x32xf32> to vector<16x32xf32>
    %216 = tpu.concatenate %211, %212, %213, %214, %215 in 1 : vector<16x32xf32>, vector<16x32xf32>, vector<16x32xf32>, vector<16x32xf32>, vector<16x32xf32> -> vector<16x160xf32>
    %c640 = arith.constant 640 : index
    %c0_77 = arith.constant 0 : index
    %217 = vector.load %arg4[%c640, %c0_77] : memref<4896x128xbf16, #tpu.memory_space<vmem>>, vector<160x32xbf16>
    %218 = arith.truncf %216 : vector<16x160xf32> to vector<16x160xbf16>
    %cst_78 = arith.constant dense<0.000000e+00> : vector<16x32xf32>
    %219 = tpu.matmul %218, %217, %cst_78 {dimension_numbers = #tpu.dot_dimension_numbers<[1], [0], [0], [1], [0, 0, 1, 1], [], []>} : vector<16x160xbf16>, vector<160x32xbf16>, vector<16x32xf32> -> vector<16x32xf32>
    %c12 = arith.constant 12 : index
    %c0_79 = arith.constant 0 : index
    %220 = vector.load %arg6[%c12, %c0_79] : memref<64x128xf32, #tpu.memory_space<vmem>>, vector<1x32xf32>
    %221 = vector.broadcast %220 : vector<1x32xf32> to vector<16x32xf32>
    %222 = arith.addf %219, %221 : vector<16x32xf32>
    %c0_80 = arith.constant 0 : index
    %c0_81 = arith.constant 0 : index
    %223 = vector.load %arg4[%c0_80, %c0_81] : memref<4896x128xbf16, #tpu.memory_space<vmem>>, vector<32x32xbf16>
    %cst_82 = arith.constant dense<0.000000e+00> : vector<32xf32>
    %224 = vector.multi_reduction <add>, %222, %cst_82 [0] : vector<16x32xf32> to vector<32xf32>
    %225 = vector.shape_cast %224 : vector<32xf32> to vector<1x32xf32>
    %226 = arith.truncf %225 : vector<1x32xf32> to vector<1x32xbf16>
    %cst_83 = arith.constant dense<0.000000e+00> : vector<1x32xf32>
    %227 = tpu.matmul %226, %223, %cst_83 {dimension_numbers = #tpu.dot_dimension_numbers<[1], [0], [0], [1], [0, 0, 1, 1], [], []>} : vector<1x32xbf16>, vector<32x32xbf16>, vector<1x32xf32> -> vector<1x32xf32>
    %cst_84 = arith.constant 1.562500e-02 : f32
    %228 = vector.broadcast %cst_84 : f32 to vector<1x32xf32>
    %229 = arith.mulf %227, %228 : vector<1x32xf32>
    %230 = vector.broadcast %229 : vector<1x32xf32> to vector<16x32xf32>
    %231 = arith.subf %222, %230 : vector<16x32xf32>
    %232 = arith.mulf %231, %231 : vector<16x32xf32>
    %cst_85 = arith.constant dense<0.000000e+00> : vector<32xf32>
    %233 = vector.multi_reduction <add>, %232, %cst_85 [0] : vector<16x32xf32> to vector<32xf32>
    %234 = vector.shape_cast %233 : vector<32xf32> to vector<1x32xf32>
    %235 = arith.truncf %234 : vector<1x32xf32> to vector<1x32xbf16>
    %cst_86 = arith.constant dense<0.000000e+00> : vector<1x32xf32>
    %236 = tpu.matmul %235, %223, %cst_86 {dimension_numbers = #tpu.dot_dimension_numbers<[1], [0], [0], [1], [0, 0, 1, 1], [], []>} : vector<1x32xbf16>, vector<32x32xbf16>, vector<1x32xf32> -> vector<1x32xf32>
    %cst_87 = arith.constant 1.562500e-02 : f32
    %237 = vector.broadcast %cst_87 : f32 to vector<1x32xf32>
    %238 = arith.mulf %236, %237 : vector<1x32xf32>
    %cst_88 = arith.constant 9.99999974E-6 : f32
    %239 = vector.broadcast %cst_88 : f32 to vector<1x32xf32>
    %240 = arith.addf %238, %239 : vector<1x32xf32>
    %241 = math.rsqrt %240 : vector<1x32xf32>
    %242 = vector.broadcast %241 : vector<1x32xf32> to vector<16x32xf32>
    %243 = arith.mulf %231, %242 : vector<16x32xf32>
    %c13 = arith.constant 13 : index
    %c0_89 = arith.constant 0 : index
    %244 = vector.load %arg6[%c13, %c0_89] : memref<64x128xf32, #tpu.memory_space<vmem>>, vector<1x32xf32>
    %245 = vector.broadcast %244 : vector<1x32xf32> to vector<16x32xf32>
    %246 = arith.mulf %243, %245 : vector<16x32xf32>
    %c14 = arith.constant 14 : index
    %c0_90 = arith.constant 0 : index
    %247 = vector.load %arg6[%c14, %c0_90] : memref<64x128xf32, #tpu.memory_space<vmem>>, vector<1x32xf32>
    %248 = vector.broadcast %247 : vector<1x32xf32> to vector<16x32xf32>
    %249 = arith.addf %246, %248 : vector<16x32xf32>
    %cst_91 = arith.constant 2.000000e+01 : f32
    %250 = vector.broadcast %cst_91 : f32 to vector<16x32xf32>
    %251 = arith.cmpf ogt, %249, %250 : vector<16x32xf32>
    %cst_92 = arith.constant 2.000000e+01 : f32
    %252 = vector.broadcast %cst_92 : f32 to vector<16x32xf32>
    %253 = arith.minimumf %249, %252 : vector<16x32xf32>
    %254 = math.exp %253 : vector<16x32xf32>
    %255 = math.log1p %254 : vector<16x32xf32>
    %256 = arith.select %251, %249, %255 : vector<16x32xi1>, vector<16x32xf32>
    %257 = math.tanh %256 : vector<16x32xf32>
    %258 = arith.mulf %249, %257 : vector<16x32xf32>
    %259 = arith.addf %258, %152 : vector<16x32xf32>
    %cst_93 = arith.constant 0.000000e+00 : f32
    %260 = vector.broadcast %cst_93 : f32 to vector<1x32xf32>
    %261 = tpu.concatenate %260, %259, %260 in 0 : vector<1x32xf32>, vector<16x32xf32>, vector<1x32xf32> -> vector<18x32xf32>
    %262 = vector.extract_strided_slice %261 {offsets = [0, 0], sizes = [16, 32], strides = [1, 1]} : vector<18x32xf32> to vector<16x32xf32>
    %263 = vector.extract_strided_slice %261 {offsets = [1, 0], sizes = [16, 32], strides = [1, 1]} : vector<18x32xf32> to vector<16x32xf32>
    %264 = vector.extract_strided_slice %261 {offsets = [2, 0], sizes = [16, 32], strides = [1, 1]} : vector<18x32xf32> to vector<16x32xf32>
    %265 = tpu.concatenate %262, %263, %264 in 1 : vector<16x32xf32>, vector<16x32xf32>, vector<16x32xf32> -> vector<16x96xf32>
    %c4480 = arith.constant 4480 : index
    %c0_94 = arith.constant 0 : index
    %266 = vector.load %arg4[%c4480, %c0_94] : memref<4896x128xbf16, #tpu.memory_space<vmem>>, vector<96x32xbf16>
    %267 = arith.truncf %265 : vector<16x96xf32> to vector<16x96xbf16>
    %cst_95 = arith.constant dense<0.000000e+00> : vector<16x32xf32>
    %268 = tpu.matmul %267, %266, %cst_95 {dimension_numbers = #tpu.dot_dimension_numbers<[1], [0], [0], [1], [0, 0, 1, 1], [], []>} : vector<16x96xbf16>, vector<96x32xbf16>, vector<16x32xf32> -> vector<16x32xf32>
    %c53 = arith.constant 53 : index
    %c0_96 = arith.constant 0 : index
    %269 = vector.load %arg6[%c53, %c0_96] : memref<64x128xf32, #tpu.memory_space<vmem>>, vector<1x32xf32>
    %270 = vector.broadcast %269 : vector<1x32xf32> to vector<16x32xf32>
    %271 = arith.addf %268, %270 : vector<16x32xf32>
    %c96 = arith.constant 96 : index
    %c0_97 = arith.constant 0 : index
    %272 = vector.load %arg4[%c96, %c0_97] : memref<4896x128xbf16, #tpu.memory_space<vmem>>, vector<8x16xbf16>
    %273 = arith.truncf %271 : vector<16x32xf32> to vector<16x32xbf16>
    %cst_98 = arith.constant dense<0.000000e+00> : vector<8x32xf32>
    %274 = tpu.matmul %272, %273, %cst_98 {dimension_numbers = #tpu.dot_dimension_numbers<[1], [0], [0], [1], [0, 0, 1, 1], [], []>} : vector<8x16xbf16>, vector<16x32xbf16>, vector<8x32xf32> -> vector<8x32xf32>
    %cst_99 = arith.constant 0.000000e+00 : f32
    %275 = vector.broadcast %cst_99 : f32 to vector<2x32xf32>
    %276 = tpu.concatenate %275, %274, %275 in 0 : vector<2x32xf32>, vector<8x32xf32>, vector<2x32xf32> -> vector<12x32xf32>
    %277 = vector.extract_strided_slice %276 {offsets = [0, 0], sizes = [8, 32], strides = [1, 1]} : vector<12x32xf32> to vector<8x32xf32>
    %278 = vector.extract_strided_slice %276 {offsets = [1, 0], sizes = [8, 32], strides = [1, 1]} : vector<12x32xf32> to vector<8x32xf32>
    %279 = vector.extract_strided_slice %276 {offsets = [2, 0], sizes = [8, 32], strides = [1, 1]} : vector<12x32xf32> to vector<8x32xf32>
    %280 = vector.extract_strided_slice %276 {offsets = [3, 0], sizes = [8, 32], strides = [1, 1]} : vector<12x32xf32> to vector<8x32xf32>
    %281 = vector.extract_strided_slice %276 {offsets = [4, 0], sizes = [8, 32], strides = [1, 1]} : vector<12x32xf32> to vector<8x32xf32>
    %282 = tpu.concatenate %277, %278, %279, %280, %281 in 1 : vector<8x32xf32>, vector<8x32xf32>, vector<8x32xf32>, vector<8x32xf32>, vector<8x32xf32> -> vector<8x160xf32>
    %c800 = arith.constant 800 : index
    %c0_100 = arith.constant 0 : index
    %283 = vector.load %arg4[%c800, %c0_100] : memref<4896x128xbf16, #tpu.memory_space<vmem>>, vector<160x64xbf16>
    %284 = arith.truncf %282 : vector<8x160xf32> to vector<8x160xbf16>
    %cst_101 = arith.constant dense<0.000000e+00> : vector<8x64xf32>
    %285 = tpu.matmul %284, %283, %cst_101 {dimension_numbers = #tpu.dot_dimension_numbers<[1], [0], [0], [1], [0, 0, 1, 1], [], []>} : vector<8x160xbf16>, vector<160x64xbf16>, vector<8x64xf32> -> vector<8x64xf32>
    %c15 = arith.constant 15 : index
    %c0_102 = arith.constant 0 : index
    %286 = vector.load %arg6[%c15, %c0_102] : memref<64x128xf32, #tpu.memory_space<vmem>>, vector<1x64xf32>
    %287 = vector.broadcast %286 : vector<1x64xf32> to vector<8x64xf32>
    %288 = arith.addf %285, %287 : vector<8x64xf32>
    %c32 = arith.constant 32 : index
    %c0_103 = arith.constant 0 : index
    %289 = vector.load %arg4[%c32, %c0_103] : memref<4896x128xbf16, #tpu.memory_space<vmem>>, vector<64x64xbf16>
    %cst_104 = arith.constant dense<0.000000e+00> : vector<64xf32>
    %290 = vector.multi_reduction <add>, %288, %cst_104 [0] : vector<8x64xf32> to vector<64xf32>
    %291 = vector.shape_cast %290 : vector<64xf32> to vector<1x64xf32>
    %292 = arith.truncf %291 : vector<1x64xf32> to vector<1x64xbf16>
    %cst_105 = arith.constant dense<0.000000e+00> : vector<1x64xf32>
    %293 = tpu.matmul %292, %289, %cst_105 {dimension_numbers = #tpu.dot_dimension_numbers<[1], [0], [0], [1], [0, 0, 1, 1], [], []>} : vector<1x64xbf16>, vector<64x64xbf16>, vector<1x64xf32> -> vector<1x64xf32>
    %cst_106 = arith.constant 1.562500e-02 : f32
    %294 = vector.broadcast %cst_106 : f32 to vector<1x64xf32>
    %295 = arith.mulf %293, %294 : vector<1x64xf32>
    %296 = vector.broadcast %295 : vector<1x64xf32> to vector<8x64xf32>
    %297 = arith.subf %288, %296 : vector<8x64xf32>
    %298 = arith.mulf %297, %297 : vector<8x64xf32>
    %cst_107 = arith.constant dense<0.000000e+00> : vector<64xf32>
    %299 = vector.multi_reduction <add>, %298, %cst_107 [0] : vector<8x64xf32> to vector<64xf32>
    %300 = vector.shape_cast %299 : vector<64xf32> to vector<1x64xf32>
    %301 = arith.truncf %300 : vector<1x64xf32> to vector<1x64xbf16>
    %cst_108 = arith.constant dense<0.000000e+00> : vector<1x64xf32>
    %302 = tpu.matmul %301, %289, %cst_108 {dimension_numbers = #tpu.dot_dimension_numbers<[1], [0], [0], [1], [0, 0, 1, 1], [], []>} : vector<1x64xbf16>, vector<64x64xbf16>, vector<1x64xf32> -> vector<1x64xf32>
    %cst_109 = arith.constant 1.562500e-02 : f32
    %303 = vector.broadcast %cst_109 : f32 to vector<1x64xf32>
    %304 = arith.mulf %302, %303 : vector<1x64xf32>
    %cst_110 = arith.constant 9.99999974E-6 : f32
    %305 = vector.broadcast %cst_110 : f32 to vector<1x64xf32>
    %306 = arith.addf %304, %305 : vector<1x64xf32>
    %307 = math.rsqrt %306 : vector<1x64xf32>
    %308 = vector.broadcast %307 : vector<1x64xf32> to vector<8x64xf32>
    %309 = arith.mulf %297, %308 : vector<8x64xf32>
    %c16 = arith.constant 16 : index
    %c0_111 = arith.constant 0 : index
    %310 = vector.load %arg6[%c16, %c0_111] : memref<64x128xf32, #tpu.memory_space<vmem>>, vector<1x64xf32>
    %311 = vector.broadcast %310 : vector<1x64xf32> to vector<8x64xf32>
    %312 = arith.mulf %309, %311 : vector<8x64xf32>
    %c17 = arith.constant 17 : index
    %c0_112 = arith.constant 0 : index
    %313 = vector.load %arg6[%c17, %c0_112] : memref<64x128xf32, #tpu.memory_space<vmem>>, vector<1x64xf32>
    %314 = vector.broadcast %313 : vector<1x64xf32> to vector<8x64xf32>
    %315 = arith.addf %312, %314 : vector<8x64xf32>
    %cst_113 = arith.constant 2.000000e+01 : f32
    %316 = vector.broadcast %cst_113 : f32 to vector<8x64xf32>
    %317 = arith.cmpf ogt, %315, %316 : vector<8x64xf32>
    %cst_114 = arith.constant 2.000000e+01 : f32
    %318 = vector.broadcast %cst_114 : f32 to vector<8x64xf32>
    %319 = arith.minimumf %315, %318 : vector<8x64xf32>
    %320 = math.exp %319 : vector<8x64xf32>
    %321 = math.log1p %320 : vector<8x64xf32>
    %322 = arith.select %317, %315, %321 : vector<8x64xi1>, vector<8x64xf32>
    %323 = math.tanh %322 : vector<8x64xf32>
    %324 = arith.mulf %315, %323 : vector<8x64xf32>
    %325 = vector.extract_strided_slice %37 {offsets = [0, 512], sizes = [1, 64], strides = [1, 1]} : vector<1x2048xf32> to vector<1x64xf32>
    %326 = vector.extract_strided_slice %37 {offsets = [0, 640], sizes = [1, 64], strides = [1, 1]} : vector<1x2048xf32> to vector<1x64xf32>
    %327 = vector.broadcast %325 : vector<1x64xf32> to vector<8x64xf32>
    %328 = arith.mulf %327, %324 : vector<8x64xf32>
    %329 = vector.broadcast %326 : vector<1x64xf32> to vector<8x64xf32>
    %330 = arith.addf %328, %329 : vector<8x64xf32>
    %cst_115 = arith.constant 0.000000e+00 : f32
    %331 = vector.broadcast %cst_115 : f32 to vector<2x64xf32>
    %332 = tpu.concatenate %331, %330, %331 in 0 : vector<2x64xf32>, vector<8x64xf32>, vector<2x64xf32> -> vector<12x64xf32>
    %333 = vector.extract_strided_slice %332 {offsets = [0, 0], sizes = [8, 64], strides = [1, 1]} : vector<12x64xf32> to vector<8x64xf32>
    %334 = vector.extract_strided_slice %332 {offsets = [1, 0], sizes = [8, 64], strides = [1, 1]} : vector<12x64xf32> to vector<8x64xf32>
    %335 = vector.extract_strided_slice %332 {offsets = [2, 0], sizes = [8, 64], strides = [1, 1]} : vector<12x64xf32> to vector<8x64xf32>
    %336 = vector.extract_strided_slice %332 {offsets = [3, 0], sizes = [8, 64], strides = [1, 1]} : vector<12x64xf32> to vector<8x64xf32>
    %337 = vector.extract_strided_slice %332 {offsets = [4, 0], sizes = [8, 64], strides = [1, 1]} : vector<12x64xf32> to vector<8x64xf32>
    %338 = tpu.concatenate %333, %334, %335, %336, %337 in 1 : vector<8x64xf32>, vector<8x64xf32>, vector<8x64xf32>, vector<8x64xf32>, vector<8x64xf32> -> vector<8x320xf32>
    %c960 = arith.constant 960 : index
    %c0_116 = arith.constant 0 : index
    %339 = vector.load %arg4[%c960, %c0_116] : memref<4896x128xbf16, #tpu.memory_space<vmem>>, vector<320x64xbf16>
    %340 = arith.truncf %338 : vector<8x320xf32> to vector<8x320xbf16>
    %cst_117 = arith.constant dense<0.000000e+00> : vector<8x64xf32>
    %341 = tpu.matmul %340, %339, %cst_117 {dimension_numbers = #tpu.dot_dimension_numbers<[1], [0], [0], [1], [0, 0, 1, 1], [], []>} : vector<8x320xbf16>, vector<320x64xbf16>, vector<8x64xf32> -> vector<8x64xf32>
    %c18 = arith.constant 18 : index
    %c0_118 = arith.constant 0 : index
    %342 = vector.load %arg6[%c18, %c0_118] : memref<64x128xf32, #tpu.memory_space<vmem>>, vector<1x64xf32>
    %343 = vector.broadcast %342 : vector<1x64xf32> to vector<8x64xf32>
    %344 = arith.addf %341, %343 : vector<8x64xf32>
    %c32_119 = arith.constant 32 : index
    %c0_120 = arith.constant 0 : index
    %345 = vector.load %arg4[%c32_119, %c0_120] : memref<4896x128xbf16, #tpu.memory_space<vmem>>, vector<64x64xbf16>
    %cst_121 = arith.constant dense<0.000000e+00> : vector<64xf32>
    %346 = vector.multi_reduction <add>, %344, %cst_121 [0] : vector<8x64xf32> to vector<64xf32>
    %347 = vector.shape_cast %346 : vector<64xf32> to vector<1x64xf32>
    %348 = arith.truncf %347 : vector<1x64xf32> to vector<1x64xbf16>
    %cst_122 = arith.constant dense<0.000000e+00> : vector<1x64xf32>
    %349 = tpu.matmul %348, %345, %cst_122 {dimension_numbers = #tpu.dot_dimension_numbers<[1], [0], [0], [1], [0, 0, 1, 1], [], []>} : vector<1x64xbf16>, vector<64x64xbf16>, vector<1x64xf32> -> vector<1x64xf32>
    %cst_123 = arith.constant 1.562500e-02 : f32
    %350 = vector.broadcast %cst_123 : f32 to vector<1x64xf32>
    %351 = arith.mulf %349, %350 : vector<1x64xf32>
    %352 = vector.broadcast %351 : vector<1x64xf32> to vector<8x64xf32>
    %353 = arith.subf %344, %352 : vector<8x64xf32>
    %354 = arith.mulf %353, %353 : vector<8x64xf32>
    %cst_124 = arith.constant dense<0.000000e+00> : vector<64xf32>
    %355 = vector.multi_reduction <add>, %354, %cst_124 [0] : vector<8x64xf32> to vector<64xf32>
    %356 = vector.shape_cast %355 : vector<64xf32> to vector<1x64xf32>
    %357 = arith.truncf %356 : vector<1x64xf32> to vector<1x64xbf16>
    %cst_125 = arith.constant dense<0.000000e+00> : vector<1x64xf32>
    %358 = tpu.matmul %357, %345, %cst_125 {dimension_numbers = #tpu.dot_dimension_numbers<[1], [0], [0], [1], [0, 0, 1, 1], [], []>} : vector<1x64xbf16>, vector<64x64xbf16>, vector<1x64xf32> -> vector<1x64xf32>
    %cst_126 = arith.constant 1.562500e-02 : f32
    %359 = vector.broadcast %cst_126 : f32 to vector<1x64xf32>
    %360 = arith.mulf %358, %359 : vector<1x64xf32>
    %cst_127 = arith.constant 9.99999974E-6 : f32
    %361 = vector.broadcast %cst_127 : f32 to vector<1x64xf32>
    %362 = arith.addf %360, %361 : vector<1x64xf32>
    %363 = math.rsqrt %362 : vector<1x64xf32>
    %364 = vector.broadcast %363 : vector<1x64xf32> to vector<8x64xf32>
    %365 = arith.mulf %353, %364 : vector<8x64xf32>
    %c19 = arith.constant 19 : index
    %c0_128 = arith.constant 0 : index
    %366 = vector.load %arg6[%c19, %c0_128] : memref<64x128xf32, #tpu.memory_space<vmem>>, vector<1x64xf32>
    %367 = vector.broadcast %366 : vector<1x64xf32> to vector<8x64xf32>
    %368 = arith.mulf %365, %367 : vector<8x64xf32>
    %c20 = arith.constant 20 : index
    %c0_129 = arith.constant 0 : index
    %369 = vector.load %arg6[%c20, %c0_129] : memref<64x128xf32, #tpu.memory_space<vmem>>, vector<1x64xf32>
    %370 = vector.broadcast %369 : vector<1x64xf32> to vector<8x64xf32>
    %371 = arith.addf %368, %370 : vector<8x64xf32>
    %cst_130 = arith.constant 2.000000e+01 : f32
    %372 = vector.broadcast %cst_130 : f32 to vector<8x64xf32>
    %373 = arith.cmpf ogt, %371, %372 : vector<8x64xf32>
    %cst_131 = arith.constant 2.000000e+01 : f32
    %374 = vector.broadcast %cst_131 : f32 to vector<8x64xf32>
    %375 = arith.minimumf %371, %374 : vector<8x64xf32>
    %376 = math.exp %375 : vector<8x64xf32>
    %377 = math.log1p %376 : vector<8x64xf32>
    %378 = arith.select %373, %371, %377 : vector<8x64xi1>, vector<8x64xf32>
    %379 = math.tanh %378 : vector<8x64xf32>
    %380 = arith.mulf %371, %379 : vector<8x64xf32>
    %c1280 = arith.constant 1280 : index
    %c0_132 = arith.constant 0 : index
    %381 = vector.load %arg4[%c1280, %c0_132] : memref<4896x128xbf16, #tpu.memory_space<vmem>>, vector<32x64xbf16>
    %382 = arith.truncf %274 : vector<8x32xf32> to vector<8x32xbf16>
    %cst_133 = arith.constant dense<0.000000e+00> : vector<8x64xf32>
    %383 = tpu.matmul %382, %381, %cst_133 {dimension_numbers = #tpu.dot_dimension_numbers<[1], [0], [0], [1], [0, 0, 1, 1], [], []>} : vector<8x32xbf16>, vector<32x64xbf16>, vector<8x64xf32> -> vector<8x64xf32>
    %c21 = arith.constant 21 : index
    %c0_134 = arith.constant 0 : index
    %384 = vector.load %arg6[%c21, %c0_134] : memref<64x128xf32, #tpu.memory_space<vmem>>, vector<1x64xf32>
    %385 = vector.broadcast %384 : vector<1x64xf32> to vector<8x64xf32>
    %386 = arith.addf %383, %385 : vector<8x64xf32>
    %387 = arith.addf %380, %386 : vector<8x64xf32>
    %cst_135 = arith.constant 0.000000e+00 : f32
    %388 = vector.broadcast %cst_135 : f32 to vector<2x64xf32>
    %389 = tpu.concatenate %388, %387, %388 in 0 : vector<2x64xf32>, vector<8x64xf32>, vector<2x64xf32> -> vector<12x64xf32>
    %390 = vector.extract_strided_slice %389 {offsets = [0, 0], sizes = [8, 64], strides = [1, 1]} : vector<12x64xf32> to vector<8x64xf32>
    %391 = vector.extract_strided_slice %389 {offsets = [1, 0], sizes = [8, 64], strides = [1, 1]} : vector<12x64xf32> to vector<8x64xf32>
    %392 = vector.extract_strided_slice %389 {offsets = [2, 0], sizes = [8, 64], strides = [1, 1]} : vector<12x64xf32> to vector<8x64xf32>
    %393 = vector.extract_strided_slice %389 {offsets = [3, 0], sizes = [8, 64], strides = [1, 1]} : vector<12x64xf32> to vector<8x64xf32>
    %394 = vector.extract_strided_slice %389 {offsets = [4, 0], sizes = [8, 64], strides = [1, 1]} : vector<12x64xf32> to vector<8x64xf32>
    %395 = tpu.concatenate %390, %391, %392, %393, %394 in 1 : vector<8x64xf32>, vector<8x64xf32>, vector<8x64xf32>, vector<8x64xf32>, vector<8x64xf32> -> vector<8x320xf32>
    %c1312 = arith.constant 1312 : index
    %c0_136 = arith.constant 0 : index
    %396 = vector.load %arg4[%c1312, %c0_136] : memref<4896x128xbf16, #tpu.memory_space<vmem>>, vector<320x64xbf16>
    %397 = arith.truncf %395 : vector<8x320xf32> to vector<8x320xbf16>
    %cst_137 = arith.constant dense<0.000000e+00> : vector<8x64xf32>
    %398 = tpu.matmul %397, %396, %cst_137 {dimension_numbers = #tpu.dot_dimension_numbers<[1], [0], [0], [1], [0, 0, 1, 1], [], []>} : vector<8x320xbf16>, vector<320x64xbf16>, vector<8x64xf32> -> vector<8x64xf32>
    %c22 = arith.constant 22 : index
    %c0_138 = arith.constant 0 : index
    %399 = vector.load %arg6[%c22, %c0_138] : memref<64x128xf32, #tpu.memory_space<vmem>>, vector<1x64xf32>
    %400 = vector.broadcast %399 : vector<1x64xf32> to vector<8x64xf32>
    %401 = arith.addf %398, %400 : vector<8x64xf32>
    %c32_139 = arith.constant 32 : index
    %c0_140 = arith.constant 0 : index
    %402 = vector.load %arg4[%c32_139, %c0_140] : memref<4896x128xbf16, #tpu.memory_space<vmem>>, vector<64x64xbf16>
    %cst_141 = arith.constant dense<0.000000e+00> : vector<64xf32>
    %403 = vector.multi_reduction <add>, %401, %cst_141 [0] : vector<8x64xf32> to vector<64xf32>
    %404 = vector.shape_cast %403 : vector<64xf32> to vector<1x64xf32>
    %405 = arith.truncf %404 : vector<1x64xf32> to vector<1x64xbf16>
    %cst_142 = arith.constant dense<0.000000e+00> : vector<1x64xf32>
    %406 = tpu.matmul %405, %402, %cst_142 {dimension_numbers = #tpu.dot_dimension_numbers<[1], [0], [0], [1], [0, 0, 1, 1], [], []>} : vector<1x64xbf16>, vector<64x64xbf16>, vector<1x64xf32> -> vector<1x64xf32>
    %cst_143 = arith.constant 1.562500e-02 : f32
    %407 = vector.broadcast %cst_143 : f32 to vector<1x64xf32>
    %408 = arith.mulf %406, %407 : vector<1x64xf32>
    %409 = vector.broadcast %408 : vector<1x64xf32> to vector<8x64xf32>
    %410 = arith.subf %401, %409 : vector<8x64xf32>
    %411 = arith.mulf %410, %410 : vector<8x64xf32>
    %cst_144 = arith.constant dense<0.000000e+00> : vector<64xf32>
    %412 = vector.multi_reduction <add>, %411, %cst_144 [0] : vector<8x64xf32> to vector<64xf32>
    %413 = vector.shape_cast %412 : vector<64xf32> to vector<1x64xf32>
    %414 = arith.truncf %413 : vector<1x64xf32> to vector<1x64xbf16>
    %cst_145 = arith.constant dense<0.000000e+00> : vector<1x64xf32>
    %415 = tpu.matmul %414, %402, %cst_145 {dimension_numbers = #tpu.dot_dimension_numbers<[1], [0], [0], [1], [0, 0, 1, 1], [], []>} : vector<1x64xbf16>, vector<64x64xbf16>, vector<1x64xf32> -> vector<1x64xf32>
    %cst_146 = arith.constant 1.562500e-02 : f32
    %416 = vector.broadcast %cst_146 : f32 to vector<1x64xf32>
    %417 = arith.mulf %415, %416 : vector<1x64xf32>
    %cst_147 = arith.constant 9.99999974E-6 : f32
    %418 = vector.broadcast %cst_147 : f32 to vector<1x64xf32>
    %419 = arith.addf %417, %418 : vector<1x64xf32>
    %420 = math.rsqrt %419 : vector<1x64xf32>
    %421 = vector.broadcast %420 : vector<1x64xf32> to vector<8x64xf32>
    %422 = arith.mulf %410, %421 : vector<8x64xf32>
    %c23 = arith.constant 23 : index
    %c0_148 = arith.constant 0 : index
    %423 = vector.load %arg6[%c23, %c0_148] : memref<64x128xf32, #tpu.memory_space<vmem>>, vector<1x64xf32>
    %424 = vector.broadcast %423 : vector<1x64xf32> to vector<8x64xf32>
    %425 = arith.mulf %422, %424 : vector<8x64xf32>
    %c24 = arith.constant 24 : index
    %c0_149 = arith.constant 0 : index
    %426 = vector.load %arg6[%c24, %c0_149] : memref<64x128xf32, #tpu.memory_space<vmem>>, vector<1x64xf32>
    %427 = vector.broadcast %426 : vector<1x64xf32> to vector<8x64xf32>
    %428 = arith.addf %425, %427 : vector<8x64xf32>
    %cst_150 = arith.constant 2.000000e+01 : f32
    %429 = vector.broadcast %cst_150 : f32 to vector<8x64xf32>
    %430 = arith.cmpf ogt, %428, %429 : vector<8x64xf32>
    %cst_151 = arith.constant 2.000000e+01 : f32
    %431 = vector.broadcast %cst_151 : f32 to vector<8x64xf32>
    %432 = arith.minimumf %428, %431 : vector<8x64xf32>
    %433 = math.exp %432 : vector<8x64xf32>
    %434 = math.log1p %433 : vector<8x64xf32>
    %435 = arith.select %430, %428, %434 : vector<8x64xi1>, vector<8x64xf32>
    %436 = math.tanh %435 : vector<8x64xf32>
    %437 = arith.mulf %428, %436 : vector<8x64xf32>
    %438 = vector.extract_strided_slice %37 {offsets = [0, 768], sizes = [1, 64], strides = [1, 1]} : vector<1x2048xf32> to vector<1x64xf32>
    %439 = vector.extract_strided_slice %37 {offsets = [0, 896], sizes = [1, 64], strides = [1, 1]} : vector<1x2048xf32> to vector<1x64xf32>
    %440 = vector.broadcast %438 : vector<1x64xf32> to vector<8x64xf32>
    %441 = arith.mulf %440, %437 : vector<8x64xf32>
    %442 = vector.broadcast %439 : vector<1x64xf32> to vector<8x64xf32>
    %443 = arith.addf %441, %442 : vector<8x64xf32>
    %cst_152 = arith.constant 0.000000e+00 : f32
    %444 = vector.broadcast %cst_152 : f32 to vector<2x64xf32>
    %445 = tpu.concatenate %444, %443, %444 in 0 : vector<2x64xf32>, vector<8x64xf32>, vector<2x64xf32> -> vector<12x64xf32>
    %446 = vector.extract_strided_slice %445 {offsets = [0, 0], sizes = [8, 64], strides = [1, 1]} : vector<12x64xf32> to vector<8x64xf32>
    %447 = vector.extract_strided_slice %445 {offsets = [1, 0], sizes = [8, 64], strides = [1, 1]} : vector<12x64xf32> to vector<8x64xf32>
    %448 = vector.extract_strided_slice %445 {offsets = [2, 0], sizes = [8, 64], strides = [1, 1]} : vector<12x64xf32> to vector<8x64xf32>
    %449 = vector.extract_strided_slice %445 {offsets = [3, 0], sizes = [8, 64], strides = [1, 1]} : vector<12x64xf32> to vector<8x64xf32>
    %450 = vector.extract_strided_slice %445 {offsets = [4, 0], sizes = [8, 64], strides = [1, 1]} : vector<12x64xf32> to vector<8x64xf32>
    %451 = tpu.concatenate %446, %447, %448, %449, %450 in 1 : vector<8x64xf32>, vector<8x64xf32>, vector<8x64xf32>, vector<8x64xf32>, vector<8x64xf32> -> vector<8x320xf32>
    %c1632 = arith.constant 1632 : index
    %c0_153 = arith.constant 0 : index
    %452 = vector.load %arg4[%c1632, %c0_153] : memref<4896x128xbf16, #tpu.memory_space<vmem>>, vector<320x64xbf16>
    %453 = arith.truncf %451 : vector<8x320xf32> to vector<8x320xbf16>
    %cst_154 = arith.constant dense<0.000000e+00> : vector<8x64xf32>
    %454 = tpu.matmul %453, %452, %cst_154 {dimension_numbers = #tpu.dot_dimension_numbers<[1], [0], [0], [1], [0, 0, 1, 1], [], []>} : vector<8x320xbf16>, vector<320x64xbf16>, vector<8x64xf32> -> vector<8x64xf32>
    %c25 = arith.constant 25 : index
    %c0_155 = arith.constant 0 : index
    %455 = vector.load %arg6[%c25, %c0_155] : memref<64x128xf32, #tpu.memory_space<vmem>>, vector<1x64xf32>
    %456 = vector.broadcast %455 : vector<1x64xf32> to vector<8x64xf32>
    %457 = arith.addf %454, %456 : vector<8x64xf32>
    %c32_156 = arith.constant 32 : index
    %c0_157 = arith.constant 0 : index
    %458 = vector.load %arg4[%c32_156, %c0_157] : memref<4896x128xbf16, #tpu.memory_space<vmem>>, vector<64x64xbf16>
    %cst_158 = arith.constant dense<0.000000e+00> : vector<64xf32>
    %459 = vector.multi_reduction <add>, %457, %cst_158 [0] : vector<8x64xf32> to vector<64xf32>
    %460 = vector.shape_cast %459 : vector<64xf32> to vector<1x64xf32>
    %461 = arith.truncf %460 : vector<1x64xf32> to vector<1x64xbf16>
    %cst_159 = arith.constant dense<0.000000e+00> : vector<1x64xf32>
    %462 = tpu.matmul %461, %458, %cst_159 {dimension_numbers = #tpu.dot_dimension_numbers<[1], [0], [0], [1], [0, 0, 1, 1], [], []>} : vector<1x64xbf16>, vector<64x64xbf16>, vector<1x64xf32> -> vector<1x64xf32>
    %cst_160 = arith.constant 1.562500e-02 : f32
    %463 = vector.broadcast %cst_160 : f32 to vector<1x64xf32>
    %464 = arith.mulf %462, %463 : vector<1x64xf32>
    %465 = vector.broadcast %464 : vector<1x64xf32> to vector<8x64xf32>
    %466 = arith.subf %457, %465 : vector<8x64xf32>
    %467 = arith.mulf %466, %466 : vector<8x64xf32>
    %cst_161 = arith.constant dense<0.000000e+00> : vector<64xf32>
    %468 = vector.multi_reduction <add>, %467, %cst_161 [0] : vector<8x64xf32> to vector<64xf32>
    %469 = vector.shape_cast %468 : vector<64xf32> to vector<1x64xf32>
    %470 = arith.truncf %469 : vector<1x64xf32> to vector<1x64xbf16>
    %cst_162 = arith.constant dense<0.000000e+00> : vector<1x64xf32>
    %471 = tpu.matmul %470, %458, %cst_162 {dimension_numbers = #tpu.dot_dimension_numbers<[1], [0], [0], [1], [0, 0, 1, 1], [], []>} : vector<1x64xbf16>, vector<64x64xbf16>, vector<1x64xf32> -> vector<1x64xf32>
    %cst_163 = arith.constant 1.562500e-02 : f32
    %472 = vector.broadcast %cst_163 : f32 to vector<1x64xf32>
    %473 = arith.mulf %471, %472 : vector<1x64xf32>
    %cst_164 = arith.constant 9.99999974E-6 : f32
    %474 = vector.broadcast %cst_164 : f32 to vector<1x64xf32>
    %475 = arith.addf %473, %474 : vector<1x64xf32>
    %476 = math.rsqrt %475 : vector<1x64xf32>
    %477 = vector.broadcast %476 : vector<1x64xf32> to vector<8x64xf32>
    %478 = arith.mulf %466, %477 : vector<8x64xf32>
    %c26 = arith.constant 26 : index
    %c0_165 = arith.constant 0 : index
    %479 = vector.load %arg6[%c26, %c0_165] : memref<64x128xf32, #tpu.memory_space<vmem>>, vector<1x64xf32>
    %480 = vector.broadcast %479 : vector<1x64xf32> to vector<8x64xf32>
    %481 = arith.mulf %478, %480 : vector<8x64xf32>
    %c27 = arith.constant 27 : index
    %c0_166 = arith.constant 0 : index
    %482 = vector.load %arg6[%c27, %c0_166] : memref<64x128xf32, #tpu.memory_space<vmem>>, vector<1x64xf32>
    %483 = vector.broadcast %482 : vector<1x64xf32> to vector<8x64xf32>
    %484 = arith.addf %481, %483 : vector<8x64xf32>
    %cst_167 = arith.constant 2.000000e+01 : f32
    %485 = vector.broadcast %cst_167 : f32 to vector<8x64xf32>
    %486 = arith.cmpf ogt, %484, %485 : vector<8x64xf32>
    %cst_168 = arith.constant 2.000000e+01 : f32
    %487 = vector.broadcast %cst_168 : f32 to vector<8x64xf32>
    %488 = arith.minimumf %484, %487 : vector<8x64xf32>
    %489 = math.exp %488 : vector<8x64xf32>
    %490 = math.log1p %489 : vector<8x64xf32>
    %491 = arith.select %486, %484, %490 : vector<8x64xi1>, vector<8x64xf32>
    %492 = math.tanh %491 : vector<8x64xf32>
    %493 = arith.mulf %484, %492 : vector<8x64xf32>
    %494 = arith.addf %493, %387 : vector<8x64xf32>
    %cst_169 = arith.constant 0.000000e+00 : f32
    %495 = vector.broadcast %cst_169 : f32 to vector<2x64xf32>
    %496 = tpu.concatenate %495, %494, %495 in 0 : vector<2x64xf32>, vector<8x64xf32>, vector<2x64xf32> -> vector<12x64xf32>
    %497 = vector.extract_strided_slice %496 {offsets = [0, 0], sizes = [8, 64], strides = [1, 1]} : vector<12x64xf32> to vector<8x64xf32>
    %498 = vector.extract_strided_slice %496 {offsets = [1, 0], sizes = [8, 64], strides = [1, 1]} : vector<12x64xf32> to vector<8x64xf32>
    %499 = vector.extract_strided_slice %496 {offsets = [2, 0], sizes = [8, 64], strides = [1, 1]} : vector<12x64xf32> to vector<8x64xf32>
    %500 = vector.extract_strided_slice %496 {offsets = [3, 0], sizes = [8, 64], strides = [1, 1]} : vector<12x64xf32> to vector<8x64xf32>
    %501 = vector.extract_strided_slice %496 {offsets = [4, 0], sizes = [8, 64], strides = [1, 1]} : vector<12x64xf32> to vector<8x64xf32>
    %502 = tpu.concatenate %497, %498, %499, %500, %501 in 1 : vector<8x64xf32>, vector<8x64xf32>, vector<8x64xf32>, vector<8x64xf32>, vector<8x64xf32> -> vector<8x320xf32>
    %c1952 = arith.constant 1952 : index
    %c0_170 = arith.constant 0 : index
    %503 = vector.load %arg4[%c1952, %c0_170] : memref<4896x128xbf16, #tpu.memory_space<vmem>>, vector<320x64xbf16>
    %504 = arith.truncf %502 : vector<8x320xf32> to vector<8x320xbf16>
    %cst_171 = arith.constant dense<0.000000e+00> : vector<8x64xf32>
    %505 = tpu.matmul %504, %503, %cst_171 {dimension_numbers = #tpu.dot_dimension_numbers<[1], [0], [0], [1], [0, 0, 1, 1], [], []>} : vector<8x320xbf16>, vector<320x64xbf16>, vector<8x64xf32> -> vector<8x64xf32>
    %c28 = arith.constant 28 : index
    %c0_172 = arith.constant 0 : index
    %506 = vector.load %arg6[%c28, %c0_172] : memref<64x128xf32, #tpu.memory_space<vmem>>, vector<1x64xf32>
    %507 = vector.broadcast %506 : vector<1x64xf32> to vector<8x64xf32>
    %508 = arith.addf %505, %507 : vector<8x64xf32>
    %c32_173 = arith.constant 32 : index
    %c0_174 = arith.constant 0 : index
    %509 = vector.load %arg4[%c32_173, %c0_174] : memref<4896x128xbf16, #tpu.memory_space<vmem>>, vector<64x64xbf16>
    %cst_175 = arith.constant dense<0.000000e+00> : vector<64xf32>
    %510 = vector.multi_reduction <add>, %508, %cst_175 [0] : vector<8x64xf32> to vector<64xf32>
    %511 = vector.shape_cast %510 : vector<64xf32> to vector<1x64xf32>
    %512 = arith.truncf %511 : vector<1x64xf32> to vector<1x64xbf16>
    %cst_176 = arith.constant dense<0.000000e+00> : vector<1x64xf32>
    %513 = tpu.matmul %512, %509, %cst_176 {dimension_numbers = #tpu.dot_dimension_numbers<[1], [0], [0], [1], [0, 0, 1, 1], [], []>} : vector<1x64xbf16>, vector<64x64xbf16>, vector<1x64xf32> -> vector<1x64xf32>
    %cst_177 = arith.constant 1.562500e-02 : f32
    %514 = vector.broadcast %cst_177 : f32 to vector<1x64xf32>
    %515 = arith.mulf %513, %514 : vector<1x64xf32>
    %516 = vector.broadcast %515 : vector<1x64xf32> to vector<8x64xf32>
    %517 = arith.subf %508, %516 : vector<8x64xf32>
    %518 = arith.mulf %517, %517 : vector<8x64xf32>
    %cst_178 = arith.constant dense<0.000000e+00> : vector<64xf32>
    %519 = vector.multi_reduction <add>, %518, %cst_178 [0] : vector<8x64xf32> to vector<64xf32>
    %520 = vector.shape_cast %519 : vector<64xf32> to vector<1x64xf32>
    %521 = arith.truncf %520 : vector<1x64xf32> to vector<1x64xbf16>
    %cst_179 = arith.constant dense<0.000000e+00> : vector<1x64xf32>
    %522 = tpu.matmul %521, %509, %cst_179 {dimension_numbers = #tpu.dot_dimension_numbers<[1], [0], [0], [1], [0, 0, 1, 1], [], []>} : vector<1x64xbf16>, vector<64x64xbf16>, vector<1x64xf32> -> vector<1x64xf32>
    %cst_180 = arith.constant 1.562500e-02 : f32
    %523 = vector.broadcast %cst_180 : f32 to vector<1x64xf32>
    %524 = arith.mulf %522, %523 : vector<1x64xf32>
    %cst_181 = arith.constant 9.99999974E-6 : f32
    %525 = vector.broadcast %cst_181 : f32 to vector<1x64xf32>
    %526 = arith.addf %524, %525 : vector<1x64xf32>
    %527 = math.rsqrt %526 : vector<1x64xf32>
    %528 = vector.broadcast %527 : vector<1x64xf32> to vector<8x64xf32>
    %529 = arith.mulf %517, %528 : vector<8x64xf32>
    %c29 = arith.constant 29 : index
    %c0_182 = arith.constant 0 : index
    %530 = vector.load %arg6[%c29, %c0_182] : memref<64x128xf32, #tpu.memory_space<vmem>>, vector<1x64xf32>
    %531 = vector.broadcast %530 : vector<1x64xf32> to vector<8x64xf32>
    %532 = arith.mulf %529, %531 : vector<8x64xf32>
    %c30 = arith.constant 30 : index
    %c0_183 = arith.constant 0 : index
    %533 = vector.load %arg6[%c30, %c0_183] : memref<64x128xf32, #tpu.memory_space<vmem>>, vector<1x64xf32>
    %534 = vector.broadcast %533 : vector<1x64xf32> to vector<8x64xf32>
    %535 = arith.addf %532, %534 : vector<8x64xf32>
    %cst_184 = arith.constant 2.000000e+01 : f32
    %536 = vector.broadcast %cst_184 : f32 to vector<8x64xf32>
    %537 = arith.cmpf ogt, %535, %536 : vector<8x64xf32>
    %cst_185 = arith.constant 2.000000e+01 : f32
    %538 = vector.broadcast %cst_185 : f32 to vector<8x64xf32>
    %539 = arith.minimumf %535, %538 : vector<8x64xf32>
    %540 = math.exp %539 : vector<8x64xf32>
    %541 = math.log1p %540 : vector<8x64xf32>
    %542 = arith.select %537, %535, %541 : vector<8x64xi1>, vector<8x64xf32>
    %543 = math.tanh %542 : vector<8x64xf32>
    %544 = arith.mulf %535, %543 : vector<8x64xf32>
    %545 = vector.extract_strided_slice %37 {offsets = [0, 1024], sizes = [1, 64], strides = [1, 1]} : vector<1x2048xf32> to vector<1x64xf32>
    %546 = vector.extract_strided_slice %37 {offsets = [0, 1152], sizes = [1, 64], strides = [1, 1]} : vector<1x2048xf32> to vector<1x64xf32>
    %547 = vector.broadcast %545 : vector<1x64xf32> to vector<8x64xf32>
    %548 = arith.mulf %547, %544 : vector<8x64xf32>
    %549 = vector.broadcast %546 : vector<1x64xf32> to vector<8x64xf32>
    %550 = arith.addf %548, %549 : vector<8x64xf32>
    %cst_186 = arith.constant 0.000000e+00 : f32
    %551 = vector.broadcast %cst_186 : f32 to vector<2x64xf32>
    %552 = tpu.concatenate %551, %550, %551 in 0 : vector<2x64xf32>, vector<8x64xf32>, vector<2x64xf32> -> vector<12x64xf32>
    %553 = vector.extract_strided_slice %552 {offsets = [0, 0], sizes = [8, 64], strides = [1, 1]} : vector<12x64xf32> to vector<8x64xf32>
    %554 = vector.extract_strided_slice %552 {offsets = [1, 0], sizes = [8, 64], strides = [1, 1]} : vector<12x64xf32> to vector<8x64xf32>
    %555 = vector.extract_strided_slice %552 {offsets = [2, 0], sizes = [8, 64], strides = [1, 1]} : vector<12x64xf32> to vector<8x64xf32>
    %556 = vector.extract_strided_slice %552 {offsets = [3, 0], sizes = [8, 64], strides = [1, 1]} : vector<12x64xf32> to vector<8x64xf32>
    %557 = vector.extract_strided_slice %552 {offsets = [4, 0], sizes = [8, 64], strides = [1, 1]} : vector<12x64xf32> to vector<8x64xf32>
    %558 = tpu.concatenate %553, %554, %555, %556, %557 in 1 : vector<8x64xf32>, vector<8x64xf32>, vector<8x64xf32>, vector<8x64xf32>, vector<8x64xf32> -> vector<8x320xf32>
    %c2272 = arith.constant 2272 : index
    %c0_187 = arith.constant 0 : index
    %559 = vector.load %arg4[%c2272, %c0_187] : memref<4896x128xbf16, #tpu.memory_space<vmem>>, vector<320x64xbf16>
    %560 = arith.truncf %558 : vector<8x320xf32> to vector<8x320xbf16>
    %cst_188 = arith.constant dense<0.000000e+00> : vector<8x64xf32>
    %561 = tpu.matmul %560, %559, %cst_188 {dimension_numbers = #tpu.dot_dimension_numbers<[1], [0], [0], [1], [0, 0, 1, 1], [], []>} : vector<8x320xbf16>, vector<320x64xbf16>, vector<8x64xf32> -> vector<8x64xf32>
    %c31 = arith.constant 31 : index
    %c0_189 = arith.constant 0 : index
    %562 = vector.load %arg6[%c31, %c0_189] : memref<64x128xf32, #tpu.memory_space<vmem>>, vector<1x64xf32>
    %563 = vector.broadcast %562 : vector<1x64xf32> to vector<8x64xf32>
    %564 = arith.addf %561, %563 : vector<8x64xf32>
    %c32_190 = arith.constant 32 : index
    %c0_191 = arith.constant 0 : index
    %565 = vector.load %arg4[%c32_190, %c0_191] : memref<4896x128xbf16, #tpu.memory_space<vmem>>, vector<64x64xbf16>
    %cst_192 = arith.constant dense<0.000000e+00> : vector<64xf32>
    %566 = vector.multi_reduction <add>, %564, %cst_192 [0] : vector<8x64xf32> to vector<64xf32>
    %567 = vector.shape_cast %566 : vector<64xf32> to vector<1x64xf32>
    %568 = arith.truncf %567 : vector<1x64xf32> to vector<1x64xbf16>
    %cst_193 = arith.constant dense<0.000000e+00> : vector<1x64xf32>
    %569 = tpu.matmul %568, %565, %cst_193 {dimension_numbers = #tpu.dot_dimension_numbers<[1], [0], [0], [1], [0, 0, 1, 1], [], []>} : vector<1x64xbf16>, vector<64x64xbf16>, vector<1x64xf32> -> vector<1x64xf32>
    %cst_194 = arith.constant 1.562500e-02 : f32
    %570 = vector.broadcast %cst_194 : f32 to vector<1x64xf32>
    %571 = arith.mulf %569, %570 : vector<1x64xf32>
    %572 = vector.broadcast %571 : vector<1x64xf32> to vector<8x64xf32>
    %573 = arith.subf %564, %572 : vector<8x64xf32>
    %574 = arith.mulf %573, %573 : vector<8x64xf32>
    %cst_195 = arith.constant dense<0.000000e+00> : vector<64xf32>
    %575 = vector.multi_reduction <add>, %574, %cst_195 [0] : vector<8x64xf32> to vector<64xf32>
    %576 = vector.shape_cast %575 : vector<64xf32> to vector<1x64xf32>
    %577 = arith.truncf %576 : vector<1x64xf32> to vector<1x64xbf16>
    %cst_196 = arith.constant dense<0.000000e+00> : vector<1x64xf32>
    %578 = tpu.matmul %577, %565, %cst_196 {dimension_numbers = #tpu.dot_dimension_numbers<[1], [0], [0], [1], [0, 0, 1, 1], [], []>} : vector<1x64xbf16>, vector<64x64xbf16>, vector<1x64xf32> -> vector<1x64xf32>
    %cst_197 = arith.constant 1.562500e-02 : f32
    %579 = vector.broadcast %cst_197 : f32 to vector<1x64xf32>
    %580 = arith.mulf %578, %579 : vector<1x64xf32>
    %cst_198 = arith.constant 9.99999974E-6 : f32
    %581 = vector.broadcast %cst_198 : f32 to vector<1x64xf32>
    %582 = arith.addf %580, %581 : vector<1x64xf32>
    %583 = math.rsqrt %582 : vector<1x64xf32>
    %584 = vector.broadcast %583 : vector<1x64xf32> to vector<8x64xf32>
    %585 = arith.mulf %573, %584 : vector<8x64xf32>
    %c32_199 = arith.constant 32 : index
    %c0_200 = arith.constant 0 : index
    %586 = vector.load %arg6[%c32_199, %c0_200] : memref<64x128xf32, #tpu.memory_space<vmem>>, vector<1x64xf32>
    %587 = vector.broadcast %586 : vector<1x64xf32> to vector<8x64xf32>
    %588 = arith.mulf %585, %587 : vector<8x64xf32>
    %c33 = arith.constant 33 : index
    %c0_201 = arith.constant 0 : index
    %589 = vector.load %arg6[%c33, %c0_201] : memref<64x128xf32, #tpu.memory_space<vmem>>, vector<1x64xf32>
    %590 = vector.broadcast %589 : vector<1x64xf32> to vector<8x64xf32>
    %591 = arith.addf %588, %590 : vector<8x64xf32>
    %cst_202 = arith.constant 2.000000e+01 : f32
    %592 = vector.broadcast %cst_202 : f32 to vector<8x64xf32>
    %593 = arith.cmpf ogt, %591, %592 : vector<8x64xf32>
    %cst_203 = arith.constant 2.000000e+01 : f32
    %594 = vector.broadcast %cst_203 : f32 to vector<8x64xf32>
    %595 = arith.minimumf %591, %594 : vector<8x64xf32>
    %596 = math.exp %595 : vector<8x64xf32>
    %597 = math.log1p %596 : vector<8x64xf32>
    %598 = arith.select %593, %591, %597 : vector<8x64xi1>, vector<8x64xf32>
    %599 = math.tanh %598 : vector<8x64xf32>
    %600 = arith.mulf %591, %599 : vector<8x64xf32>
    %601 = arith.addf %600, %494 : vector<8x64xf32>
    %cst_204 = arith.constant 0.000000e+00 : f32
    %602 = vector.broadcast %cst_204 : f32 to vector<2x64xf32>
    %603 = tpu.concatenate %602, %601, %602 in 0 : vector<2x64xf32>, vector<8x64xf32>, vector<2x64xf32> -> vector<12x64xf32>
    %604 = vector.extract_strided_slice %603 {offsets = [0, 0], sizes = [8, 64], strides = [1, 1]} : vector<12x64xf32> to vector<8x64xf32>
    %605 = vector.extract_strided_slice %603 {offsets = [1, 0], sizes = [8, 64], strides = [1, 1]} : vector<12x64xf32> to vector<8x64xf32>
    %606 = vector.extract_strided_slice %603 {offsets = [2, 0], sizes = [8, 64], strides = [1, 1]} : vector<12x64xf32> to vector<8x64xf32>
    %607 = vector.extract_strided_slice %603 {offsets = [3, 0], sizes = [8, 64], strides = [1, 1]} : vector<12x64xf32> to vector<8x64xf32>
    %608 = vector.extract_strided_slice %603 {offsets = [4, 0], sizes = [8, 64], strides = [1, 1]} : vector<12x64xf32> to vector<8x64xf32>
    %609 = tpu.concatenate %604, %605, %606, %607, %608 in 1 : vector<8x64xf32>, vector<8x64xf32>, vector<8x64xf32>, vector<8x64xf32>, vector<8x64xf32> -> vector<8x320xf32>
    %c2592 = arith.constant 2592 : index
    %c0_205 = arith.constant 0 : index
    %610 = vector.load %arg4[%c2592, %c0_205] : memref<4896x128xbf16, #tpu.memory_space<vmem>>, vector<320x64xbf16>
    %611 = arith.truncf %609 : vector<8x320xf32> to vector<8x320xbf16>
    %cst_206 = arith.constant dense<0.000000e+00> : vector<8x64xf32>
    %612 = tpu.matmul %611, %610, %cst_206 {dimension_numbers = #tpu.dot_dimension_numbers<[1], [0], [0], [1], [0, 0, 1, 1], [], []>} : vector<8x320xbf16>, vector<320x64xbf16>, vector<8x64xf32> -> vector<8x64xf32>
    %c34 = arith.constant 34 : index
    %c0_207 = arith.constant 0 : index
    %613 = vector.load %arg6[%c34, %c0_207] : memref<64x128xf32, #tpu.memory_space<vmem>>, vector<1x64xf32>
    %614 = vector.broadcast %613 : vector<1x64xf32> to vector<8x64xf32>
    %615 = arith.addf %612, %614 : vector<8x64xf32>
    %c32_208 = arith.constant 32 : index
    %c0_209 = arith.constant 0 : index
    %616 = vector.load %arg4[%c32_208, %c0_209] : memref<4896x128xbf16, #tpu.memory_space<vmem>>, vector<64x64xbf16>
    %cst_210 = arith.constant dense<0.000000e+00> : vector<64xf32>
    %617 = vector.multi_reduction <add>, %615, %cst_210 [0] : vector<8x64xf32> to vector<64xf32>
    %618 = vector.shape_cast %617 : vector<64xf32> to vector<1x64xf32>
    %619 = arith.truncf %618 : vector<1x64xf32> to vector<1x64xbf16>
    %cst_211 = arith.constant dense<0.000000e+00> : vector<1x64xf32>
    %620 = tpu.matmul %619, %616, %cst_211 {dimension_numbers = #tpu.dot_dimension_numbers<[1], [0], [0], [1], [0, 0, 1, 1], [], []>} : vector<1x64xbf16>, vector<64x64xbf16>, vector<1x64xf32> -> vector<1x64xf32>
    %cst_212 = arith.constant 1.562500e-02 : f32
    %621 = vector.broadcast %cst_212 : f32 to vector<1x64xf32>
    %622 = arith.mulf %620, %621 : vector<1x64xf32>
    %623 = vector.broadcast %622 : vector<1x64xf32> to vector<8x64xf32>
    %624 = arith.subf %615, %623 : vector<8x64xf32>
    %625 = arith.mulf %624, %624 : vector<8x64xf32>
    %cst_213 = arith.constant dense<0.000000e+00> : vector<64xf32>
    %626 = vector.multi_reduction <add>, %625, %cst_213 [0] : vector<8x64xf32> to vector<64xf32>
    %627 = vector.shape_cast %626 : vector<64xf32> to vector<1x64xf32>
    %628 = arith.truncf %627 : vector<1x64xf32> to vector<1x64xbf16>
    %cst_214 = arith.constant dense<0.000000e+00> : vector<1x64xf32>
    %629 = tpu.matmul %628, %616, %cst_214 {dimension_numbers = #tpu.dot_dimension_numbers<[1], [0], [0], [1], [0, 0, 1, 1], [], []>} : vector<1x64xbf16>, vector<64x64xbf16>, vector<1x64xf32> -> vector<1x64xf32>
    %cst_215 = arith.constant 1.562500e-02 : f32
    %630 = vector.broadcast %cst_215 : f32 to vector<1x64xf32>
    %631 = arith.mulf %629, %630 : vector<1x64xf32>
    %cst_216 = arith.constant 9.99999974E-6 : f32
    %632 = vector.broadcast %cst_216 : f32 to vector<1x64xf32>
    %633 = arith.addf %631, %632 : vector<1x64xf32>
    %634 = math.rsqrt %633 : vector<1x64xf32>
    %635 = vector.broadcast %634 : vector<1x64xf32> to vector<8x64xf32>
    %636 = arith.mulf %624, %635 : vector<8x64xf32>
    %c35 = arith.constant 35 : index
    %c0_217 = arith.constant 0 : index
    %637 = vector.load %arg6[%c35, %c0_217] : memref<64x128xf32, #tpu.memory_space<vmem>>, vector<1x64xf32>
    %638 = vector.broadcast %637 : vector<1x64xf32> to vector<8x64xf32>
    %639 = arith.mulf %636, %638 : vector<8x64xf32>
    %c36 = arith.constant 36 : index
    %c0_218 = arith.constant 0 : index
    %640 = vector.load %arg6[%c36, %c0_218] : memref<64x128xf32, #tpu.memory_space<vmem>>, vector<1x64xf32>
    %641 = vector.broadcast %640 : vector<1x64xf32> to vector<8x64xf32>
    %642 = arith.addf %639, %641 : vector<8x64xf32>
    %cst_219 = arith.constant 2.000000e+01 : f32
    %643 = vector.broadcast %cst_219 : f32 to vector<8x64xf32>
    %644 = arith.cmpf ogt, %642, %643 : vector<8x64xf32>
    %cst_220 = arith.constant 2.000000e+01 : f32
    %645 = vector.broadcast %cst_220 : f32 to vector<8x64xf32>
    %646 = arith.minimumf %642, %645 : vector<8x64xf32>
    %647 = math.exp %646 : vector<8x64xf32>
    %648 = math.log1p %647 : vector<8x64xf32>
    %649 = arith.select %644, %642, %648 : vector<8x64xi1>, vector<8x64xf32>
    %650 = math.tanh %649 : vector<8x64xf32>
    %651 = arith.mulf %642, %650 : vector<8x64xf32>
    %652 = vector.extract_strided_slice %37 {offsets = [0, 1280], sizes = [1, 64], strides = [1, 1]} : vector<1x2048xf32> to vector<1x64xf32>
    %653 = vector.extract_strided_slice %37 {offsets = [0, 1408], sizes = [1, 64], strides = [1, 1]} : vector<1x2048xf32> to vector<1x64xf32>
    %654 = vector.broadcast %652 : vector<1x64xf32> to vector<8x64xf32>
    %655 = arith.mulf %654, %651 : vector<8x64xf32>
    %656 = vector.broadcast %653 : vector<1x64xf32> to vector<8x64xf32>
    %657 = arith.addf %655, %656 : vector<8x64xf32>
    %cst_221 = arith.constant 0.000000e+00 : f32
    %658 = vector.broadcast %cst_221 : f32 to vector<2x64xf32>
    %659 = tpu.concatenate %658, %657, %658 in 0 : vector<2x64xf32>, vector<8x64xf32>, vector<2x64xf32> -> vector<12x64xf32>
    %660 = vector.extract_strided_slice %659 {offsets = [0, 0], sizes = [8, 64], strides = [1, 1]} : vector<12x64xf32> to vector<8x64xf32>
    %661 = vector.extract_strided_slice %659 {offsets = [1, 0], sizes = [8, 64], strides = [1, 1]} : vector<12x64xf32> to vector<8x64xf32>
    %662 = vector.extract_strided_slice %659 {offsets = [2, 0], sizes = [8, 64], strides = [1, 1]} : vector<12x64xf32> to vector<8x64xf32>
    %663 = vector.extract_strided_slice %659 {offsets = [3, 0], sizes = [8, 64], strides = [1, 1]} : vector<12x64xf32> to vector<8x64xf32>
    %664 = vector.extract_strided_slice %659 {offsets = [4, 0], sizes = [8, 64], strides = [1, 1]} : vector<12x64xf32> to vector<8x64xf32>
    %665 = tpu.concatenate %660, %661, %662, %663, %664 in 1 : vector<8x64xf32>, vector<8x64xf32>, vector<8x64xf32>, vector<8x64xf32>, vector<8x64xf32> -> vector<8x320xf32>
    %c2912 = arith.constant 2912 : index
    %c0_222 = arith.constant 0 : index
    %666 = vector.load %arg4[%c2912, %c0_222] : memref<4896x128xbf16, #tpu.memory_space<vmem>>, vector<320x64xbf16>
    %667 = arith.truncf %665 : vector<8x320xf32> to vector<8x320xbf16>
    %cst_223 = arith.constant dense<0.000000e+00> : vector<8x64xf32>
    %668 = tpu.matmul %667, %666, %cst_223 {dimension_numbers = #tpu.dot_dimension_numbers<[1], [0], [0], [1], [0, 0, 1, 1], [], []>} : vector<8x320xbf16>, vector<320x64xbf16>, vector<8x64xf32> -> vector<8x64xf32>
    %c37 = arith.constant 37 : index
    %c0_224 = arith.constant 0 : index
    %669 = vector.load %arg6[%c37, %c0_224] : memref<64x128xf32, #tpu.memory_space<vmem>>, vector<1x64xf32>
    %670 = vector.broadcast %669 : vector<1x64xf32> to vector<8x64xf32>
    %671 = arith.addf %668, %670 : vector<8x64xf32>
    %c32_225 = arith.constant 32 : index
    %c0_226 = arith.constant 0 : index
    %672 = vector.load %arg4[%c32_225, %c0_226] : memref<4896x128xbf16, #tpu.memory_space<vmem>>, vector<64x64xbf16>
    %cst_227 = arith.constant dense<0.000000e+00> : vector<64xf32>
    %673 = vector.multi_reduction <add>, %671, %cst_227 [0] : vector<8x64xf32> to vector<64xf32>
    %674 = vector.shape_cast %673 : vector<64xf32> to vector<1x64xf32>
    %675 = arith.truncf %674 : vector<1x64xf32> to vector<1x64xbf16>
    %cst_228 = arith.constant dense<0.000000e+00> : vector<1x64xf32>
    %676 = tpu.matmul %675, %672, %cst_228 {dimension_numbers = #tpu.dot_dimension_numbers<[1], [0], [0], [1], [0, 0, 1, 1], [], []>} : vector<1x64xbf16>, vector<64x64xbf16>, vector<1x64xf32> -> vector<1x64xf32>
    %cst_229 = arith.constant 1.562500e-02 : f32
    %677 = vector.broadcast %cst_229 : f32 to vector<1x64xf32>
    %678 = arith.mulf %676, %677 : vector<1x64xf32>
    %679 = vector.broadcast %678 : vector<1x64xf32> to vector<8x64xf32>
    %680 = arith.subf %671, %679 : vector<8x64xf32>
    %681 = arith.mulf %680, %680 : vector<8x64xf32>
    %cst_230 = arith.constant dense<0.000000e+00> : vector<64xf32>
    %682 = vector.multi_reduction <add>, %681, %cst_230 [0] : vector<8x64xf32> to vector<64xf32>
    %683 = vector.shape_cast %682 : vector<64xf32> to vector<1x64xf32>
    %684 = arith.truncf %683 : vector<1x64xf32> to vector<1x64xbf16>
    %cst_231 = arith.constant dense<0.000000e+00> : vector<1x64xf32>
    %685 = tpu.matmul %684, %672, %cst_231 {dimension_numbers = #tpu.dot_dimension_numbers<[1], [0], [0], [1], [0, 0, 1, 1], [], []>} : vector<1x64xbf16>, vector<64x64xbf16>, vector<1x64xf32> -> vector<1x64xf32>
    %cst_232 = arith.constant 1.562500e-02 : f32
    %686 = vector.broadcast %cst_232 : f32 to vector<1x64xf32>
    %687 = arith.mulf %685, %686 : vector<1x64xf32>
    %cst_233 = arith.constant 9.99999974E-6 : f32
    %688 = vector.broadcast %cst_233 : f32 to vector<1x64xf32>
    %689 = arith.addf %687, %688 : vector<1x64xf32>
    %690 = math.rsqrt %689 : vector<1x64xf32>
    %691 = vector.broadcast %690 : vector<1x64xf32> to vector<8x64xf32>
    %692 = arith.mulf %680, %691 : vector<8x64xf32>
    %c38 = arith.constant 38 : index
    %c0_234 = arith.constant 0 : index
    %693 = vector.load %arg6[%c38, %c0_234] : memref<64x128xf32, #tpu.memory_space<vmem>>, vector<1x64xf32>
    %694 = vector.broadcast %693 : vector<1x64xf32> to vector<8x64xf32>
    %695 = arith.mulf %692, %694 : vector<8x64xf32>
    %c39 = arith.constant 39 : index
    %c0_235 = arith.constant 0 : index
    %696 = vector.load %arg6[%c39, %c0_235] : memref<64x128xf32, #tpu.memory_space<vmem>>, vector<1x64xf32>
    %697 = vector.broadcast %696 : vector<1x64xf32> to vector<8x64xf32>
    %698 = arith.addf %695, %697 : vector<8x64xf32>
    %cst_236 = arith.constant 2.000000e+01 : f32
    %699 = vector.broadcast %cst_236 : f32 to vector<8x64xf32>
    %700 = arith.cmpf ogt, %698, %699 : vector<8x64xf32>
    %cst_237 = arith.constant 2.000000e+01 : f32
    %701 = vector.broadcast %cst_237 : f32 to vector<8x64xf32>
    %702 = arith.minimumf %698, %701 : vector<8x64xf32>
    %703 = math.exp %702 : vector<8x64xf32>
    %704 = math.log1p %703 : vector<8x64xf32>
    %705 = arith.select %700, %698, %704 : vector<8x64xi1>, vector<8x64xf32>
    %706 = math.tanh %705 : vector<8x64xf32>
    %707 = arith.mulf %698, %706 : vector<8x64xf32>
    %708 = arith.addf %707, %601 : vector<8x64xf32>
    %709 = tpu.concatenate %708, %494 in 1 : vector<8x64xf32>, vector<8x64xf32> -> vector<8x128xf32>
    %cst_238 = arith.constant 0.000000e+00 : f32
    %710 = vector.broadcast %cst_238 : f32 to vector<2x128xf32>
    %711 = tpu.concatenate %710, %709, %710 in 0 : vector<2x128xf32>, vector<8x128xf32>, vector<2x128xf32> -> vector<12x128xf32>
    %712 = vector.extract_strided_slice %711 {offsets = [0, 0], sizes = [8, 128], strides = [1, 1]} : vector<12x128xf32> to vector<8x128xf32>
    %713 = vector.extract_strided_slice %711 {offsets = [1, 0], sizes = [8, 128], strides = [1, 1]} : vector<12x128xf32> to vector<8x128xf32>
    %714 = vector.extract_strided_slice %711 {offsets = [2, 0], sizes = [8, 128], strides = [1, 1]} : vector<12x128xf32> to vector<8x128xf32>
    %715 = vector.extract_strided_slice %711 {offsets = [3, 0], sizes = [8, 128], strides = [1, 1]} : vector<12x128xf32> to vector<8x128xf32>
    %716 = vector.extract_strided_slice %711 {offsets = [4, 0], sizes = [8, 128], strides = [1, 1]} : vector<12x128xf32> to vector<8x128xf32>
    %717 = tpu.concatenate %712, %713, %714, %715, %716 in 1 : vector<8x128xf32>, vector<8x128xf32>, vector<8x128xf32>, vector<8x128xf32>, vector<8x128xf32> -> vector<8x640xf32>
    %c3232 = arith.constant 3232 : index
    %c0_239 = arith.constant 0 : index
    %718 = vector.load %arg4[%c3232, %c0_239] : memref<4896x128xbf16, #tpu.memory_space<vmem>>, vector<640x32xbf16>
    %719 = arith.truncf %717 : vector<8x640xf32> to vector<8x640xbf16>
    %cst_240 = arith.constant dense<0.000000e+00> : vector<8x32xf32>
    %720 = tpu.matmul %719, %718, %cst_240 {dimension_numbers = #tpu.dot_dimension_numbers<[1], [0], [0], [1], [0, 0, 1, 1], [], []>} : vector<8x640xbf16>, vector<640x32xbf16>, vector<8x32xf32> -> vector<8x32xf32>
    %c40 = arith.constant 40 : index
    %c0_241 = arith.constant 0 : index
    %721 = vector.load %arg6[%c40, %c0_241] : memref<64x128xf32, #tpu.memory_space<vmem>>, vector<1x32xf32>
    %722 = vector.broadcast %721 : vector<1x32xf32> to vector<8x32xf32>
    %723 = arith.addf %720, %722 : vector<8x32xf32>
    %c0_242 = arith.constant 0 : index
    %c0_243 = arith.constant 0 : index
    %724 = vector.load %arg4[%c0_242, %c0_243] : memref<4896x128xbf16, #tpu.memory_space<vmem>>, vector<32x32xbf16>
    %cst_244 = arith.constant dense<0.000000e+00> : vector<32xf32>
    %725 = vector.multi_reduction <add>, %723, %cst_244 [0] : vector<8x32xf32> to vector<32xf32>
    %726 = vector.shape_cast %725 : vector<32xf32> to vector<1x32xf32>
    %727 = arith.truncf %726 : vector<1x32xf32> to vector<1x32xbf16>
    %cst_245 = arith.constant dense<0.000000e+00> : vector<1x32xf32>
    %728 = tpu.matmul %727, %724, %cst_245 {dimension_numbers = #tpu.dot_dimension_numbers<[1], [0], [0], [1], [0, 0, 1, 1], [], []>} : vector<1x32xbf16>, vector<32x32xbf16>, vector<1x32xf32> -> vector<1x32xf32>
    %cst_246 = arith.constant 3.125000e-02 : f32
    %729 = vector.broadcast %cst_246 : f32 to vector<1x32xf32>
    %730 = arith.mulf %728, %729 : vector<1x32xf32>
    %731 = vector.broadcast %730 : vector<1x32xf32> to vector<8x32xf32>
    %732 = arith.subf %723, %731 : vector<8x32xf32>
    %733 = arith.mulf %732, %732 : vector<8x32xf32>
    %cst_247 = arith.constant dense<0.000000e+00> : vector<32xf32>
    %734 = vector.multi_reduction <add>, %733, %cst_247 [0] : vector<8x32xf32> to vector<32xf32>
    %735 = vector.shape_cast %734 : vector<32xf32> to vector<1x32xf32>
    %736 = arith.truncf %735 : vector<1x32xf32> to vector<1x32xbf16>
    %cst_248 = arith.constant dense<0.000000e+00> : vector<1x32xf32>
    %737 = tpu.matmul %736, %724, %cst_248 {dimension_numbers = #tpu.dot_dimension_numbers<[1], [0], [0], [1], [0, 0, 1, 1], [], []>} : vector<1x32xbf16>, vector<32x32xbf16>, vector<1x32xf32> -> vector<1x32xf32>
    %cst_249 = arith.constant 3.125000e-02 : f32
    %738 = vector.broadcast %cst_249 : f32 to vector<1x32xf32>
    %739 = arith.mulf %737, %738 : vector<1x32xf32>
    %cst_250 = arith.constant 9.99999974E-6 : f32
    %740 = vector.broadcast %cst_250 : f32 to vector<1x32xf32>
    %741 = arith.addf %739, %740 : vector<1x32xf32>
    %742 = math.rsqrt %741 : vector<1x32xf32>
    %743 = vector.broadcast %742 : vector<1x32xf32> to vector<8x32xf32>
    %744 = arith.mulf %732, %743 : vector<8x32xf32>
    %c41 = arith.constant 41 : index
    %c0_251 = arith.constant 0 : index
    %745 = vector.load %arg6[%c41, %c0_251] : memref<64x128xf32, #tpu.memory_space<vmem>>, vector<1x32xf32>
    %746 = vector.broadcast %745 : vector<1x32xf32> to vector<8x32xf32>
    %747 = arith.mulf %744, %746 : vector<8x32xf32>
    %c42 = arith.constant 42 : index
    %c0_252 = arith.constant 0 : index
    %748 = vector.load %arg6[%c42, %c0_252] : memref<64x128xf32, #tpu.memory_space<vmem>>, vector<1x32xf32>
    %749 = vector.broadcast %748 : vector<1x32xf32> to vector<8x32xf32>
    %750 = arith.addf %747, %749 : vector<8x32xf32>
    %cst_253 = arith.constant 2.000000e+01 : f32
    %751 = vector.broadcast %cst_253 : f32 to vector<8x32xf32>
    %752 = arith.cmpf ogt, %750, %751 : vector<8x32xf32>
    %cst_254 = arith.constant 2.000000e+01 : f32
    %753 = vector.broadcast %cst_254 : f32 to vector<8x32xf32>
    %754 = arith.minimumf %750, %753 : vector<8x32xf32>
    %755 = math.exp %754 : vector<8x32xf32>
    %756 = math.log1p %755 : vector<8x32xf32>
    %757 = arith.select %752, %750, %756 : vector<8x32xi1>, vector<8x32xf32>
    %758 = math.tanh %757 : vector<8x32xf32>
    %759 = arith.mulf %750, %758 : vector<8x32xf32>
    %760 = vector.extract_strided_slice %37 {offsets = [0, 1536], sizes = [1, 32], strides = [1, 1]} : vector<1x2048xf32> to vector<1x32xf32>
    %761 = vector.extract_strided_slice %37 {offsets = [0, 1664], sizes = [1, 32], strides = [1, 1]} : vector<1x2048xf32> to vector<1x32xf32>
    %762 = vector.broadcast %760 : vector<1x32xf32> to vector<8x32xf32>
    %763 = arith.mulf %762, %759 : vector<8x32xf32>
    %764 = vector.broadcast %761 : vector<1x32xf32> to vector<8x32xf32>
    %765 = arith.addf %763, %764 : vector<8x32xf32>
    %cst_255 = arith.constant 0.000000e+00 : f32
    %766 = vector.broadcast %cst_255 : f32 to vector<2x32xf32>
    %767 = tpu.concatenate %766, %765, %766 in 0 : vector<2x32xf32>, vector<8x32xf32>, vector<2x32xf32> -> vector<12x32xf32>
    %768 = vector.extract_strided_slice %767 {offsets = [0, 0], sizes = [8, 32], strides = [1, 1]} : vector<12x32xf32> to vector<8x32xf32>
    %769 = vector.extract_strided_slice %767 {offsets = [1, 0], sizes = [8, 32], strides = [1, 1]} : vector<12x32xf32> to vector<8x32xf32>
    %770 = vector.extract_strided_slice %767 {offsets = [2, 0], sizes = [8, 32], strides = [1, 1]} : vector<12x32xf32> to vector<8x32xf32>
    %771 = vector.extract_strided_slice %767 {offsets = [3, 0], sizes = [8, 32], strides = [1, 1]} : vector<12x32xf32> to vector<8x32xf32>
    %772 = vector.extract_strided_slice %767 {offsets = [4, 0], sizes = [8, 32], strides = [1, 1]} : vector<12x32xf32> to vector<8x32xf32>
    %773 = tpu.concatenate %768, %769, %770, %771, %772 in 1 : vector<8x32xf32>, vector<8x32xf32>, vector<8x32xf32>, vector<8x32xf32>, vector<8x32xf32> -> vector<8x160xf32>
    %c3872 = arith.constant 3872 : index
    %c0_256 = arith.constant 0 : index
    %774 = vector.load %arg4[%c3872, %c0_256] : memref<4896x128xbf16, #tpu.memory_space<vmem>>, vector<160x32xbf16>
    %775 = arith.truncf %773 : vector<8x160xf32> to vector<8x160xbf16>
    %cst_257 = arith.constant dense<0.000000e+00> : vector<8x32xf32>
    %776 = tpu.matmul %775, %774, %cst_257 {dimension_numbers = #tpu.dot_dimension_numbers<[1], [0], [0], [1], [0, 0, 1, 1], [], []>} : vector<8x160xbf16>, vector<160x32xbf16>, vector<8x32xf32> -> vector<8x32xf32>
    %c43 = arith.constant 43 : index
    %c0_258 = arith.constant 0 : index
    %777 = vector.load %arg6[%c43, %c0_258] : memref<64x128xf32, #tpu.memory_space<vmem>>, vector<1x32xf32>
    %778 = vector.broadcast %777 : vector<1x32xf32> to vector<8x32xf32>
    %779 = arith.addf %776, %778 : vector<8x32xf32>
    %c0_259 = arith.constant 0 : index
    %c0_260 = arith.constant 0 : index
    %780 = vector.load %arg4[%c0_259, %c0_260] : memref<4896x128xbf16, #tpu.memory_space<vmem>>, vector<32x32xbf16>
    %cst_261 = arith.constant dense<0.000000e+00> : vector<32xf32>
    %781 = vector.multi_reduction <add>, %779, %cst_261 [0] : vector<8x32xf32> to vector<32xf32>
    %782 = vector.shape_cast %781 : vector<32xf32> to vector<1x32xf32>
    %783 = arith.truncf %782 : vector<1x32xf32> to vector<1x32xbf16>
    %cst_262 = arith.constant dense<0.000000e+00> : vector<1x32xf32>
    %784 = tpu.matmul %783, %780, %cst_262 {dimension_numbers = #tpu.dot_dimension_numbers<[1], [0], [0], [1], [0, 0, 1, 1], [], []>} : vector<1x32xbf16>, vector<32x32xbf16>, vector<1x32xf32> -> vector<1x32xf32>
    %cst_263 = arith.constant 3.125000e-02 : f32
    %785 = vector.broadcast %cst_263 : f32 to vector<1x32xf32>
    %786 = arith.mulf %784, %785 : vector<1x32xf32>
    %787 = vector.broadcast %786 : vector<1x32xf32> to vector<8x32xf32>
    %788 = arith.subf %779, %787 : vector<8x32xf32>
    %789 = arith.mulf %788, %788 : vector<8x32xf32>
    %cst_264 = arith.constant dense<0.000000e+00> : vector<32xf32>
    %790 = vector.multi_reduction <add>, %789, %cst_264 [0] : vector<8x32xf32> to vector<32xf32>
    %791 = vector.shape_cast %790 : vector<32xf32> to vector<1x32xf32>
    %792 = arith.truncf %791 : vector<1x32xf32> to vector<1x32xbf16>
    %cst_265 = arith.constant dense<0.000000e+00> : vector<1x32xf32>
    %793 = tpu.matmul %792, %780, %cst_265 {dimension_numbers = #tpu.dot_dimension_numbers<[1], [0], [0], [1], [0, 0, 1, 1], [], []>} : vector<1x32xbf16>, vector<32x32xbf16>, vector<1x32xf32> -> vector<1x32xf32>
    %cst_266 = arith.constant 3.125000e-02 : f32
    %794 = vector.broadcast %cst_266 : f32 to vector<1x32xf32>
    %795 = arith.mulf %793, %794 : vector<1x32xf32>
    %cst_267 = arith.constant 9.99999974E-6 : f32
    %796 = vector.broadcast %cst_267 : f32 to vector<1x32xf32>
    %797 = arith.addf %795, %796 : vector<1x32xf32>
    %798 = math.rsqrt %797 : vector<1x32xf32>
    %799 = vector.broadcast %798 : vector<1x32xf32> to vector<8x32xf32>
    %800 = arith.mulf %788, %799 : vector<8x32xf32>
    %c44 = arith.constant 44 : index
    %c0_268 = arith.constant 0 : index
    %801 = vector.load %arg6[%c44, %c0_268] : memref<64x128xf32, #tpu.memory_space<vmem>>, vector<1x32xf32>
    %802 = vector.broadcast %801 : vector<1x32xf32> to vector<8x32xf32>
    %803 = arith.mulf %800, %802 : vector<8x32xf32>
    %c45 = arith.constant 45 : index
    %c0_269 = arith.constant 0 : index
    %804 = vector.load %arg6[%c45, %c0_269] : memref<64x128xf32, #tpu.memory_space<vmem>>, vector<1x32xf32>
    %805 = vector.broadcast %804 : vector<1x32xf32> to vector<8x32xf32>
    %806 = arith.addf %803, %805 : vector<8x32xf32>
    %cst_270 = arith.constant 2.000000e+01 : f32
    %807 = vector.broadcast %cst_270 : f32 to vector<8x32xf32>
    %808 = arith.cmpf ogt, %806, %807 : vector<8x32xf32>
    %cst_271 = arith.constant 2.000000e+01 : f32
    %809 = vector.broadcast %cst_271 : f32 to vector<8x32xf32>
    %810 = arith.minimumf %806, %809 : vector<8x32xf32>
    %811 = math.exp %810 : vector<8x32xf32>
    %812 = math.log1p %811 : vector<8x32xf32>
    %813 = arith.select %808, %806, %812 : vector<8x32xi1>, vector<8x32xf32>
    %814 = math.tanh %813 : vector<8x32xf32>
    %815 = arith.mulf %806, %814 : vector<8x32xf32>
    %c4032 = arith.constant 4032 : index
    %c0_272 = arith.constant 0 : index
    %816 = vector.load %arg4[%c4032, %c0_272] : memref<4896x128xbf16, #tpu.memory_space<vmem>>, vector<128x32xbf16>
    %817 = arith.truncf %709 : vector<8x128xf32> to vector<8x128xbf16>
    %cst_273 = arith.constant dense<0.000000e+00> : vector<8x32xf32>
    %818 = tpu.matmul %817, %816, %cst_273 {dimension_numbers = #tpu.dot_dimension_numbers<[1], [0], [0], [1], [0, 0, 1, 1], [], []>} : vector<8x128xbf16>, vector<128x32xbf16>, vector<8x32xf32> -> vector<8x32xf32>
    %c46 = arith.constant 46 : index
    %c0_274 = arith.constant 0 : index
    %819 = vector.load %arg6[%c46, %c0_274] : memref<64x128xf32, #tpu.memory_space<vmem>>, vector<1x32xf32>
    %820 = vector.broadcast %819 : vector<1x32xf32> to vector<8x32xf32>
    %821 = arith.addf %818, %820 : vector<8x32xf32>
    %822 = arith.addf %815, %821 : vector<8x32xf32>
    %cst_275 = arith.constant 0.000000e+00 : f32
    %823 = vector.broadcast %cst_275 : f32 to vector<2x32xf32>
    %824 = tpu.concatenate %823, %822, %823 in 0 : vector<2x32xf32>, vector<8x32xf32>, vector<2x32xf32> -> vector<12x32xf32>
    %825 = vector.extract_strided_slice %824 {offsets = [0, 0], sizes = [8, 32], strides = [1, 1]} : vector<12x32xf32> to vector<8x32xf32>
    %826 = vector.extract_strided_slice %824 {offsets = [1, 0], sizes = [8, 32], strides = [1, 1]} : vector<12x32xf32> to vector<8x32xf32>
    %827 = vector.extract_strided_slice %824 {offsets = [2, 0], sizes = [8, 32], strides = [1, 1]} : vector<12x32xf32> to vector<8x32xf32>
    %828 = vector.extract_strided_slice %824 {offsets = [3, 0], sizes = [8, 32], strides = [1, 1]} : vector<12x32xf32> to vector<8x32xf32>
    %829 = vector.extract_strided_slice %824 {offsets = [4, 0], sizes = [8, 32], strides = [1, 1]} : vector<12x32xf32> to vector<8x32xf32>
    %830 = tpu.concatenate %825, %826, %827, %828, %829 in 1 : vector<8x32xf32>, vector<8x32xf32>, vector<8x32xf32>, vector<8x32xf32>, vector<8x32xf32> -> vector<8x160xf32>
    %c4160 = arith.constant 4160 : index
    %c0_276 = arith.constant 0 : index
    %831 = vector.load %arg4[%c4160, %c0_276] : memref<4896x128xbf16, #tpu.memory_space<vmem>>, vector<160x32xbf16>
    %832 = arith.truncf %830 : vector<8x160xf32> to vector<8x160xbf16>
    %cst_277 = arith.constant dense<0.000000e+00> : vector<8x32xf32>
    %833 = tpu.matmul %832, %831, %cst_277 {dimension_numbers = #tpu.dot_dimension_numbers<[1], [0], [0], [1], [0, 0, 1, 1], [], []>} : vector<8x160xbf16>, vector<160x32xbf16>, vector<8x32xf32> -> vector<8x32xf32>
    %c47 = arith.constant 47 : index
    %c0_278 = arith.constant 0 : index
    %834 = vector.load %arg6[%c47, %c0_278] : memref<64x128xf32, #tpu.memory_space<vmem>>, vector<1x32xf32>
    %835 = vector.broadcast %834 : vector<1x32xf32> to vector<8x32xf32>
    %836 = arith.addf %833, %835 : vector<8x32xf32>
    %c0_279 = arith.constant 0 : index
    %c0_280 = arith.constant 0 : index
    %837 = vector.load %arg4[%c0_279, %c0_280] : memref<4896x128xbf16, #tpu.memory_space<vmem>>, vector<32x32xbf16>
    %cst_281 = arith.constant dense<0.000000e+00> : vector<32xf32>
    %838 = vector.multi_reduction <add>, %836, %cst_281 [0] : vector<8x32xf32> to vector<32xf32>
    %839 = vector.shape_cast %838 : vector<32xf32> to vector<1x32xf32>
    %840 = arith.truncf %839 : vector<1x32xf32> to vector<1x32xbf16>
    %cst_282 = arith.constant dense<0.000000e+00> : vector<1x32xf32>
    %841 = tpu.matmul %840, %837, %cst_282 {dimension_numbers = #tpu.dot_dimension_numbers<[1], [0], [0], [1], [0, 0, 1, 1], [], []>} : vector<1x32xbf16>, vector<32x32xbf16>, vector<1x32xf32> -> vector<1x32xf32>
    %cst_283 = arith.constant 3.125000e-02 : f32
    %842 = vector.broadcast %cst_283 : f32 to vector<1x32xf32>
    %843 = arith.mulf %841, %842 : vector<1x32xf32>
    %844 = vector.broadcast %843 : vector<1x32xf32> to vector<8x32xf32>
    %845 = arith.subf %836, %844 : vector<8x32xf32>
    %846 = arith.mulf %845, %845 : vector<8x32xf32>
    %cst_284 = arith.constant dense<0.000000e+00> : vector<32xf32>
    %847 = vector.multi_reduction <add>, %846, %cst_284 [0] : vector<8x32xf32> to vector<32xf32>
    %848 = vector.shape_cast %847 : vector<32xf32> to vector<1x32xf32>
    %849 = arith.truncf %848 : vector<1x32xf32> to vector<1x32xbf16>
    %cst_285 = arith.constant dense<0.000000e+00> : vector<1x32xf32>
    %850 = tpu.matmul %849, %837, %cst_285 {dimension_numbers = #tpu.dot_dimension_numbers<[1], [0], [0], [1], [0, 0, 1, 1], [], []>} : vector<1x32xbf16>, vector<32x32xbf16>, vector<1x32xf32> -> vector<1x32xf32>
    %cst_286 = arith.constant 3.125000e-02 : f32
    %851 = vector.broadcast %cst_286 : f32 to vector<1x32xf32>
    %852 = arith.mulf %850, %851 : vector<1x32xf32>
    %cst_287 = arith.constant 9.99999974E-6 : f32
    %853 = vector.broadcast %cst_287 : f32 to vector<1x32xf32>
    %854 = arith.addf %852, %853 : vector<1x32xf32>
    %855 = math.rsqrt %854 : vector<1x32xf32>
    %856 = vector.broadcast %855 : vector<1x32xf32> to vector<8x32xf32>
    %857 = arith.mulf %845, %856 : vector<8x32xf32>
    %c48 = arith.constant 48 : index
    %c0_288 = arith.constant 0 : index
    %858 = vector.load %arg6[%c48, %c0_288] : memref<64x128xf32, #tpu.memory_space<vmem>>, vector<1x32xf32>
    %859 = vector.broadcast %858 : vector<1x32xf32> to vector<8x32xf32>
    %860 = arith.mulf %857, %859 : vector<8x32xf32>
    %c49 = arith.constant 49 : index
    %c0_289 = arith.constant 0 : index
    %861 = vector.load %arg6[%c49, %c0_289] : memref<64x128xf32, #tpu.memory_space<vmem>>, vector<1x32xf32>
    %862 = vector.broadcast %861 : vector<1x32xf32> to vector<8x32xf32>
    %863 = arith.addf %860, %862 : vector<8x32xf32>
    %cst_290 = arith.constant 2.000000e+01 : f32
    %864 = vector.broadcast %cst_290 : f32 to vector<8x32xf32>
    %865 = arith.cmpf ogt, %863, %864 : vector<8x32xf32>
    %cst_291 = arith.constant 2.000000e+01 : f32
    %866 = vector.broadcast %cst_291 : f32 to vector<8x32xf32>
    %867 = arith.minimumf %863, %866 : vector<8x32xf32>
    %868 = math.exp %867 : vector<8x32xf32>
    %869 = math.log1p %868 : vector<8x32xf32>
    %870 = arith.select %865, %863, %869 : vector<8x32xi1>, vector<8x32xf32>
    %871 = math.tanh %870 : vector<8x32xf32>
    %872 = arith.mulf %863, %871 : vector<8x32xf32>
    %873 = vector.extract_strided_slice %37 {offsets = [0, 1792], sizes = [1, 32], strides = [1, 1]} : vector<1x2048xf32> to vector<1x32xf32>
    %874 = vector.extract_strided_slice %37 {offsets = [0, 1920], sizes = [1, 32], strides = [1, 1]} : vector<1x2048xf32> to vector<1x32xf32>
    %875 = vector.broadcast %873 : vector<1x32xf32> to vector<8x32xf32>
    %876 = arith.mulf %875, %872 : vector<8x32xf32>
    %877 = vector.broadcast %874 : vector<1x32xf32> to vector<8x32xf32>
    %878 = arith.addf %876, %877 : vector<8x32xf32>
    %cst_292 = arith.constant 0.000000e+00 : f32
    %879 = vector.broadcast %cst_292 : f32 to vector<2x32xf32>
    %880 = tpu.concatenate %879, %878, %879 in 0 : vector<2x32xf32>, vector<8x32xf32>, vector<2x32xf32> -> vector<12x32xf32>
    %881 = vector.extract_strided_slice %880 {offsets = [0, 0], sizes = [8, 32], strides = [1, 1]} : vector<12x32xf32> to vector<8x32xf32>
    %882 = vector.extract_strided_slice %880 {offsets = [1, 0], sizes = [8, 32], strides = [1, 1]} : vector<12x32xf32> to vector<8x32xf32>
    %883 = vector.extract_strided_slice %880 {offsets = [2, 0], sizes = [8, 32], strides = [1, 1]} : vector<12x32xf32> to vector<8x32xf32>
    %884 = vector.extract_strided_slice %880 {offsets = [3, 0], sizes = [8, 32], strides = [1, 1]} : vector<12x32xf32> to vector<8x32xf32>
    %885 = vector.extract_strided_slice %880 {offsets = [4, 0], sizes = [8, 32], strides = [1, 1]} : vector<12x32xf32> to vector<8x32xf32>
    %886 = tpu.concatenate %881, %882, %883, %884, %885 in 1 : vector<8x32xf32>, vector<8x32xf32>, vector<8x32xf32>, vector<8x32xf32>, vector<8x32xf32> -> vector<8x160xf32>
    %c4320 = arith.constant 4320 : index
    %c0_293 = arith.constant 0 : index
    %887 = vector.load %arg4[%c4320, %c0_293] : memref<4896x128xbf16, #tpu.memory_space<vmem>>, vector<160x32xbf16>
    %888 = arith.truncf %886 : vector<8x160xf32> to vector<8x160xbf16>
    %cst_294 = arith.constant dense<0.000000e+00> : vector<8x32xf32>
    %889 = tpu.matmul %888, %887, %cst_294 {dimension_numbers = #tpu.dot_dimension_numbers<[1], [0], [0], [1], [0, 0, 1, 1], [], []>} : vector<8x160xbf16>, vector<160x32xbf16>, vector<8x32xf32> -> vector<8x32xf32>
    %c50 = arith.constant 50 : index
    %c0_295 = arith.constant 0 : index
    %890 = vector.load %arg6[%c50, %c0_295] : memref<64x128xf32, #tpu.memory_space<vmem>>, vector<1x32xf32>
    %891 = vector.broadcast %890 : vector<1x32xf32> to vector<8x32xf32>
    %892 = arith.addf %889, %891 : vector<8x32xf32>
    %c0_296 = arith.constant 0 : index
    %c0_297 = arith.constant 0 : index
    %893 = vector.load %arg4[%c0_296, %c0_297] : memref<4896x128xbf16, #tpu.memory_space<vmem>>, vector<32x32xbf16>
    %cst_298 = arith.constant dense<0.000000e+00> : vector<32xf32>
    %894 = vector.multi_reduction <add>, %892, %cst_298 [0] : vector<8x32xf32> to vector<32xf32>
    %895 = vector.shape_cast %894 : vector<32xf32> to vector<1x32xf32>
    %896 = arith.truncf %895 : vector<1x32xf32> to vector<1x32xbf16>
    %cst_299 = arith.constant dense<0.000000e+00> : vector<1x32xf32>
    %897 = tpu.matmul %896, %893, %cst_299 {dimension_numbers = #tpu.dot_dimension_numbers<[1], [0], [0], [1], [0, 0, 1, 1], [], []>} : vector<1x32xbf16>, vector<32x32xbf16>, vector<1x32xf32> -> vector<1x32xf32>
    %cst_300 = arith.constant 3.125000e-02 : f32
    %898 = vector.broadcast %cst_300 : f32 to vector<1x32xf32>
    %899 = arith.mulf %897, %898 : vector<1x32xf32>
    %900 = vector.broadcast %899 : vector<1x32xf32> to vector<8x32xf32>
    %901 = arith.subf %892, %900 : vector<8x32xf32>
    %902 = arith.mulf %901, %901 : vector<8x32xf32>
    %cst_301 = arith.constant dense<0.000000e+00> : vector<32xf32>
    %903 = vector.multi_reduction <add>, %902, %cst_301 [0] : vector<8x32xf32> to vector<32xf32>
    %904 = vector.shape_cast %903 : vector<32xf32> to vector<1x32xf32>
    %905 = arith.truncf %904 : vector<1x32xf32> to vector<1x32xbf16>
    %cst_302 = arith.constant dense<0.000000e+00> : vector<1x32xf32>
    %906 = tpu.matmul %905, %893, %cst_302 {dimension_numbers = #tpu.dot_dimension_numbers<[1], [0], [0], [1], [0, 0, 1, 1], [], []>} : vector<1x32xbf16>, vector<32x32xbf16>, vector<1x32xf32> -> vector<1x32xf32>
    %cst_303 = arith.constant 3.125000e-02 : f32
    %907 = vector.broadcast %cst_303 : f32 to vector<1x32xf32>
    %908 = arith.mulf %906, %907 : vector<1x32xf32>
    %cst_304 = arith.constant 9.99999974E-6 : f32
    %909 = vector.broadcast %cst_304 : f32 to vector<1x32xf32>
    %910 = arith.addf %908, %909 : vector<1x32xf32>
    %911 = math.rsqrt %910 : vector<1x32xf32>
    %912 = vector.broadcast %911 : vector<1x32xf32> to vector<8x32xf32>
    %913 = arith.mulf %901, %912 : vector<8x32xf32>
    %c51 = arith.constant 51 : index
    %c0_305 = arith.constant 0 : index
    %914 = vector.load %arg6[%c51, %c0_305] : memref<64x128xf32, #tpu.memory_space<vmem>>, vector<1x32xf32>
    %915 = vector.broadcast %914 : vector<1x32xf32> to vector<8x32xf32>
    %916 = arith.mulf %913, %915 : vector<8x32xf32>
    %c52 = arith.constant 52 : index
    %c0_306 = arith.constant 0 : index
    %917 = vector.load %arg6[%c52, %c0_306] : memref<64x128xf32, #tpu.memory_space<vmem>>, vector<1x32xf32>
    %918 = vector.broadcast %917 : vector<1x32xf32> to vector<8x32xf32>
    %919 = arith.addf %916, %918 : vector<8x32xf32>
    %cst_307 = arith.constant 2.000000e+01 : f32
    %920 = vector.broadcast %cst_307 : f32 to vector<8x32xf32>
    %921 = arith.cmpf ogt, %919, %920 : vector<8x32xf32>
    %cst_308 = arith.constant 2.000000e+01 : f32
    %922 = vector.broadcast %cst_308 : f32 to vector<8x32xf32>
    %923 = arith.minimumf %919, %922 : vector<8x32xf32>
    %924 = math.exp %923 : vector<8x32xf32>
    %925 = math.log1p %924 : vector<8x32xf32>
    %926 = arith.select %921, %919, %925 : vector<8x32xi1>, vector<8x32xf32>
    %927 = math.tanh %926 : vector<8x32xf32>
    %928 = arith.mulf %919, %927 : vector<8x32xf32>
    %929 = arith.addf %928, %822 : vector<8x32xf32>
    %c104 = arith.constant 104 : index
    %c0_309 = arith.constant 0 : index
    %930 = vector.load %arg4[%c104, %c0_309] : memref<4896x128xbf16, #tpu.memory_space<vmem>>, vector<19x8xbf16>
    %931 = arith.truncf %929 : vector<8x32xf32> to vector<8x32xbf16>
    %cst_310 = arith.constant dense<0.000000e+00> : vector<19x32xf32>
    %932 = tpu.matmul %930, %931, %cst_310 {dimension_numbers = #tpu.dot_dimension_numbers<[1], [0], [0], [1], [0, 0, 1, 1], [], []>} : vector<19x8xbf16>, vector<8x32xbf16>, vector<19x32xf32> -> vector<19x32xf32>
    %933 = vector.extract_strided_slice %932 {offsets = [0, 0], sizes = [16, 32], strides = [1, 1]} : vector<19x32xf32> to vector<16x32xf32>
    %934 = vector.extract_strided_slice %932 {offsets = [1, 0], sizes = [16, 32], strides = [1, 1]} : vector<19x32xf32> to vector<16x32xf32>
    %935 = vector.extract_strided_slice %932 {offsets = [2, 0], sizes = [16, 32], strides = [1, 1]} : vector<19x32xf32> to vector<16x32xf32>
    %936 = vector.extract_strided_slice %932 {offsets = [3, 0], sizes = [16, 32], strides = [1, 1]} : vector<19x32xf32> to vector<16x32xf32>
    %937 = tpu.concatenate %933, %934, %935, %936 in 1 : vector<16x32xf32>, vector<16x32xf32>, vector<16x32xf32>, vector<16x32xf32> -> vector<16x128xf32>
    %c4576 = arith.constant 4576 : index
    %c0_311 = arith.constant 0 : index
    %938 = vector.load %arg4[%c4576, %c0_311] : memref<4896x128xbf16, #tpu.memory_space<vmem>>, vector<128x32xbf16>
    %939 = arith.truncf %937 : vector<16x128xf32> to vector<16x128xbf16>
    %cst_312 = arith.constant dense<0.000000e+00> : vector<16x32xf32>
    %940 = tpu.matmul %939, %938, %cst_312 {dimension_numbers = #tpu.dot_dimension_numbers<[1], [0], [0], [1], [0, 0, 1, 1], [], []>} : vector<16x128xbf16>, vector<128x32xbf16>, vector<16x32xf32> -> vector<16x32xf32>
    %c54 = arith.constant 54 : index
    %c0_313 = arith.constant 0 : index
    %941 = vector.load %arg6[%c54, %c0_313] : memref<64x128xf32, #tpu.memory_space<vmem>>, vector<1x32xf32>
    %942 = vector.broadcast %941 : vector<1x32xf32> to vector<16x32xf32>
    %943 = arith.addf %940, %942 : vector<16x32xf32>
    %cst_314 = arith.constant 0.000000e+00 : f32
    %944 = vector.broadcast %cst_314 : f32 to vector<2x32xf32>
    %945 = tpu.concatenate %944, %943, %944 in 0 : vector<2x32xf32>, vector<16x32xf32>, vector<2x32xf32> -> vector<20x32xf32>
    %946 = vector.extract_strided_slice %945 {offsets = [0, 0], sizes = [16, 32], strides = [1, 1]} : vector<20x32xf32> to vector<16x32xf32>
    %947 = vector.extract_strided_slice %945 {offsets = [1, 0], sizes = [16, 32], strides = [1, 1]} : vector<20x32xf32> to vector<16x32xf32>
    %948 = vector.extract_strided_slice %945 {offsets = [2, 0], sizes = [16, 32], strides = [1, 1]} : vector<20x32xf32> to vector<16x32xf32>
    %949 = vector.extract_strided_slice %945 {offsets = [3, 0], sizes = [16, 32], strides = [1, 1]} : vector<20x32xf32> to vector<16x32xf32>
    %950 = vector.extract_strided_slice %945 {offsets = [4, 0], sizes = [16, 32], strides = [1, 1]} : vector<20x32xf32> to vector<16x32xf32>
    %951 = tpu.concatenate %946, %947, %948, %949, %950 in 1 : vector<16x32xf32>, vector<16x32xf32>, vector<16x32xf32>, vector<16x32xf32>, vector<16x32xf32> -> vector<16x160xf32>
    %c4704 = arith.constant 4704 : index
    %c0_315 = arith.constant 0 : index
    %952 = vector.load %arg4[%c4704, %c0_315] : memref<4896x128xbf16, #tpu.memory_space<vmem>>, vector<160x32xbf16>
    %953 = arith.truncf %951 : vector<16x160xf32> to vector<16x160xbf16>
    %cst_316 = arith.constant dense<0.000000e+00> : vector<16x32xf32>
    %954 = tpu.matmul %953, %952, %cst_316 {dimension_numbers = #tpu.dot_dimension_numbers<[1], [0], [0], [1], [0, 0, 1, 1], [], []>} : vector<16x160xbf16>, vector<160x32xbf16>, vector<16x32xf32> -> vector<16x32xf32>
    %c55 = arith.constant 55 : index
    %c0_317 = arith.constant 0 : index
    %955 = vector.load %arg6[%c55, %c0_317] : memref<64x128xf32, #tpu.memory_space<vmem>>, vector<1x32xf32>
    %956 = vector.broadcast %955 : vector<1x32xf32> to vector<16x32xf32>
    %957 = arith.addf %954, %956 : vector<16x32xf32>
    %c0_318 = arith.constant 0 : index
    %c0_319 = arith.constant 0 : index
    %958 = vector.load %arg4[%c0_318, %c0_319] : memref<4896x128xbf16, #tpu.memory_space<vmem>>, vector<32x32xbf16>
    %cst_320 = arith.constant dense<0.000000e+00> : vector<32xf32>
    %959 = vector.multi_reduction <add>, %957, %cst_320 [0] : vector<16x32xf32> to vector<32xf32>
    %960 = vector.shape_cast %959 : vector<32xf32> to vector<1x32xf32>
    %961 = arith.truncf %960 : vector<1x32xf32> to vector<1x32xbf16>
    %cst_321 = arith.constant dense<0.000000e+00> : vector<1x32xf32>
    %962 = tpu.matmul %961, %958, %cst_321 {dimension_numbers = #tpu.dot_dimension_numbers<[1], [0], [0], [1], [0, 0, 1, 1], [], []>} : vector<1x32xbf16>, vector<32x32xbf16>, vector<1x32xf32> -> vector<1x32xf32>
    %cst_322 = arith.constant 1.562500e-02 : f32
    %963 = vector.broadcast %cst_322 : f32 to vector<1x32xf32>
    %964 = arith.mulf %962, %963 : vector<1x32xf32>
    %965 = vector.broadcast %964 : vector<1x32xf32> to vector<16x32xf32>
    %966 = arith.subf %957, %965 : vector<16x32xf32>
    %967 = arith.mulf %966, %966 : vector<16x32xf32>
    %cst_323 = arith.constant dense<0.000000e+00> : vector<32xf32>
    %968 = vector.multi_reduction <add>, %967, %cst_323 [0] : vector<16x32xf32> to vector<32xf32>
    %969 = vector.shape_cast %968 : vector<32xf32> to vector<1x32xf32>
    %970 = arith.truncf %969 : vector<1x32xf32> to vector<1x32xbf16>
    %cst_324 = arith.constant dense<0.000000e+00> : vector<1x32xf32>
    %971 = tpu.matmul %970, %958, %cst_324 {dimension_numbers = #tpu.dot_dimension_numbers<[1], [0], [0], [1], [0, 0, 1, 1], [], []>} : vector<1x32xbf16>, vector<32x32xbf16>, vector<1x32xf32> -> vector<1x32xf32>
    %cst_325 = arith.constant 1.562500e-02 : f32
    %972 = vector.broadcast %cst_325 : f32 to vector<1x32xf32>
    %973 = arith.mulf %971, %972 : vector<1x32xf32>
    %cst_326 = arith.constant 9.99999974E-6 : f32
    %974 = vector.broadcast %cst_326 : f32 to vector<1x32xf32>
    %975 = arith.addf %973, %974 : vector<1x32xf32>
    %976 = math.rsqrt %975 : vector<1x32xf32>
    %977 = vector.broadcast %976 : vector<1x32xf32> to vector<16x32xf32>
    %978 = arith.mulf %966, %977 : vector<16x32xf32>
    %c56 = arith.constant 56 : index
    %c0_327 = arith.constant 0 : index
    %979 = vector.load %arg6[%c56, %c0_327] : memref<64x128xf32, #tpu.memory_space<vmem>>, vector<1x32xf32>
    %980 = vector.broadcast %979 : vector<1x32xf32> to vector<16x32xf32>
    %981 = arith.mulf %978, %980 : vector<16x32xf32>
    %c57 = arith.constant 57 : index
    %c0_328 = arith.constant 0 : index
    %982 = vector.load %arg6[%c57, %c0_328] : memref<64x128xf32, #tpu.memory_space<vmem>>, vector<1x32xf32>
    %983 = vector.broadcast %982 : vector<1x32xf32> to vector<16x32xf32>
    %984 = arith.addf %981, %983 : vector<16x32xf32>
    %cst_329 = arith.constant 2.000000e+01 : f32
    %985 = vector.broadcast %cst_329 : f32 to vector<16x32xf32>
    %986 = arith.cmpf ogt, %984, %985 : vector<16x32xf32>
    %cst_330 = arith.constant 2.000000e+01 : f32
    %987 = vector.broadcast %cst_330 : f32 to vector<16x32xf32>
    %988 = arith.minimumf %984, %987 : vector<16x32xf32>
    %989 = math.exp %988 : vector<16x32xf32>
    %990 = math.log1p %989 : vector<16x32xf32>
    %991 = arith.select %986, %984, %990 : vector<16x32xi1>, vector<16x32xf32>
    %992 = math.tanh %991 : vector<16x32xf32>
    %993 = arith.mulf %984, %992 : vector<16x32xf32>
    %c4864 = arith.constant 4864 : index
    %c0_331 = arith.constant 0 : index
    %994 = vector.load %arg4[%c4864, %c0_331] : memref<4896x128xbf16, #tpu.memory_space<vmem>>, vector<32x128xbf16>
    %995 = arith.truncf %993 : vector<16x32xf32> to vector<16x32xbf16>
    %cst_332 = arith.constant dense<0.000000e+00> : vector<16x128xf32>
    %996 = tpu.matmul %995, %994, %cst_332 {dimension_numbers = #tpu.dot_dimension_numbers<[1], [0], [0], [1], [0, 0, 1, 1], [], []>} : vector<16x32xbf16>, vector<32x128xbf16>, vector<16x128xf32> -> vector<16x128xf32>
    %c58 = arith.constant 58 : index
    %c0_333 = arith.constant 0 : index
    %997 = vector.load %arg6[%c58, %c0_333] : memref<64x128xf32, #tpu.memory_space<vmem>>, vector<1x128xf32>
    %998 = vector.broadcast %997 : vector<1x128xf32> to vector<16x128xf32>
    %999 = arith.addf %996, %998 : vector<16x128xf32>
    %c0_334 = arith.constant 0 : index
    %c0_335 = arith.constant 0 : index
    %c0_336 = arith.constant 0 : index
    %1000 = vector.load %arg7[%c0_334, %c0_335, %c0_336] : memref<1x16x128xf32, #tpu.memory_space<vmem>>, vector<1x16x128xf32>
    %1001 = vector.shape_cast %1000 : vector<1x16x128xf32> to vector<16x128xf32>
    %1002 = vector.shape_cast %999 : vector<16x128xf32> to vector<1x16x128xf32>
    tpu.vector_store %arg7[%c0_334, %c0_335, %c0_336], %1002 {strides = array<i32>} : memref<1x16x128xf32, #tpu.memory_space<vmem>>, vector<1x16x128xf32>,
    return
  }
  func.func @transform_0(%arg0: i32) -> (i32, i32, i32) {
    %c0_i32 = arith.constant 0 : i32
    %c0_i32_0 = arith.constant 0 : i32
    %c0_i32_1 = arith.constant 0 : i32
    return %arg0, %c0_i32, %c0_i32_0 : i32, i32, i32
  }
  func.func @transform_1(%arg0: i32) -> (i32, i32, i32) {
    %c0_i32 = arith.constant 0 : i32
    %c0_i32_0 = arith.constant 0 : i32
    %c0_i32_1 = arith.constant 0 : i32
    return %arg0, %c0_i32, %c0_i32_0 : i32, i32, i32
  }
  func.func @transform_2(%arg0: i32) -> (i32, i32, i32) {
    %c0_i32 = arith.constant 0 : i32
    %c0_i32_0 = arith.constant 0 : i32
    %c0_i32_1 = arith.constant 0 : i32
    return %arg0, %c0_i32, %c0_i32_0 : i32, i32, i32
  }
  func.func @transform_3(%arg0: i32) -> (i32, i32) {
    %c0_i32 = arith.constant 0 : i32
    %c0_i32_0 = arith.constant 0 : i32
    %c0_i32_1 = arith.constant 0 : i32
    return %c0_i32, %c0_i32_0 : i32, i32
  }
  func.func @transform_4(%arg0: i32) -> (i32, i32) {
    %c0_i32 = arith.constant 0 : i32
    %c0_i32_0 = arith.constant 0 : i32
    %c0_i32_1 = arith.constant 0 : i32
    return %c0_i32, %c0_i32_0 : i32, i32
  }
  func.func @transform_5(%arg0: i32) -> (i32, i32) {
    %c0_i32 = arith.constant 0 : i32
    %c0_i32_0 = arith.constant 0 : i32
    %c0_i32_1 = arith.constant 0 : i32
    return %c0_i32, %c0_i32_0 : i32, i32
  }
  func.func @transform_6(%arg0: i32) -> (i32, i32, i32) {
    %c0_i32 = arith.constant 0 : i32
    %c0_i32_0 = arith.constant 0 : i32
    %c0_i32_1 = arith.constant 0 : i32
    return %arg0, %c0_i32, %c0_i32_0 : i32, i32, i32
  }
}

</mosaic_0001>

<bundles_post_ra>
// kernel: forward.1
= control target key start
LH: loop header
LB: loop body
LE: loop exit
PB: predicated region body
PF: predicated region fallthrough
CT: control target
= control target key end

     0   :  { %11 = vsyncpa [#allocation3], 0  ;;  %s12438_s0 = inlined_call_operand.vmem [shape: f32[2,1,32], index: 0, kind: input, shape index: {}]   ;;  %s12439_s1 = inlined_call_operand.hbm [shape: f32[2,1,8], index: 1, kind: input, shape index: {}]   ;;  %s12440_s2 = inlined_call_operand.vmem [shape: f32[2,16,4], index: 2, kind: input, shape index: {}]   ;;  %s12441_s3 = inlined_call_operand.hbm [shape: bf16[4896,128], index: 3, kind: input, shape index: {}]   ;;  %s12442_s4 = inlined_call_operand.hbm [shape: bf16[41,2048], index: 4, kind: input, shape index: {}]   ;;  %s12443_s5 = inlined_call_operand.hbm [shape: f32[64,128], index: 5, kind: input, shape index: {}]   ;;  %s12444_s6 = inlined_call_operand.vmem [shape: f32[2,16,128], index: 6, kind: output, shape index: {}]  }
   0x1   :  { %13 = vsyncpa [#allocation3 + $0x1], 0 }
   0x2   :  { %14 = vsyncpa [#allocation5], 0 }
   0x3   :  { %15 = vsyncpa [#allocation8], 0  ;;  %s11181_s21 = smov 0   ;;  %s11183_s22 = smov 0  }
   0x4   :  { %s11185_s23 = smov 0   ;;  %s11187_s24 = smov 0  }
   0x5 LB: > { %s11200_s25 = sadd.s32 4294967295, %s11124_s24   ;;  %p67_p0 = scmp.ne.s32.totalorder %s11116_s22, %s11112_s21  ;;  %s11124_s24 = sphi %s11187_s24, %s12462_s24   ;;  %s11120_s23 = sphi %s11185_s23, %s12461_s23   ;;  %s11116_s22 = sphi %s11183_s22, %s12460_s22   ;;  %s11112_s21 = sphi %s11181_s21, %s12459_s21  }
   0x6   : > { %p12445_p1 = scmp.eq.s32.totalorder %s11200_s25, 0  ;;  %p8745_p2 = scmp.ge.s32.totalorder %s11124_s24, 1 }
   0x7   : > { %p193_p3 = scmp.lt.s32.totalorder %s11124_s24, 3  ;;  %s11126_s28 = smov [#allocation4]  }
   0x8   : > { %p11208_p4 = por %p12445_p1, %p67_p0  ;;  %s205_s29 = sshll.u32 %s11126_s28, 4  ;;  %s206_s29 = int_to_ptr.vmem [resolvable:$true] %s205_s29 }
   0x9   : > { %p11212_p5 = pnand %p8745_p2, %p193_p3  ;;  %s11127_s7 = smov [#allocation6]  }
   0xa   : > { %s12448_s26 = scalar_select %p11208_p4, 1, 0 }
   0xb   : > { %s12449_s27 = scalar_select %p11212_p5, 1, 0 }
   0xc   : > { %p10256_p6 = pneg %p11212_p5  ;;  %s218_s8 = sshll.u32 %s11127_s7, 4  ;;  %s11224_s8 = int_to_ptr.vmem [resolvable:$true] %s218_s8 }
   0xd   : > { %s10968_s11 = scalar_lea.hbm %s12441_s3, 39168 }
   0xe   : > { %p11220_p7 = pnand %p10256_p6, %p12445_p1  ;;  %p10969_p8 = scmp.ne.s32.totalorder %s12441_s3, %s10968_s11 }
   0xf   : > { %p10975_p12 = scmp.lt.u32.totalorder %s10968_s11, %s12441_s3 }
  0x10   : > { %p11234_p9 = pneg %p11220_p7 }
  0x12   : > { %p10971_p10 = pnand %p11234_p9, %p10969_p8 }
  0x14   : > { %p10972_p11 = pneg %p10971_p10 }
  0x16   : > { %p10977_p13 = pnand %p10975_p12, %p10972_p11 }
  0x18   : > { %10980 = shalt.err (!%p10977_p13)
}
  0x19   : > { %s10981_s17 = scalar_lea.vmem %s206_s29, 39168  ;;  %p10989_p6 = scmp.lt.s32.totalorder %s206_s29, %s206_s29 }
  0x1a   : > { %p10982_p0 = scmp.ne.s32.totalorder %s206_s29, %s10981_s17  ;;  %p10990_p1 = scmp.lt.s32.totalorder %s10981_s17, %s10981_s17 }
  0x1c   : > { %p10984_p2 = pnand %p10982_p0, %p11234_p9  ;;  %p10991_p4 = por %p10990_p1, %p10989_p6 }
  0x1e   : > { %p10985_p3 = pneg %p10984_p2 }
  0x20   : > { %p10992_p5 = pnand %p10991_p4, %p10985_p3 }
  0x22   : > { %10995 = shalt.err (!%p10992_p5)
}
  0x23   : > { %s11128_s18 = smov 64   ;;  %s11129_s19 = smov 4  }
  0x24   : > { %10259 = dma.hbm_to_vmem [thread:$0]  (!%p11220_p7), %s12441_s3, 39168, %s206_s29, [#allocation5], %s11128_s18, %s11128_s18, %s11129_s19  }
  0x25   : > { %s10996_s9 = scalar_lea.hbm %s12442_s4, 6144 }
  0x26   : > { %p10997_p8 = scmp.ne.s32.totalorder %s12442_s4, %s10996_s9  ;;  %p11003_p5 = scmp.lt.u32.totalorder %s10996_s9, %s12442_s4 }
  0x28   : > { %p10999_p1 = pnand %p10997_p8, %p11234_p9 }
  0x2a   : > { %p11000_p4 = pneg %p10999_p1 }
  0x2c   : > { %p11005_p10 = pnand %p11003_p5, %p11000_p4 }
  0x2e   : > { %11008 = shalt.err (!%p11005_p10)
}
  0x2f   : > { %s11009_s29 = scalar_lea.vmem %s11224_s8, 6144  ;;  %p11017_p0 = scmp.lt.s32.totalorder %s11224_s8, %s11224_s8 }
  0x30   : > { %p11010_p11 = scmp.ne.s32.totalorder %s11224_s8, %s11009_s29  ;;  %p11018_p2 = scmp.lt.s32.totalorder %s11009_s29, %s11009_s29 }
  0x32   : > { %p11012_p12 = pnand %p11010_p11, %p11234_p9  ;;  %p11019_p3 = por %p11018_p2, %p11017_p0 }
  0x34   : > { %p11013_p13 = pneg %p11012_p12 }
  0x36   : > { %p11020_p6 = pnand %p11019_p3, %p11013_p13 }
  0x38   : > { %11023 = shalt.err (!%p11020_p6)
}
  0x39   : > { %s11130_s15 = smov 1024   ;;  %s11131_s19 = smov [#allocation7]  }
  0x3a   : > { %10262 = dma.hbm_to_vmem [thread:$0]  (!%p11220_p7), %s12442_s4, 6144, %s11224_s8, [#allocation5], %s11130_s15, %s11130_s15, %s11128_s18  }
  0x3b   : > { %s231_s20 = sshll.u32 %s11131_s19, 4  ;;  %s11024_s7 = scalar_lea.hbm %s12443_s5, 1024  ;;  %s232_s20 = int_to_ptr.vmem [resolvable:$true] %s231_s20 }
  0x3c   : > { %p11025_p8 = scmp.ne.s32.totalorder %s12443_s5, %s11024_s7  ;;  %p11031_p5 = scmp.lt.u32.totalorder %s11024_s7, %s12443_s5 }
  0x3e   : > { %p11027_p1 = pnand %p11025_p8, %p11234_p9 }
  0x40   : > { %p11028_p4 = pneg %p11027_p1 }
  0x42   : > { %p11033_p10 = pnand %p11031_p5, %p11028_p4 }
  0x44   : > { %11036 = shalt.err (!%p11033_p10)
}
  0x45   : > { %s11037_s8 = scalar_lea.vmem %s232_s20, 1024  ;;  %p11045_p0 = scmp.lt.s32.totalorder %s232_s20, %s232_s20 }
  0x46   : > { %p11038_p11 = scmp.ne.s32.totalorder %s232_s20, %s11037_s8  ;;  %p11046_p2 = scmp.lt.s32.totalorder %s11037_s8, %s11037_s8 }
  0x48   : > { %p11040_p12 = pnand %p11038_p11, %p11234_p9  ;;  %p11047_p3 = por %p11046_p2, %p11045_p0 }
  0x4a   : > { %p11041_p13 = pneg %p11040_p12 }
  0x4c   : > { %p11048_p6 = pnand %p11047_p3, %p11041_p13 }
  0x4e   : > { %11051 = shalt.err (!%p11048_p6)
}
  0x4f   : > { %s11132_s18 = smov 128   ;;  %s11133_s14 = smov 8  }
  0x50   : > { %10265 = dma.hbm_to_vmem [thread:$0]  (!%p11220_p7), %s12443_s5, 1024, %s232_s20, [#allocation8], %s11132_s18, %s11132_s18, %s11133_s14  }
  0x51   : > { %s11292_s15 = sadd.s32 1, %s11124_s24   ;;  %s54_s17 = sadd.s32 1, %s11120_s23 }
  0x52   : > { %s51_s16 = ssub.s32 %s11124_s24, %s11292_s15  ;;  %p61_p8 = scmp.ne.s32.totalorder %s11120_s23, %s11116_s22 }
  0x53   : > { %p52_p9 = scmp.eq.s32.totalorder %s51_s16, 0  ;;  %p62_p1 = scmp.eq.s32.totalorder %s11124_s24, 0 }
  0x54   : > { %p10273_p5 = scmp.lt.s32.totalorder %s11124_s24, 2  ;;  %s251_s21 = sand.u32 1, %s11120_s23  }
  0x55   : > { %s11301_s19 = scalar_select %p52_p9, %s11120_s23, %s54_s17  }
  0x56   : > { %p63_p4 = por %p62_p1, %p61_p8  ;;  %s8750_s28 = sshll.u32 %s11124_s24, 4 }
  0x57   : > { %s11309_s9 = scalar_lea.hbm %s12439_s1, %s8750_s28  ;;  %s254_s20 = scalar_lea.vmem [#allocation2], %s251_s21 }
  0x58   : > { %s261_s10 = sshll.u32 %s254_s20, 4  ;;  %p11313_p7 = pnand %p10273_p5, %p63_p4  ;;  %s11311_s10 = int_to_ptr.vmem [resolvable:$true] %s261_s10 }
  0x59   : > { %s252_s24 = scalar_lea.sflag [#allocation3], %s251_s21  ;;  %s11052_s12 = scalar_lea.hbm %s11309_s9, 16 }
  0x5a   : > { %p11053_p10 = scmp.ne.s32.totalorder %s11309_s9, %s11052_s12  ;;  %p11054_p11 = pneg %p11313_p7 }
  0x5b   : > { %s11057_s14 = scalar_lea.hbm %s12439_s1, 32  ;;  %p11058_p0 = scmp.lt.u32.totalorder %s11309_s9, %s12439_s1 }
  0x5c   : > { %p11055_p12 = pnand %p11054_p11, %p11053_p10  ;;  %p11059_p2 = scmp.lt.u32.totalorder %s11057_s14, %s11052_s12 }
  0x5d   : > { %p11061_p6 = scmp.lt.u32.totalorder %s11052_s12, %s11309_s9 }
  0x5e   : > { %p11056_p13 = pneg %p11055_p12  ;;  %p11060_p3 = por %p11059_p2, %p11058_p0 }
  0x60   : > { %p11062_p9 = por %p11061_p6, %p11060_p3 }
  0x62   : > { %p11063_p8 = pnand %p11062_p9, %p11056_p13 }
  0x64   : > { %11066 = shalt.err (!%p11063_p8)
}
  0x65   : > { %s11067_s16 = scalar_lea.vmem %s11311_s10, 16  ;;  %s11134_s17 = smov [#allocation2]  }
  0x66   : > { %p11068_p1 = scmp.ne.s32.totalorder %s11311_s10, %s11067_s16  ;;  %s11072_s21 = sshll.u32 %s11134_s17, 4  ;;  %s11073_s21 = int_to_ptr.vmem [resolvable:$false] %s11072_s21 }
  0x67   : > { %s11074_s28 = scalar_lea.vmem %s11073_s21, 32  ;;  %p11075_p10 = scmp.lt.s32.totalorder %s11311_s10, %s11073_s21 }
  0x68   : > { %p11070_p4 = pnand %p11068_p1, %p11054_p11  ;;  %p11076_p12 = scmp.lt.s32.totalorder %s11074_s28, %s11067_s16 }
  0x6a   : > { %p11071_p5 = pneg %p11070_p4  ;;  %p11077_p0 = por %p11076_p12, %p11075_p10 }
  0x6c   : > { %p11078_p2 = pnand %p11077_p0, %p11071_p5 }
  0x6e   : > { %11081 = shalt.err (!%p11078_p2)
}
  0x6f   : > { %10269 = dma.hbm_to_vmem [thread:$0]  (!%p11313_p7), %s11309_s9, 16, %s11311_s10, %s252_s24  }
  0x70   : > { %p12453_p13 = scmp.ne.s32.totalorder %s12449_s27, 0 }
  0x71   : > { %s280_s7 = sand.u32 (!%p12453_p13), 1, %s11116_s22   ;;  %p12454_p11 = scmp.ne.s32.totalorder (!%p12453_p13), %s12448_s26, 0 }
  0x72   : > { %278 = sbr.rel (%p12453_p13) target bundleno = 16830 (0x41be), region = 44  ;;  %s281_s30 = scalar_lea.sflag (!%p12453_p13), [#allocation3], %s280_s7 }
  0x73   : > { %s11345_s20 = scalar_lea.vmem (!%p12453_p13), [#allocation2], %s280_s7 }
  0x79   : > { %11099 = dma.done.wait (%p12454_p11), %s281_s30, 16  }
  0x7a   : > { %11101 = vsyncadd (%p12454_p11), %s281_s30, 4294967280  ;;  %p12455_p3 = scmp.eq.s32.totalorder %s11200_s25, 0 }
  0x7c   : > { %11103 = dma.done.wait (%p12455_p3), [#allocation5], 45312   ;;  %p12456_p6 = pmov %p12455_p3 }
  0x7d   : > { %p12457_p7 = pmov %p12455_p3 }
  0x7e   : > { %11105 = vsyncadd (%p12456_p6), [#allocation5], 4294921984 }
  0x7f   : > { %11107 = dma.done.wait (%p12457_p7), [#allocation8], 1024   ;;  %p12458_p9 = pmov %p12455_p3 }
  0x80   : > { %p331_p8 = scmp.lt.s32.totalorder %s11200_s25, 1  ;;  %v11135_v0 = vmov 0.0   ;;  %vm11136_vm0 = vmmov 0   ;;  %v10468_v1 = vld [vmem:[#allocation4 + $0x40] sm:$0xff]   ;;  %v10469_v2 = vld [vmem:[#allocation4 + $0x48] sm:$0xff]   ;;  %vm364_vm1 = vcmask 261120  }
  0x81   : > { %11109 = vsyncadd (%p12458_p9), [#allocation8], 4294966272  ;;  %9675 = vmatprep.subr.bf16.mxu0 %v11135_v0  ;;  %9679 = vmatprep.mubr.msk.bf16.mxu0 %vm11136_vm0, %v11135_v0  ;;  %v10470_v5 = vld [vmem:[#allocation4 + $0x50] sm:$0xff]   ;;  %v10471_v6 = vld [vmem:[#allocation4 + $0x58] sm:$0xff]   ;;  %vm1219_vm2 = vcmask 1041408   ;;  %s11137_s8 = smov 32  }
  0x82   : > { %s12464_s25 = smov (!%p331_p8, %s11200_s25), 1  ;;  %9683 = vmatprep.subr.bf16.mxu1 %v11135_v0  ;;  %9699 = vmatprep.mubr.msk.bf16.mxu1 %vm11136_vm0, %v11135_v0  ;;  %v10472_v7 = vld [vmem:[#allocation4 + $0x60] sm:$0xff]   ;;  %v10473_v8 = vld [vmem:[#allocation4 + $0x68] sm:$0xff]   ;;  %v10474_v9 = vld [vmem:[#allocation4 + $0x70] sm:$0xff]   ;;  %vm1242_vm3 = vcmask 1045504   ;;  %vm1230_vm4 = vcmask 1046528  }
  0x83   : > { %s333_s9 = scalar_lea.vmem %s12438_s0, %s12464_s25  ;;  %9676 = vmatpush3.bf16.msra.mxu0 %v10468_v1  ;;  %9684 = vmatpush3.bf16.msra.mxu1 %v10470_v5  ;;  %s9244_s10 = sshll.u32 %s12464_s25, 4  ;;  %v10475_v10 = vld [vmem:[#allocation4 + $0x78] sm:$0xff]   ;;  %v10476_v11 = vld [vmem:[#allocation4 + $0x80] sm:$0xff]   ;;  %v10477_v12 = vld [vmem:[#allocation4 + $0x88] sm:$0xff]   ;;  %vm836_vm5 = vcmask 1044480   ;;  %vm835_vm6 = vcmask 1043456  }
  0x84   : > { %v345_v3 = vld [vmem:[%s333_s9] sm:$0x1]  ;;  %9677 = vmatprep.subr.bf16.mxu0 %v11135_v0  ;;  %9685 = vmatprep.subr.bf16.mxu1 %v11135_v0  ;;  %s11387_s12 = scalar_lea.vmem %s12440_s2, %s9244_s10  ;;  %s11138_s18 = smov 8   ;;  %v351_v45 = vld [vmem:[#allocation7] sm:$0x1]  ;;  %v562_v5 = vld [vmem:[#allocation6 + $0x18] sm:$0xff] }
  0x85   : > { %v350_v4 = vpack.c.bf16 %v345_v3, %v345_v3  ;;  %v1215_v13 = vld [vmem:[%s11387_s12] sm:$0xff]  ;;  %v1216_v15 = vld [vmem:[%s11387_s12 + $0x8] sm:$0xff]  ;;  %s11139_s14 = smov 4   ;;  %s11140_s13 = smov 12   ;;  %v559_v3 = vld [vmem:[#allocation6] sm:$0xff]  ;;  %vm556_vm11 = vcmask 326656  }
  0x86   : > { %v8770_v14 = vld [vmem:[%s11345_s20] ss:$0 sm:$0xff]  ;;  %v1220_v16 = vrot.slane %v1215_v13, 6  ;;  %v1221_v17 = vrot.slane %v1216_v15, 6  ;;  %s11141_s29 = smov 16   ;;  %v578_v13 = vld [vmem:[#allocation6 + $0x98] sm:$0xff]  ;;  %s343_s7 = scalar_lea.vmem %s12444_s6, %s9244_s10 }
  0x87   : > { %9678 = vmatpush3.bf16.msra.mxu0 %v10469_v2  ;;  %9686 = vmatpush3.bf16.msra.mxu1 %v10471_v6  ;;  %v586_v15 = vld [vmem:[#allocation6 + $0xd8] sm:$0xff]  ;;  %vm831_vm12 = vcmask 334848   ;;  %vm1276_vm13 = vcmask 31744   ;;  %vm1279_vm14 = vcmask 64512   ;;  %vm1282_vm15 = vcmask 97280   ;;  %s11144_s16 = smov 64  }
  0x88   : > { %9687 = vmatprep.subr.bf16.mxu1 %v11135_v0  ;;  %536 = vrot.lane.b32.xlu0 %v8770_v14, %s11137_s8  ;;  %v11395_v18 = vsel %vm1219_vm2, 0.0, %v1220_v16  ;;  %v11398_v19 = vsel %vm1219_vm2, %v1220_v16, %v1221_v17  ;;  %v1227_v20 = vsel %vm1219_vm2, %v1221_v17, 0.0  ;;  %v8793_v17 = vcombine.low %v578_v13, %v586_v15  ;;  %s11145_s17 = smov 96  }
  0x89   : > { %v1243_v21 = vrot.slane %v11395_v18, 2  ;;  %v1231_v22 = vrot.slane %v11395_v18, 1  ;;  %v1244_v23 = vrot.slane %v11398_v19, 2  ;;  %v1246_v24 = vrot.slane %v1227_v20, 2 }
  0x8a   : > { %9680 = vmatmul.mubr.msk.bf16.vlgmr.msra.gmra.mrb[0].mxu0 %vm364_vm1, %v350_v4  ;;  %v1232_v25 = vrot.slane %v11398_v19, 1  ;;  %v1234_v26 = vrot.slane %v1227_v20, 1  ;;  %v1254_v27 = vrot.slane %v11395_v18, 3  ;;  %v1255_v28 = vrot.slane %v11398_v19, 3  ;;  %v567_v4 = vld [vmem:[#allocation6 + $0x40] sm:$0xff] }
  0x8b   : > { %9688 = vmatpush3.bf16.msra.mxu1 %v10472_v7  ;;  %v1257_v29 = vrot.slane %v1227_v20, 3  ;;  %v1265_v30 = vrot.slane %v11395_v18, 4  ;;  %v1245_v31 = vsel %vm1242_vm3, %v1243_v21, %v1244_v23  ;;  %v1247_v32 = vsel %vm1242_vm3, %v1244_v23, %v1246_v24  ;;  %v570_v7 = vld [vmem:[#allocation6 + $0x58] sm:$0xff]  ;;  %v591_v21 = vld [vmem:[#allocation6 + $0x100] sm:$0xff] }
  0x8c   : > { %9689 = vmatprep.subr.bf16.mxu1 %v11135_v0  ;;  %v1233_v33 = vsel %vm1230_vm4, %v1231_v22, %v1232_v25  ;;  %v1235_v34 = vsel %vm1230_vm4, %v1232_v25, %v1234_v26  ;;  %v10333_v35 = vpack.i.bf16 %v1247_v32, %v1245_v31  ;;  %v1256_v37 = vsel %vm836_vm5, %v1254_v27, %v1255_v28  ;;  %v599_v22 = vld [vmem:[#allocation6 + $0x140] sm:$0x11]  ;;  %v594_v23 = vld [vmem:[#allocation6 + $0x118] sm:$0xff] }
  0x8d   : > { %v10328_v36 = vpack.i.bf16 %v1235_v34, %v1233_v33  ;;  %v1258_v38 = vsel %vm836_vm5, %v1255_v28, %v1257_v29  ;;  %v1266_v39 = vrot.slane %v11398_v19, 4  ;;  %v1268_v40 = vrot.slane %v1227_v20, 4  ;;  %v602_v27 = vld [vmem:[#allocation6 + $0x158] sm:$0x11] }
  0x8e   : > { %10334 = vrot.lane.b32.xlu1 %v10333_v35, %s11138_s18  ;;  %v10338_v41 = vpack.i.bf16 %v1258_v38, %v1256_v37  ;;  %v8772_v6 = vcombine.high %v559_v3, %v567_v4  ;;  %v8794_v20 = vcombine.high %v578_v13, %v586_v15  ;;  %v8804_v24 = vcombine.high %v591_v21, %v599_v22  ;;  %v568_v37 = vld [vmem:[#allocation6 + $0x48] sm:$0xff] }
  0x8f   : > { %9690 = vmatpush3.bf16.msra.mxu1 %v10473_v8  ;;  %10329 = vrot.lane.b32.xlu0 %v10328_v36, %s11139_s14  ;;  %v1267_v42 = vsel %vm835_vm6, %v1265_v30, %v1266_v39  ;;  %v1269_v43 = vsel %vm835_vm6, %v1266_v39, %v1268_v40  ;;  %v8771_v8 = vcombine.low %v559_v3, %v567_v4  ;;  %v11142_v25 = vmov 65535   ;;  %v560_v36 = vld [vmem:[#allocation6 + $0x8] sm:$0xff] }
  0x90   : > { %9691 = vmatprep.subr.bf16.mxu1 %v11135_v0  ;;  %v10343_v44 = vpack.i.bf16 %v1269_v43, %v1267_v42  ;;  %887 = vmatprep.subr.bf16.mxu0 %v8772_v6  ;;  %v837_v26 = vsel %vm835_vm6, 4294967295, %v11142_v25  ;;  %v8803_v28 = vcombine.low %v591_v21, %v599_v22  ;;  %v8809_v30 = vcombine.low %v594_v23, %v602_v27  ;;  %v564_v38 = vld [vmem:[#allocation6 + $0x28] sm:$0xff] }
  0x91   : > { %888 = vmatpush1.bf16.msra.mxu0 %v8771_v8  ;;  %v11419_v29 = vsel %vm836_vm5, %v837_v26, 0  ;;  %v8810_v31 = vcombine.high %v594_v23, %v602_v27  ;;  %v8774_v39 = vcombine.high %v560_v36, %v568_v37  ;;  %v572_v40 = vld [vmem:[#allocation6 + $0x68] sm:$0xff]  ;;  %v561_v26 = vld [vmem:[#allocation6 + $0x10] sm:$0xff] }
  0x92   : > { %10339 = vrot.lane.b32.xlu1 %v10338_v41, %s11140_s13  ;;  %v843_v32 = vand.u32 %v8804_v24, %v11419_v29  ;;  %v840_v34 = vand.u32 %v8803_v28, %v11419_v29  ;;  %v858_v35 = vand.u32 %v8809_v30, %v11419_v29  ;;  %v8773_v41 = vcombine.low %v560_v36, %v568_v37  ;;  %v584_v3 = vld [vmem:[#allocation6 + $0xc8] sm:$0xff]  ;;  %v569_v27 = vld [vmem:[#allocation6 + $0x50] sm:$0xff]  ;;  %v566_v28 = vld [vmem:[#allocation6 + $0x38] sm:$0xff] }
  0x93   : > { %9692 = vmatpush3.bf16.msra.mxu1 %v10474_v9  ;;  %10344 = vrot.lane.b32.xlu0 %v10343_v44, %s11141_s29  ;;  %v8777_v9 = vcombine.low %v562_v5, %v570_v7  ;;  %v861_v33 = vand.u32 %v8810_v31, %v11419_v29  ;;  %v8781_v42 = vcombine.low %v564_v38, %v572_v40  ;;  %v11143_v44 = vmov 0   ;;  %v588_v6 = vld [vmem:[#allocation6 + $0xe8] sm:$0xff]  ;;  %v574_v30 = vld [vmem:[#allocation6 + $0x78] sm:$0xff] }
  0x94   : > { %9693 = vmatprep.subr.bf16.mxu1 %v11135_v0  ;;  %v8782_v43 = vcombine.high %v564_v38, %v572_v40  ;;  %919 = vmatprep.mubr.bf16.mxu0 %v11143_v44  ;;  %v8786_v36 = vcombine.high %v566_v28, %v574_v30  ;;  %v582_v37 = vld [vmem:[#allocation6 + $0xb8] sm:$0xff]  ;;  %v601_v40 = vld [vmem:[#allocation6 + $0x150] sm:$0x11] }
  0x95   : > { %v590_v38 = vld [vmem:[#allocation6 + $0xf8] sm:$0xff] }
  0x97   : > { %9694 = vmatpush3.bf16.msra.mxu1 %v10475_v10  ;;  %v8778_v10 = vcombine.high %v562_v5, %v570_v7  ;;  %v580_v5 = vld [vmem:[#allocation6 + $0xa8] sm:$0xff] }
  0x98   : > { %9695 = vmatprep.subr.bf16.mxu1 %v11135_v0  ;;  %v592_v7 = vld [vmem:[#allocation6 + $0x108] sm:$0xff]  ;;  %v8798_v15 = vcombine.high %v580_v5, %v588_v6  ;;  %v8797_v21 = vcombine.low %v580_v5, %v588_v6 }
  0x9b   : > { %9696 = vmatpush3.bf16.msra.mxu1 %v10476_v11  ;;  %v575_v11 = vld [vmem:[#allocation6 + $0x80] sm:$0xff] }
  0x9c   : > { %9697 = vmatprep.subr.bf16.mxu1 %v11135_v0 }
  0x9f   : > { %9698 = vmatpush3.bf16.msra.mxu1 %v10477_v12  ;;  %v583_v12 = vld [vmem:[#allocation6 + $0xc0] sm:$0xff] }
  0xa0   : > { %1010 = vmatprep.subr.bf16.mxu1 %v8778_v10  ;;  %v8788_v14 = vcombine.high %v575_v11, %v583_v12  ;;  %v8787_v16 = vcombine.low %v575_v11, %v583_v12  ;;  %v596_v10 = vld [vmem:[#allocation6 + $0x128] sm:$0xff] }
  0xa1   : > { %v604_v11 = vld [vmem:[#allocation6 + $0x168] sm:$0x11] }
  0xa2   : > { %889 = vmatprep.subr.bf16.mxu0 %v8788_v14  ;;  %v8813_v23 = vcombine.low %v596_v10, %v604_v11 }
  0xa3   : > { %890 = vmatpush1.bf16.msra.mxu0 %v8787_v16 }
  0xa4   : > { %891 = vmatprep.subr.bf16.mxu0 %v843_v32  ;;  %v870_v32 = vand.u32 %v8813_v23, %v11419_v29 }
  0xa7   : > { %892 = vmatpush1.bf16.msra.mxu0 %v840_v34  ;;  %v585_v34 = vld [vmem:[#allocation6 + $0xd0] sm:$0xff] }
  0xa8   : > { %928 = vmatprep.subr.bf16.mxu0 %v8774_v39  ;;  %v593_v39 = vld [vmem:[#allocation6 + $0x110] sm:$0xff] }
 0x15d   : > { %v402_v46 = vpop.f32.mrb[0].mxu0 }
 0x15e   : > { %v403_v47 = vadd.f32 %v402_v46, %v351_v45  ;;  %v9681_v48 = vpop.f32.mrb[1].mxu0  ;;  %v441_v45 = vld [vmem:[#allocation7 + $0x1] sm:$0x1] }
 0x15f   : > { %v405_v49 = vpop.f32.mrb[2].mxu0 }
 0x160   : > { %v409_v50 = vmin.f32 %v403_v47, 20.0  ;;  %v9682_v51 = vpop.f32.mrb[3].mxu0  ;;  %vm408_vm8 = vcmp.gt.f32.partialorder %v403_v47, 20.0 }
 0x162   : > { %v410_v52 = vmul.f32 1.442695, %v409_v50 }
 0x164   : > { %10774 = vpow2.f32 %v410_v52 }
 0x16e   : > { %v10775_v53 = vpop.eup %10774 }
 0x16f   : > { %v412_v54 = vadd.f32 1.0, %v10775_v53  ;;  %v415_v55 = vmul.f32 -0.5, %v10775_v53  ;;  %v418_v57 = vand.u32 2147483647, %v10775_v53 }
 0x171   : > { %10776 = vlog2.f32 %v412_v54  ;;  %v416_v56 = vadd.f32 1.0, %v415_v55  ;;  %vm419_vm7 = vcmp.lt.f32.partialorder %v418_v57, 0.0004427343 }
 0x173   : > { %v417_v60 = vmul.f32 %v10775_v53, %v416_v56 }
 0x17b   : > { %v10777_v58 = vpop.eup %10776 }
 0x17c   : > { %v414_v59 = vmul.f32 0.6931472, %v10777_v58 }
 0x17e   : > { %v420_v61 = vsel %vm419_vm7, %v417_v60, %v414_v59  ;;  %vm1285_vm7 = vcmask 130048  }
 0x17f   : > { %v421_v62 = vsel %vm408_vm8, %v403_v47, %v420_v61  ;;  %vm1306_vm8 = vcmask 162816  }
 0x180   : > { %10778 = vtanh.f32 %v421_v62 }
 0x18a   : > { %v10779_v63 = vpop.eup %10778 }
 0x18b   : > { %v423_v1 = vmul.f32 %v10779_v63, %v403_v47  ;;  %v537_v47 = vpop.permute.xlu0 %536 }
 0x18d   : > { %v440_v2 = vpack.c.bf16 %v423_v1, %v423_v1 }
 0x18f   : > { %9700 = vmatmul.mubr.bf16.vlgmr.msra.gmra.mrb[0].mxu1 %v440_v2  ;;  %v576_v2 = vld [vmem:[#allocation6 + $0x88] sm:$0xff]  ;;  %v10330_v23 = vpop.permute.xlu0 %10329 }
 0x190   : > { %1011 = vmatpush1.bf16.msra.mxu1 %v8777_v9  ;;  %1042 = vmatprep.mubr.bf16.mxu1 %v11143_v44  ;;  %v600_v9 = vld [vmem:[#allocation6 + $0x148] sm:$0x11]  ;;  %v8790_v13 = vcombine.high %v576_v2, %v584_v3 }
 0x191   : > { %1012 = vmatprep.subr.bf16.mxu1 %v8794_v20  ;;  %v8806_v16 = vcombine.high %v592_v7, %v600_v9  ;;  %v8789_v20 = vcombine.low %v576_v2, %v584_v3  ;;  %v8805_v22 = vcombine.low %v592_v7, %v600_v9  ;;  %v573_v9 = vld [vmem:[#allocation6 + $0x70] sm:$0xff] }
 0x193   : > { %v849_v24 = vand.u32 %v8806_v16, %v11419_v29  ;;  %v846_v31 = vand.u32 %v8805_v22, %v11419_v29  ;;  %v605_v16 = vld [vmem:[#allocation6 + $0x170] sm:$0x11]  ;;  %v10335_v22 = vpop.permute.xlu1 %10334 }
 0x194   : > { %1013 = vmatpush1.bf16.msra.mxu1 %v8793_v17  ;;  %v8814_v17 = vcombine.high %v596_v10, %v604_v11 }
 0x195   : > { %1014 = vmatprep.subr.bf16.mxu1 %v861_v33  ;;  %v577_v33 = vld [vmem:[#allocation6 + $0x90] sm:$0xff] }
 0x196   : > { %v873_v25 = vand.u32 %v8814_v17, %v11419_v29 }
 0x198   : > { %1015 = vmatpush1.bf16.msra.mxu1 %v858_v35  ;;  %v8776_v35 = vcombine.high %v561_v26, %v569_v27 }
 0x199   : > { %1092 = vmatprep.subr.bf16.mxu1 %v8782_v43  ;;  %v8775_v43 = vcombine.low %v561_v26, %v569_v27  ;;  %v10332_v26 = vunpack.i.h.bf16 %v10330_v23  ;;  %v10331_v27 = vunpack.i.l.bf16 %v10330_v23 }
 0x262   : > { %v524_v46 = vpop.f32.mrb[0].mxu1 }
 0x263   : > { %v525_v48 = vadd.f32 %v524_v46, %v441_v45  ;;  %v9701_v49 = vpop.f32.mrb[1].mxu1  ;;  %v8785_v45 = vcombine.low %v566_v28, %v574_v30  ;;  %v8792_v46 = vcombine.high %v577_v33, %v585_v34  ;;  %v10337_v30 = vunpack.i.h.bf16 %v10335_v22 }
 0x264   : > { %v527_v50 = vpop.f32.mrb[2].mxu1 }
 0x265   : > { %v539_v51 = vsel %vm364_vm1, %v525_v48, %v537_v47  ;;  %v9702_v52 = vpop.f32.mrb[3].mxu1  ;;  %v8802_v47 = vcombine.high %v582_v37, %v590_v38  ;;  %v8808_v48 = vcombine.high %v593_v39, %v601_v40  ;;  %v8791_v50 = vcombine.low %v577_v33, %v585_v34  ;;  %v10340_v33 = vpop.permute.xlu1 %10339 }
 0x266   : > { %v541_v53 = vmin.f32 %v539_v51, 20.0  ;;  %vm540_vm10 = vcmp.gt.f32.partialorder %v539_v51, 20.0  ;;  %v8807_v52 = vcombine.low %v593_v39, %v601_v40  ;;  %v1278_v34 = vsel %vm1276_vm13, %v11398_v19, %v10332_v26 }
 0x267   : > { %v1281_v40 = vsel %vm1279_vm14, %v1278_v34, %v10337_v30 }
 0x268   : > { %v542_v54 = vmul.f32 1.442695, %v541_v53 }
 0x26a   : > { %10780 = vpow2.f32 %v542_v54  ;;  %v855_v54 = vand.u32 %v8808_v48, %v11419_v29 }
 0x274   : > { %v10781_v55 = vpop.eup %10780 }
 0x275   : > { %v544_v56 = vadd.f32 1.0, %v10781_v55  ;;  %v547_v57 = vmul.f32 -0.5, %v10781_v55  ;;  %v550_v59 = vand.u32 2147483647, %v10781_v55 }
 0x277   : > { %10782 = vlog2.f32 %v544_v56  ;;  %v548_v58 = vadd.f32 1.0, %v547_v57  ;;  %vm551_vm9 = vcmp.lt.f32.partialorder %v550_v59, 0.0004427343  ;;  %v563_v56 = vld [vmem:[#allocation6 + $0x20] sm:$0xff] }
 0x278   : > { %v571_v57 = vld [vmem:[#allocation6 + $0x60] sm:$0xff] }
 0x279   : > { %v549_v62 = vmul.f32 %v10781_v55, %v548_v58  ;;  %v852_v58 = vand.u32 %v8807_v52, %v11419_v29  ;;  %v8779_v2 = vcombine.low %v563_v56, %v571_v57 }
 0x281   : > { %v10783_v60 = vpop.eup %10782 }
 0x282   : > { %v546_v61 = vmul.f32 0.6931472, %v10783_v60  ;;  %v8780_v60 = vcombine.high %v563_v56, %v571_v57 }
 0x284   : > { %v552_v63 = vsel %vm551_vm9, %v549_v62, %v546_v61  ;;  %v579_v61 = vld [vmem:[#allocation6 + $0xa0] sm:$0xff] }
 0x285   : > { %v553_v1 = vsel %vm540_vm10, %v539_v51, %v552_v63  ;;  %v587_v62 = vld [vmem:[#allocation6 + $0xe0] sm:$0xff] }
 0x286   : > { %10784 = vtanh.f32 %v553_v1  ;;  %v595_v63 = vld [vmem:[#allocation6 + $0x120] sm:$0xff]  ;;  %v8796_v3 = vcombine.high %v579_v61, %v587_v62  ;;  %v8795_v5 = vcombine.low %v579_v61, %v587_v62 }
 0x287   : > { %v603_v1 = vld [vmem:[#allocation6 + $0x160] sm:$0x11] }
 0x288   : > { %v8811_v6 = vcombine.low %v595_v63, %v603_v1 }
 0x28a   : > { %v864_v10 = vand.u32 %v8811_v6, %v11419_v29 }
 0x290   : > { %v10785_v4 = vpop.eup %10784 }
 0x291   : > { %v555_v8 = vmul.f32 %v10785_v4, %v539_v51  ;;  %v8801_v51 = vcombine.low %v582_v37, %v590_v38  ;;  %v8812_v4 = vcombine.high %v595_v63, %v603_v1  ;;  %v10341_v37 = vunpack.i.l.bf16 %v10340_v33  ;;  %v10345_v38 = vpop.permute.xlu0 %10344 }
 0x292   : > { %v10346_v19 = vunpack.i.l.bf16 %v10345_v38 }
 0x293   : > { %v557_v12 = vsel %vm556_vm11, %v555_v8, 1.0  ;;  %v867_v7 = vand.u32 %v8812_v4, %v11419_v29  ;;  %v565_v8 = vld [vmem:[#allocation6 + $0x30] sm:$0xff] }
 0x294   : > { %v11428_v14 = vpack.c.bf16 %v557_v12, %v557_v12  ;;  %v8784_v11 = vcombine.high %v565_v8, %v573_v9  ;;  %v581_v12 = vld [vmem:[#allocation6 + $0xb0] sm:$0xff]  ;;  %v8783_v17 = vcombine.low %v565_v8, %v573_v9 }
 0x296   : > { %8819 = vmatmul.mubr.msk.bf16.vlgmr.msra.gmra.mrb[4].mxu0 %vm831_vm12, %v11428_v14  ;;  %8822 = vmatmul.mubr.msk.bf16.vlgmr.msra.gmra.mrb[4].mxu1 %vm831_vm12, %v11428_v14 }
 0x297   : > { %929 = vmatpush1.bf16.msra.mxu0 %v8773_v41  ;;  %1093 = vmatpush1.bf16.msra.mxu1 %v8781_v42  ;;  %v598_v41 = vld [vmem:[#allocation6 + $0x138] sm:$0xff] }
 0x298   : > { %930 = vmatprep.subr.bf16.mxu0 %v8790_v13  ;;  %1094 = vmatprep.subr.bf16.mxu1 %v8798_v15  ;;  %v606_v42 = vld [vmem:[#allocation6 + $0x178] sm:$0x11]  ;;  %v589_v13 = vld [vmem:[#allocation6 + $0xf0] sm:$0xff] }
 0x299   : > { %960 = vmatprep.mubr.bf16.mxu0 %v11143_v44  ;;  %1124 = vmatprep.mubr.bf16.mxu1 %v11143_v44  ;;  %v8818_v49 = vcombine.high %v598_v41, %v606_v42  ;;  %v8817_v53 = vcombine.low %v598_v41, %v606_v42  ;;  %v597_v15 = vld [vmem:[#allocation6 + $0x130] sm:$0xff]  ;;  %v10478_v41 = vld [vmem:[#allocation4 + $0x90] sm:$0xff]   ;;  %v10347_v42 = vunpack.i.h.bf16 %v10345_v38 }
 0x29b   : > { %931 = vmatpush1.bf16.msra.mxu0 %v8789_v20  ;;  %1095 = vmatpush1.bf16.msra.mxu1 %v8797_v21  ;;  %v885_v55 = vand.u32 %v8818_v49, %v11419_v29  ;;  %v882_v59 = vand.u32 %v8817_v53, %v11419_v29  ;;  %v8800_v20 = vcombine.high %v581_v12, %v589_v13  ;;  %v11489_v49 = vld [vmem:[#allocation4 + $0x8] sm:$0xff]  }
 0x29c   : > { %932 = vmatprep.subr.bf16.mxu0 %v849_v24  ;;  %1096 = vmatprep.subr.bf16.mxu1 %v873_v25  ;;  %v8816_v21 = vcombine.high %v597_v15, %v605_v16  ;;  %v8799_v24 = vcombine.low %v581_v12, %v589_v13  ;;  %v8815_v25 = vcombine.low %v597_v15, %v605_v16 }
 0x29e   : > { %v879_v28 = vand.u32 %v8816_v21, %v11419_v29 }
 0x29f   : > { %933 = vmatpush1.bf16.msra.mxu0 %v846_v31  ;;  %1097 = vmatpush1.bf16.msra.mxu1 %v870_v32  ;;  %v10336_v31 = vunpack.i.l.bf16 %v10335_v22  ;;  %v876_v32 = vand.u32 %v8815_v25, %v11419_v29  ;;  %v10479_v29 = vld [vmem:[#allocation4 + $0x98] ss:$0 sps:$4 sm:$0x33]   ;;  %v8827_v22 = vld [vmem:[#allocation7 + $0x2] ss:$0 sm:$0xff] }
 0x2a0   : > { %969 = vmatprep.subr.bf16.mxu0 %v8776_v35  ;;  %1174 = vmatprep.subr.bf16.mxu1 %v8786_v36  ;;  %v1277_v35 = vsel %vm1276_vm13, %v11395_v18, %v10331_v27  ;;  %v10342_v36 = vunpack.i.h.bf16 %v10340_v33  ;;  %v1311_v18 = vsel %vm1219_vm2, %v10479_v29, 0 }
 0x2a1   : > { %v1280_v39 = vsel %vm1279_vm14, %v1277_v35, %v10336_v31 }
 0x2a2   : > { %8820 = vmatmul.mubr.msk.bf16.vlgmr.msra.gmra.mrb[8].mxu0 %vm831_vm12, %v11428_v14  ;;  %8824 = vmatmul.mubr.msk.bf16.vlgmr.msra.gmra.mrb[8].mxu1 %vm831_vm12, %v11428_v14 }
 0x2a3   : > { %970 = vmatpush1.bf16.msra.mxu0 %v8775_v43  ;;  %1175 = vmatpush1.bf16.msra.mxu1 %v8785_v45  ;;  %v1283_v43 = vsel %vm1282_vm15, %v1280_v39, %v10341_v37  ;;  %v1284_v45 = vsel %vm1282_vm15, %v1281_v40, %v10342_v36  ;;  %v1424_v40 = vlaneseq  ;;  %vm1606_vm15 = vcmask 523264  }
 0x2a4   : > { %971 = vmatprep.subr.bf16.mxu0 %v8792_v46  ;;  %1176 = vmatprep.subr.bf16.mxu1 %v8802_v47  ;;  %v1286_v46 = vsel %vm1285_vm7, %v1283_v43, %v10346_v19  ;;  %v1287_v47 = vsel %vm1285_vm7, %v1284_v45, %v10347_v42 }
 0x2a5   : > { %1001 = vmatprep.mubr.bf16.mxu0 %v11143_v44  ;;  %1206 = vmatprep.mubr.bf16.mxu1 %v11143_v44  ;;  %v1291_v48 = vpack.c.bf16 %v1287_v47, %v1286_v46 }
 0x2a7   : > { %972 = vmatpush1.bf16.msra.mxu0 %v8791_v50  ;;  %1177 = vmatpush1.bf16.msra.mxu1 %v8801_v51 }
 0x2a8   : > { %973 = vmatprep.subr.bf16.mxu0 %v855_v54  ;;  %1178 = vmatprep.subr.bf16.mxu1 %v885_v55 }
 0x2ab   : > { %974 = vmatpush1.bf16.msra.mxu0 %v852_v58  ;;  %1179 = vmatpush1.bf16.msra.mxu1 %v882_v59 }
 0x2ac   : > { %1051 = vmatprep.subr.bf16.mxu0 %v8780_v60  ;;  %9711 = vmatprep.subr.bf16.mxu1 %v11135_v0 }
 0x2ae   : > { %8821 = vmatmul.mubr.msk.bf16.vlgmr.msra.gmra.mrb[12].mxu0 %vm831_vm12, %v11428_v14  ;;  %8826 = vmatmul.mubr.msk.bf16.vlgmr.msra.gmra.mrb[12].mxu1 %vm831_vm12, %v11428_v14 }
 0x2af   : > { %1052 = vmatpush1.bf16.msra.mxu0 %v8779_v2  ;;  %1083 = vmatprep.mubr.bf16.mxu0 %v11143_v44 }
 0x2b0   : > { %1053 = vmatprep.subr.bf16.mxu0 %v8796_v3  ;;  %9715 = vmatprep.mubr.msk.bf16.mxu1 %vm11136_vm0, %v11135_v0 }
 0x2b3   : > { %1054 = vmatpush1.bf16.msra.mxu0 %v8795_v5 }
 0x2b4   : > { %1055 = vmatprep.subr.bf16.mxu0 %v867_v7 }
 0x2b7   : > { %1056 = vmatpush1.bf16.msra.mxu0 %v864_v10 }
 0x2b8   : > { %1133 = vmatprep.subr.bf16.mxu0 %v8784_v11 }
 0x2ba   : > { %8823 = vmatmul.mubr.msk.bf16.vlgmr.msra.gmra.mrb[16].mxu0 %vm831_vm12, %v11428_v14 }
 0x2bb   : > { %1134 = vmatpush1.bf16.msra.mxu0 %v8783_v17  ;;  %1165 = vmatprep.mubr.bf16.mxu0 %v11143_v44 }
 0x2bc   : > { %1135 = vmatprep.subr.bf16.mxu0 %v8800_v20 }
 0x2bf   : > { %1136 = vmatpush1.bf16.msra.mxu0 %v8799_v24 }
 0x2c0   : > { %1137 = vmatprep.subr.bf16.mxu0 %v879_v28 }
 0x2c3   : > { %1138 = vmatpush1.bf16.msra.mxu0 %v876_v32 }
 0x2c4   : > { %9703 = vmatprep.subr.bf16.mxu0 %v11135_v0 }
 0x2c6   : > { %8825 = vmatmul.mubr.msk.bf16.vlgmr.msra.gmra.mrb[20].mxu0 %vm831_vm12, %v11428_v14  ;;  %v11483_v14 = vld [vmem:[#allocation4] sm:$0xff]  }
 0x2c7   : > { %9704 = vmatpush3.bf16.msra.mxu0 %v10478_v41  ;;  %9707 = vmatprep.mubr.msk.bf16.mxu0 %vm11136_vm0, %v11135_v0  ;;  %v1425_v41 = vshrl.u32 %v1424_v40, 7 }
 0x2c8   : > { %9705 = vmatprep.subr.bf16.mxu0 %v11135_v0  ;;  %9712 = vmatpush3.bf16.msra.mxu1 %v11483_v14 }
 0x2c9   : > { %9713 = vmatprep.subr.bf16.mxu1 %v11135_v0  ;;  %v11530_v42 = vsub.s32 0, %v1425_v41 }
 0x2cb   : > { %9706 = vmatpush3.bf16.msra.mxu0 %v1311_v18 }
 0x2cc   : > { %9719 = vmatprep.subr.bf16.mxu0 %v11135_v0  ;;  %9714 = vmatpush3.bf16.msra.mxu1 %v11489_v49 }
 0x2cd   : > { %1702 = vmatprep.subr.bf16.mxu1 %v11143_v44 }
 0x2ce   : > { %9708 = vmatmul.mubr.msk.bf16.vlgmr.msra.gmra.mrb[24].mxu0 %vm1306_vm8, %v1291_v48  ;;  %vm1609_vm8 = vcmask 785408  }
 0x2cf   : > { %9723 = vmatprep.mubr.msk.bf16.mxu0 %vm11136_vm0, %v11135_v0  ;;  %9720 = vmatpush3.bf16.msra.mxu0 %v11483_v14 }
 0x2d0   : > { %9721 = vmatprep.subr.bf16.mxu0 %v11135_v0 }
 0x2d3   : > { %9722 = vmatpush3.bf16.msra.mxu0 %v11489_v49 }
 0x2d4   : > { %9727 = vmatprep.subr.bf16.mxu0 %v11135_v0 }
 0x369   : > { %v11495_v50 = vpop.f32.mrb[4].mxu0  ;;  %v11497_v51 = vpop.f32.mrb[4].mxu1 }
 0x36a   : > { %v11499_v52 = vpop.f32.mrb[5].mxu0  ;;  %v11501_v53 = vpop.f32.mrb[5].mxu1 }
 0x36b   : > { %v925_v54 = vpop.f32.mrb[6].mxu0  ;;  %v1048_v55 = vpop.f32.mrb[6].mxu1 }
 0x36c   : > { %v926_v56 = vpop.f32.mrb[7].mxu0  ;;  %v1049_v57 = vpop.f32.mrb[7].mxu1 }
 0x375   : > { %v11503_v58 = vpop.f32.mrb[8].mxu0  ;;  %v11505_v59 = vpop.f32.mrb[8].mxu1 }
 0x376   : > { %v11507_v60 = vpop.f32.mrb[9].mxu0  ;;  %v11509_v61 = vpop.f32.mrb[9].mxu1 }
 0x377   : > { %v966_v62 = vpop.f32.mrb[10].mxu0  ;;  %v1130_v63 = vpop.f32.mrb[10].mxu1 }
 0x378   : > { %v967_v1 = vpop.f32.mrb[11].mxu0  ;;  %v1131_v2 = vpop.f32.mrb[11].mxu1 }
 0x381   : > { %v11511_v3 = vpop.f32.mrb[12].mxu0  ;;  %v11513_v4 = vpop.f32.mrb[12].mxu1 }
 0x382   : > { %v11515_v5 = vpop.f32.mrb[13].mxu0  ;;  %v11517_v6 = vpop.f32.mrb[13].mxu1 }
 0x383   : > { %v1007_v7 = vpop.f32.mrb[14].mxu0  ;;  %v1212_v8 = vpop.f32.mrb[14].mxu1 }
 0x384   : > { %v1008_v9 = vpop.f32.mrb[15].mxu0  ;;  %v1213_v10 = vpop.f32.mrb[15].mxu1 }
 0x38d   : > { %v11519_v11 = vpop.f32.mrb[16].mxu0 }
 0x38e   : > { %v11521_v12 = vpop.f32.mrb[17].mxu0 }
 0x38f   : > { %v1089_v13 = vpop.f32.mrb[18].mxu0 }
 0x390   : > { %v1090_v15 = vpop.f32.mrb[19].mxu0  ;;  %v10482_v13 = vld [vmem:[#allocation4 + $0x9c] sm:$0xff]  }
 0x391   : > { %v10483_v15 = vld [vmem:[#allocation4 + $0xa4] sm:$0xff]  }
 0x399   : > { %v11523_v16 = vpop.f32.mrb[20].mxu0 }
 0x39a   : > { %v11525_v17 = vpop.f32.mrb[21].mxu0 }
 0x39b   : > { %v1171_v20 = vpop.f32.mrb[22].mxu0 }
 0x39c   : > { %v1172_v21 = vpop.f32.mrb[23].mxu0  ;;  %v10484_v20 = vld [vmem:[#allocation4 + $0xac] sm:$0xff]  }
 0x39d   : > { %v10485_v21 = vld [vmem:[#allocation4 + $0xb4] sm:$0xff]  }
 0x3a1   : > { %v1347_v23 = vpop.f32.mrb[24].mxu0 }
 0x3a2   : > { %v1348_v24 = vadd.f32 %v8827_v22, %v1347_v23  ;;  %v9709_v25 = vpop.f32.mrb[25].mxu0  ;;  %v10487_v23 = vld [vmem:[#allocation4 + $0xc4] sm:$0xff]  }
 0x3a3   : > { %v1350_v26 = vpop.f32.mrb[26].mxu0  ;;  %v10489_v25 = vld [vmem:[#allocation4 + $0xd4] sm:$0xff]  }
 0x3a4   : > { %v1351_v27 = vadd.f32 %v8827_v22, %v1350_v26  ;;  %v9710_v28 = vpop.f32.mrb[27].mxu0  ;;  %v1358_v30 = vsel %vm364_vm1, %v1348_v24, 0.0  ;;  %v10486_v22 = vld [vmem:[#allocation4 + $0xbc] sm:$0xff]  }
 0x3a6   : > { %v1359_v31 = vsel %vm364_vm1, %v1351_v27, 0.0 }
 0x3a7   : > { %v1360_v32 = vadd.f32 %v1359_v31, %v1358_v30 }
 0x3a9   : > { %v1361_v33 = vrot.slane %v1360_v32, 4 }
 0x3ab   : > { %v1362_v34 = vadd.f32 %v1361_v33, %v1360_v32 }
 0x3ad   : > { %v1363_v35 = vrot.slane %v1362_v34, 2 }
 0x3af   : > { %v1364_v36 = vadd.f32 %v1363_v35, %v1362_v34  ;;  %v8835_v35 = vld [vmem:[#allocation7 + $0x3] ss:$0 sm:$0xff] }
 0x3b1   : > { %v1365_v37 = vrot.slane %v1364_v36, 1 }
 0x3b3   : > { %v1366_v38 = vadd.f32 %v1365_v37, %v1364_v36 }
 0x3b5   : > { %v1367_v39 = vpack.c.bf16 %v1366_v38, %v1366_v38  ;;  %v8836_v38 = vld [vmem:[#allocation7 + $0x4] ss:$0 sm:$0xff] }
 0x3b7   : > { %9716 = vmatmul.mubr.msk.bf16.vlgmr.msra.gmra.mrb[16].mxu1 %vm364_vm1, %v1367_v39 }
 0x3b8   : > { %1703 = vmatpush1.bf16.msra.mxu1 %v10482_v13 }
 0x3b9   : > { %1704 = vmatprep.subr.bf16.mxu1 %v11143_v44 }
 0x3bc   : > { %1705 = vmatpush1.bf16.msra.mxu1 %v10483_v15 }
 0x3bd   : > { %1706 = vmatprep.subr.bf16.mxu1 %v11143_v44 }
 0x3c0   : > { %1707 = vmatpush1.bf16.msra.mxu1 %v10484_v20 }
 0x3c1   : > { %1708 = vmatprep.subr.bf16.mxu1 %v11143_v44 }
 0x3c4   : > { %1709 = vmatpush1.bf16.msra.mxu1 %v10485_v21 }
 0x3c5   : > { %1710 = vmatprep.subr.bf16.mxu1 %v11143_v44 }
 0x3c8   : > { %1711 = vmatpush1.bf16.msra.mxu1 %v10486_v22 }
 0x3c9   : > { %1712 = vmatprep.subr.bf16.mxu1 %v11143_v44 }
 0x3cc   : > { %1713 = vmatpush1.bf16.msra.mxu1 %v10487_v23 }
 0x3cd   : > { %1714 = vmatprep.subr.bf16.mxu1 %v11143_v44 }
 0x48a   : > { %v1417_v29 = vpop.f32.mrb[16].mxu1 }
 0x48b   : > { %v1423_v19 = vmul.f32 0.015625, %v1417_v29  ;;  %v9717_v43 = vpop.f32.mrb[17].mxu1 }
 0x48c   : > { %v1420_v45 = vpop.f32.mrb[18].mxu1 }
 0x48d   : > { %v1427_v18 = vrot.slane %v1423_v19, %v11530_v42  ;;  %v9718_v46 = vpop.f32.mrb[19].mxu1 }
 0x48f   : > { %v1428_v47 = vsub.f32 %v1348_v24, %v1427_v18  ;;  %v1429_v48 = vsub.f32 %v1351_v27, %v1427_v18  ;;  %v10488_v24 = vld [vmem:[#allocation4 + $0xcc] sm:$0xff]  }
 0x490   : > { %1715 = vmatpush1.bf16.msra.mxu1 %v10488_v24 }
 0x491   : > { %v1430_v54 = vmul.f32 %v1428_v47, %v1428_v47  ;;  %v1431_v55 = vmul.f32 %v1429_v48, %v1429_v48  ;;  %1716 = vmatprep.subr.bf16.mxu1 %v11143_v44 }
 0x493   : > { %v1432_v56 = vsel %vm364_vm1, %v1430_v54, 0.0  ;;  %v1433_v57 = vsel %vm364_vm1, %v1431_v55, 0.0 }
 0x494   : > { %v1434_v62 = vadd.f32 %v1433_v57, %v1432_v56  ;;  %1717 = vmatpush1.bf16.msra.mxu1 %v10489_v25  ;;  %v1543_v25 = vrot.slane %v11495_v50, %v11530_v42 }
 0x495   : > { %1718 = vmatprep.subr.bf16.mxu1 %v11143_v44 }
 0x496   : > { %v1435_v63 = vrot.slane %v1434_v62, 4 }
 0x498   : > { %v1436_v1 = vadd.f32 %v1435_v63, %v1434_v62 }
 0x49a   : > { %v1437_v2 = vrot.slane %v1436_v1, 2 }
 0x49c   : > { %v1438_v7 = vadd.f32 %v1437_v2, %v1436_v1 }
 0x49e   : > { %v1439_v8 = vrot.slane %v1438_v7, 1 }
 0x4a0   : > { %v1440_v9 = vadd.f32 %v1439_v8, %v1438_v7 }
 0x4a2   : > { %v1441_v10 = vpack.c.bf16 %v1440_v9, %v1440_v9 }
 0x4a4   : > { %9724 = vmatmul.mubr.msk.bf16.vlgmr.msra.gmra.mrb[28].mxu0 %vm364_vm1, %v1441_v10 }
 0x4a5   : > { %9728 = vmatpush3.bf16.msra.mxu0 %v11483_v14  ;;  %9731 = vmatprep.mubr.msk.bf16.mxu0 %vm11136_vm0, %v11135_v0 }
 0x4a6   : > { %9729 = vmatprep.subr.bf16.mxu0 %v11135_v0 }
 0x4a9   : > { %9730 = vmatpush3.bf16.msra.mxu0 %v11489_v49 }
 0x4aa   : > { %9735 = vmatprep.subr.bf16.mxu0 %v11135_v0 }
 0x577   : > { %v1479_v26 = vpop.f32.mrb[28].mxu0 }
 0x578   : > { %v1485_v27 = vmul.f32 0.015625, %v1479_v26  ;;  %v9725_v28 = vpop.f32.mrb[29].mxu0 }
 0x579   : > { %v1482_v30 = vpop.f32.mrb[30].mxu0  ;;  %v1549_v28 = vrot.slane %v11499_v52, %v11530_v42 }
 0x57a   : > { %v1486_v31 = vadd.f32 1e-05, %v1485_v27  ;;  %v9726_v32 = vpop.f32.mrb[31].mxu0 }
 0x57c   : > { %10786 = vrsqrt.f32 %v1486_v31 }
 0x586   : > { %v10787_v33 = vpop.eup %10786 }
 0x587   : > { %v1491_v34 = vrot.slane %v10787_v33, %v11530_v42 }
 0x589   : > { %v1492_v36 = vmul.f32 %v1491_v34, %v1428_v47  ;;  %v1493_v37 = vmul.f32 %v1491_v34, %v1429_v48  ;;  %v10490_v34 = vld [vmem:[#allocation4 + $0xdc] sm:$0xff]  }
 0x58a   : > { %1719 = vmatpush1.bf16.msra.mxu1 %v10490_v34 }
 0x58b   : > { %v1499_v39 = vmul.f32 %v8835_v35, %v1492_v36  ;;  %v1500_v40 = vmul.f32 %v8835_v35, %v1493_v37  ;;  %1720 = vmatprep.subr.bf16.mxu1 %v11143_v44 }
 0x58d   : > { %v1506_v41 = vadd.f32 %v8836_v38, %v1499_v39  ;;  %v1507_v29 = vadd.f32 %v8836_v38, %v1500_v40 }
 0x58f   : > { %v1510_v19 = vmin.f32 %v1506_v41, 20.0  ;;  %v1511_v43 = vmin.f32 %v1507_v29, 20.0  ;;  %vm1508_vm10 = vcmp.gt.f32.partialorder %v1506_v41, 20.0  ;;  %vm1509_vm12 = vcmp.gt.f32.partialorder %v1507_v29, 20.0 }
 0x591   : > { %v1512_v45 = vmul.f32 1.442695, %v1510_v19  ;;  %v1514_v18 = vmul.f32 1.442695, %v1511_v43  ;;  %v10491_v43 = vld [vmem:[#allocation4 + $0xe4] sm:$0xff]  }
 0x592   : > { %1721 = vmatpush1.bf16.msra.mxu1 %v10491_v43 }
 0x593   : > { %10788 = vpow2.f32 %v1512_v45  ;;  %9749 = vmatprep.subr.bf16.mxu1 %v11135_v0 }
 0x594   : > { %10790 = vpow2.f32 %v1514_v18 }
 0x59d   : > { %v10789_v46 = vpop.eup %10788 }
 0x59e   : > { %v10791_v54 = vpop.eup %10790  ;;  %v1516_v55 = vadd.f32 1.0, %v10789_v46  ;;  %v1519_v57 = vmul.f32 -0.5, %v10789_v46  ;;  %v1522_v62 = vand.u32 2147483647, %v10789_v46 }
 0x59f   : > { %v1525_v56 = vadd.f32 1.0, %v10791_v54  ;;  %v1528_v47 = vmul.f32 -0.5, %v10791_v54  ;;  %v1531_v1 = vand.u32 2147483647, %v10791_v54 }
 0x5a0   : > { %10792 = vlog2.f32 %v1516_v55  ;;  %v1520_v48 = vadd.f32 1.0, %v1519_v57  ;;  %vm1523_vm9 = vcmp.lt.f32.partialorder %v1522_v62, 0.0004427343 }
 0x5a1   : > { %10794 = vlog2.f32 %v1525_v56  ;;  %v1529_v63 = vadd.f32 1.0, %v1528_v47  ;;  %vm1532_vm11 = vcmp.lt.f32.partialorder %v1531_v1, 0.0004427343 }
 0x5a2   : > { %v1521_v9 = vmul.f32 %v10789_v46, %v1520_v48 }
 0x5a3   : > { %v1530_v13 = vmul.f32 %v10791_v54, %v1529_v63 }
 0x5aa   : > { %v10793_v2 = vpop.eup %10792 }
 0x5ab   : > { %v10795_v7 = vpop.eup %10794  ;;  %v1518_v8 = vmul.f32 0.6931472, %v10793_v2 }
 0x5ac   : > { %v1527_v10 = vmul.f32 0.6931472, %v10795_v7 }
 0x5ad   : > { %v1524_v15 = vsel %vm1523_vm9, %v1521_v9, %v1518_v8 }
 0x5ae   : > { %v1533_v20 = vsel %vm1532_vm11, %v1530_v13, %v1527_v10  ;;  %v1534_v21 = vsel %vm1508_vm10, %v1506_v41, %v1524_v15 }
 0x5af   : > { %v1535_v22 = vsel %vm1509_vm12, %v1507_v29, %v1533_v20  ;;  %10796 = vtanh.f32 %v1534_v21 }
 0x5b0   : > { %10798 = vtanh.f32 %v1535_v22 }
 0x5b9   : > { %v10797_v23 = vpop.eup %10796 }
 0x5ba   : > { %v10799_v24 = vpop.eup %10798  ;;  %v1538_v26 = vmul.f32 %v10797_v23, %v1506_v41 }
 0x5bb   : > { %v1539_v27 = vmul.f32 %v10799_v24, %v1507_v29 }
 0x5bc   : > { %v1544_v30 = vmul.f32 %v1543_v25, %v1538_v26 }
 0x5bd   : > { %v1545_v31 = vmul.f32 %v1543_v25, %v1539_v27 }
 0x5be   : > { %v1550_v32 = vadd.f32 %v1549_v28, %v1544_v30 }
 0x5bf   : > { %v1551_v33 = vadd.f32 %v1549_v28, %v1545_v31 }
 0x5c0   : > { %v1554_v35 = vrot.slane %v1550_v32, 6 }
 0x5c1   : > { %v1555_v36 = vrot.slane %v1551_v33, 6 }
 0x5c2   : > { %v1560_v37 = vsel %vm1219_vm2, 0.0, %v1554_v35 }
 0x5c3   : > { %v1556_v38 = vsel %vm1219_vm2, %v1554_v35, %v1555_v36  ;;  %v1561_v50 = vsel %vm1219_vm2, %v1555_v36, 0.0  ;;  %v1597_v39 = vrot.slane %v1560_v37, 4  ;;  %v1575_v40 = vrot.slane %v1560_v37, 2  ;;  %v8837_v36 = vld [vmem:[#allocation7 + $0x5] ss:$0 sm:$0xff] }
 0x5c4   : > { %v1598_v41 = vrot.slane %v1556_v38, 4  ;;  %v1600_v52 = vrot.slane %v1561_v50, 4  ;;  %v1576_v29 = vrot.slane %v1556_v38, 2  ;;  %v1578_v19 = vrot.slane %v1561_v50, 2 }
 0x5c5   : > { %v1564_v45 = vrot.slane %v1560_v37, 1  ;;  %v1565_v18 = vrot.slane %v1556_v38, 1  ;;  %v1567_v46 = vrot.slane %v1561_v50, 1  ;;  %v1586_v54 = vrot.slane %v1560_v37, 3 }
 0x5c6   : > { %v1599_v55 = vsel %vm835_vm6, %v1597_v39, %v1598_v41  ;;  %v1601_v56 = vsel %vm835_vm6, %v1598_v41, %v1600_v52  ;;  %v1577_v57 = vsel %vm1242_vm3, %v1575_v40, %v1576_v29  ;;  %v1579_v47 = vsel %vm1242_vm3, %v1576_v29, %v1578_v19 }
 0x5c7   : > { %v1633_v48 = vpack.c.bf16 %v1601_v56, %v1599_v55  ;;  %v10353_v62 = vpack.i.bf16 %v1579_v47, %v1577_v57  ;;  %v1566_v63 = vsel %vm1230_vm4, %v1564_v45, %v1565_v18  ;;  %v1568_v1 = vsel %vm1230_vm4, %v1565_v18, %v1567_v46 }
 0x5c8   : > { %v10348_v2 = vpack.i.bf16 %v1568_v1, %v1566_v63  ;;  %v1587_v7 = vrot.slane %v1556_v38, 3  ;;  %v1589_v8 = vrot.slane %v1561_v50, 3 }
 0x5c9   : > { %8848 = vmatprep.mubr.msk.bf16.mxu1 %vm364_vm1, %v1633_v48  ;;  %10354 = vrot.lane.b32.xlu0 %v10353_v62, %s11144_s16 }
 0x5ca   : > { %10349 = vrot.lane.b32.xlu1 %v10348_v2, %s11137_s8  ;;  %v1588_v9 = vsel %vm836_vm5, %v1586_v54, %v1587_v7  ;;  %v1590_v10 = vsel %vm836_vm5, %v1587_v7, %v1589_v8 }
 0x5cb   : > { %v10358_v13 = vpack.i.bf16 %v1590_v10, %v1588_v9 }
 0x5ce   : > { %10359 = vrot.lane.b32.xlu1 %v10358_v13, %s11145_s17 }
 0x63b   : > { %v10355_v15 = vpop.permute.xlu0 %10354 }
 0x63c   : > { %v10350_v20 = vpop.permute.xlu1 %10349  ;;  %v10357_v23 = vunpack.i.h.bf16 %v10355_v15  ;;  %v10356_v24 = vunpack.i.l.bf16 %v10355_v15 }
 0x63d   : > { %v10352_v21 = vunpack.i.h.bf16 %v10350_v20  ;;  %v10351_v22 = vunpack.i.l.bf16 %v10350_v20 }
 0x63f   : > { %v1605_v25 = vsel %vm364_vm1, %v1556_v38, %v10352_v21  ;;  %v1604_v26 = vsel %vm364_vm1, %v1560_v37, %v10351_v22 }
 0x640   : > { %v10360_v27 = vpop.permute.xlu1 %10359  ;;  %v1607_v31 = vsel %vm1606_vm15, %v1604_v26, %v10356_v24  ;;  %v1608_v32 = vsel %vm1606_vm15, %v1605_v25, %v10357_v23  ;;  %v1913_v25 = vld [vmem:[#allocation4 + $0xec] sm:$0x3] }
 0x641   : > { %v10362_v28 = vunpack.i.h.bf16 %v10360_v27  ;;  %v10361_v30 = vunpack.i.l.bf16 %v10360_v27 }
 0x643   : > { %v1610_v33 = vsel %vm1609_vm8, %v1607_v31, %v10361_v30  ;;  %v1611_v34 = vsel %vm1609_vm8, %v1608_v32, %v10362_v28  ;;  %v1924_v28 = vsel %vm1219_vm2, %v1913_v25, 0  ;;  %v10952_v30 = vld [vmem:[%s11387_s12] sm:$0xff]  ;;  %v10953_v31 = vld [vmem:[%s11387_s12 + $0x8] sm:$0xff] }
 0x644   : > { %v1632_v35 = vpack.c.bf16 %v1611_v34, %v1610_v33  ;;  %v1914_v32 = vpack.c.bf16 %v10953_v31, %v10952_v30  ;;  %v10492_v33 = vld [vmem:[#allocation4 + $0xf0] sm:$0xff]   ;;  %v10493_v34 = vld [vmem:[#allocation4 + $0xf8] sm:$0xff]  }
 0x646   : > { %1735 = vmatmul.mubr.bf16.vlgmr.msra.gmra.mrb[20].mxu1 %v1632_v35  ;;  %v10494_v35 = vld [vmem:[#allocation4 + $0x100] sm:$0xff]  }
 0x647   : > { %9750 = vmatpush3.bf16.msra.mxu1 %v11483_v14  ;;  %9753 = vmatprep.mubr.msk.bf16.mxu1 %vm11136_vm0, %v11135_v0 }
 0x648   : > { %9751 = vmatprep.subr.bf16.mxu1 %v11135_v0 }
 0x64b   : > { %9752 = vmatpush3.bf16.msra.mxu1 %v11489_v49 }
 0x64c   : > { %9757 = vmatprep.subr.bf16.mxu1 %v11135_v0 }
 0x719   : > { %v1736_v37 = vpop.f32.mrb[20].mxu1 }
 0x71a   : > { %v1737_v38 = vadd.f32 %v8837_v36, %v1736_v37  ;;  %v1738_v50 = vpop.f32.mrb[21].mxu1  ;;  %v10496_v37 = vld [vmem:[#allocation4 + $0x110] sm:$0xff]  }
 0x71b   : > { %v1739_v39 = vpop.f32.mrb[22].mxu1  ;;  %v10498_v50 = vld [vmem:[#allocation4 + $0x120] sm:$0xff]  }
 0x71c   : > { %v1740_v40 = vadd.f32 %v8837_v36, %v1739_v39  ;;  %v1741_v41 = vpop.f32.mrb[23].mxu1  ;;  %v1743_v52 = vsel %vm364_vm1, %v1737_v38, 0.0  ;;  %v10495_v36 = vld [vmem:[#allocation4 + $0x108] sm:$0xff]  }
 0x71d   : > { %v10499_v39 = vld [vmem:[#allocation4 + $0x128] sm:$0xff]  }
 0x71e   : > { %v1744_v29 = vsel %vm364_vm1, %v1740_v40, 0.0 }
 0x71f   : > { %v1745_v19 = vadd.f32 %v1744_v29, %v1743_v52 }
 0x721   : > { %v1746_v43 = vrot.slane %v1745_v19, 4 }
 0x723   : > { %v1747_v45 = vadd.f32 %v1746_v43, %v1745_v19 }
 0x725   : > { %v1748_v18 = vrot.slane %v1747_v45, 2 }
 0x727   : > { %v1749_v46 = vadd.f32 %v1748_v18, %v1747_v45 }
 0x729   : > { %v1750_v54 = vrot.slane %v1749_v46, 1 }
 0x72b   : > { %v1751_v55 = vadd.f32 %v1750_v54, %v1749_v46 }
 0x72d   : > { %v1752_v56 = vpack.c.bf16 %v1751_v55, %v1751_v55 }
 0x72f   : > { %9732 = vmatmul.mubr.msk.bf16.vlgmr.msra.gmra.mrb[32].mxu0 %vm364_vm1, %v1752_v56 }
 0x730   : > { %9736 = vmatpush3.bf16.msra.mxu0 %v11483_v14  ;;  %9739 = vmatprep.mubr.msk.bf16.mxu0 %vm11136_vm0, %v11135_v0 }
 0x731   : > { %9737 = vmatprep.subr.bf16.mxu0 %v11135_v0 }
 0x734   : > { %9738 = vmatpush3.bf16.msra.mxu0 %v11489_v49 }
 0x735   : > { %9743 = vmatprep.subr.bf16.mxu0 %v11135_v0 }
 0x802   : > { %v1790_v57 = vpop.f32.mrb[32].mxu0 }
 0x803   : > { %v1796_v47 = vmul.f32 0.015625, %v1790_v57  ;;  %v9733_v48 = vpop.f32.mrb[33].mxu0  ;;  %v8851_v57 = vld [vmem:[#allocation7 + $0x6] ss:$0 sm:$0xff] }
 0x804   : > { %v1793_v62 = vpop.f32.mrb[34].mxu0 }
 0x805   : > { %v1800_v63 = vrot.slane %v1796_v47, %v11530_v42  ;;  %v9734_v1 = vpop.f32.mrb[35].mxu0  ;;  %v8852_v62 = vld [vmem:[#allocation7 + $0x7] ss:$0 sm:$0xff] }
 0x807   : > { %v1801_v2 = vsub.f32 %v1737_v38, %v1800_v63  ;;  %v1802_v7 = vsub.f32 %v1740_v40, %v1800_v63  ;;  %v10497_v38 = vld [vmem:[#allocation4 + $0x118] sm:$0xff]  }
 0x809   : > { %v1803_v8 = vmul.f32 %v1801_v2, %v1801_v2  ;;  %v1804_v9 = vmul.f32 %v1802_v7, %v1802_v7 }
 0x80b   : > { %v1805_v10 = vsel %vm364_vm1, %v1803_v8, 0.0  ;;  %v1806_v13 = vsel %vm364_vm1, %v1804_v9, 0.0 }
 0x80c   : > { %v1807_v15 = vadd.f32 %v1806_v13, %v1805_v10 }
 0x80e   : > { %v1808_v20 = vrot.slane %v1807_v15, 4 }
 0x810   : > { %v1809_v21 = vadd.f32 %v1808_v20, %v1807_v15 }
 0x812   : > { %v1810_v22 = vrot.slane %v1809_v21, 2 }
 0x814   : > { %v1811_v23 = vadd.f32 %v1810_v22, %v1809_v21 }
 0x816   : > { %v1812_v24 = vrot.slane %v1811_v23, 1 }
 0x818   : > { %v1813_v26 = vadd.f32 %v1812_v24, %v1811_v23 }
 0x81a   : > { %v1814_v27 = vpack.c.bf16 %v1813_v26, %v1813_v26 }
 0x81c   : > { %9740 = vmatmul.mubr.msk.bf16.vlgmr.msra.gmra.mrb[36].mxu0 %vm364_vm1, %v1814_v27 }
 0x81d   : > { %9744 = vmatpush3.bf16.msra.mxu0 %v1924_v28  ;;  %9745 = vmatprep.mubr.msk.bf16.mxu0 %vm11136_vm0, %v11135_v0 }
 0x81e   : > { %2117 = vmatprep.subr.bf16.mxu0 %v11143_v44 }
 0x824   : > { %9746 = vmatmul.mubr.msk.bf16.vlgmr.msra.gmra.mrb[40].mxu0 %vm1276_vm13, %v1914_v32 }
 0x825   : > { %2118 = vmatpush1.bf16.msra.mxu0 %v10492_v33 }
 0x826   : > { %2119 = vmatprep.subr.bf16.mxu0 %v11143_v44 }
 0x829   : > { %2120 = vmatpush1.bf16.msra.mxu0 %v10493_v34 }
 0x82a   : > { %2121 = vmatprep.subr.bf16.mxu0 %v11143_v44 }
 0x82d   : > { %2122 = vmatpush1.bf16.msra.mxu0 %v10494_v35 }
 0x82e   : > { %2123 = vmatprep.subr.bf16.mxu0 %v11143_v44 }
 0x831   : > { %2124 = vmatpush1.bf16.msra.mxu0 %v10495_v36 }
 0x832   : > { %2125 = vmatprep.subr.bf16.mxu0 %v11143_v44 }
 0x835   : > { %2126 = vmatpush1.bf16.msra.mxu0 %v10496_v37 }
 0x836   : > { %2127 = vmatprep.subr.bf16.mxu0 %v11143_v44 }
 0x839   : > { %2128 = vmatpush1.bf16.msra.mxu0 %v10497_v38 }
 0x83a   : > { %2129 = vmatprep.subr.bf16.mxu0 %v11143_v44 }
 0x83d   : > { %2130 = vmatpush1.bf16.msra.mxu0 %v10498_v50 }
 0x83e   : > { %2131 = vmatprep.subr.bf16.mxu0 %v11143_v44 }
 0x841   : > { %2132 = vmatpush1.bf16.msra.mxu0 %v10499_v39  ;;  %v8853_v39 = vld [vmem:[#allocation7 + $0x8] ss:$0 sm:$0xff] }
 0x842   : > { %2133 = vmatprep.subr.bf16.mxu0 %v11143_v44 }
 0x8ef   : > { %v1852_v40 = vpop.f32.mrb[36].mxu0 }
 0x8f0   : > { %v1858_v41 = vmul.f32 0.015625, %v1852_v40  ;;  %v9741_v52 = vpop.f32.mrb[37].mxu0 }
 0x8f1   : > { %v1855_v29 = vpop.f32.mrb[38].mxu0 }
 0x8f2   : > { %v1859_v19 = vadd.f32 1e-05, %v1858_v41  ;;  %v9742_v43 = vpop.f32.mrb[39].mxu0 }
 0x8f4   : > { %10800 = vrsqrt.f32 %v1859_v19 }
 0x8f7   : > { %v1960_v45 = vpop.f32.mrb[40].mxu0 }
 0x8f8   : > { %v9747_v18 = vpop.f32.mrb[41].mxu0  ;;  %v1961_v29 = vadd.f32 %v8853_v39, %v1960_v45 }
 0x8f9   : > { %v1963_v46 = vpop.f32.mrb[42].mxu0 }
 0x8fa   : > { %v9748_v54 = vpop.f32.mrb[43].mxu0  ;;  %v1964_v43 = vadd.f32 %v8853_v39, %v1963_v46 }
 0x8fe   : > { %v10801_v55 = vpop.eup %10800 }
 0x8ff   : > { %v1864_v56 = vrot.slane %v10801_v55, %v11530_v42  ;;  %v10500_v55 = vld [vmem:[#allocation4 + $0x130] sm:$0xff]  }
 0x900   : > { %2134 = vmatpush1.bf16.msra.mxu0 %v10500_v55 }
 0x901   : > { %v1865_v47 = vmul.f32 %v1864_v56, %v1801_v2  ;;  %v1866_v48 = vmul.f32 %v1864_v56, %v1802_v7  ;;  %2135 = vmatprep.subr.bf16.mxu0 %v11143_v44 }
 0x903   : > { %v1872_v63 = vmul.f32 %v8851_v57, %v1865_v47  ;;  %v1873_v1 = vmul.f32 %v8851_v57, %v1866_v48 }
 0x905   : > { %v1879_v8 = vadd.f32 %v8852_v62, %v1872_v63  ;;  %v1880_v9 = vadd.f32 %v8852_v62, %v1873_v1 }
 0x907   : > { %v1883_v10 = vmin.f32 %v1879_v8, 20.0  ;;  %v1884_v13 = vmin.f32 %v1880_v9, 20.0  ;;  %vm1881_vm9 = vcmp.gt.f32.partialorder %v1879_v8, 20.0  ;;  %vm1882_vm11 = vcmp.gt.f32.partialorder %v1880_v9, 20.0 }
 0x909   : > { %v1885_v15 = vmul.f32 1.442695, %v1883_v10  ;;  %v1887_v20 = vmul.f32 1.442695, %v1884_v13  ;;  %v10501_v10 = vld [vmem:[#allocation4 + $0x138] sm:$0xff]  }
 0x90a   : > { %2136 = vmatpush1.bf16.msra.mxu0 %v10501_v10 }
 0x90b   : > { %10802 = vpow2.f32 %v1885_v15  ;;  %9765 = vmatprep.subr.bf16.mxu0 %v11135_v0 }
 0x90c   : > { %10804 = vpow2.f32 %v1887_v20 }
 0x915   : > { %v10803_v21 = vpop.eup %10802 }
 0x916   : > { %v10805_v22 = vpop.eup %10804  ;;  %v1889_v23 = vadd.f32 1.0, %v10803_v21  ;;  %v1892_v25 = vmul.f32 -0.5, %v10803_v21  ;;  %v1895_v26 = vand.u32 2147483647, %v10803_v21 }
 0x917   : > { %v1898_v24 = vadd.f32 1.0, %v10805_v22  ;;  %v1901_v2 = vmul.f32 -0.5, %v10805_v22  ;;  %v1904_v28 = vand.u32 2147483647, %v10805_v22 }
 0x918   : > { %10806 = vlog2.f32 %v1889_v23  ;;  %v1893_v7 = vadd.f32 1.0, %v1892_v25  ;;  %vm1896_vm13 = vcmp.lt.f32.partialorder %v1895_v26, 0.0004427343 }
 0x919   : > { %10808 = vlog2.f32 %v1898_v24  ;;  %v1902_v27 = vadd.f32 1.0, %v1901_v2  ;;  %vm1905_vm10 = vcmp.lt.f32.partialorder %v1904_v28, 0.0004427343 }
 0x91a   : > { %v1894_v33 = vmul.f32 %v10803_v21, %v1893_v7 }
 0x91b   : > { %v1903_v35 = vmul.f32 %v10805_v22, %v1902_v27 }
 0x922   : > { %v10807_v30 = vpop.eup %10806 }
 0x923   : > { %v10809_v31 = vpop.eup %10808  ;;  %v1891_v32 = vmul.f32 0.6931472, %v10807_v30 }
 0x924   : > { %v1900_v34 = vmul.f32 0.6931472, %v10809_v31 }
 0x925   : > { %v1897_v36 = vsel %vm1896_vm13, %v1894_v33, %v1891_v32 }
 0x926   : > { %v1907_v37 = vsel %vm1881_vm9, %v1879_v8, %v1897_v36  ;;  %v1906_v38 = vsel %vm1905_vm10, %v1903_v35, %v1900_v34 }
 0x927   : > { %10810 = vtanh.f32 %v1907_v37  ;;  %v1908_v50 = vsel %vm1882_vm11, %v1880_v9, %v1906_v38 }
 0x928   : > { %10812 = vtanh.f32 %v1908_v50 }
 0x931   : > { %v10811_v40 = vpop.eup %10810 }
 0x932   : > { %v10813_v41 = vpop.eup %10812  ;;  %v1911_v52 = vmul.f32 %v10811_v40, %v1879_v8 }
 0x933   : > { %v1912_v19 = vmul.f32 %v10813_v41, %v1880_v9 }
 0x934   : > { %v11613_v18 = vadd.f32 %v1961_v29, %v1911_v52 }
 0x935   : > { %v11615_v54 = vadd.f32 %v1964_v43, %v1912_v19 }
 0x936   : > { %v1971_v56 = vrot.slane %v11613_v18, 6 }
 0x937   : > { %v1972_v57 = vrot.slane %v11615_v54, 6 }
 0x938   : > { %v1977_v47 = vsel %vm1219_vm2, 0.0, %v1971_v56 }
 0x939   : > { %v2014_v48 = vrot.slane %v1977_v47, 4  ;;  %v1973_v62 = vsel %vm1219_vm2, %v1971_v56, %v1972_v57  ;;  %v1978_v45 = vsel %vm1219_vm2, %v1972_v57, 0.0  ;;  %v1992_v46 = vrot.slane %v1977_v47, 2 }
 0x93a   : > { %v2017_v63 = vrot.slane %v1978_v45, 4  ;;  %v2015_v1 = vrot.slane %v1973_v62, 4  ;;  %v1993_v8 = vrot.slane %v1973_v62, 2  ;;  %v1995_v9 = vrot.slane %v1978_v45, 2 }
 0x93b   : > { %v1981_v13 = vrot.slane %v1977_v47, 1  ;;  %v1982_v15 = vrot.slane %v1973_v62, 1  ;;  %v1984_v20 = vrot.slane %v1978_v45, 1  ;;  %v2003_v21 = vrot.slane %v1977_v47, 3 }
 0x93c   : > { %v2016_v22 = vsel %vm835_vm6, %v2014_v48, %v2015_v1  ;;  %v2018_v23 = vsel %vm835_vm6, %v2015_v1, %v2017_v63  ;;  %v1994_v24 = vsel %vm1242_vm3, %v1992_v46, %v1993_v8  ;;  %v1996_v25 = vsel %vm1242_vm3, %v1993_v8, %v1995_v9 }
 0x93d   : > { %v2048_v2 = vpack.c.bf16 %v2018_v23, %v2016_v22  ;;  %v10368_v7 = vpack.i.bf16 %v1996_v25, %v1994_v24  ;;  %v1983_v26 = vsel %vm1230_vm4, %v1981_v13, %v1982_v15  ;;  %v1985_v27 = vsel %vm1230_vm4, %v1982_v15, %v1984_v20 }
 0x93e   : > { %v10363_v28 = vpack.i.bf16 %v1985_v27, %v1983_v26  ;;  %v2004_v30 = vrot.slane %v1973_v62, 3  ;;  %v2006_v31 = vrot.slane %v1978_v45, 3 }
 0x93f   : > { %8866 = vmatprep.mubr.msk.bf16.mxu0 %vm364_vm1, %v2048_v2  ;;  %10369 = vrot.lane.b32.xlu1 %v10368_v7, %s11144_s16 }
 0x940   : > { %10364 = vrot.lane.b32.xlu0 %v10363_v28, %s11137_s8  ;;  %v2005_v32 = vsel %vm836_vm5, %v2003_v21, %v2004_v30  ;;  %v2007_v33 = vsel %vm836_vm5, %v2004_v30, %v2006_v31 }
 0x941   : > { %v10373_v34 = vpack.i.bf16 %v2007_v33, %v2005_v32 }
 0x944   : > { %10374 = vrot.lane.b32.xlu0 %v10373_v34, %s11145_s17 }
 0x9b1   : > { %v10370_v35 = vpop.permute.xlu1 %10369 }
 0x9b2   : > { %v10365_v36 = vpop.permute.xlu0 %10364  ;;  %v10372_v50 = vunpack.i.h.bf16 %v10370_v35  ;;  %v10371_v39 = vunpack.i.l.bf16 %v10370_v35 }
 0x9b3   : > { %v10367_v37 = vunpack.i.h.bf16 %v10365_v36  ;;  %v10366_v38 = vunpack.i.l.bf16 %v10365_v36 }
 0x9b5   : > { %v2022_v40 = vsel %vm364_vm1, %v1973_v62, %v10367_v37  ;;  %v2021_v41 = vsel %vm364_vm1, %v1977_v47, %v10366_v38  ;;  %v8855_v47 = vld [vmem:[#allocation7 + $0x9] ss:$0 sm:$0xff] }
 0x9b6   : > { %v10375_v52 = vpop.permute.xlu0 %10374  ;;  %v2023_v43 = vsel %vm1606_vm15, %v2021_v41, %v10371_v39  ;;  %v2024_v55 = vsel %vm1606_vm15, %v2022_v40, %v10372_v50 }
 0x9b7   : > { %v10377_v29 = vunpack.i.h.bf16 %v10375_v52  ;;  %v10376_v19 = vunpack.i.l.bf16 %v10375_v52  ;;  %v10502_v52 = vld [vmem:[#allocation4 + $0x140] sm:$0xff]  }
 0x9b9   : > { %v2025_v56 = vsel %vm1609_vm8, %v2023_v43, %v10376_v19  ;;  %v2026_v57 = vsel %vm1609_vm8, %v2024_v55, %v10377_v29  ;;  %v10503_v29 = vld [vmem:[#allocation4 + $0x148] sm:$0xff]   ;;  %v10504_v19 = vld [vmem:[#allocation4 + $0x150] sm:$0xff]   ;;  %v10505_v43 = vld [vmem:[#allocation4 + $0x158] sm:$0xff]  }
 0x9ba   : > { %v2047_v48 = vpack.c.bf16 %v2026_v57, %v2025_v56  ;;  %v10506_v55 = vld [vmem:[#allocation4 + $0x160] sm:$0xff]   ;;  %v10507_v56 = vld [vmem:[#allocation4 + $0x168] sm:$0xff]   ;;  %v10508_v57 = vld [vmem:[#allocation4 + $0x170] sm:$0xff]  }
 0x9bc   : > { %2150 = vmatmul.mubr.bf16.vlgmr.msra.gmra.mrb[44].mxu0 %v2047_v48  ;;  %v10509_v48 = vld [vmem:[#allocation4 + $0x178] sm:$0xff]  }
 0x9bd   : > { %9766 = vmatpush3.bf16.msra.mxu0 %v11483_v14  ;;  %9769 = vmatprep.mubr.msk.bf16.mxu0 %vm11136_vm0, %v11135_v0 }
 0x9be   : > { %9767 = vmatprep.subr.bf16.mxu0 %v11135_v0 }
 0x9c1   : > { %9768 = vmatpush3.bf16.msra.mxu0 %v11489_v49 }
 0x9c2   : > { %9773 = vmatprep.subr.bf16.mxu0 %v11135_v0 }
 0xa8f   : > { %v2151_v62 = vpop.f32.mrb[44].mxu0 }
 0xa90   : > { %v2152_v45 = vadd.f32 %v8855_v47, %v2151_v62  ;;  %v2153_v46 = vpop.f32.mrb[45].mxu0 }
 0xa91   : > { %v2154_v63 = vpop.f32.mrb[46].mxu0 }
 0xa92   : > { %v2155_v1 = vadd.f32 %v8855_v47, %v2154_v63  ;;  %v2156_v8 = vpop.f32.mrb[47].mxu0  ;;  %v2158_v9 = vsel %vm364_vm1, %v2152_v45, 0.0 }
 0xa94   : > { %v2159_v10 = vsel %vm364_vm1, %v2155_v1, 0.0 }
 0xa95   : > { %v2160_v13 = vadd.f32 %v2159_v10, %v2158_v9  ;;  %v8869_v10 = vld [vmem:[#allocation7 + $0xa] ss:$0 sm:$0xff] }
 0xa97   : > { %v2161_v15 = vrot.slane %v2160_v13, 4 }
 0xa99   : > { %v2162_v20 = vadd.f32 %v2161_v15, %v2160_v13 }
 0xa9b   : > { %v2163_v21 = vrot.slane %v2162_v20, 2 }
 0xa9d   : > { %v2164_v22 = vadd.f32 %v2163_v21, %v2162_v20  ;;  %v8870_v20 = vld [vmem:[#allocation7 + $0xb] ss:$0 sm:$0xff] }
 0xa9f   : > { %v2165_v23 = vrot.slane %v2164_v22, 1 }
 0xaa1   : > { %v2166_v24 = vadd.f32 %v2165_v23, %v2164_v22 }
 0xaa3   : > { %v2167_v25 = vpack.c.bf16 %v2166_v24, %v2166_v24 }
 0xaa5   : > { %9754 = vmatmul.mubr.msk.bf16.vlgmr.msra.gmra.mrb[24].mxu1 %vm364_vm1, %v2167_v25 }
 0xaa6   : > { %9758 = vmatpush3.bf16.msra.mxu1 %v11483_v14  ;;  %9761 = vmatprep.mubr.msk.bf16.mxu1 %vm11136_vm0, %v11135_v0 }
 0xaa7   : > { %9759 = vmatprep.subr.bf16.mxu1 %v11135_v0 }
 0xaaa   : > { %9760 = vmatpush3.bf16.msra.mxu1 %v11489_v49 }
 0xaab   : > { %2488 = vmatprep.subr.bf16.mxu1 %v11143_v44 }
 0xb78   : > { %v2205_v2 = vpop.f32.mrb[24].mxu1 }
 0xb79   : > { %v2211_v7 = vmul.f32 0.015625, %v2205_v2  ;;  %v9755_v26 = vpop.f32.mrb[25].mxu1 }
 0xb7a   : > { %v2208_v27 = vpop.f32.mrb[26].mxu1 }
 0xb7b   : > { %v2215_v28 = vrot.slane %v2211_v7, %v11530_v42  ;;  %v9756_v30 = vpop.f32.mrb[27].mxu1 }
 0xb7d   : > { %v2216_v31 = vsub.f32 %v2152_v45, %v2215_v28  ;;  %v2217_v32 = vsub.f32 %v2155_v1, %v2215_v28 }
 0xb7f   : > { %v2218_v33 = vmul.f32 %v2216_v31, %v2216_v31  ;;  %v2219_v14 = vmul.f32 %v2217_v32, %v2217_v32 }
 0xb81   : > { %v2220_v34 = vsel %vm364_vm1, %v2218_v33, 0.0  ;;  %v2221_v35 = vsel %vm364_vm1, %v2219_v14, 0.0 }
 0xb82   : > { %v2222_v36 = vadd.f32 %v2221_v35, %v2220_v34 }
 0xb84   : > { %v2223_v37 = vrot.slane %v2222_v36, 4 }
 0xb86   : > { %v2224_v49 = vadd.f32 %v2223_v37, %v2222_v36 }
 0xb88   : > { %v2225_v38 = vrot.slane %v2224_v49, 2 }
 0xb8a   : > { %v2226_v50 = vadd.f32 %v2225_v38, %v2224_v49 }
 0xb8c   : > { %v2227_v39 = vrot.slane %v2226_v50, 1 }
 0xb8e   : > { %v2228_v40 = vadd.f32 %v2227_v39, %v2226_v50 }
 0xb90   : > { %v2229_v41 = vpack.c.bf16 %v2228_v40, %v2228_v40 }
 0xb92   : > { %9762 = vmatmul.mubr.msk.bf16.vlgmr.msra.gmra.mrb[28].mxu1 %vm364_vm1, %v2229_v41 }
 0xb93   : > { %2489 = vmatpush1.bf16.msra.mxu1 %v10502_v52 }
 0xb94   : > { %2490 = vmatprep.subr.bf16.mxu1 %v11143_v44 }
 0xb97   : > { %2491 = vmatpush1.bf16.msra.mxu1 %v10503_v29 }
 0xb98   : > { %2492 = vmatprep.subr.bf16.mxu1 %v11143_v44 }
 0xb9b   : > { %2493 = vmatpush1.bf16.msra.mxu1 %v10504_v19 }
 0xb9c   : > { %2494 = vmatprep.subr.bf16.mxu1 %v11143_v44 }
 0xb9f   : > { %2495 = vmatpush1.bf16.msra.mxu1 %v10505_v43 }
 0xba0   : > { %2496 = vmatprep.subr.bf16.mxu1 %v11143_v44 }
 0xba3   : > { %2497 = vmatpush1.bf16.msra.mxu1 %v10506_v55 }
 0xba4   : > { %2498 = vmatprep.subr.bf16.mxu1 %v11143_v44 }
 0xba7   : > { %2499 = vmatpush1.bf16.msra.mxu1 %v10507_v56  ;;  %v2331_v56 = vrot.slane %v11503_v58, %v11530_v42 }
 0xba8   : > { %2500 = vmatprep.subr.bf16.mxu1 %v11143_v44 }
 0xbab   : > { %2501 = vmatpush1.bf16.msra.mxu1 %v10508_v57 }
 0xbac   : > { %2502 = vmatprep.subr.bf16.mxu1 %v11143_v44 }
 0xbaf   : > { %2503 = vmatpush1.bf16.msra.mxu1 %v10509_v48 }
 0xbb0   : > { %2504 = vmatprep.subr.bf16.mxu1 %v11143_v44 }
 0xc65   : > { %v2267_v47 = vpop.f32.mrb[28].mxu1 }
 0xc66   : > { %v2273_v62 = vmul.f32 0.015625, %v2267_v47  ;;  %v9763_v45 = vpop.f32.mrb[29].mxu1  ;;  %v2337_v47 = vrot.slane %v11507_v60, %v11530_v42 }
 0xc67   : > { %v2270_v46 = vpop.f32.mrb[30].mxu1 }
 0xc68   : > { %v2274_v63 = vadd.f32 1e-05, %v2273_v62  ;;  %v9764_v1 = vpop.f32.mrb[31].mxu1 }
 0xc69   : > { %v10510_v1 = vld [vmem:[#allocation4 + $0x180] sm:$0xff]  }
 0xc6a   : > { %10814 = vrsqrt.f32 %v2274_v63  ;;  %2505 = vmatpush1.bf16.msra.mxu1 %v10510_v1  ;;  %v8871_v1 = vld [vmem:[#allocation7 + $0xc] ss:$0 sm:$0xff] }
 0xc6b   : > { %2506 = vmatprep.subr.bf16.mxu1 %v11143_v44 }
 0xc74   : > { %v10815_v8 = vpop.eup %10814 }
 0xc75   : > { %v2279_v9 = vrot.slane %v10815_v8, %v11530_v42 }
 0xc77   : > { %v2280_v13 = vmul.f32 %v2279_v9, %v2216_v31  ;;  %v2281_v15 = vmul.f32 %v2279_v9, %v2217_v32 }
 0xc79   : > { %v2287_v21 = vmul.f32 %v8869_v10, %v2280_v13  ;;  %v2288_v22 = vmul.f32 %v8869_v10, %v2281_v15 }
 0xc7b   : > { %v2294_v23 = vadd.f32 %v8870_v20, %v2287_v21  ;;  %v2295_v24 = vadd.f32 %v8870_v20, %v2288_v22 }
 0xc7d   : > { %v2298_v25 = vmin.f32 %v2294_v23, 20.0  ;;  %v2299_v2 = vmin.f32 %v2295_v24, 20.0  ;;  %vm2296_vm13 = vcmp.gt.f32.partialorder %v2294_v23, 20.0  ;;  %vm2297_vm10 = vcmp.gt.f32.partialorder %v2295_v24, 20.0 }
 0xc7f   : > { %v2300_v7 = vmul.f32 1.442695, %v2298_v25  ;;  %v2302_v26 = vmul.f32 1.442695, %v2299_v2 }
 0xc81   : > { %10816 = vpow2.f32 %v2300_v7 }
 0xc82   : > { %10818 = vpow2.f32 %v2302_v26 }
 0xc8b   : > { %v10817_v27 = vpop.eup %10816 }
 0xc8c   : > { %v10819_v28 = vpop.eup %10818  ;;  %v2304_v30 = vadd.f32 1.0, %v10817_v27  ;;  %v2307_v14 = vmul.f32 -0.5, %v10817_v27  ;;  %v2310_v34 = vand.u32 2147483647, %v10817_v27 }
 0xc8d   : > { %v2313_v33 = vadd.f32 1.0, %v10819_v28  ;;  %v2316_v31 = vmul.f32 -0.5, %v10819_v28  ;;  %v2319_v36 = vand.u32 2147483647, %v10819_v28 }
 0xc8e   : > { %10820 = vlog2.f32 %v2304_v30  ;;  %v2308_v32 = vadd.f32 1.0, %v2307_v14  ;;  %vm2311_vm12 = vcmp.lt.f32.partialorder %v2310_v34, 0.0004427343 }
 0xc8f   : > { %10822 = vlog2.f32 %v2313_v33  ;;  %v2317_v35 = vadd.f32 1.0, %v2316_v31  ;;  %vm2320_vm9 = vcmp.lt.f32.partialorder %v2319_v36, 0.0004427343 }
 0xc90   : > { %v2309_v50 = vmul.f32 %v10817_v27, %v2308_v32 }
 0xc91   : > { %v2318_v40 = vmul.f32 %v10819_v28, %v2317_v35 }
 0xc98   : > { %v10821_v37 = vpop.eup %10820 }
 0xc99   : > { %v10823_v49 = vpop.eup %10822  ;;  %v2306_v38 = vmul.f32 0.6931472, %v10821_v37 }
 0xc9a   : > { %v2315_v39 = vmul.f32 0.6931472, %v10823_v49 }
 0xc9b   : > { %v2312_v41 = vsel %vm2311_vm12, %v2309_v50, %v2306_v38 }
 0xc9c   : > { %v2321_v52 = vsel %vm2320_vm9, %v2318_v40, %v2315_v39  ;;  %v2322_v29 = vsel %vm2296_vm13, %v2294_v23, %v2312_v41 }
 0xc9d   : > { %v2323_v19 = vsel %vm2297_vm10, %v2295_v24, %v2321_v52  ;;  %10824 = vtanh.f32 %v2322_v29  ;;  %vm2703_vm10 = vcmask 1040384  }
 0xc9e   : > { %10826 = vtanh.f32 %v2323_v19 }
 0xca7   : > { %v10825_v43 = vpop.eup %10824 }
 0xca8   : > { %v10827_v55 = vpop.eup %10826  ;;  %v2326_v57 = vmul.f32 %v10825_v43, %v2294_v23 }
 0xca9   : > { %v2327_v48 = vmul.f32 %v10827_v55, %v2295_v24  ;;  %v10511_v24 = vld [vmem:[#allocation4 + $0x188] sm:$0xff]  }
 0xcaa   : > { %v2332_v62 = vmul.f32 %v2331_v56, %v2326_v57  ;;  %2507 = vmatpush1.bf16.msra.mxu1 %v10511_v24 }
 0xcab   : > { %v2333_v45 = vmul.f32 %v2331_v56, %v2327_v48  ;;  %9797 = vmatprep.subr.bf16.mxu1 %v11135_v0 }
 0xcac   : > { %v2338_v46 = vadd.f32 %v2337_v47, %v2332_v62 }
 0xcad   : > { %v2339_v63 = vadd.f32 %v2337_v47, %v2333_v45 }
 0xcae   : > { %v2342_v8 = vrot.slane %v2338_v46, 6 }
 0xcaf   : > { %v2343_v9 = vrot.slane %v2339_v63, 6 }
 0xcb0   : > { %v2348_v10 = vsel %vm1219_vm2, 0.0, %v2342_v8 }
 0xcb1   : > { %v2344_v13 = vsel %vm1219_vm2, %v2342_v8, %v2343_v9  ;;  %v2349_v58 = vsel %vm1219_vm2, %v2343_v9, 0.0  ;;  %v2385_v15 = vrot.slane %v2348_v10, 4  ;;  %v2363_v20 = vrot.slane %v2348_v10, 2 }
 0xcb2   : > { %v2386_v21 = vrot.slane %v2344_v13, 4  ;;  %v2388_v60 = vrot.slane %v2349_v58, 4  ;;  %v2364_v22 = vrot.slane %v2344_v13, 2  ;;  %v2366_v23 = vrot.slane %v2349_v58, 2 }
 0xcb3   : > { %v2352_v25 = vrot.slane %v2348_v10, 1  ;;  %v2353_v2 = vrot.slane %v2344_v13, 1  ;;  %v2355_v7 = vrot.slane %v2349_v58, 1  ;;  %v2374_v26 = vrot.slane %v2348_v10, 3 }
 0xcb4   : > { %v2387_v27 = vsel %vm835_vm6, %v2385_v15, %v2386_v21  ;;  %v2389_v28 = vsel %vm835_vm6, %v2386_v21, %v2388_v60  ;;  %v2365_v30 = vsel %vm1242_vm3, %v2363_v20, %v2364_v22  ;;  %v2367_v33 = vsel %vm1242_vm3, %v2364_v22, %v2366_v23 }
 0xcb5   : > { %v2419_v14 = vpack.c.bf16 %v2389_v28, %v2387_v27  ;;  %v10383_v31 = vpack.i.bf16 %v2367_v33, %v2365_v30  ;;  %v2354_v32 = vsel %vm1230_vm4, %v2352_v25, %v2353_v2  ;;  %v2356_v34 = vsel %vm1230_vm4, %v2353_v2, %v2355_v7  ;;  %v10954_v27 = vld [vmem:[#allocation4] sm:$0xff]   ;;  %v10955_v28 = vld [vmem:[#allocation4 + $0x8] sm:$0xff]  }
 0xcb6   : > { %v10378_v35 = vpack.i.bf16 %v2356_v34, %v2354_v32  ;;  %v2375_v36 = vrot.slane %v2344_v13, 3  ;;  %v2377_v37 = vrot.slane %v2349_v58, 3 }
 0xcb7   : > { %8882 = vmatprep.mubr.msk.bf16.mxu1 %vm364_vm1, %v2419_v14  ;;  %10384 = vrot.lane.b32.xlu0 %v10383_v31, %s11144_s16 }
 0xcb8   : > { %10379 = vrot.lane.b32.xlu1 %v10378_v35, %s11137_s8  ;;  %v2376_v49 = vsel %vm836_vm5, %v2374_v26, %v2375_v36  ;;  %v2378_v38 = vsel %vm836_vm5, %v2375_v36, %v2377_v37 }
 0xcb9   : > { %v10388_v50 = vpack.i.bf16 %v2378_v38, %v2376_v49 }
 0xcbc   : > { %10389 = vrot.lane.b32.xlu1 %v10388_v50, %s11145_s17 }
 0xd29   : > { %v10385_v39 = vpop.permute.xlu0 %10384 }
 0xd2a   : > { %v10380_v40 = vpop.permute.xlu1 %10379  ;;  %v10387_v29 = vunpack.i.h.bf16 %v10385_v39  ;;  %v10386_v19 = vunpack.i.l.bf16 %v10385_v39 }
 0xd2b   : > { %v10382_v41 = vunpack.i.h.bf16 %v10380_v40  ;;  %v10381_v52 = vunpack.i.l.bf16 %v10380_v40 }
 0xd2d   : > { %v2393_v43 = vsel %vm364_vm1, %v2344_v13, %v10382_v41  ;;  %v2392_v55 = vsel %vm364_vm1, %v2348_v10, %v10381_v52 }
 0xd2e   : > { %v10390_v56 = vpop.permute.xlu1 %10389  ;;  %v2394_v47 = vsel %vm1606_vm15, %v2392_v55, %v10386_v19  ;;  %v2395_v62 = vsel %vm1606_vm15, %v2393_v43, %v10387_v29 }
 0xd2f   : > { %v10392_v57 = vunpack.i.h.bf16 %v10390_v56  ;;  %v10391_v48 = vunpack.i.l.bf16 %v10390_v56  ;;  %v10512_v56 = vld [vmem:[#allocation4 + $0x8c0] sm:$0xff]  }
 0xd31   : > { %v2396_v45 = vsel %vm1609_vm8, %v2394_v47, %v10391_v48  ;;  %v2397_v46 = vsel %vm1609_vm8, %v2395_v62, %v10392_v57  ;;  %v10513_v57 = vld [vmem:[#allocation4 + $0x8c8] sm:$0xff]   ;;  %v10514_v48 = vld [vmem:[#allocation4 + $0x8d0] sm:$0xff]   ;;  %v10515_v47 = vld [vmem:[#allocation4 + $0x8d8] sm:$0xff]  }
 0xd32   : > { %v2418_v63 = vpack.c.bf16 %v2397_v46, %v2396_v45  ;;  %v10516_v62 = vld [vmem:[#allocation4 + $0x8e0] sm:$0xff]  }
 0xd34   : > { %2521 = vmatmul.mubr.bf16.vlgmr.msra.gmra.mrb[32].mxu1 %v2418_v63 }
 0xd35   : > { %9799 = vmatprep.mubr.msk.bf16.mxu1 %vm11136_vm0, %v11135_v0 }
 0xe07   : > { %v2522_v8 = vpop.f32.mrb[32].mxu1 }
 0xe08   : > { %v2523_v9 = vadd.f32 %v8871_v1, %v2522_v8  ;;  %v2524_v10 = vpop.f32.mrb[33].mxu1 }
 0xe09   : > { %v2525_v13 = vpop.f32.mrb[34].mxu1 }
 0xe0a   : > { %v2526_v58 = vadd.f32 %v8871_v1, %v2525_v13  ;;  %v2527_v15 = vpop.f32.mrb[35].mxu1  ;;  %v2529_v20 = vsel %vm364_vm1, %v2523_v9, 0.0 }
 0xe0c   : > { %v2530_v21 = vsel %vm364_vm1, %v2526_v58, 0.0 }
 0xe0d   : > { %v2531_v60 = vadd.f32 %v2530_v21, %v2529_v20  ;;  %v8886_v21 = vld [vmem:[#allocation7 + $0xe] ss:$0 sm:$0xff] }
 0xe0f   : > { %v2532_v22 = vrot.slane %v2531_v60, 4 }
 0xe11   : > { %v2533_v23 = vadd.f32 %v2532_v22, %v2531_v60 }
 0xe13   : > { %v2534_v24 = vrot.slane %v2533_v23, 2 }
 0xe15   : > { %v2535_v25 = vadd.f32 %v2534_v24, %v2533_v23 }
 0xe17   : > { %v2536_v2 = vrot.slane %v2535_v25, 1 }
 0xe19   : > { %v2537_v7 = vadd.f32 %v2536_v2, %v2535_v25 }
 0xe1b   : > { %v2538_v26 = vpack.c.bf16 %v2537_v7, %v2537_v7 }
 0xe1d   : > { %9770 = vmatmul.mubr.msk.bf16.vlgmr.msra.gmra.mrb[48].mxu0 %vm364_vm1, %v2538_v26 }
 0xe1e   : > { %9774 = vmatpush3.bf16.msra.mxu0 %v10954_v27  ;;  %9777 = vmatprep.mubr.msk.bf16.mxu0 %vm11136_vm0, %v11135_v0 }
 0xe1f   : > { %9775 = vmatprep.subr.bf16.mxu0 %v11135_v0 }
 0xe22   : > { %9776 = vmatpush3.bf16.msra.mxu0 %v10955_v28 }
 0xe23   : > { %9781 = vmatprep.subr.bf16.mxu0 %v11135_v0 }
 0xef0   : > { %v2576_v30 = vpop.f32.mrb[48].mxu0 }
 0xef1   : > { %v2582_v33 = vmul.f32 0.015625, %v2576_v30  ;;  %v9771_v14 = vpop.f32.mrb[49].mxu0 }
 0xef2   : > { %v2579_v31 = vpop.f32.mrb[50].mxu0 }
 0xef3   : > { %v2586_v32 = vrot.slane %v2582_v33, %v11530_v42  ;;  %v9772_v34 = vpop.f32.mrb[51].mxu0 }
 0xef5   : > { %v2587_v35 = vsub.f32 %v2523_v9, %v2586_v32  ;;  %v2588_v36 = vsub.f32 %v2526_v58, %v2586_v32  ;;  %v8885_v58 = vld [vmem:[#allocation7 + $0xd] ss:$0 sm:$0xff] }
 0xef7   : > { %v2589_v37 = vmul.f32 %v2587_v35, %v2587_v35  ;;  %v2590_v49 = vmul.f32 %v2588_v36, %v2588_v36 }
 0xef9   : > { %v2591_v38 = vsel %vm364_vm1, %v2589_v37, 0.0  ;;  %v2592_v50 = vsel %vm364_vm1, %v2590_v49, 0.0 }
 0xefa   : > { %v2593_v39 = vadd.f32 %v2592_v50, %v2591_v38 }
 0xefc   : > { %v2594_v40 = vrot.slane %v2593_v39, 4 }
 0xefe   : > { %v2595_v41 = vadd.f32 %v2594_v40, %v2593_v39 }
 0xf00   : > { %v2596_v52 = vrot.slane %v2595_v41, 2 }
 0xf02   : > { %v2597_v29 = vadd.f32 %v2596_v52, %v2595_v41 }
 0xf04   : > { %v2598_v19 = vrot.slane %v2597_v29, 1 }
 0xf06   : > { %v2599_v43 = vadd.f32 %v2598_v19, %v2597_v29 }
 0xf08   : > { %v2600_v55 = vpack.c.bf16 %v2599_v43, %v2599_v43 }
 0xf0a   : > { %9778 = vmatmul.mubr.msk.bf16.vlgmr.msra.gmra.mrb[52].mxu0 %vm364_vm1, %v2600_v55 }
 0xf0b   : > { %9793 = vmatprep.mubr.msk.bf16.mxu0 %vm11136_vm0, %v11135_v0  ;;  %9782 = vmatpush3.bf16.msra.mxu0 %v10512_v56 }
 0xf0c   : > { %9783 = vmatprep.subr.bf16.mxu0 %v11135_v0 }
 0xf0f   : > { %9784 = vmatpush3.bf16.msra.mxu0 %v10513_v57 }
 0xf10   : > { %9785 = vmatprep.subr.bf16.mxu0 %v11135_v0 }
 0xf13   : > { %9786 = vmatpush3.bf16.msra.mxu0 %v10514_v48 }
 0xf14   : > { %9787 = vmatprep.subr.bf16.mxu0 %v11135_v0 }
 0xf17   : > { %9788 = vmatpush3.bf16.msra.mxu0 %v10515_v47 }
 0xf18   : > { %9789 = vmatprep.subr.bf16.mxu0 %v11135_v0 }
 0xf1b   : > { %9790 = vmatpush3.bf16.msra.mxu0 %v10516_v62  ;;  %v10517_v62 = vld [vmem:[#allocation4 + $0x8e8] sm:$0xff]  }
 0xf1c   : > { %9791 = vmatprep.subr.bf16.mxu0 %v11135_v0 }
 0xf1f   : > { %9792 = vmatpush3.bf16.msra.mxu0 %v10517_v62 }
 0xf20   : > { %9803 = vmatprep.subr.bf16.mxu0 %v11135_v0 }
 0xfdd   : > { %v2638_v45 = vpop.f32.mrb[52].mxu0 }
 0xfde   : > { %v2644_v46 = vmul.f32 0.015625, %v2638_v45  ;;  %v9779_v63 = vpop.f32.mrb[53].mxu0 }
 0xfdf   : > { %v2641_v1 = vpop.f32.mrb[54].mxu0 }
 0xfe0   : > { %v2645_v8 = vadd.f32 1e-05, %v2644_v46  ;;  %v9780_v9 = vpop.f32.mrb[55].mxu0 }
 0xfe2   : > { %10828 = vrsqrt.f32 %v2645_v8 }
 0xfec   : > { %v10829_v10 = vpop.eup %10828 }
 0xfed   : > { %v2650_v13 = vrot.slane %v10829_v10, %v11530_v42 }
 0xfef   : > { %v2651_v15 = vmul.f32 %v2650_v13, %v2587_v35  ;;  %v2652_v20 = vmul.f32 %v2650_v13, %v2588_v36 }
 0xff1   : > { %v2658_v60 = vmul.f32 %v8885_v58, %v2651_v15  ;;  %v2659_v22 = vmul.f32 %v8885_v58, %v2652_v20 }
 0xff3   : > { %v2665_v23 = vadd.f32 %v8886_v21, %v2658_v60  ;;  %v2666_v24 = vadd.f32 %v8886_v21, %v2659_v22 }
 0xff5   : > { %v2669_v25 = vmin.f32 %v2665_v23, 20.0  ;;  %v2670_v2 = vmin.f32 %v2666_v24, 20.0  ;;  %vm2667_vm12 = vcmp.gt.f32.partialorder %v2665_v23, 20.0  ;;  %vm2668_vm9 = vcmp.gt.f32.partialorder %v2666_v24, 20.0 }
 0xff7   : > { %v2671_v7 = vmul.f32 1.442695, %v2669_v25  ;;  %v2673_v26 = vmul.f32 1.442695, %v2670_v2 }
 0xff9   : > { %10830 = vpow2.f32 %v2671_v7 }
 0xffa   : > { %10832 = vpow2.f32 %v2673_v26 }
0x1003   : > { %v10831_v27 = vpop.eup %10830 }
0x1004   : > { %v10833_v28 = vpop.eup %10832  ;;  %v2675_v30 = vadd.f32 1.0, %v10831_v27  ;;  %v2678_v14 = vmul.f32 -0.5, %v10831_v27  ;;  %v2681_v34 = vand.u32 2147483647, %v10831_v27 }
0x1005   : > { %v2684_v33 = vadd.f32 1.0, %v10833_v28  ;;  %v2687_v31 = vmul.f32 -0.5, %v10833_v28  ;;  %v2690_v36 = vand.u32 2147483647, %v10833_v28 }
0x1006   : > { %10834 = vlog2.f32 %v2675_v30  ;;  %v2679_v32 = vadd.f32 1.0, %v2678_v14  ;;  %vm2682_vm11 = vcmp.lt.f32.partialorder %v2681_v34, 0.0004427343 }
0x1007   : > { %10836 = vlog2.f32 %v2684_v33  ;;  %v2688_v35 = vadd.f32 1.0, %v2687_v31  ;;  %vm2691_vm13 = vcmp.lt.f32.partialorder %v2690_v36, 0.0004427343 }
0x1008   : > { %v2680_v50 = vmul.f32 %v10831_v27, %v2679_v32  ;;  %v8887_v32 = vld [vmem:[#allocation7 + $0x35] ss:$0 sm:$0xff] }
0x1009   : > { %v2689_v40 = vmul.f32 %v10833_v28, %v2688_v35 }
0x1010   : > { %v10835_v37 = vpop.eup %10834 }
0x1011   : > { %v10837_v49 = vpop.eup %10836  ;;  %v2677_v38 = vmul.f32 0.6931472, %v10835_v37 }
0x1012   : > { %v2686_v39 = vmul.f32 0.6931472, %v10837_v49 }
0x1013   : > { %v2683_v41 = vsel %vm2682_vm11, %v2680_v50, %v2677_v38 }
0x1014   : > { %v2693_v52 = vsel %vm2667_vm12, %v2665_v23, %v2683_v41  ;;  %v2692_v29 = vsel %vm2691_vm13, %v2689_v40, %v2686_v39  ;;  %v2838_v39 = vld [vmem:[#allocation4 + $0x30] sm:$0xf]  ;;  %v10519_v41 = vld [vmem:[#allocation4 + $0x198] sm:$0xff]  }
0x1015   : > { %10838 = vtanh.f32 %v2693_v52  ;;  %v2694_v19 = vsel %vm2668_vm9, %v2666_v24, %v2692_v29  ;;  %v10518_v40 = vld [vmem:[#allocation4 + $0x190] sm:$0xff]   ;;  %v10520_v52 = vld [vmem:[#allocation4 + $0x1a0] sm:$0xff]   ;;  %v10521_v29 = vld [vmem:[#allocation4 + $0x1a8] sm:$0xff]  }
0x1016   : > { %10840 = vtanh.f32 %v2694_v19  ;;  %v10522_v19 = vld [vmem:[#allocation4 + $0x1b0] sm:$0xff]  }
0x101f   : > { %v10839_v43 = vpop.eup %10838 }
0x1020   : > { %v10841_v55 = vpop.eup %10840  ;;  %v2697_v56 = vmul.f32 %v10839_v43, %v2665_v23  ;;  %v10523_v43 = vld [vmem:[#allocation4 + $0x1b8] sm:$0xff]  }
0x1021   : > { %v2698_v57 = vmul.f32 %v10841_v55, %v2666_v24  ;;  %v10524_v55 = vld [vmem:[#allocation4 + $0x1c0] sm:$0xff]  }
0x1022   : > { %v2699_v48 = vadd.f32 %v2697_v56, %v11613_v18  ;;  %v10525_v56 = vld [vmem:[#allocation4 + $0x1c8] sm:$0xff]  }
0x1023   : > { %v2700_v47 = vadd.f32 %v2698_v57, %v11615_v54  ;;  %v10526_v57 = vld [vmem:[#allocation4 + $0x1d0] sm:$0xff]  }
0x1024   : > { %v2704_v45 = vrot.slane %v2699_v48, 7  ;;  %v10527_v48 = vld [vmem:[#allocation4 + $0x1d8] sm:$0xff]  }
0x1025   : > { %v2705_v46 = vrot.slane %v2700_v47, 7 }
0x1026   : > { %v2710_v63 = vsel %vm2703_vm10, 0.0, %v2704_v45 }
0x1027   : > { %v2706_v1 = vsel %vm2703_vm10, %v2704_v45, %v2705_v46  ;;  %v2711_v8 = vsel %vm2703_vm10, %v2705_v46, 0.0  ;;  %v2725_v9 = vrot.slane %v2710_v63, 2  ;;  %v2714_v10 = vrot.slane %v2710_v63, 1 }
0x1028   : > { %v2726_v13 = vrot.slane %v2706_v1, 2  ;;  %v2728_v58 = vrot.slane %v2711_v8, 2  ;;  %v2715_v15 = vrot.slane %v2706_v1, 1  ;;  %v2717_v20 = vrot.slane %v2711_v8, 1 }
0x102a   : > { %v2727_v18 = vsel %vm1242_vm3, %v2725_v9, %v2726_v13  ;;  %v2729_v54 = vsel %vm1242_vm3, %v2726_v13, %v2728_v58  ;;  %v2716_v21 = vsel %vm1230_vm4, %v2714_v10, %v2715_v15  ;;  %v2718_v60 = vsel %vm1230_vm4, %v2715_v15, %v2717_v20 }
0x102b   : > { %v10398_v22 = vpack.i.bf16 %v2729_v54, %v2727_v18  ;;  %v10393_v23 = vpack.i.bf16 %v2718_v60, %v2716_v21 }
0x102d   : > { %10399 = vrot.lane.b32.xlu1 %v10398_v22, %s11144_s16  ;;  %10394 = vrot.lane.b32.xlu0 %v10393_v23, %s11137_s8 }
0x109f   : > { %v10400_v24 = vpop.permute.xlu1 %10399  ;;  %v10395_v25 = vpop.permute.xlu0 %10394 }
0x10a0   : > { %v10402_v2 = vunpack.i.h.bf16 %v10400_v24  ;;  %v10401_v7 = vunpack.i.l.bf16 %v10400_v24  ;;  %v10397_v26 = vunpack.i.h.bf16 %v10395_v25  ;;  %v10396_v27 = vunpack.i.l.bf16 %v10395_v25 }
0x10a2   : > { %v2737_v28 = vsel %vm364_vm1, %v2706_v1, %v10397_v26  ;;  %v2736_v30 = vsel %vm364_vm1, %v2710_v63, %v10396_v27 }
0x10a3   : > { %v2739_v33 = vsel %vm1606_vm15, %v2737_v28, %v10402_v2  ;;  %v2738_v14 = vsel %vm1606_vm15, %v2736_v30, %v10401_v7 }
0x10a4   : > { %v2752_v31 = vpack.c.bf16 %v2739_v33, %v2738_v14  ;;  %v11764_v33 = vld [vmem:[#allocation4 + $0x10] sm:$0xff]   ;;  %v11768_v14 = vld [vmem:[#allocation4 + $0x18] sm:$0xff]  }
0x10a6   : > { %9794 = vmatmul.mubr.msk.bf16.vlgmr.msra.gmra.mrb[56].mxu0 %vm1609_vm8, %v2752_v31  ;;  %v11772_v31 = vld [vmem:[#allocation4 + $0x20] sm:$0xff]  }
0x10a7   : > { %9811 = vmatprep.mubr.msk.bf16.mxu0 %vm11136_vm0, %v11135_v0  ;;  %9804 = vmatpush3.bf16.msra.mxu0 %v11764_v33 }
0x10a8   : > { %9805 = vmatprep.subr.bf16.mxu0 %v11135_v0 }
0x10ab   : > { %9806 = vmatpush3.bf16.msra.mxu0 %v11768_v14 }
0x10ac   : > { %9807 = vmatprep.subr.bf16.mxu0 %v11135_v0 }
0x10af   : > { %9808 = vmatpush3.bf16.msra.mxu0 %v11772_v31 }
0x10b0   : > { %9809 = vmatprep.subr.bf16.mxu0 %v11135_v0 }
0x1179   : > { %v2831_v34 = vpop.f32.mrb[56].mxu0 }
0x117a   : > { %v9795_v35 = vpop.f32.mrb[57].mxu0  ;;  %v2832_v37 = vadd.f32 %v8887_v32, %v2831_v34  ;;  %v8896_v34 = vld [vmem:[#allocation7 + $0xf] ss:$0 sm:$0xff] }
0x117b   : > { %v2834_v36 = vpop.f32.mrb[58].mxu0 }
0x117c   : > { %v2835_v49 = vadd.f32 %v8887_v32, %v2834_v36  ;;  %v9796_v38 = vpop.f32.mrb[59].mxu0  ;;  %v11776_v32 = vld [vmem:[#allocation4 + $0x28] sm:$0xff]  }
0x117d   : > { %9810 = vmatpush3.bf16.msra.mxu0 %v11776_v32 }
0x117e   : > { %v2839_v50 = vpack.c.bf16 %v2835_v49, %v2832_v37  ;;  %9815 = vmatprep.subr.bf16.mxu0 %v11135_v0 }
0x1180   : > { %9798 = vmatpush3.bf16.msra.mxu1 %v2839_v50 }
0x1181   : > { %3005 = vmatprep.subr.bf16.mxu1 %v11143_v44 }
0x1183   : > { %9800 = vmatmul.mubr.msk.bf16.vlgmr.msra.gmra.mrb[36].mxu1 %vm1285_vm7, %v2838_v39 }
0x1184   : > { %3006 = vmatpush1.bf16.msra.mxu1 %v10518_v40 }
0x1185   : > { %3007 = vmatprep.subr.bf16.mxu1 %v11143_v44 }
0x1188   : > { %3008 = vmatpush1.bf16.msra.mxu1 %v10519_v41 }
0x1189   : > { %3009 = vmatprep.subr.bf16.mxu1 %v11143_v44 }
0x118c   : > { %3010 = vmatpush1.bf16.msra.mxu1 %v10520_v52 }
0x118d   : > { %3011 = vmatprep.subr.bf16.mxu1 %v11143_v44 }
0x1190   : > { %3012 = vmatpush1.bf16.msra.mxu1 %v10521_v29 }
0x1191   : > { %3013 = vmatprep.subr.bf16.mxu1 %v11143_v44 }
0x1194   : > { %3014 = vmatpush1.bf16.msra.mxu1 %v10522_v19 }
0x1195   : > { %3015 = vmatprep.subr.bf16.mxu1 %v11143_v44 }
0x1198   : > { %3016 = vmatpush1.bf16.msra.mxu1 %v10523_v43 }
0x1199   : > { %3017 = vmatprep.subr.bf16.mxu1 %v11143_v44 }
0x119c   : > { %3018 = vmatpush1.bf16.msra.mxu1 %v10524_v55 }
0x119d   : > { %3019 = vmatprep.subr.bf16.mxu1 %v11143_v44 }
0x11a0   : > { %3020 = vmatpush1.bf16.msra.mxu1 %v10525_v56 }
0x11a1   : > { %3021 = vmatprep.subr.bf16.mxu1 %v11143_v44 }
0x11a4   : > { %3022 = vmatpush1.bf16.msra.mxu1 %v10526_v57 }
0x11a5   : > { %3023 = vmatprep.subr.bf16.mxu1 %v11143_v44 }
0x11a8   : > { %3024 = vmatpush1.bf16.msra.mxu1 %v10527_v48 }
0x11a9   : > { %9827 = vmatprep.subr.bf16.mxu1 %v11135_v0 }
0x1256   : > { %v11745_v47 = vpop.f32.mrb[36].mxu1 }
0x1257   : > { %v2884_v62 = vrot.slane %v11745_v47, 6  ;;  %v9801_v45 = vpop.f32.mrb[37].mxu1 }
0x1258   : > { %v2880_v46 = vpop.f32.mrb[38].mxu1 }
0x1259   : > { %v2886_v63 = vsel %vm1219_vm2, 0.0, %v2884_v62  ;;  %v2887_v1 = vsel %vm1219_vm2, %v2884_v62, 0.0  ;;  %v9802_v8 = vpop.f32.mrb[39].mxu1 }
0x125a   : > { %v2908_v9 = vrot.slane %v2886_v63, 4  ;;  %v2909_v10 = vrot.slane %v2887_v1, 4  ;;  %v2896_v13 = vrot.slane %v2886_v63, 2  ;;  %v2897_v58 = vrot.slane %v2887_v1, 2 }
0x125b   : > { %v2890_v15 = vrot.slane %v2886_v63, 1  ;;  %v2891_v20 = vrot.slane %v2887_v1, 1  ;;  %v2902_v22 = vrot.slane %v2886_v63, 3  ;;  %v2903_v23 = vrot.slane %v2887_v1, 3 }
0x125c   : > { %v2898_v18 = vsel %vm1242_vm3, %v2896_v13, %v2897_v58  ;;  %v2910_v54 = vsel %vm835_vm6, %v2908_v9, %v2909_v10 }
0x125d   : > { %2899 = vrot.lane.b32.xlu1 %v2898_v18, %s11144_s16  ;;  %v2892_v21 = vsel %vm1230_vm4, %v2890_v15, %v2891_v20  ;;  %v2936_v60 = vpack.c.bf16 %v2910_v54, %v2910_v54  ;;  %v2904_v24 = vsel %vm836_vm5, %v2902_v22, %v2903_v23  ;;  %v10532_v18 = vld [vmem:[#allocation4 + $0x260] sm:$0xff]   ;;  %v10533_v54 = vld [vmem:[#allocation4 + $0x268] sm:$0xff]  }
0x125e   : > { %2893 = vrot.lane.b32.xlu0 %v2892_v21, %s11137_s8  ;;  %v10534_v21 = vld [vmem:[#allocation4 + $0x270] sm:$0xff]   ;;  %v10536_v22 = vld [vmem:[#allocation4 + $0x220] sm:$0xff]  }
0x125f   : > { %8907 = vmatprep.mubr.msk.bf16.mxu1 %vm364_vm1, %v2936_v60  ;;  %v10535_v60 = vld [vmem:[#allocation4 + $0x278] sm:$0xff]   ;;  %v10537_v23 = vld [vmem:[#allocation4 + $0x1e0] sm:$0xff]  }
0x1262   : > { %2905 = vrot.lane.b32.xlu0 %v2904_v24, %s11145_s17  ;;  %v10538_v24 = vld [vmem:[#allocation4 + $0x228] sm:$0xff]  }
0x12cf   : > { %v2900_v2 = vpop.permute.xlu1 %2899 }
0x12d0   : > { %v2894_v25 = vpop.permute.xlu0 %2893 }
0x12d1   : > { %v2912_v7 = vsel %vm364_vm1, %v2886_v63, %v2894_v25  ;;  %v10539_v25 = vld [vmem:[#allocation4 + $0x1e8] sm:$0xff]  }
0x12d2   : > { %v2913_v26 = vsel %vm1606_vm15, %v2912_v7, %v2900_v2  ;;  %v10540_v2 = vld [vmem:[#allocation4 + $0x230] sm:$0xff]  }
0x12d3   : > { %v10541_v7 = vld [vmem:[#allocation4 + $0x1f0] sm:$0xff]  }
0x12d4   : > { %v2906_v27 = vpop.permute.xlu0 %2905 }
0x12d5   : > { %v2914_v28 = vsel %vm1609_vm8, %v2913_v26, %v2906_v27  ;;  %v10542_v26 = vld [vmem:[#allocation4 + $0x238] sm:$0xff]  }
0x12d6   : > { %v2935_v30 = vpack.c.bf16 %v2914_v28, %v2914_v28  ;;  %v10543_v27 = vld [vmem:[#allocation4 + $0x1f8] sm:$0xff]   ;;  %v10544_v28 = vld [vmem:[#allocation4 + $0x240] sm:$0xff]  }
0x12d8   : > { %3038 = vmatmul.mubr.bf16.vlgmr.msra.gmra.mrb[40].mxu1 %v2935_v30  ;;  %v10545_v30 = vld [vmem:[#allocation4 + $0x200] sm:$0xff]  }
0x12d9   : > { %9835 = vmatprep.mubr.msk.bf16.mxu1 %vm11136_vm0, %v11135_v0  ;;  %9828 = vmatpush3.bf16.msra.mxu1 %v10532_v18  ;;  %v3225_v18 = vrot.slane %v11511_v3, %v11530_v42 }
0x12da   : > { %9829 = vmatprep.subr.bf16.mxu1 %v11135_v0 }
0x12dd   : > { %9830 = vmatpush3.bf16.msra.mxu1 %v10533_v54 }
0x12de   : > { %9831 = vmatprep.subr.bf16.mxu1 %v11135_v0 }
0x12e1   : > { %9832 = vmatpush3.bf16.msra.mxu1 %v10534_v21  ;;  %v3230_v21 = vrot.slane %v11515_v5, %v11530_v42 }
0x12e2   : > { %9833 = vmatprep.subr.bf16.mxu1 %v11135_v0 }
0x12e5   : > { %9834 = vmatpush3.bf16.msra.mxu1 %v10535_v60 }
0x12e6   : > { %9839 = vmatprep.subr.bf16.mxu1 %v11135_v0 }
0x13ab   : > { %v3039_v35 = vpop.f32.mrb[40].mxu1 }
0x13ac   : > { %v3040_v36 = vadd.f32 %v8896_v34, %v3039_v35  ;;  %v3041_v37 = vpop.f32.mrb[41].mxu1  ;;  %v10546_v34 = vld [vmem:[#allocation4 + $0x248] sm:$0xff]  }
0x13ad   : > { %v3042_v49 = vpop.f32.mrb[42].mxu1  ;;  %v10547_v35 = vld [vmem:[#allocation4 + $0x208] sm:$0xff]   ;;  %v10549_v37 = vld [vmem:[#allocation4 + $0x210] sm:$0xff]  }
0x13ae   : > { %v3053_v38 = vsel %vm1606_vm15, %v3040_v36, 0.0  ;;  %v3043_v50 = vpop.f32.mrb[43].mxu1 }
0x13af   : > { %v3054_v39 = vrot.slane %v3053_v38, 4 }
0x13b1   : > { %v3055_v40 = vadd.f32 %v3054_v39, %v3053_v38 }
0x13b3   : > { %v3056_v41 = vrot.slane %v3055_v40, 2 }
0x13b5   : > { %v3057_v52 = vadd.f32 %v3056_v41, %v3055_v40 }
0x13b7   : > { %v3058_v29 = vrot.slane %v3057_v52, 1 }
0x13b9   : > { %v3059_v19 = vadd.f32 %v3058_v29, %v3057_v52 }
0x13bb   : > { %v3060_v43 = vpack.c.bf16 %v3059_v19, %v3059_v19  ;;  %v8914_v19 = vld [vmem:[#allocation7 + $0x10] ss:$0 sm:$0xff] }
0x13bd   : > { %9812 = vmatmul.mubr.msk.bf16.vlgmr.msra.gmra.mrb[60].mxu0 %vm1606_vm15, %v3060_v43 }
0x13be   : > { %9816 = vmatpush3.bf16.msra.mxu0 %v11764_v33  ;;  %9823 = vmatprep.mubr.msk.bf16.mxu0 %vm11136_vm0, %v11135_v0 }
0x13bf   : > { %9817 = vmatprep.subr.bf16.mxu0 %v11135_v0 }
0x13c2   : > { %9818 = vmatpush3.bf16.msra.mxu0 %v11768_v14 }
0x13c3   : > { %9819 = vmatprep.subr.bf16.mxu0 %v11135_v0 }
0x13c6   : > { %9820 = vmatpush3.bf16.msra.mxu0 %v11772_v31 }
0x13c7   : > { %9821 = vmatprep.subr.bf16.mxu0 %v11135_v0 }
0x13ca   : > { %9822 = vmatpush3.bf16.msra.mxu0 %v11776_v32 }
0x13cb   : > { %9306 = vmatprep.subr.bf16.mxu0 %v10536_v22  ;;  %v10550_v22 = vld [vmem:[#allocation4 + $0x258] sm:$0xff]  }
0x1490   : > { %v3122_v55 = vpop.f32.mrb[60].mxu0 }
0x1491   : > { %v3128_v56 = vmul.f32 0.015625, %v3122_v55  ;;  %v9813_v57 = vpop.f32.mrb[61].mxu0  ;;  %v8915_v55 = vld [vmem:[#allocation7 + $0x11] ss:$0 sm:$0xff] }
0x1492   : > { %v3125_v48 = vpop.f32.mrb[62].mxu0 }
0x1493   : > { %v3132_v62 = vrot.slane %v3128_v56, %v11530_v42  ;;  %v9814_v45 = vpop.f32.mrb[63].mxu0 }
0x1495   : > { %v3133_v46 = vsub.f32 %v3040_v36, %v3132_v62  ;;  %v10548_v36 = vld [vmem:[#allocation4 + $0x250] sm:$0xff]  }
0x1497   : > { %v3134_v63 = vmul.f32 %v3133_v46, %v3133_v46 }
0x1499   : > { %v3135_v1 = vsel %vm1606_vm15, %v3134_v63, 0.0 }
0x149a   : > { %v3136_v8 = vrot.slane %v3135_v1, 4 }
0x149c   : > { %v3137_v9 = vadd.f32 %v3136_v8, %v3135_v1 }
0x149e   : > { %v3138_v10 = vrot.slane %v3137_v9, 2 }
0x14a0   : > { %v3139_v13 = vadd.f32 %v3138_v10, %v3137_v9 }
0x14a2   : > { %v3140_v58 = vrot.slane %v3139_v13, 1 }
0x14a4   : > { %v3141_v15 = vadd.f32 %v3140_v58, %v3139_v13 }
0x14a6   : > { %v3142_v20 = vpack.c.bf16 %v3141_v15, %v3141_v15 }
0x14a8   : > { %9824 = vmatmul.mubr.msk.bf16.vlgmr.msra.gmra.mrb[64].mxu0 %vm1606_vm15, %v3142_v20 }
0x14a9   : > { %9307 = vmatpush3.bf16.msra.mxu0 %v10537_v23  ;;  %v10551_v23 = vld [vmem:[#allocation4 + $0x218] sm:$0xff]  }
0x14aa   : > { %9308 = vmatprep.subr.bf16.mxu0 %v10538_v24 }
0x14ad   : > { %9309 = vmatpush3.bf16.msra.mxu0 %v10539_v25 }
0x14ae   : > { %9310 = vmatprep.subr.bf16.mxu0 %v10540_v2 }
0x14b1   : > { %9311 = vmatpush3.bf16.msra.mxu0 %v10541_v7 }
0x14b2   : > { %9312 = vmatprep.subr.bf16.mxu0 %v10542_v26 }
0x14b5   : > { %9313 = vmatpush3.bf16.msra.mxu0 %v10543_v27 }
0x14b6   : > { %9314 = vmatprep.subr.bf16.mxu0 %v10544_v28 }
0x14b9   : > { %9315 = vmatpush3.bf16.msra.mxu0 %v10545_v30 }
0x14ba   : > { %9316 = vmatprep.subr.bf16.mxu0 %v10546_v34 }
0x14bd   : > { %9317 = vmatpush3.bf16.msra.mxu0 %v10547_v35 }
0x14be   : > { %9318 = vmatprep.subr.bf16.mxu0 %v10548_v36 }
0x14c1   : > { %9319 = vmatpush3.bf16.msra.mxu0 %v10549_v37 }
0x14c2   : > { %9320 = vmatprep.subr.bf16.mxu0 %v10550_v22  ;;  %v10552_v22 = vld [vmem:[#allocation4 + $0x280] sm:$0xff]  }
0x14c5   : > { %9321 = vmatpush3.bf16.msra.mxu0 %v10551_v23 }
0x14c6   : > { %9851 = vmatprep.subr.bf16.mxu0 %v11135_v0 }
0x157b   : > { %v3180_v49 = vpop.f32.mrb[64].mxu0 }
0x157c   : > { %v3186_v38 = vmul.f32 0.015625, %v3180_v49  ;;  %v9825_v50 = vpop.f32.mrb[65].mxu0 }
0x157d   : > { %v3183_v39 = vpop.f32.mrb[66].mxu0 }
0x157e   : > { %v3187_v40 = vadd.f32 1e-05, %v3186_v38  ;;  %v9826_v41 = vpop.f32.mrb[67].mxu0 }
0x1580   : > { %10842 = vrsqrt.f32 %v3187_v40 }
0x158a   : > { %v10843_v52 = vpop.eup %10842 }
0x158b   : > { %v3192_v29 = vrot.slane %v10843_v52, %v11530_v42 }
0x158d   : > { %v3193_v43 = vmul.f32 %v3192_v29, %v3133_v46 }
0x158f   : > { %v3199_v56 = vmul.f32 %v8914_v19, %v3193_v43 }
0x1591   : > { %v3205_v57 = vadd.f32 %v8915_v55, %v3199_v56 }
0x1593   : > { %v3207_v48 = vmin.f32 %v3205_v57, 20.0  ;;  %vm3206_vm11 = vcmp.gt.f32.partialorder %v3205_v57, 20.0 }
0x1595   : > { %v3208_v62 = vmul.f32 1.442695, %v3207_v48 }
0x1597   : > { %10844 = vpow2.f32 %v3208_v62 }
0x15a1   : > { %v10845_v45 = vpop.eup %10844 }
0x15a2   : > { %v3210_v63 = vadd.f32 1.0, %v10845_v45  ;;  %v3213_v1 = vmul.f32 -0.5, %v10845_v45  ;;  %v3216_v9 = vand.u32 2147483647, %v10845_v45 }
0x15a4   : > { %10846 = vlog2.f32 %v3210_v63  ;;  %v3214_v8 = vadd.f32 1.0, %v3213_v1  ;;  %vm3217_vm7 = vcmp.lt.f32.partialorder %v3216_v9, 0.0004427343  ;;  %v8916_v63 = vld [vmem:[#allocation7 + $0x12] ss:$0 sm:$0xff] }
0x15a6   : > { %v3215_v58 = vmul.f32 %v10845_v45, %v3214_v8 }
0x15ae   : > { %v10847_v10 = vpop.eup %10846 }
0x15af   : > { %v3212_v13 = vmul.f32 0.6931472, %v10847_v10 }
0x15b1   : > { %v3218_v15 = vsel %vm3217_vm7, %v3215_v58, %v3212_v13 }
0x15b2   : > { %v3219_v20 = vsel %vm3206_vm11, %v3205_v57, %v3218_v15 }
0x15b3   : > { %10848 = vtanh.f32 %v3219_v20 }
0x15bd   : > { %v10849_v46 = vpop.eup %10848 }
0x15be   : > { %v3221_v54 = vmul.f32 %v10849_v46, %v3205_v57 }
0x15c0   : > { %v3226_v60 = vmul.f32 %v3225_v18, %v3221_v54 }
0x15c2   : > { %v3231_v24 = vadd.f32 %v3230_v21, %v3226_v60 }
0x15c4   : > { %v3233_v25 = vrot.slane %v3231_v24, 6  ;;  %v10553_v24 = vld [vmem:[#allocation4 + $0x288] sm:$0xff]  }
0x15c6   : > { %v3235_v2 = vsel %vm1219_vm2, 0.0, %v3233_v25  ;;  %v3236_v7 = vsel %vm1219_vm2, %v3233_v25, 0.0  ;;  %v3661_v25 = vpack.c.bf16 %v11745_v47, %v11745_v47 }
0x15c7   : > { %v3255_v26 = vrot.slane %v3235_v2, 4  ;;  %v3256_v27 = vrot.slane %v3236_v7, 4  ;;  %v3239_v3 = vrot.slane %v3235_v2, 1  ;;  %v3240_v28 = vrot.slane %v3236_v7, 1 }
0x15c8   : > { %v3249_v30 = vrot.slane %v3235_v2, 3  ;;  %v3250_v34 = vrot.slane %v3236_v7, 3  ;;  %v3245_v38 = vrot.slane %v3235_v2, 2  ;;  %v3246_v50 = vrot.slane %v3236_v7, 2 }
0x15c9   : > { %v3257_v5 = vsel %vm835_vm6, %v3255_v26, %v3256_v27  ;;  %v3241_v35 = vsel %vm1230_vm4, %v3239_v3, %v3240_v28 }
0x15ca   : > { %v3303_v36 = vpack.c.bf16 %v3257_v5, %v3257_v5  ;;  %v3251_v37 = vsel %vm836_vm5, %v3249_v30, %v3250_v34  ;;  %v3247_v52 = vsel %vm1242_vm3, %v3245_v38, %v3246_v50 }
0x15cb   : > { %v10403_v49 = vpack.i.bf16 %v3241_v35, %v3251_v37 }
0x15cc   : > { %9836 = vmatmul.mubr.msk.bf16.vlgmr.msra.gmra.mrb[44].mxu1 %vm1606_vm15, %v3303_v36 }
0x15cd   : > { %10404 = vrot.lane.b32.xlu1 %v10403_v49, %s11144_s16  ;;  %9840 = vmatpush3.bf16.msra.mxu1 %v11764_v33 }
0x15ce   : > { %9841 = vmatprep.subr.bf16.mxu1 %v11135_v0  ;;  %9847 = vmatprep.mubr.msk.bf16.mxu1 %vm11136_vm0, %v11135_v0 }
0x15d1   : > { %9842 = vmatpush3.bf16.msra.mxu1 %v11768_v14 }
0x15d2   : > { %9843 = vmatprep.subr.bf16.mxu1 %v11135_v0 }
0x15d5   : > { %9844 = vmatpush3.bf16.msra.mxu1 %v11772_v31 }
0x15d6   : > { %9845 = vmatprep.subr.bf16.mxu1 %v11135_v0 }
0x15d9   : > { %9846 = vmatpush3.bf16.msra.mxu1 %v11776_v32 }
0x15da   : > { %9863 = vmatprep.subr.bf16.mxu1 %v11135_v0 }
0x163f   : > { %v10405_v39 = vpop.permute.xlu1 %10404 }
0x1640   : > { %v10407_v40 = vunpack.i.h.bf16 %v10405_v39  ;;  %v10406_v41 = vunpack.i.l.bf16 %v10405_v39 }
0x1642   : > { %v3259_v29 = vsel %vm1606_vm15, %v3235_v2, %v10407_v40  ;;  %v3260_v19 = vsel %vm1606_vm15, %v3247_v52, %v10406_v41 }
0x1643   : > { %v3301_v43 = vpack.c.bf16 %v3259_v29, %v3259_v29  ;;  %v3302_v55 = vpack.c.bf16 %v3260_v19, %v3260_v19  ;;  %v10554_v29 = vld [vmem:[#allocation4 + $0x310] sm:$0xff]   ;;  %v10555_v19 = vld [vmem:[#allocation4 + $0x318] sm:$0xff]  }
0x1645   : > { %3464 = vmatprep.mubr.bf16.mxu0 %v3302_v55  ;;  %v10557_v55 = vld [vmem:[#allocation4 + $0x328] sm:$0xff]  }
0x1646   : > { %3465 = vmatmul.mubr.bf16.vlgmr.msra.gmra.mrb[68].mxu0 %v3301_v43  ;;  %v10556_v43 = vld [vmem:[#allocation4 + $0x320] sm:$0xff]  }
0x1647   : > { %9852 = vmatpush3.bf16.msra.mxu0 %v11764_v33  ;;  %9859 = vmatprep.mubr.msk.bf16.mxu0 %vm11136_vm0, %v11135_v0 }
0x1648   : > { %9853 = vmatprep.subr.bf16.mxu0 %v11135_v0 }
0x164b   : > { %9854 = vmatpush3.bf16.msra.mxu0 %v11768_v14 }
0x164c   : > { %9855 = vmatprep.subr.bf16.mxu0 %v11135_v0 }
0x164f   : > { %9856 = vmatpush3.bf16.msra.mxu0 %v11772_v31 }
0x1650   : > { %9857 = vmatprep.subr.bf16.mxu0 %v11135_v0 }
0x1653   : > { %9858 = vmatpush3.bf16.msra.mxu0 %v11776_v32 }
0x1654   : > { %9871 = vmatprep.subr.bf16.mxu0 %v11135_v0 }
0x169f   : > { %v3506_v56 = vpop.f32.mrb[44].mxu1 }
0x16a0   : > { %v9837_v57 = vpop.f32.mrb[45].mxu1 }
0x16a1   : > { %v3509_v48 = vpop.f32.mrb[46].mxu1  ;;  %v10559_v57 = vld [vmem:[#allocation4 + $0x290] sm:$0xff]  }
0x16a2   : > { %v9838_v62 = vpop.f32.mrb[47].mxu1  ;;  %v10560_v48 = vld [vmem:[#allocation4 + $0x2d8] sm:$0xff]  }
0x16a3   : > { %v10561_v62 = vld [vmem:[#allocation4 + $0x298] sm:$0xff]  }
0x1719   : > { %v9322_v45 = vpop.f32.mrb[68].mxu0 }
0x171a   : > { %v9323_v1 = vpop.f32.mrb[69].mxu0 }
0x171b   : > { %v9324_v8 = vadd.f32 %v9323_v1, %v9322_v45  ;;  %v9325_v9 = vpop.f32.mrb[70].mxu0  ;;  %v10562_v45 = vld [vmem:[#allocation4 + $0x2e0] sm:$0xff]   ;;  %v10564_v1 = vld [vmem:[#allocation4 + $0x2e8] sm:$0xff]  }
0x171c   : > { %v9326_v10 = vpop.f32.mrb[71].mxu0  ;;  %v10566_v9 = vld [vmem:[#allocation4 + $0x2f0] sm:$0xff]  }
0x171d   : > { %v3467_v13 = vadd.f32 %v9324_v8, %v8916_v63  ;;  %v10563_v63 = vld [vmem:[#allocation4 + $0x2a0] sm:$0xff]   ;;  %v10565_v8 = vld [vmem:[#allocation4 + $0x2a8] sm:$0xff]   ;;  %v10567_v10 = vld [vmem:[#allocation4 + $0x2b0] sm:$0xff]  }
0x171f   : > { %v3507_v58 = vadd.f32 %v3506_v56, %v3467_v13  ;;  %v10558_v56 = vld [vmem:[#allocation4 + $0x2d0] sm:$0xff]   ;;  %v10568_v13 = vld [vmem:[#allocation4 + $0x2f8] sm:$0xff]  }
0x1721   : > { %v3512_v15 = vsel %vm1606_vm15, %v3507_v58, 0.0 }
0x1722   : > { %v3513_v20 = vrot.slane %v3512_v15, 4 }
0x1724   : > { %v3514_v46 = vadd.f32 %v3513_v20, %v3512_v15  ;;  %v10570_v15 = vld [vmem:[#allocation4 + $0x300] sm:$0xff]  }
0x1725   : > { %v10571_v20 = vld [vmem:[#allocation4 + $0x2c0] sm:$0xff]  }
0x1726   : > { %v3515_v18 = vrot.slane %v3514_v46, 2 }
0x1728   : > { %v3516_v54 = vadd.f32 %v3515_v18, %v3514_v46 }
0x172a   : > { %v3517_v21 = vrot.slane %v3516_v54, 1 }
0x172c   : > { %v3518_v60 = vadd.f32 %v3517_v21, %v3516_v54 }
0x172e   : > { %v3519_v23 = vpack.c.bf16 %v3518_v60, %v3518_v60 }
0x1730   : > { %9848 = vmatmul.mubr.msk.bf16.vlgmr.msra.gmra.mrb[48].mxu1 %vm1606_vm15, %v3519_v23 }
0x1731   : > { %9864 = vmatpush3.bf16.msra.mxu1 %v10552_v22  ;;  %9867 = vmatprep.mubr.msk.bf16.mxu1 %vm11136_vm0, %v11135_v0 }
0x1732   : > { %9865 = vmatprep.subr.bf16.mxu1 %v11135_v0 }
0x1735   : > { %9866 = vmatpush3.bf16.msra.mxu1 %v10553_v24 }
0x1736   : > { %9346 = vmatprep.subr.bf16.mxu1 %v10558_v56 }
0x1738   : > { %9868 = vmatmul.mubr.msk.bf16.vlgmr.msra.gmra.mrb[52].mxu1 %vm364_vm1, %v3661_v25  ;;  %v8940_v25 = vld [vmem:[#allocation7 + $0x13] ss:$0 sm:$0xff] }
0x1739   : > { %9347 = vmatpush3.bf16.msra.mxu1 %v10559_v57 }
0x173a   : > { %9348 = vmatprep.subr.bf16.mxu1 %v10560_v48 }
0x173d   : > { %9349 = vmatpush3.bf16.msra.mxu1 %v10561_v62 }
0x173e   : > { %9350 = vmatprep.subr.bf16.mxu1 %v10562_v45 }
0x1741   : > { %9351 = vmatpush3.bf16.msra.mxu1 %v10563_v63 }
0x1742   : > { %9352 = vmatprep.subr.bf16.mxu1 %v10564_v1 }
0x1745   : > { %9353 = vmatpush3.bf16.msra.mxu1 %v10565_v8 }
0x1746   : > { %9354 = vmatprep.subr.bf16.mxu1 %v10566_v9 }
0x1749   : > { %9355 = vmatpush3.bf16.msra.mxu1 %v10567_v10 }
0x174a   : > { %9356 = vmatprep.subr.bf16.mxu1 %v10568_v13 }
0x1803   : > { %v3557_v2 = vpop.f32.mrb[48].mxu1 }
0x1804   : > { %v3563_v7 = vmul.f32 0.015625, %v3557_v2  ;;  %v9849_v26 = vpop.f32.mrb[49].mxu1 }
0x1805   : > { %v3560_v27 = vpop.f32.mrb[50].mxu1 }
0x1806   : > { %v3567_v3 = vrot.slane %v3563_v7, %v11530_v42  ;;  %v9850_v28 = vpop.f32.mrb[51].mxu1  ;;  %v8941_v7 = vld [vmem:[#allocation7 + $0x14] ss:$0 sm:$0xff] }
0x1808   : > { %v11843_v30 = vsub.f32 %v3507_v58, %v3567_v3  ;;  %v10569_v58 = vld [vmem:[#allocation4 + $0x2b8] sm:$0xff]  }
0x1809   : > { %9357 = vmatpush3.bf16.msra.mxu1 %v10569_v58 }
0x180a   : > { %v3569_v34 = vmul.f32 %v11843_v30, %v11843_v30  ;;  %9358 = vmatprep.subr.bf16.mxu1 %v10570_v15 }
0x180b   : > { %v11847_v5 = vpop.f32.mrb[52].mxu1 }
0x180c   : > { %v3570_v35 = vsel %vm1606_vm15, %v3569_v34, 0.0  ;;  %v9869_v36 = vpop.f32.mrb[53].mxu1 }
0x180d   : > { %v3571_v47 = vrot.slane %v3570_v35, 4  ;;  %v3719_v37 = vpop.f32.mrb[54].mxu1  ;;  %9359 = vmatpush3.bf16.msra.mxu1 %v10571_v20 }
0x180e   : > { %v9870_v49 = vpop.f32.mrb[55].mxu1 }
0x180f   : > { %v3572_v38 = vadd.f32 %v3571_v47, %v3570_v35 }
0x1811   : > { %v3573_v50 = vrot.slane %v3572_v38, 2 }
0x1813   : > { %v3574_v39 = vadd.f32 %v3573_v50, %v3572_v38 }
0x1815   : > { %v3575_v40 = vrot.slane %v3574_v39, 1 }
0x1817   : > { %v3576_v41 = vadd.f32 %v3575_v40, %v3574_v39 }
0x1819   : > { %v3577_v52 = vpack.c.bf16 %v3576_v41, %v3576_v41 }
0x181b   : > { %9860 = vmatmul.mubr.msk.bf16.vlgmr.msra.gmra.mrb[72].mxu0 %vm1606_vm15, %v3577_v52 }
0x181c   : > { %9879 = vmatprep.mubr.msk.bf16.mxu0 %vm11136_vm0, %v11135_v0  ;;  %9872 = vmatpush3.bf16.msra.mxu0 %v10554_v29 }
0x181d   : > { %9873 = vmatprep.subr.bf16.mxu0 %v11135_v0 }
0x1820   : > { %9874 = vmatpush3.bf16.msra.mxu0 %v10555_v19  ;;  %v10572_v19 = vld [vmem:[#allocation4 + $0x308] sm:$0xff]  }
0x1821   : > { %9875 = vmatprep.subr.bf16.mxu0 %v11135_v0  ;;  %9360 = vmatprep.subr.bf16.mxu1 %v10572_v19 }
0x1824   : > { %9876 = vmatpush3.bf16.msra.mxu0 %v10556_v43  ;;  %v10573_v43 = vld [vmem:[#allocation4 + $0x2c8] sm:$0xff]  }
0x1825   : > { %9877 = vmatprep.subr.bf16.mxu0 %v11135_v0  ;;  %9361 = vmatpush3.bf16.msra.mxu1 %v10573_v43 }
0x1826   : > { %9895 = vmatprep.subr.bf16.mxu1 %v11135_v0 }
0x1828   : > { %9878 = vmatpush3.bf16.msra.mxu0 %v10557_v55 }
0x1829   : > { %9883 = vmatprep.subr.bf16.mxu0 %v11135_v0 }
0x18ee   : > { %v3615_v46 = vpop.f32.mrb[72].mxu0 }
0x18ef   : > { %v3621_v18 = vmul.f32 0.015625, %v3615_v46  ;;  %v9861_v54 = vpop.f32.mrb[73].mxu0 }
0x18f0   : > { %v3618_v21 = vpop.f32.mrb[74].mxu0 }
0x18f1   : > { %v3622_v60 = vadd.f32 1e-05, %v3621_v18  ;;  %v9862_v22 = vpop.f32.mrb[75].mxu0 }
0x18f3   : > { %10850 = vrsqrt.f32 %v3622_v60 }
0x18fd   : > { %v10851_v23 = vpop.eup %10850 }
0x18fe   : > { %v3627_v24 = vrot.slane %v10851_v23, %v11530_v42 }
0x1900   : > { %v3628_v2 = vmul.f32 %v3627_v24, %v11843_v30  ;;  %v8942_v30 = vld [vmem:[#allocation7 + $0x15] ss:$0 sm:$0xff] }
0x1901   : > { %v3717_v52 = vadd.f32 %v8942_v30, %v11847_v5 }
0x1902   : > { %v3634_v26 = vmul.f32 %v8940_v25, %v3628_v2 }
0x1904   : > { %v3640_v27 = vadd.f32 %v8941_v7, %v3634_v26 }
0x1906   : > { %v3642_v3 = vmin.f32 %v3640_v27, 20.0  ;;  %vm3641_vm13 = vcmp.gt.f32.partialorder %v3640_v27, 20.0 }
0x1908   : > { %v3643_v28 = vmul.f32 1.442695, %v3642_v3 }
0x190a   : > { %10852 = vpow2.f32 %v3643_v28  ;;  %v8946_v28 = vld [vmem:[#allocation7 + $0x16] ss:$0 sm:$0xff] }
0x1914   : > { %v10853_v34 = vpop.eup %10852 }
0x1915   : > { %v3645_v35 = vadd.f32 1.0, %v10853_v34  ;;  %v3648_v36 = vmul.f32 -0.5, %v10853_v34  ;;  %v3651_v37 = vand.u32 2147483647, %v10853_v34 }
0x1917   : > { %10854 = vlog2.f32 %v3645_v35  ;;  %v3649_v47 = vadd.f32 1.0, %v3648_v36  ;;  %vm3652_vm12 = vcmp.lt.f32.partialorder %v3651_v37, 0.0004427343 }
0x1919   : > { %v3650_v50 = vmul.f32 %v10853_v34, %v3649_v47 }
0x1921   : > { %v10855_v49 = vpop.eup %10854 }
0x1922   : > { %v3647_v38 = vmul.f32 0.6931472, %v10855_v49 }
0x1924   : > { %v3653_v39 = vsel %vm3652_vm12, %v3650_v50, %v3647_v38 }
0x1925   : > { %v3654_v40 = vsel %vm3641_vm13, %v3640_v27, %v3653_v39 }
0x1926   : > { %10856 = vtanh.f32 %v3654_v40 }
0x1930   : > { %v10857_v41 = vpop.eup %10856 }
0x1931   : > { %v3656_v29 = vmul.f32 %v10857_v41, %v3640_v27 }
0x1933   : > { %v11860_v55 = vadd.f32 %v3717_v52, %v3656_v29 }
0x1935   : > { %v3724_v56 = vrot.slane %v11860_v55, 6 }
0x1937   : > { %v3726_v57 = vsel %vm1219_vm2, 0.0, %v3724_v56  ;;  %v3727_v48 = vsel %vm1219_vm2, %v3724_v56, 0.0 }
0x1938   : > { %v3746_v62 = vrot.slane %v3726_v57, 4  ;;  %v3747_v45 = vrot.slane %v3727_v48, 4  ;;  %v3730_v63 = vrot.slane %v3726_v57, 1  ;;  %v3731_v1 = vrot.slane %v3727_v48, 1 }
0x1939   : > { %v3740_v5 = vrot.slane %v3726_v57, 3  ;;  %v3741_v8 = vrot.slane %v3727_v48, 3  ;;  %v3736_v20 = vrot.slane %v3726_v57, 2  ;;  %v3737_v46 = vrot.slane %v3727_v48, 2 }
0x193a   : > { %v3748_v9 = vsel %vm835_vm6, %v3746_v62, %v3747_v45  ;;  %v3732_v10 = vsel %vm1230_vm4, %v3730_v63, %v3731_v1 }
0x193b   : > { %v3794_v13 = vpack.c.bf16 %v3748_v9, %v3748_v9  ;;  %v3742_v58 = vsel %vm836_vm5, %v3740_v5, %v3741_v8  ;;  %v3738_v60 = vsel %vm1242_vm3, %v3736_v20, %v3737_v46  ;;  %v10574_v20 = vld [vmem:[#allocation4 + $0x3b0] sm:$0xff]   ;;  %v10575_v46 = vld [vmem:[#allocation4 + $0x3b8] sm:$0xff]  }
0x193c   : > { %v10408_v15 = vpack.i.bf16 %v3732_v10, %v3742_v58 }
0x193d   : > { %9880 = vmatmul.mubr.msk.bf16.vlgmr.msra.gmra.mrb[76].mxu0 %vm1606_vm15, %v3794_v13 }
0x193e   : > { %10409 = vrot.lane.b32.xlu0 %v10408_v15, %s11144_s16  ;;  %9884 = vmatpush3.bf16.msra.mxu0 %v11764_v33 }
0x193f   : > { %9885 = vmatprep.subr.bf16.mxu0 %v11135_v0  ;;  %9891 = vmatprep.mubr.msk.bf16.mxu0 %vm11136_vm0, %v11135_v0 }
0x1942   : > { %9886 = vmatpush3.bf16.msra.mxu0 %v11768_v14 }
0x1943   : > { %9887 = vmatprep.subr.bf16.mxu0 %v11135_v0 }
0x1946   : > { %9888 = vmatpush3.bf16.msra.mxu0 %v11772_v31 }
0x1947   : > { %9889 = vmatprep.subr.bf16.mxu0 %v11135_v0 }
0x194a   : > { %9890 = vmatpush3.bf16.msra.mxu0 %v11776_v32 }
0x19b0   : > { %v10410_v18 = vpop.permute.xlu0 %10409 }
0x19b1   : > { %v10412_v54 = vunpack.i.h.bf16 %v10410_v18  ;;  %v10411_v21 = vunpack.i.l.bf16 %v10410_v18  ;;  %v10576_v18 = vld [vmem:[#allocation4 + $0x3c0] sm:$0xff]  }
0x19b3   : > { %v3750_v22 = vsel %vm1606_vm15, %v3726_v57, %v10412_v54  ;;  %v3751_v23 = vsel %vm1606_vm15, %v3738_v60, %v10411_v21  ;;  %v10577_v54 = vld [vmem:[#allocation4 + $0x3c8] sm:$0xff]   ;;  %v10578_v21 = vld [vmem:[#allocation4 + $0x370] sm:$0xff]  }
0x19b4   : > { %v3792_v24 = vpack.c.bf16 %v3750_v22, %v3750_v22  ;;  %v3793_v25 = vpack.c.bf16 %v3751_v23, %v3751_v23  ;;  %v10579_v60 = vld [vmem:[#allocation4 + $0x330] sm:$0xff]   ;;  %v10580_v22 = vld [vmem:[#allocation4 + $0x378] sm:$0xff]   ;;  %9383 = vmatprep.subr.bf16.mxu0 %v10578_v21 }
0x19b5   : > { %v10581_v23 = vld [vmem:[#allocation4 + $0x338] sm:$0xff]  }
0x19b6   : > { %3955 = vmatprep.mubr.bf16.mxu1 %v3793_v25  ;;  %v10583_v25 = vld [vmem:[#allocation4 + $0x340] sm:$0xff]  }
0x19b7   : > { %3956 = vmatmul.mubr.bf16.vlgmr.msra.gmra.mrb[56].mxu1 %v3792_v24  ;;  %v10582_v24 = vld [vmem:[#allocation4 + $0x380] sm:$0xff]  }
0x19b8   : > { %9896 = vmatpush3.bf16.msra.mxu1 %v11764_v33  ;;  %9903 = vmatprep.mubr.msk.bf16.mxu1 %vm11136_vm0, %v11135_v0 }
0x19b9   : > { %9897 = vmatprep.subr.bf16.mxu1 %v11135_v0 }
0x19bc   : > { %9898 = vmatpush3.bf16.msra.mxu1 %v11768_v14 }
0x19bd   : > { %9899 = vmatprep.subr.bf16.mxu1 %v11135_v0 }
0x19c0   : > { %9900 = vmatpush3.bf16.msra.mxu1 %v11772_v31 }
0x19c1   : > { %9901 = vmatprep.subr.bf16.mxu1 %v11135_v0 }
0x19c4   : > { %9902 = vmatpush3.bf16.msra.mxu1 %v11776_v32 }
0x19c5   : > { %9907 = vmatprep.subr.bf16.mxu1 %v11135_v0 }
0x1a10   : > { %v3997_v2 = vpop.f32.mrb[76].mxu0 }
0x1a11   : > { %v9881_v7 = vpop.f32.mrb[77].mxu0 }
0x1a12   : > { %v4000_v26 = vpop.f32.mrb[78].mxu0  ;;  %v10585_v7 = vld [vmem:[#allocation4 + $0x348] sm:$0xff]  }
0x1a13   : > { %v9882_v27 = vpop.f32.mrb[79].mxu0  ;;  %v10586_v26 = vld [vmem:[#allocation4 + $0x390] sm:$0xff]  }
0x1a14   : > { %v10587_v27 = vld [vmem:[#allocation4 + $0x350] sm:$0xff]  }
0x1a8a   : > { %v9362_v3 = vpop.f32.mrb[56].mxu1 }
0x1a8b   : > { %v9363_v34 = vpop.f32.mrb[57].mxu1 }
0x1a8c   : > { %v9364_v35 = vadd.f32 %v9363_v34, %v9362_v3  ;;  %v9365_v36 = vpop.f32.mrb[58].mxu1  ;;  %v10588_v3 = vld [vmem:[#allocation4 + $0x398] sm:$0xff]   ;;  %v10590_v34 = vld [vmem:[#allocation4 + $0x3a0] sm:$0xff]  }
0x1a8d   : > { %v9366_v47 = vpop.f32.mrb[59].mxu1 }
0x1a8e   : > { %v3958_v37 = vadd.f32 %v9364_v35, %v8946_v28  ;;  %v10589_v28 = vld [vmem:[#allocation4 + $0x358] sm:$0xff]   ;;  %v10591_v35 = vld [vmem:[#allocation4 + $0x360] sm:$0xff]  }
0x1a90   : > { %v3998_v49 = vadd.f32 %v3997_v2, %v3958_v37  ;;  %v10584_v2 = vld [vmem:[#allocation4 + $0x388] sm:$0xff]  }
0x1a92   : > { %v4003_v38 = vsel %vm1606_vm15, %v3998_v49, 0.0 }
0x1a93   : > { %v4004_v50 = vrot.slane %v4003_v38, 4 }
0x1a95   : > { %v4005_v39 = vadd.f32 %v4004_v50, %v4003_v38 }
0x1a97   : > { %v4006_v40 = vrot.slane %v4005_v39, 2 }
0x1a99   : > { %v4007_v30 = vadd.f32 %v4006_v40, %v4005_v39 }
0x1a9b   : > { %v4008_v41 = vrot.slane %v4007_v30, 1 }
0x1a9d   : > { %v4009_v52 = vadd.f32 %v4008_v41, %v4007_v30  ;;  %v8970_v30 = vld [vmem:[#allocation7 + $0x17] ss:$0 sm:$0xff] }
0x1a9f   : > { %v4010_v29 = vpack.c.bf16 %v4009_v52, %v4009_v52  ;;  %v8971_v52 = vld [vmem:[#allocation7 + $0x18] ss:$0 sm:$0xff] }
0x1aa1   : > { %9892 = vmatmul.mubr.msk.bf16.vlgmr.msra.gmra.mrb[80].mxu0 %vm1606_vm15, %v4010_v29 }
0x1aa2   : > { %9384 = vmatpush3.bf16.msra.mxu0 %v10579_v60 }
0x1aa3   : > { %9385 = vmatprep.subr.bf16.mxu0 %v10580_v22 }
0x1aa6   : > { %9386 = vmatpush3.bf16.msra.mxu0 %v10581_v23 }
0x1aa7   : > { %9387 = vmatprep.subr.bf16.mxu0 %v10582_v24 }
0x1aaa   : > { %9388 = vmatpush3.bf16.msra.mxu0 %v10583_v25 }
0x1aab   : > { %9389 = vmatprep.subr.bf16.mxu0 %v10584_v2 }
0x1aae   : > { %9390 = vmatpush3.bf16.msra.mxu0 %v10585_v7 }
0x1aaf   : > { %9391 = vmatprep.subr.bf16.mxu0 %v10586_v26 }
0x1ab2   : > { %9392 = vmatpush3.bf16.msra.mxu0 %v10587_v27 }
0x1ab3   : > { %9393 = vmatprep.subr.bf16.mxu0 %v10588_v3 }
0x1ab6   : > { %9394 = vmatpush3.bf16.msra.mxu0 %v10589_v28 }
0x1ab7   : > { %9395 = vmatprep.subr.bf16.mxu0 %v10590_v34 }
0x1aba   : > { %9396 = vmatpush3.bf16.msra.mxu0 %v10591_v35 }
0x1b74   : > { %v4048_v19 = vpop.f32.mrb[80].mxu0 }
0x1b75   : > { %v4054_v43 = vmul.f32 0.015625, %v4048_v19  ;;  %v9893_v56 = vpop.f32.mrb[81].mxu0 }
0x1b76   : > { %v4051_v57 = vpop.f32.mrb[82].mxu0 }
0x1b77   : > { %v4058_v48 = vrot.slane %v4054_v43, %v11530_v42  ;;  %v9894_v62 = vpop.f32.mrb[83].mxu0 }
0x1b79   : > { %v4059_v45 = vsub.f32 %v3998_v49, %v4058_v48 }
0x1b7b   : > { %v4060_v63 = vmul.f32 %v4059_v45, %v4059_v45 }
0x1b7d   : > { %v4061_v1 = vsel %vm1606_vm15, %v4060_v63, 0.0 }
0x1b7e   : > { %v4062_v5 = vrot.slane %v4061_v1, 4 }
0x1b80   : > { %v4063_v8 = vadd.f32 %v4062_v5, %v4061_v1 }
0x1b82   : > { %v4064_v9 = vrot.slane %v4063_v8, 2 }
0x1b84   : > { %v4065_v10 = vadd.f32 %v4064_v9, %v4063_v8 }
0x1b86   : > { %v4066_v13 = vrot.slane %v4065_v10, 1 }
0x1b88   : > { %v4067_v58 = vadd.f32 %v4066_v13, %v4065_v10 }
0x1b8a   : > { %v4068_v15 = vpack.c.bf16 %v4067_v58, %v4067_v58  ;;  %v4151_v58 = vrot.slane %v11497_v51, %v11530_v42 }
0x1b8c   : > { %9904 = vmatmul.mubr.msk.bf16.vlgmr.msra.gmra.mrb[60].mxu1 %vm1606_vm15, %v4068_v15 }
0x1b8d   : > { %9915 = vmatprep.mubr.msk.bf16.mxu1 %vm11136_vm0, %v11135_v0  ;;  %9908 = vmatpush3.bf16.msra.mxu1 %v10574_v20  ;;  %v4156_v20 = vrot.slane %v11501_v53, %v11530_v42 }
0x1b8e   : > { %9909 = vmatprep.subr.bf16.mxu1 %v11135_v0 }
0x1b91   : > { %9910 = vmatpush3.bf16.msra.mxu1 %v10575_v46 }
0x1b92   : > { %9911 = vmatprep.subr.bf16.mxu1 %v11135_v0 }
0x1b95   : > { %9912 = vmatpush3.bf16.msra.mxu1 %v10576_v18  ;;  %v10592_v18 = vld [vmem:[#allocation4 + $0x3a8] sm:$0xff]  }
0x1b96   : > { %9913 = vmatprep.subr.bf16.mxu1 %v11135_v0  ;;  %9397 = vmatprep.subr.bf16.mxu0 %v10592_v18 }
0x1b99   : > { %9914 = vmatpush3.bf16.msra.mxu1 %v10577_v54  ;;  %v10593_v54 = vld [vmem:[#allocation4 + $0x368] sm:$0xff]  }
0x1b9a   : > { %9919 = vmatprep.subr.bf16.mxu1 %v11135_v0  ;;  %9398 = vmatpush3.bf16.msra.mxu0 %v10593_v54 }
0x1b9b   : > { %9931 = vmatprep.subr.bf16.mxu0 %v11135_v0 }
0x1c5f   : > { %v4106_v36 = vpop.f32.mrb[60].mxu1 }
0x1c60   : > { %v4112_v47 = vmul.f32 0.015625, %v4106_v36  ;;  %v9905_v37 = vpop.f32.mrb[61].mxu1 }
0x1c61   : > { %v4109_v49 = vpop.f32.mrb[62].mxu1 }
0x1c62   : > { %v4113_v38 = vadd.f32 1e-05, %v4112_v47  ;;  %v9906_v50 = vpop.f32.mrb[63].mxu1 }
0x1c64   : > { %10858 = vrsqrt.f32 %v4113_v38 }
0x1c6e   : > { %v10859_v39 = vpop.eup %10858 }
0x1c6f   : > { %v4118_v40 = vrot.slane %v10859_v39, %v11530_v42 }
0x1c71   : > { %v4119_v41 = vmul.f32 %v4118_v40, %v4059_v45  ;;  %v11939_v40 = vld [vmem:[#allocation4 + $0x20] sm:$0xff]  }
0x1c73   : > { %v4125_v29 = vmul.f32 %v8970_v30, %v4119_v41  ;;  %v11943_v30 = vld [vmem:[#allocation4 + $0x28] sm:$0xff]  }
0x1c75   : > { %v4131_v19 = vadd.f32 %v8971_v52, %v4125_v29 }
0x1c77   : > { %v4133_v43 = vmin.f32 %v4131_v19, 20.0  ;;  %vm4132_vm10 = vcmp.gt.f32.partialorder %v4131_v19, 20.0 }
0x1c79   : > { %v4134_v56 = vmul.f32 1.442695, %v4133_v43 }
0x1c7b   : > { %10860 = vpow2.f32 %v4134_v56  ;;  %v8972_v56 = vld [vmem:[#allocation7 + $0x19] ss:$0 sm:$0xff] }
0x1c85   : > { %v10861_v57 = vpop.eup %10860 }
0x1c86   : > { %v4136_v48 = vadd.f32 1.0, %v10861_v57  ;;  %v4139_v62 = vmul.f32 -0.5, %v10861_v57  ;;  %v4142_v1 = vand.u32 2147483647, %v10861_v57 }
0x1c88   : > { %10862 = vlog2.f32 %v4136_v48  ;;  %v4140_v63 = vadd.f32 1.0, %v4139_v62  ;;  %vm4143_vm9 = vcmp.lt.f32.partialorder %v4142_v1, 0.0004427343 }
0x1c8a   : > { %v4141_v9 = vmul.f32 %v10861_v57, %v4140_v63 }
0x1c92   : > { %v10863_v5 = vpop.eup %10862 }
0x1c93   : > { %v4138_v8 = vmul.f32 0.6931472, %v10863_v5 }
0x1c95   : > { %v4144_v10 = vsel %vm4143_vm9, %v4141_v9, %v4138_v8 }
0x1c96   : > { %v4145_v13 = vsel %vm4132_vm10, %v4131_v19, %v4144_v10 }
0x1c97   : > { %10864 = vtanh.f32 %v4145_v13 }
0x1ca1   : > { %v10865_v45 = vpop.eup %10864 }
0x1ca2   : > { %v4147_v15 = vmul.f32 %v10865_v45, %v4131_v19 }
0x1ca4   : > { %v4152_v46 = vmul.f32 %v4151_v58, %v4147_v15 }
0x1ca6   : > { %v4157_v21 = vadd.f32 %v4156_v20, %v4152_v46 }
0x1ca8   : > { %v4159_v60 = vrot.slane %v4157_v21, 6 }
0x1caa   : > { %v4161_v22 = vsel %vm1219_vm2, 0.0, %v4159_v60  ;;  %v4162_v23 = vsel %vm1219_vm2, %v4159_v60, 0.0 }
0x1cab   : > { %v4181_v24 = vrot.slane %v4161_v22, 4  ;;  %v4182_v25 = vrot.slane %v4162_v23, 4  ;;  %v4165_v51 = vrot.slane %v4161_v22, 1  ;;  %v4166_v2 = vrot.slane %v4162_v23, 1 }
0x1cac   : > { %v4175_v7 = vrot.slane %v4161_v22, 3  ;;  %v4176_v26 = vrot.slane %v4162_v23, 3  ;;  %v4171_v35 = vrot.slane %v4161_v22, 2  ;;  %v4172_v36 = vrot.slane %v4162_v23, 2 }
0x1cad   : > { %v4183_v53 = vsel %vm835_vm6, %v4181_v24, %v4182_v25  ;;  %v4167_v27 = vsel %vm1230_vm4, %v4165_v51, %v4166_v2 }
0x1cae   : > { %v4229_v3 = vpack.c.bf16 %v4183_v53, %v4183_v53  ;;  %v4177_v28 = vsel %vm836_vm5, %v4175_v7, %v4176_v26  ;;  %v4173_v49 = vsel %vm1242_vm3, %v4171_v35, %v4172_v36  ;;  %v10596_v35 = vld [vmem:[#allocation4 + $0x460] sm:$0xff]   ;;  %v10597_v36 = vld [vmem:[#allocation4 + $0x468] sm:$0xff]  }
0x1caf   : > { %v10413_v34 = vpack.i.bf16 %v4167_v27, %v4177_v28  ;;  %v10594_v28 = vld [vmem:[#allocation4 + $0x450] sm:$0xff]  }
0x1cb0   : > { %9916 = vmatmul.mubr.msk.bf16.vlgmr.msra.gmra.mrb[64].mxu1 %vm1606_vm15, %v4229_v3 }
0x1cb1   : > { %10414 = vrot.lane.b32.xlu1 %v10413_v34, %s11144_s16  ;;  %9920 = vmatpush3.bf16.msra.mxu1 %v11764_v33  ;;  %v10595_v34 = vld [vmem:[#allocation4 + $0x458] sm:$0xff]  }
0x1cb2   : > { %9921 = vmatprep.subr.bf16.mxu1 %v11135_v0  ;;  %9927 = vmatprep.mubr.msk.bf16.mxu1 %vm11136_vm0, %v11135_v0 }
0x1cb5   : > { %9922 = vmatpush3.bf16.msra.mxu1 %v11768_v14 }
0x1cb6   : > { %9923 = vmatprep.subr.bf16.mxu1 %v11135_v0 }
0x1cb9   : > { %9924 = vmatpush3.bf16.msra.mxu1 %v11772_v31  ;;  %v11929_v31 = vld [vmem:[#allocation4 + $0x10] sm:$0xff]  }
0x1cba   : > { %9925 = vmatprep.subr.bf16.mxu1 %v11135_v0 }
0x1cbd   : > { %9926 = vmatpush3.bf16.msra.mxu1 %v11776_v32  ;;  %v11935_v32 = vld [vmem:[#allocation4 + $0x18] sm:$0xff]  }
0x1d23   : > { %v10415_v47 = vpop.permute.xlu1 %10414 }
0x1d24   : > { %v10417_v37 = vunpack.i.h.bf16 %v10415_v47  ;;  %v10416_v33 = vunpack.i.l.bf16 %v10415_v47  ;;  %v10598_v47 = vld [vmem:[#allocation4 + $0x410] sm:$0xff]  }
0x1d25   : > { %9420 = vmatprep.subr.bf16.mxu1 %v10598_v47 }
0x1d26   : > { %v4185_v38 = vsel %vm1606_vm15, %v4161_v22, %v10417_v37  ;;  %v4186_v50 = vsel %vm1606_vm15, %v4173_v49, %v10416_v33  ;;  %v10599_v37 = vld [vmem:[#allocation4 + $0x3d0] sm:$0xff]   ;;  %v10600_v33 = vld [vmem:[#allocation4 + $0x418] sm:$0xff]  }
0x1d27   : > { %v4227_v14 = vpack.c.bf16 %v4185_v38, %v4185_v38  ;;  %v4228_v39 = vpack.c.bf16 %v4186_v50, %v4186_v50  ;;  %v10601_v49 = vld [vmem:[#allocation4 + $0x3d8] sm:$0xff]   ;;  %v10602_v38 = vld [vmem:[#allocation4 + $0x420] sm:$0xff]  }
0x1d28   : > { %v10603_v50 = vld [vmem:[#allocation4 + $0x3e0] sm:$0xff]  }
0x1d29   : > { %4390 = vmatprep.mubr.bf16.mxu0 %v4228_v39  ;;  %v10605_v39 = vld [vmem:[#allocation4 + $0x3e8] sm:$0xff]  }
0x1d2a   : > { %4391 = vmatmul.mubr.bf16.vlgmr.msra.gmra.mrb[84].mxu0 %v4227_v14  ;;  %v10604_v14 = vld [vmem:[#allocation4 + $0x428] sm:$0xff]  }
0x1d2b   : > { %9932 = vmatpush3.bf16.msra.mxu0 %v11929_v31  ;;  %9939 = vmatprep.mubr.msk.bf16.mxu0 %vm11136_vm0, %v11135_v0 }
0x1d2c   : > { %9933 = vmatprep.subr.bf16.mxu0 %v11135_v0 }
0x1d2f   : > { %9934 = vmatpush3.bf16.msra.mxu0 %v11935_v32 }
0x1d30   : > { %9935 = vmatprep.subr.bf16.mxu0 %v11135_v0 }
0x1d33   : > { %9936 = vmatpush3.bf16.msra.mxu0 %v11939_v40 }
0x1d34   : > { %9937 = vmatprep.subr.bf16.mxu0 %v11135_v0 }
0x1d37   : > { %9938 = vmatpush3.bf16.msra.mxu0 %v11943_v30 }
0x1d38   : > { %9943 = vmatprep.subr.bf16.mxu0 %v11135_v0 }
0x1d83   : > { %v4432_v41 = vpop.f32.mrb[64].mxu1 }
0x1d84   : > { %v9917_v52 = vpop.f32.mrb[65].mxu1 }
0x1d85   : > { %v4435_v29 = vpop.f32.mrb[66].mxu1  ;;  %v10607_v52 = vld [vmem:[#allocation4 + $0x3f0] sm:$0xff]  }
0x1d86   : > { %v9918_v19 = vpop.f32.mrb[67].mxu1  ;;  %v10608_v29 = vld [vmem:[#allocation4 + $0x438] sm:$0xff]  }
0x1d87   : > { %v10609_v19 = vld [vmem:[#allocation4 + $0x3f8] sm:$0xff]  }
0x1dfd   : > { %v9399_v43 = vpop.f32.mrb[84].mxu0 }
0x1dfe   : > { %v9400_v57 = vpop.f32.mrb[85].mxu0 }
0x1dff   : > { %v9401_v48 = vadd.f32 %v9400_v57, %v9399_v43  ;;  %v9402_v62 = vpop.f32.mrb[86].mxu0  ;;  %v10610_v43 = vld [vmem:[#allocation4 + $0x440] sm:$0xff]  }
0x1e00   : > { %v9403_v63 = vpop.f32.mrb[87].mxu0 }
0x1e01   : > { %v4393_v1 = vadd.f32 %v9401_v48, %v8972_v56  ;;  %v10611_v56 = vld [vmem:[#allocation4 + $0x400] sm:$0xff]  }
0x1e03   : > { %v4433_v5 = vadd.f32 %v4432_v41, %v4393_v1  ;;  %v10606_v41 = vld [vmem:[#allocation4 + $0x430] sm:$0xff]  }
0x1e05   : > { %v4438_v8 = vsel %vm1606_vm15, %v4433_v5, 0.0 }
0x1e06   : > { %v4439_v9 = vrot.slane %v4438_v8, 4 }
0x1e08   : > { %v4440_v10 = vadd.f32 %v4439_v9, %v4438_v8 }
0x1e0a   : > { %v4441_v13 = vrot.slane %v4440_v10, 2 }
0x1e0c   : > { %v4442_v45 = vadd.f32 %v4441_v13, %v4440_v10  ;;  %v8996_v10 = vld [vmem:[#allocation7 + $0x1a] ss:$0 sm:$0xff] }
0x1e0e   : > { %v4443_v58 = vrot.slane %v4442_v45, 1 }
0x1e10   : > { %v4444_v15 = vadd.f32 %v4443_v58, %v4442_v45  ;;  %v8997_v45 = vld [vmem:[#allocation7 + $0x1b] ss:$0 sm:$0xff] }
0x1e12   : > { %v4445_v20 = vpack.c.bf16 %v4444_v15, %v4444_v15 }
0x1e14   : > { %9928 = vmatmul.mubr.msk.bf16.vlgmr.msra.gmra.mrb[68].mxu1 %vm1606_vm15, %v4445_v20 }
0x1e15   : > { %9421 = vmatpush3.bf16.msra.mxu1 %v10599_v37 }
0x1e16   : > { %9422 = vmatprep.subr.bf16.mxu1 %v10600_v33 }
0x1e19   : > { %9423 = vmatpush3.bf16.msra.mxu1 %v10601_v49 }
0x1e1a   : > { %9424 = vmatprep.subr.bf16.mxu1 %v10602_v38 }
0x1e1d   : > { %9425 = vmatpush3.bf16.msra.mxu1 %v10603_v50 }
0x1e1e   : > { %9426 = vmatprep.subr.bf16.mxu1 %v10604_v14 }
0x1e21   : > { %9427 = vmatpush3.bf16.msra.mxu1 %v10605_v39 }
0x1e22   : > { %9428 = vmatprep.subr.bf16.mxu1 %v10606_v41 }
0x1e25   : > { %9429 = vmatpush3.bf16.msra.mxu1 %v10607_v52 }
0x1e26   : > { %9430 = vmatprep.subr.bf16.mxu1 %v10608_v29 }
0x1e29   : > { %9431 = vmatpush3.bf16.msra.mxu1 %v10609_v19 }
0x1e2a   : > { %9432 = vmatprep.subr.bf16.mxu1 %v10610_v43 }
0x1e2d   : > { %9433 = vmatpush3.bf16.msra.mxu1 %v10611_v56 }
0x1ee7   : > { %v4483_v46 = vpop.f32.mrb[68].mxu1 }
0x1ee8   : > { %v4489_v18 = vmul.f32 0.015625, %v4483_v46  ;;  %v9929_v54 = vpop.f32.mrb[69].mxu1 }
0x1ee9   : > { %v4486_v21 = vpop.f32.mrb[70].mxu1 }
0x1eea   : > { %v4493_v60 = vrot.slane %v4489_v18, %v11530_v42  ;;  %v9930_v22 = vpop.f32.mrb[71].mxu1 }
0x1eec   : > { %v4494_v23 = vsub.f32 %v4433_v5, %v4493_v60 }
0x1eee   : > { %v4495_v24 = vmul.f32 %v4494_v23, %v4494_v23 }
0x1ef0   : > { %v4496_v25 = vsel %vm1606_vm15, %v4495_v24, 0.0 }
0x1ef1   : > { %v4497_v51 = vrot.slane %v4496_v25, 4 }
0x1ef3   : > { %v4498_v2 = vadd.f32 %v4497_v51, %v4496_v25 }
0x1ef5   : > { %v4499_v7 = vrot.slane %v4498_v2, 2 }
0x1ef7   : > { %v4500_v26 = vadd.f32 %v4499_v7, %v4498_v2 }
0x1ef9   : > { %v4501_v53 = vrot.slane %v4500_v26, 1 }
0x1efb   : > { %v4502_v27 = vadd.f32 %v4501_v53, %v4500_v26  ;;  %v10612_v53 = vld [vmem:[#allocation4 + $0x448] sm:$0xff]  }
0x1efc   : > { %9434 = vmatprep.subr.bf16.mxu1 %v10612_v53 }
0x1efd   : > { %v4503_v3 = vpack.c.bf16 %v4502_v27, %v4502_v27  ;;  %v10613_v27 = vld [vmem:[#allocation4 + $0x408] sm:$0xff]  }
0x1efe   : > { %9435 = vmatpush3.bf16.msra.mxu1 %v10613_v27 }
0x1eff   : > { %9940 = vmatmul.mubr.msk.bf16.vlgmr.msra.gmra.mrb[88].mxu0 %vm1606_vm15, %v4503_v3  ;;  %9967 = vmatprep.subr.bf16.mxu1 %v11135_v0 }
0x1f00   : > { %9951 = vmatprep.mubr.msk.bf16.mxu0 %vm11136_vm0, %v11135_v0  ;;  %9944 = vmatpush3.bf16.msra.mxu0 %v10594_v28 }
0x1f01   : > { %9945 = vmatprep.subr.bf16.mxu0 %v11135_v0 }
0x1f04   : > { %9946 = vmatpush3.bf16.msra.mxu0 %v10595_v34 }
0x1f05   : > { %9947 = vmatprep.subr.bf16.mxu0 %v11135_v0 }
0x1f08   : > { %9948 = vmatpush3.bf16.msra.mxu0 %v10596_v35 }
0x1f09   : > { %9949 = vmatprep.subr.bf16.mxu0 %v11135_v0 }
0x1f0c   : > { %9950 = vmatpush3.bf16.msra.mxu0 %v10597_v36 }
0x1f0d   : > { %9955 = vmatprep.subr.bf16.mxu0 %v11135_v0 }
0x1fd2   : > { %v4541_v57 = vpop.f32.mrb[88].mxu0 }
0x1fd3   : > { %v4547_v48 = vmul.f32 0.015625, %v4541_v57  ;;  %v9941_v62 = vpop.f32.mrb[89].mxu0 }
0x1fd4   : > { %v4544_v63 = vpop.f32.mrb[90].mxu0 }
0x1fd5   : > { %v4548_v1 = vadd.f32 1e-05, %v4547_v48  ;;  %v9942_v5 = vpop.f32.mrb[91].mxu0 }
0x1fd7   : > { %10866 = vrsqrt.f32 %v4548_v1 }
0x1fe1   : > { %v10867_v8 = vpop.eup %10866 }
0x1fe2   : > { %v4553_v9 = vrot.slane %v10867_v8, %v11530_v42 }
0x1fe4   : > { %v4554_v13 = vmul.f32 %v4553_v9, %v4494_v23 }
0x1fe6   : > { %v4560_v58 = vmul.f32 %v8996_v10, %v4554_v13 }
0x1fe8   : > { %v4566_v15 = vadd.f32 %v8997_v45, %v4560_v58  ;;  %v8998_v45 = vld [vmem:[#allocation7 + $0x1c] ss:$0 sm:$0xff] }
0x1fea   : > { %v4568_v20 = vmin.f32 %v4566_v15, 20.0  ;;  %vm4567_vm11 = vcmp.gt.f32.partialorder %v4566_v15, 20.0 }
0x1fec   : > { %v4569_v46 = vmul.f32 1.442695, %v4568_v20 }
0x1fee   : > { %10868 = vpow2.f32 %v4569_v46 }
0x1ff8   : > { %v10869_v18 = vpop.eup %10868 }
0x1ff9   : > { %v4571_v54 = vadd.f32 1.0, %v10869_v18  ;;  %v4574_v21 = vmul.f32 -0.5, %v10869_v18  ;;  %v4577_v22 = vand.u32 2147483647, %v10869_v18 }
0x1ffb   : > { %10870 = vlog2.f32 %v4571_v54  ;;  %v4575_v60 = vadd.f32 1.0, %v4574_v21  ;;  %vm4578_vm7 = vcmp.lt.f32.partialorder %v4577_v22, 0.0004427343 }
0x1ffd   : > { %v4576_v51 = vmul.f32 %v10869_v18, %v4575_v60 }
0x2005   : > { %v10871_v24 = vpop.eup %10870 }
0x2006   : > { %v4573_v25 = vmul.f32 0.6931472, %v10871_v24 }
0x2008   : > { %v4579_v2 = vsel %vm4578_vm7, %v4576_v51, %v4573_v25 }
0x2009   : > { %v4580_v7 = vsel %vm4567_vm11, %v4566_v15, %v4579_v2 }
0x200a   : > { %10872 = vtanh.f32 %v4580_v7 }
0x2014   : > { %v10873_v23 = vpop.eup %10872 }
0x2015   : > { %v4582_v26 = vmul.f32 %v10873_v23, %v4566_v15 }
0x2017   : > { %v11960_v3 = vadd.f32 %v4582_v26, %v11860_v55 }
0x2019   : > { %v4585_v28 = vrot.slane %v11960_v3, 6 }
0x201b   : > { %v4587_v34 = vsel %vm1219_vm2, 0.0, %v4585_v28  ;;  %v4588_v35 = vsel %vm1219_vm2, %v4585_v28, 0.0 }
0x201c   : > { %v4607_v36 = vrot.slane %v4587_v34, 4  ;;  %v4608_v47 = vrot.slane %v4588_v35, 4  ;;  %v4591_v37 = vrot.slane %v4587_v34, 1  ;;  %v4592_v33 = vrot.slane %v4588_v35, 1 }
0x201d   : > { %v4601_v49 = vrot.slane %v4587_v34, 3  ;;  %v4602_v38 = vrot.slane %v4588_v35, 3  ;;  %v4597_v52 = vrot.slane %v4587_v34, 2  ;;  %v4598_v29 = vrot.slane %v4588_v35, 2 }
0x201e   : > { %v4609_v50 = vsel %vm835_vm6, %v4607_v36, %v4608_v47  ;;  %v4593_v55 = vsel %vm1230_vm4, %v4591_v37, %v4592_v33 }
0x201f   : > { %v4655_v14 = vpack.c.bf16 %v4609_v50, %v4609_v50  ;;  %v4603_v39 = vsel %vm836_vm5, %v4601_v49, %v4602_v38  ;;  %v4599_v57 = vsel %vm1242_vm3, %v4597_v52, %v4598_v29  ;;  %v10616_v52 = vld [vmem:[#allocation4 + $0x500] sm:$0xff]   ;;  %v10617_v29 = vld [vmem:[#allocation4 + $0x508] sm:$0xff]  }
0x2020   : > { %v10418_v41 = vpack.i.bf16 %v4593_v55, %v4603_v39  ;;  %v10614_v39 = vld [vmem:[#allocation4 + $0x4f0] sm:$0xff]  }
0x2021   : > { %9952 = vmatmul.mubr.msk.bf16.vlgmr.msra.gmra.mrb[92].mxu0 %vm1606_vm15, %v4655_v14 }
0x2022   : > { %10419 = vrot.lane.b32.xlu0 %v10418_v41, %s11144_s16  ;;  %9956 = vmatpush3.bf16.msra.mxu0 %v11929_v31  ;;  %v10615_v41 = vld [vmem:[#allocation4 + $0x4f8] sm:$0xff]  }
0x2023   : > { %9957 = vmatprep.subr.bf16.mxu0 %v11135_v0  ;;  %9963 = vmatprep.mubr.msk.bf16.mxu0 %vm11136_vm0, %v11135_v0 }
0x2026   : > { %9958 = vmatpush3.bf16.msra.mxu0 %v11935_v32 }
0x2027   : > { %9959 = vmatprep.subr.bf16.mxu0 %v11135_v0 }
0x202a   : > { %9960 = vmatpush3.bf16.msra.mxu0 %v11939_v40 }
0x202b   : > { %9961 = vmatprep.subr.bf16.mxu0 %v11135_v0 }
0x202e   : > { %9962 = vmatpush3.bf16.msra.mxu0 %v11943_v30 }
0x2094   : > { %v10420_v19 = vpop.permute.xlu0 %10419 }
0x2095   : > { %v10422_v43 = vunpack.i.h.bf16 %v10420_v19  ;;  %v10421_v56 = vunpack.i.l.bf16 %v10420_v19  ;;  %v10618_v19 = vld [vmem:[#allocation4 + $0x4b0] sm:$0xff]  }
0x2096   : > { %9457 = vmatprep.subr.bf16.mxu0 %v10618_v19 }
0x2097   : > { %v4611_v48 = vsel %vm1606_vm15, %v4587_v34, %v10422_v43  ;;  %v4612_v62 = vsel %vm1606_vm15, %v4599_v57, %v10421_v56  ;;  %v10619_v43 = vld [vmem:[#allocation4 + $0x470] sm:$0xff]   ;;  %v10620_v56 = vld [vmem:[#allocation4 + $0x4b8] sm:$0xff]  }
0x2098   : > { %v4653_v63 = vpack.c.bf16 %v4611_v48, %v4611_v48  ;;  %v4654_v1 = vpack.c.bf16 %v4612_v62, %v4612_v62  ;;  %v10621_v57 = vld [vmem:[#allocation4 + $0x478] sm:$0xff]   ;;  %v10622_v48 = vld [vmem:[#allocation4 + $0x4c0] sm:$0xff]  }
0x2099   : > { %v10623_v62 = vld [vmem:[#allocation4 + $0x480] sm:$0xff]  }
0x209a   : > { %4816 = vmatprep.mubr.bf16.mxu1 %v4654_v1  ;;  %v10625_v1 = vld [vmem:[#allocation4 + $0x488] sm:$0xff]  }
0x209b   : > { %4817 = vmatmul.mubr.bf16.vlgmr.msra.gmra.mrb[72].mxu1 %v4653_v63  ;;  %v10624_v63 = vld [vmem:[#allocation4 + $0x4c8] sm:$0xff]  }
0x209c   : > { %9968 = vmatpush3.bf16.msra.mxu1 %v11929_v31  ;;  %9975 = vmatprep.mubr.msk.bf16.mxu1 %vm11136_vm0, %v11135_v0 }
0x209d   : > { %9969 = vmatprep.subr.bf16.mxu1 %v11135_v0 }
0x20a0   : > { %9970 = vmatpush3.bf16.msra.mxu1 %v11935_v32 }
0x20a1   : > { %9971 = vmatprep.subr.bf16.mxu1 %v11135_v0 }
0x20a4   : > { %9972 = vmatpush3.bf16.msra.mxu1 %v11939_v40 }
0x20a5   : > { %9973 = vmatprep.subr.bf16.mxu1 %v11135_v0 }
0x20a8   : > { %9974 = vmatpush3.bf16.msra.mxu1 %v11943_v30 }
0x20a9   : > { %9979 = vmatprep.subr.bf16.mxu1 %v11135_v0 }
0x20f4   : > { %v4858_v5 = vpop.f32.mrb[92].mxu0 }
0x20f5   : > { %v9953_v8 = vpop.f32.mrb[93].mxu0 }
0x20f6   : > { %v4861_v9 = vpop.f32.mrb[94].mxu0  ;;  %v10627_v8 = vld [vmem:[#allocation4 + $0x490] sm:$0xff]  }
0x20f7   : > { %v9954_v10 = vpop.f32.mrb[95].mxu0  ;;  %v10628_v9 = vld [vmem:[#allocation4 + $0x4d8] sm:$0xff]  }
0x20f8   : > { %v10629_v10 = vld [vmem:[#allocation4 + $0x498] sm:$0xff]  }
0x216e   : > { %v9436_v13 = vpop.f32.mrb[72].mxu1 }
0x216f   : > { %v9437_v58 = vpop.f32.mrb[73].mxu1 }
0x2170   : > { %v9438_v15 = vadd.f32 %v9437_v58, %v9436_v13  ;;  %v9439_v20 = vpop.f32.mrb[74].mxu1  ;;  %v10630_v13 = vld [vmem:[#allocation4 + $0x4e0] sm:$0xff]  }
0x2171   : > { %v9440_v46 = vpop.f32.mrb[75].mxu1 }
0x2172   : > { %v4819_v18 = vadd.f32 %v9438_v15, %v8998_v45  ;;  %v10631_v45 = vld [vmem:[#allocation4 + $0x4a0] sm:$0xff]  }
0x2174   : > { %v4859_v54 = vadd.f32 %v4858_v5, %v4819_v18  ;;  %v10626_v5 = vld [vmem:[#allocation4 + $0x4d0] sm:$0xff]  }
0x2176   : > { %v4864_v21 = vsel %vm1606_vm15, %v4859_v54, 0.0 }
0x2177   : > { %v4865_v60 = vrot.slane %v4864_v21, 4 }
0x2179   : > { %v4866_v22 = vadd.f32 %v4865_v60, %v4864_v21 }
0x217b   : > { %v4867_v24 = vrot.slane %v4866_v22, 2 }
0x217d   : > { %v4868_v25 = vadd.f32 %v4867_v24, %v4866_v22  ;;  %v9022_v22 = vld [vmem:[#allocation7 + $0x1d] ss:$0 sm:$0xff] }
0x217f   : > { %v4869_v51 = vrot.slane %v4868_v25, 1 }
0x2181   : > { %v4870_v2 = vadd.f32 %v4869_v51, %v4868_v25  ;;  %v9023_v25 = vld [vmem:[#allocation7 + $0x1e] ss:$0 sm:$0xff] }
0x2183   : > { %v4871_v7 = vpack.c.bf16 %v4870_v2, %v4870_v2 }
0x2185   : > { %9964 = vmatmul.mubr.msk.bf16.vlgmr.msra.gmra.mrb[96].mxu0 %vm1606_vm15, %v4871_v7 }
0x2186   : > { %9458 = vmatpush3.bf16.msra.mxu0 %v10619_v43 }
0x2187   : > { %9459 = vmatprep.subr.bf16.mxu0 %v10620_v56 }
0x218a   : > { %9460 = vmatpush3.bf16.msra.mxu0 %v10621_v57 }
0x218b   : > { %9461 = vmatprep.subr.bf16.mxu0 %v10622_v48 }
0x218e   : > { %9462 = vmatpush3.bf16.msra.mxu0 %v10623_v62 }
0x218f   : > { %9463 = vmatprep.subr.bf16.mxu0 %v10624_v63 }
0x2192   : > { %9464 = vmatpush3.bf16.msra.mxu0 %v10625_v1 }
0x2193   : > { %9465 = vmatprep.subr.bf16.mxu0 %v10626_v5 }
0x2196   : > { %9466 = vmatpush3.bf16.msra.mxu0 %v10627_v8 }
0x2197   : > { %9467 = vmatprep.subr.bf16.mxu0 %v10628_v9 }
0x219a   : > { %9468 = vmatpush3.bf16.msra.mxu0 %v10629_v10 }
0x219b   : > { %9469 = vmatprep.subr.bf16.mxu0 %v10630_v13 }
0x219e   : > { %9470 = vmatpush3.bf16.msra.mxu0 %v10631_v45 }
0x2258   : > { %v4909_v23 = vpop.f32.mrb[96].mxu0 }
0x2259   : > { %v4915_v26 = vmul.f32 0.015625, %v4909_v23  ;;  %v9965_v53 = vpop.f32.mrb[97].mxu0 }
0x225a   : > { %v4912_v27 = vpop.f32.mrb[98].mxu0 }
0x225b   : > { %v4919_v28 = vrot.slane %v4915_v26, %v11530_v42  ;;  %v9966_v34 = vpop.f32.mrb[99].mxu0 }
0x225d   : > { %v4920_v35 = vsub.f32 %v4859_v54, %v4919_v28 }
0x225f   : > { %v4921_v36 = vmul.f32 %v4920_v35, %v4920_v35 }
0x2261   : > { %v4922_v47 = vsel %vm1606_vm15, %v4921_v36, 0.0 }
0x2262   : > { %v4923_v37 = vrot.slane %v4922_v47, 4 }
0x2264   : > { %v4924_v33 = vadd.f32 %v4923_v37, %v4922_v47 }
0x2266   : > { %v4925_v49 = vrot.slane %v4924_v33, 2 }
0x2268   : > { %v4926_v38 = vadd.f32 %v4925_v49, %v4924_v33 }
0x226a   : > { %v4927_v50 = vrot.slane %v4926_v38, 1 }
0x226c   : > { %v4928_v55 = vadd.f32 %v4927_v50, %v4926_v38  ;;  %v5012_v38 = vrot.slane %v11519_v11, %v11530_v42 }
0x226e   : > { %v4929_v14 = vpack.c.bf16 %v4928_v55, %v4928_v55  ;;  %v5017_v55 = vrot.slane %v11521_v12, %v11530_v42 }
0x2270   : > { %9976 = vmatmul.mubr.msk.bf16.vlgmr.msra.gmra.mrb[76].mxu1 %vm1606_vm15, %v4929_v14 }
0x2271   : > { %9987 = vmatprep.mubr.msk.bf16.mxu1 %vm11136_vm0, %v11135_v0  ;;  %9980 = vmatpush3.bf16.msra.mxu1 %v10614_v39  ;;  %v10632_v39 = vld [vmem:[#allocation4 + $0x4e8] sm:$0xff]  }
0x2272   : > { %9981 = vmatprep.subr.bf16.mxu1 %v11135_v0  ;;  %9471 = vmatprep.subr.bf16.mxu0 %v10632_v39 }
0x2275   : > { %9982 = vmatpush3.bf16.msra.mxu1 %v10615_v41  ;;  %v10633_v41 = vld [vmem:[#allocation4 + $0x4a8] sm:$0xff]  }
0x2276   : > { %9983 = vmatprep.subr.bf16.mxu1 %v11135_v0  ;;  %9472 = vmatpush3.bf16.msra.mxu0 %v10633_v41 }
0x2277   : > { %10003 = vmatprep.subr.bf16.mxu0 %v11135_v0 }
0x2279   : > { %9984 = vmatpush3.bf16.msra.mxu1 %v10616_v52 }
0x227a   : > { %9985 = vmatprep.subr.bf16.mxu1 %v11135_v0 }
0x227d   : > { %9986 = vmatpush3.bf16.msra.mxu1 %v10617_v29 }
0x227e   : > { %9991 = vmatprep.subr.bf16.mxu1 %v11135_v0 }
0x2343   : > { %v4967_v58 = vpop.f32.mrb[76].mxu1 }
0x2344   : > { %v4973_v15 = vmul.f32 0.015625, %v4967_v58  ;;  %v9977_v20 = vpop.f32.mrb[77].mxu1 }
0x2345   : > { %v4970_v46 = vpop.f32.mrb[78].mxu1 }
0x2346   : > { %v4974_v18 = vadd.f32 1e-05, %v4973_v15  ;;  %v9978_v54 = vpop.f32.mrb[79].mxu1 }
0x2348   : > { %10874 = vrsqrt.f32 %v4974_v18 }
0x2352   : > { %v10875_v21 = vpop.eup %10874 }
0x2353   : > { %v4979_v60 = vrot.slane %v10875_v21, %v11530_v42 }
0x2355   : > { %v4980_v24 = vmul.f32 %v4979_v60, %v4920_v35 }
0x2357   : > { %v4986_v51 = vmul.f32 %v9022_v22, %v4980_v24 }
0x2359   : > { %v4992_v2 = vadd.f32 %v9023_v25, %v4986_v51 }
0x235b   : > { %v4994_v7 = vmin.f32 %v4992_v2, 20.0  ;;  %vm4993_vm13 = vcmp.gt.f32.partialorder %v4992_v2, 20.0 }
0x235d   : > { %v4995_v23 = vmul.f32 1.442695, %v4994_v7 }
0x235f   : > { %10876 = vpow2.f32 %v4995_v23 }
0x2369   : > { %v10877_v26 = vpop.eup %10876 }
0x236a   : > { %v4997_v53 = vadd.f32 1.0, %v10877_v26  ;;  %v5000_v27 = vmul.f32 -0.5, %v10877_v26  ;;  %v5003_v34 = vand.u32 2147483647, %v10877_v26 }
0x236c   : > { %10878 = vlog2.f32 %v4997_v53  ;;  %v5001_v28 = vadd.f32 1.0, %v5000_v27  ;;  %vm5004_vm12 = vcmp.lt.f32.partialorder %v5003_v34, 0.0004427343 }
0x236e   : > { %v5002_v37 = vmul.f32 %v10877_v26, %v5001_v28 }
0x2376   : > { %v10879_v36 = vpop.eup %10878 }
0x2377   : > { %v4999_v47 = vmul.f32 0.6931472, %v10879_v36 }
0x2379   : > { %v5005_v33 = vsel %vm5004_vm12, %v5002_v37, %v4999_v47 }
0x237a   : > { %v5006_v49 = vsel %vm4993_vm13, %v4992_v2, %v5005_v33 }
0x237b   : > { %10880 = vtanh.f32 %v5006_v49 }
0x2385   : > { %v10881_v35 = vpop.eup %10880 }
0x2386   : > { %v5008_v50 = vmul.f32 %v10881_v35, %v4992_v2  ;;  %v9024_v2 = vld [vmem:[#allocation7 + $0x1f] ss:$0 sm:$0xff] }
0x2388   : > { %v5013_v14 = vmul.f32 %v5012_v38, %v5008_v50 }
0x238a   : > { %v5018_v52 = vadd.f32 %v5017_v55, %v5013_v14 }
0x238c   : > { %v5020_v29 = vrot.slane %v5018_v52, 6 }
0x238e   : > { %v5022_v19 = vsel %vm1219_vm2, 0.0, %v5020_v29  ;;  %v5023_v43 = vsel %vm1219_vm2, %v5020_v29, 0.0 }
0x238f   : > { %v5042_v56 = vrot.slane %v5022_v19, 4  ;;  %v5043_v57 = vrot.slane %v5023_v43, 4  ;;  %v5026_v11 = vrot.slane %v5022_v19, 1  ;;  %v5027_v48 = vrot.slane %v5023_v43, 1 }
0x2390   : > { %v5036_v62 = vrot.slane %v5022_v19, 3  ;;  %v5037_v63 = vrot.slane %v5023_v43, 3  ;;  %v5032_v10 = vrot.slane %v5022_v19, 2  ;;  %v5033_v13 = vrot.slane %v5023_v43, 2 }
0x2391   : > { %v5044_v12 = vsel %vm835_vm6, %v5042_v56, %v5043_v57  ;;  %v5028_v1 = vsel %vm1230_vm4, %v5026_v11, %v5027_v48 }
0x2392   : > { %v5090_v5 = vpack.c.bf16 %v5044_v12, %v5044_v12  ;;  %v5038_v8 = vsel %vm836_vm5, %v5036_v62, %v5037_v63  ;;  %v5034_v20 = vsel %vm1242_vm3, %v5032_v10, %v5033_v13  ;;  %v10638_v10 = vld [vmem:[#allocation4 + $0x550] sm:$0xff]  }
0x2393   : > { %v10423_v9 = vpack.i.bf16 %v5028_v1, %v5038_v8  ;;  %v10634_v1 = vld [vmem:[#allocation4 + $0x590] sm:$0xff]   ;;  %v10636_v8 = vld [vmem:[#allocation4 + $0x5a0] sm:$0xff]  }
0x2394   : > { %9988 = vmatmul.mubr.msk.bf16.vlgmr.msra.gmra.mrb[80].mxu1 %vm1606_vm15, %v5090_v5  ;;  %v10635_v5 = vld [vmem:[#allocation4 + $0x598] sm:$0xff]   ;;  %v10639_v13 = vld [vmem:[#allocation4 + $0x510] sm:$0xff]  }
0x2395   : > { %10424 = vrot.lane.b32.xlu1 %v10423_v9, %s11144_s16  ;;  %9992 = vmatpush3.bf16.msra.mxu1 %v11929_v31  ;;  %v10637_v9 = vld [vmem:[#allocation4 + $0x5a8] sm:$0xff]  }
0x2396   : > { %9993 = vmatprep.subr.bf16.mxu1 %v11135_v0  ;;  %9999 = vmatprep.mubr.msk.bf16.mxu1 %vm11136_vm0, %v11135_v0 }
0x2399   : > { %9994 = vmatpush3.bf16.msra.mxu1 %v11935_v32 }
0x239a   : > { %9995 = vmatprep.subr.bf16.mxu1 %v11135_v0 }
0x239d   : > { %9996 = vmatpush3.bf16.msra.mxu1 %v11939_v40 }
0x239e   : > { %9997 = vmatprep.subr.bf16.mxu1 %v11135_v0 }
0x23a1   : > { %9998 = vmatpush3.bf16.msra.mxu1 %v11943_v30 }
0x23a2   : > { %9494 = vmatprep.subr.bf16.mxu1 %v10638_v10 }
0x2407   : > { %v10425_v45 = vpop.permute.xlu1 %10424 }
0x2408   : > { %v10427_v58 = vunpack.i.h.bf16 %v10425_v45  ;;  %v10426_v15 = vunpack.i.l.bf16 %v10425_v45  ;;  %v10640_v45 = vld [vmem:[#allocation4 + $0x558] sm:$0xff]  }
0x240a   : > { %v5046_v46 = vsel %vm1606_vm15, %v5022_v19, %v10427_v58  ;;  %v5047_v18 = vsel %vm1606_vm15, %v5034_v20, %v10426_v15  ;;  %v10641_v58 = vld [vmem:[#allocation4 + $0x518] sm:$0xff]   ;;  %v10642_v15 = vld [vmem:[#allocation4 + $0x560] sm:$0xff]  }
0x240b   : > { %v5088_v54 = vpack.c.bf16 %v5046_v46, %v5046_v46  ;;  %v5089_v21 = vpack.c.bf16 %v5047_v18, %v5047_v18  ;;  %v10643_v20 = vld [vmem:[#allocation4 + $0x520] sm:$0xff]   ;;  %v10644_v46 = vld [vmem:[#allocation4 + $0x568] sm:$0xff]  }
0x240c   : > { %v10645_v18 = vld [vmem:[#allocation4 + $0x528] sm:$0xff]  }
0x240d   : > { %5251 = vmatprep.mubr.bf16.mxu0 %v5089_v21  ;;  %v10647_v21 = vld [vmem:[#allocation4 + $0x530] sm:$0xff]  }
0x240e   : > { %5252 = vmatmul.mubr.bf16.vlgmr.msra.gmra.mrb[100].mxu0 %v5088_v54  ;;  %v10646_v54 = vld [vmem:[#allocation4 + $0x570] sm:$0xff]  }
0x240f   : > { %10004 = vmatpush3.bf16.msra.mxu0 %v11929_v31  ;;  %10011 = vmatprep.mubr.msk.bf16.mxu0 %vm11136_vm0, %v11135_v0 }
0x2410   : > { %10005 = vmatprep.subr.bf16.mxu0 %v11135_v0 }
0x2413   : > { %10006 = vmatpush3.bf16.msra.mxu0 %v11935_v32 }
0x2414   : > { %10007 = vmatprep.subr.bf16.mxu0 %v11135_v0 }
0x2417   : > { %10008 = vmatpush3.bf16.msra.mxu0 %v11939_v40 }
0x2418   : > { %10009 = vmatprep.subr.bf16.mxu0 %v11135_v0 }
0x241b   : > { %10010 = vmatpush3.bf16.msra.mxu0 %v11943_v30 }
0x241c   : > { %10015 = vmatprep.subr.bf16.mxu0 %v11135_v0 }
0x2467   : > { %v5293_v60 = vpop.f32.mrb[80].mxu1 }
0x2468   : > { %v9989_v22 = vpop.f32.mrb[81].mxu1 }
0x2469   : > { %v5296_v24 = vpop.f32.mrb[82].mxu1  ;;  %v10649_v22 = vld [vmem:[#allocation4 + $0x538] sm:$0xff]  }
0x246a   : > { %v9990_v25 = vpop.f32.mrb[83].mxu1  ;;  %v10650_v24 = vld [vmem:[#allocation4 + $0x580] sm:$0xff]  }
0x246b   : > { %v10651_v25 = vld [vmem:[#allocation4 + $0x540] sm:$0xff]  }
0x24e1   : > { %v9473_v51 = vpop.f32.mrb[100].mxu0 }
0x24e2   : > { %v9474_v7 = vpop.f32.mrb[101].mxu0 }
0x24e3   : > { %v9475_v23 = vadd.f32 %v9474_v7, %v9473_v51  ;;  %v9476_v26 = vpop.f32.mrb[102].mxu0 }
0x24e4   : > { %v9477_v53 = vpop.f32.mrb[103].mxu0 }
0x24e5   : > { %v5254_v27 = vadd.f32 %v9475_v23, %v9024_v2 }
0x24e7   : > { %v5294_v28 = vadd.f32 %v5293_v60, %v5254_v27  ;;  %v10648_v60 = vld [vmem:[#allocation4 + $0x578] sm:$0xff]  }
0x24e9   : > { %v5299_v34 = vsel %vm1606_vm15, %v5294_v28, 0.0 }
0x24ea   : > { %v5300_v36 = vrot.slane %v5299_v34, 4 }
0x24ec   : > { %v5301_v47 = vadd.f32 %v5300_v36, %v5299_v34  ;;  %v9048_v34 = vld [vmem:[#allocation7 + $0x20] ss:$0 sm:$0xff] }
0x24ee   : > { %v5302_v37 = vrot.slane %v5301_v47, 2 }
0x24f0   : > { %v5303_v33 = vadd.f32 %v5302_v37, %v5301_v47  ;;  %v9049_v47 = vld [vmem:[#allocation7 + $0x21] ss:$0 sm:$0xff] }
0x24f2   : > { %v5304_v49 = vrot.slane %v5303_v33, 1 }
0x24f4   : > { %v5305_v35 = vadd.f32 %v5304_v49, %v5303_v33 }
0x24f6   : > { %v5306_v38 = vpack.c.bf16 %v5305_v35, %v5305_v35 }
0x24f8   : > { %10000 = vmatmul.mubr.msk.bf16.vlgmr.msra.gmra.mrb[84].mxu1 %vm1606_vm15, %v5306_v38 }
0x24f9   : > { %9495 = vmatpush3.bf16.msra.mxu1 %v10639_v13 }
0x24fa   : > { %9496 = vmatprep.subr.bf16.mxu1 %v10640_v45 }
0x24fd   : > { %9497 = vmatpush3.bf16.msra.mxu1 %v10641_v58 }
0x24fe   : > { %9498 = vmatprep.subr.bf16.mxu1 %v10642_v15 }
0x2501   : > { %9499 = vmatpush3.bf16.msra.mxu1 %v10643_v20 }
0x2502   : > { %9500 = vmatprep.subr.bf16.mxu1 %v10644_v46 }
0x2505   : > { %9501 = vmatpush3.bf16.msra.mxu1 %v10645_v18 }
0x2506   : > { %9502 = vmatprep.subr.bf16.mxu1 %v10646_v54 }
0x2509   : > { %9503 = vmatpush3.bf16.msra.mxu1 %v10647_v21 }
0x250a   : > { %9504 = vmatprep.subr.bf16.mxu1 %v10648_v60 }
0x250d   : > { %9505 = vmatpush3.bf16.msra.mxu1 %v10649_v22 }
0x250e   : > { %9506 = vmatprep.subr.bf16.mxu1 %v10650_v24 }
0x2511   : > { %9507 = vmatpush3.bf16.msra.mxu1 %v10651_v25 }
0x25cb   : > { %v5344_v50 = vpop.f32.mrb[84].mxu1 }
0x25cc   : > { %v5350_v55 = vmul.f32 0.015625, %v5344_v50  ;;  %v10001_v14 = vpop.f32.mrb[85].mxu1 }
0x25cd   : > { %v5347_v39 = vpop.f32.mrb[86].mxu1 }
0x25ce   : > { %v5354_v41 = vrot.slane %v5350_v55, %v11530_v42  ;;  %v10002_v52 = vpop.f32.mrb[87].mxu1 }
0x25d0   : > { %v5355_v29 = vsub.f32 %v5294_v28, %v5354_v41 }
0x25d2   : > { %v5356_v19 = vmul.f32 %v5355_v29, %v5355_v29 }
0x25d4   : > { %v5357_v43 = vsel %vm1606_vm15, %v5356_v19, 0.0 }
0x25d5   : > { %v5358_v56 = vrot.slane %v5357_v43, 4 }
0x25d7   : > { %v5359_v57 = vadd.f32 %v5358_v56, %v5357_v43 }
0x25d9   : > { %v5360_v11 = vrot.slane %v5359_v57, 2 }
0x25db   : > { %v5361_v48 = vadd.f32 %v5360_v11, %v5359_v57  ;;  %v10652_v11 = vld [vmem:[#allocation4 + $0x588] sm:$0xff]  }
0x25dc   : > { %9508 = vmatprep.subr.bf16.mxu1 %v10652_v11 }
0x25dd   : > { %v5362_v62 = vrot.slane %v5361_v48, 1 }
0x25df   : > { %v5363_v63 = vadd.f32 %v5362_v62, %v5361_v48  ;;  %v10653_v48 = vld [vmem:[#allocation4 + $0x548] sm:$0xff]  }
0x25e0   : > { %9509 = vmatpush3.bf16.msra.mxu1 %v10653_v48 }
0x25e1   : > { %v5364_v12 = vpack.c.bf16 %v5363_v63, %v5363_v63  ;;  %10039 = vmatprep.subr.bf16.mxu1 %v11135_v0 }
0x25e3   : > { %10012 = vmatmul.mubr.msk.bf16.vlgmr.msra.gmra.mrb[104].mxu0 %vm1606_vm15, %v5364_v12 }
0x25e4   : > { %10023 = vmatprep.mubr.msk.bf16.mxu0 %vm11136_vm0, %v11135_v0  ;;  %10016 = vmatpush3.bf16.msra.mxu0 %v10634_v1 }
0x25e5   : > { %10017 = vmatprep.subr.bf16.mxu0 %v11135_v0 }
0x25e8   : > { %10018 = vmatpush3.bf16.msra.mxu0 %v10635_v5 }
0x25e9   : > { %10019 = vmatprep.subr.bf16.mxu0 %v11135_v0 }
0x25ec   : > { %10020 = vmatpush3.bf16.msra.mxu0 %v10636_v8 }
0x25ed   : > { %10021 = vmatprep.subr.bf16.mxu0 %v11135_v0 }
0x25f0   : > { %10022 = vmatpush3.bf16.msra.mxu0 %v10637_v9 }
0x25f1   : > { %10027 = vmatprep.subr.bf16.mxu0 %v11135_v0 }
0x26b6   : > { %v5402_v51 = vpop.f32.mrb[104].mxu0 }
0x26b7   : > { %v5408_v2 = vmul.f32 0.015625, %v5402_v51  ;;  %v10013_v7 = vpop.f32.mrb[105].mxu0 }
0x26b8   : > { %v5405_v23 = vpop.f32.mrb[106].mxu0 }
0x26b9   : > { %v5409_v26 = vadd.f32 1e-05, %v5408_v2  ;;  %v10014_v53 = vpop.f32.mrb[107].mxu0 }
0x26bb   : > { %10882 = vrsqrt.f32 %v5409_v26 }
0x26c5   : > { %v10883_v27 = vpop.eup %10882 }
0x26c6   : > { %v5414_v28 = vrot.slane %v10883_v27, %v11530_v42 }
0x26c8   : > { %v5415_v36 = vmul.f32 %v5414_v28, %v5355_v29  ;;  %v9050_v28 = vld [vmem:[#allocation7 + $0x22] ss:$0 sm:$0xff] }
0x26ca   : > { %v5421_v37 = vmul.f32 %v9048_v34, %v5415_v36 }
0x26cc   : > { %v5427_v33 = vadd.f32 %v9049_v47, %v5421_v37 }
0x26ce   : > { %v5429_v49 = vmin.f32 %v5427_v33, 20.0  ;;  %vm5428_vm10 = vcmp.gt.f32.partialorder %v5427_v33, 20.0 }
0x26d0   : > { %v5430_v35 = vmul.f32 1.442695, %v5429_v49 }
0x26d2   : > { %10884 = vpow2.f32 %v5430_v35 }
0x26dc   : > { %v10885_v38 = vpop.eup %10884 }
0x26dd   : > { %v5432_v50 = vadd.f32 1.0, %v10885_v38  ;;  %v5435_v55 = vmul.f32 -0.5, %v10885_v38  ;;  %v5438_v39 = vand.u32 2147483647, %v10885_v38 }
0x26df   : > { %10886 = vlog2.f32 %v5432_v50  ;;  %v5436_v14 = vadd.f32 1.0, %v5435_v55  ;;  %vm5439_vm9 = vcmp.lt.f32.partialorder %v5438_v39, 0.0004427343 }
0x26e1   : > { %v5437_v19 = vmul.f32 %v10885_v38, %v5436_v14 }
0x26e9   : > { %v10887_v41 = vpop.eup %10886 }
0x26ea   : > { %v5434_v52 = vmul.f32 0.6931472, %v10887_v41 }
0x26ec   : > { %v5440_v43 = vsel %vm5439_vm9, %v5437_v19, %v5434_v52  ;;  %vm9143_vm9 = vmneg %vm1219_vm2 }
0x26ed   : > { %v5441_v56 = vsel %vm5428_vm10, %v5427_v33, %v5440_v43  ;;  %vm9145_vm10 = vmpackc.low %vm9143_vm9, %vm9143_vm9 }
0x26ee   : > { %10888 = vtanh.f32 %v5441_v56 }
0x26f8   : > { %v10889_v29 = vpop.eup %10888 }
0x26f9   : > { %v5443_v57 = vmul.f32 %v10889_v29, %v5427_v33 }
0x26fb   : > { %v12052_v62 = vadd.f32 %v5443_v57, %v11960_v3 }
0x26fd   : > { %v5446_v63 = vrot.slane %v12052_v62, 6 }
0x26ff   : > { %v5448_v12 = vsel %vm1219_vm2, 0.0, %v5446_v63  ;;  %v5449_v1 = vsel %vm1219_vm2, %v5446_v63, 0.0 }
0x2700   : > { %v5468_v5 = vrot.slane %v5448_v12, 4  ;;  %v5469_v8 = vrot.slane %v5449_v1, 4  ;;  %v5452_v9 = vrot.slane %v5448_v12, 1  ;;  %v5453_v10 = vrot.slane %v5449_v1, 1 }
0x2701   : > { %v5462_v13 = vrot.slane %v5448_v12, 3  ;;  %v5463_v45 = vrot.slane %v5449_v1, 3  ;;  %v5458_v54 = vrot.slane %v5448_v12, 2  ;;  %v5459_v21 = vrot.slane %v5449_v1, 2 }
0x2702   : > { %v5470_v58 = vsel %vm835_vm6, %v5468_v5, %v5469_v8  ;;  %v5454_v15 = vsel %vm1230_vm4, %v5452_v9, %v5453_v10  ;;  %v10654_v10 = vld [vmem:[#allocation4 + $0x630] sm:$0xff]  }
0x2703   : > { %v5516_v20 = vpack.c.bf16 %v5470_v58, %v5470_v58  ;;  %v5464_v46 = vsel %vm836_vm5, %v5462_v13, %v5463_v45  ;;  %v5460_v25 = vsel %vm1242_vm3, %v5458_v54, %v5459_v21  ;;  %v10655_v13 = vld [vmem:[#allocation4 + $0x638] sm:$0xff]   ;;  %v10656_v45 = vld [vmem:[#allocation4 + $0x640] sm:$0xff]   ;;  %v10657_v58 = vld [vmem:[#allocation4 + $0x648] sm:$0xff]  }
0x2704   : > { %v10428_v18 = vpack.i.bf16 %v5454_v15, %v5464_v46  ;;  %v10658_v15 = vld [vmem:[#allocation4 + $0x5f0] sm:$0xff]   ;;  %v10660_v46 = vld [vmem:[#allocation4 + $0x5f8] sm:$0xff]   ;;  %v10662_v54 = vld [vmem:[#allocation4 + $0x600] sm:$0xff]  }
0x2705   : > { %10024 = vmatmul.mubr.msk.bf16.vlgmr.msra.gmra.mrb[108].mxu0 %vm1606_vm15, %v5516_v20  ;;  %v10659_v20 = vld [vmem:[#allocation4 + $0x5b0] sm:$0xff]   ;;  %v10663_v21 = vld [vmem:[#allocation4 + $0x5c0] sm:$0xff]  }
0x2706   : > { %10429 = vrot.lane.b32.xlu0 %v10428_v18, %s11144_s16  ;;  %10028 = vmatpush3.bf16.msra.mxu0 %v11929_v31  ;;  %v10661_v18 = vld [vmem:[#allocation4 + $0x5b8] sm:$0xff]  }
0x2707   : > { %10029 = vmatprep.subr.bf16.mxu0 %v11135_v0  ;;  %10035 = vmatprep.mubr.msk.bf16.mxu0 %vm11136_vm0, %v11135_v0 }
0x270a   : > { %6306 = vrot.lane.b32.xlu0 %v11960_v3, %s11144_s16  ;;  %10030 = vmatpush3.bf16.msra.mxu0 %v11935_v32 }
0x270b   : > { %10031 = vmatprep.subr.bf16.mxu0 %v11135_v0 }
0x270e   : > { %10032 = vmatpush3.bf16.msra.mxu0 %v11939_v40 }
0x270f   : > { %10033 = vmatprep.subr.bf16.mxu0 %v11135_v0 }
0x2712   : > { %10034 = vmatpush3.bf16.msra.mxu0 %v11943_v30 }
0x2713   : > { %9531 = vmatprep.subr.bf16.mxu0 %v10658_v15 }
0x2778   : > { %v10430_v60 = vpop.permute.xlu0 %10429 }
0x2779   : > { %v10432_v22 = vunpack.i.h.bf16 %v10430_v60  ;;  %v10431_v24 = vunpack.i.l.bf16 %v10430_v60  ;;  %v10664_v60 = vld [vmem:[#allocation4 + $0x608] sm:$0xff]  }
0x277b   : > { %v5472_v51 = vsel %vm1606_vm15, %v5448_v12, %v10432_v22  ;;  %v5473_v3 = vsel %vm1606_vm15, %v5460_v25, %v10431_v24  ;;  %v10665_v22 = vld [vmem:[#allocation4 + $0x5c8] sm:$0xff]   ;;  %v10666_v24 = vld [vmem:[#allocation4 + $0x610] sm:$0xff]  }
0x277c   : > { %v5514_v2 = vpack.c.bf16 %v5472_v51, %v5472_v51  ;;  %v5515_v7 = vpack.c.bf16 %v5473_v3, %v5473_v3  ;;  %v10667_v25 = vld [vmem:[#allocation4 + $0x5d0] sm:$0xff]   ;;  %v10668_v51 = vld [vmem:[#allocation4 + $0x618] sm:$0xff]  }
0x277d   : > { %v10669_v3 = vld [vmem:[#allocation4 + $0x5d8] sm:$0xff]  }
0x277e   : > { %5677 = vmatprep.mubr.bf16.mxu1 %v5515_v7  ;;  %v10671_v7 = vld [vmem:[#allocation4 + $0x5e0] sm:$0xff]  }
0x277f   : > { %5678 = vmatmul.mubr.bf16.vlgmr.msra.gmra.mrb[88].mxu1 %v5514_v2  ;;  %v10670_v2 = vld [vmem:[#allocation4 + $0x620] sm:$0xff]  }
0x2780   : > { %10040 = vmatpush3.bf16.msra.mxu1 %v11929_v31  ;;  %10047 = vmatprep.mubr.msk.bf16.mxu1 %vm11136_vm0, %v11135_v0 }
0x2781   : > { %10041 = vmatprep.subr.bf16.mxu1 %v11135_v0 }
0x2784   : > { %10042 = vmatpush3.bf16.msra.mxu1 %v11935_v32 }
0x2785   : > { %10043 = vmatprep.subr.bf16.mxu1 %v11135_v0 }
0x2788   : > { %10044 = vmatpush3.bf16.msra.mxu1 %v11939_v40 }
0x2789   : > { %10045 = vmatprep.subr.bf16.mxu1 %v11135_v0 }
0x278c   : > { %10046 = vmatpush3.bf16.msra.mxu1 %v11943_v30 }
0x278d   : > { %10051 = vmatprep.subr.bf16.mxu1 %v11135_v0 }
0x27d8   : > { %v5719_v23 = vpop.f32.mrb[108].mxu0 }
0x27d9   : > { %v10025_v26 = vpop.f32.mrb[109].mxu0 }
0x27da   : > { %v5722_v31 = vpop.f32.mrb[110].mxu0 }
0x27db   : > { %v10026_v53 = vpop.f32.mrb[111].mxu0 }
0x2852   : > { %v9510_v27 = vpop.f32.mrb[88].mxu1 }
0x2853   : > { %v9511_v34 = vpop.f32.mrb[89].mxu1 }
0x2854   : > { %v9512_v36 = vadd.f32 %v9511_v34, %v9510_v27  ;;  %v9513_v47 = vpop.f32.mrb[90].mxu1 }
0x2855   : > { %v9514_v32 = vpop.f32.mrb[91].mxu1  ;;  %v9074_v47 = vld [vmem:[#allocation7 + $0x23] ss:$0 sm:$0xff] }
0x2856   : > { %v5680_v37 = vadd.f32 %v9512_v36, %v9050_v28 }
0x2858   : > { %v5720_v33 = vadd.f32 %v5719_v23, %v5680_v37  ;;  %v9075_v37 = vld [vmem:[#allocation7 + $0x24] ss:$0 sm:$0xff] }
0x285a   : > { %v5725_v40 = vsel %vm1606_vm15, %v5720_v33, 0.0 }
0x285b   : > { %v5726_v49 = vrot.slane %v5725_v40, 4 }
0x285d   : > { %v5727_v35 = vadd.f32 %v5726_v49, %v5725_v40 }
0x285f   : > { %v5728_v38 = vrot.slane %v5727_v35, 2 }
0x2861   : > { %v5729_v30 = vadd.f32 %v5728_v38, %v5727_v35 }
0x2863   : > { %v5730_v50 = vrot.slane %v5729_v30, 1 }
0x2865   : > { %v5731_v55 = vadd.f32 %v5730_v50, %v5729_v30 }
0x2867   : > { %v5732_v14 = vpack.c.bf16 %v5731_v55, %v5731_v55 }
0x2869   : > { %10036 = vmatmul.mubr.msk.bf16.vlgmr.msra.gmra.mrb[112].mxu0 %vm1606_vm15, %v5732_v14 }
0x286a   : > { %9532 = vmatpush3.bf16.msra.mxu0 %v10659_v20 }
0x286b   : > { %9533 = vmatprep.subr.bf16.mxu0 %v10660_v46 }
0x286e   : > { %9534 = vmatpush3.bf16.msra.mxu0 %v10661_v18 }
0x286f   : > { %9535 = vmatprep.subr.bf16.mxu0 %v10662_v54 }
0x2872   : > { %9536 = vmatpush3.bf16.msra.mxu0 %v10663_v21  ;;  %v10960_v21 = vld [vmem:[#allocation4 + $0x10] sm:$0xff]  }
0x2873   : > { %9537 = vmatprep.subr.bf16.mxu0 %v10664_v60  ;;  %v10961_v60 = vld [vmem:[#allocation4 + $0x18] sm:$0xff]  }
0x2876   : > { %9538 = vmatpush3.bf16.msra.mxu0 %v10665_v22  ;;  %v10962_v22 = vld [vmem:[#allocation4 + $0x20] sm:$0xff]  }
0x2877   : > { %9539 = vmatprep.subr.bf16.mxu0 %v10666_v24  ;;  %v10963_v24 = vld [vmem:[#allocation4 + $0x28] sm:$0xff]  }
0x287a   : > { %9540 = vmatpush3.bf16.msra.mxu0 %v10667_v25 }
0x287b   : > { %9541 = vmatprep.subr.bf16.mxu0 %v10668_v51 }
0x287e   : > { %9542 = vmatpush3.bf16.msra.mxu0 %v10669_v3 }
0x287f   : > { %9543 = vmatprep.subr.bf16.mxu0 %v10670_v2 }
0x2882   : > { %9544 = vmatpush3.bf16.msra.mxu0 %v10671_v7 }
0x293c   : > { %v5770_v39 = vpop.f32.mrb[112].mxu0 }
0x293d   : > { %v5776_v41 = vmul.f32 0.015625, %v5770_v39  ;;  %v10037_v52 = vpop.f32.mrb[113].mxu0 }
0x293e   : > { %v5773_v19 = vpop.f32.mrb[114].mxu0 }
0x293f   : > { %v5780_v43 = vrot.slane %v5776_v41, %v11530_v42  ;;  %v10038_v56 = vpop.f32.mrb[115].mxu0 }
0x2941   : > { %v5781_v29 = vsub.f32 %v5720_v33, %v5780_v43 }
0x2943   : > { %v5782_v57 = vmul.f32 %v5781_v29, %v5781_v29 }
0x2945   : > { %v5783_v11 = vsel %vm1606_vm15, %v5782_v57, 0.0 }
0x2946   : > { %v5784_v48 = vrot.slane %v5783_v11, 4 }
0x2948   : > { %v5785_v63 = vadd.f32 %v5784_v48, %v5783_v11  ;;  %v5878_v11 = vrot.slane %v11509_v61, %v11530_v42 }
0x294a   : > { %v5786_v12 = vrot.slane %v5785_v63, 2 }
0x294c   : > { %v5787_v1 = vadd.f32 %v5786_v12, %v5785_v63  ;;  %v10672_v63 = vld [vmem:[#allocation4 + $0x628] sm:$0xff]  }
0x294d   : > { %v10673_v12 = vld [vmem:[#allocation4 + $0x5e8] sm:$0xff]   ;;  %9545 = vmatprep.subr.bf16.mxu0 %v10672_v63 }
0x294e   : > { %v5788_v5 = vrot.slane %v5787_v1, 1  ;;  %9546 = vmatpush3.bf16.msra.mxu0 %v10673_v12 }
0x294f   : > { %10075 = vmatprep.subr.bf16.mxu0 %v11135_v0 }
0x2950   : > { %v5789_v8 = vadd.f32 %v5788_v5, %v5787_v1 }
0x2952   : > { %v5790_v9 = vpack.c.bf16 %v5789_v8, %v5789_v8 }
0x2954   : > { %10048 = vmatmul.mubr.msk.bf16.vlgmr.msra.gmra.mrb[92].mxu1 %vm1606_vm15, %v5790_v9 }
0x2955   : > { %10059 = vmatprep.mubr.msk.bf16.mxu1 %vm11136_vm0, %v11135_v0  ;;  %10052 = vmatpush3.bf16.msra.mxu1 %v10654_v10 }
0x2956   : > { %10053 = vmatprep.subr.bf16.mxu1 %v11135_v0 }
0x2959   : > { %10054 = vmatpush3.bf16.msra.mxu1 %v10655_v13 }
0x295a   : > { %10055 = vmatprep.subr.bf16.mxu1 %v11135_v0 }
0x295d   : > { %10056 = vmatpush3.bf16.msra.mxu1 %v10656_v45 }
0x295e   : > { %10057 = vmatprep.subr.bf16.mxu1 %v11135_v0 }
0x2961   : > { %10058 = vmatpush3.bf16.msra.mxu1 %v10657_v58 }
0x2962   : > { %10063 = vmatprep.subr.bf16.mxu1 %v11135_v0 }
0x2a27   : > { %v5828_v23 = vpop.f32.mrb[92].mxu1 }
0x2a28   : > { %v5834_v26 = vmul.f32 0.015625, %v5828_v23  ;;  %v10049_v31 = vpop.f32.mrb[93].mxu1 }
0x2a29   : > { %v5831_v53 = vpop.f32.mrb[94].mxu1 }
0x2a2a   : > { %v5835_v27 = vadd.f32 1e-05, %v5834_v26  ;;  %v10050_v28 = vpop.f32.mrb[95].mxu1 }
0x2a2c   : > { %10890 = vrsqrt.f32 %v5835_v27 }
0x2a36   : > { %v10891_v34 = vpop.eup %10890 }
0x2a37   : > { %v5840_v36 = vrot.slane %v10891_v34, %v11530_v42 }
0x2a39   : > { %v5841_v32 = vmul.f32 %v5840_v36, %v5781_v29  ;;  %v5873_v29 = vrot.slane %v11505_v59, %v11530_v42 }
0x2a3b   : > { %v5847_v33 = vmul.f32 %v9074_v47, %v5841_v32 }
0x2a3d   : > { %v5853_v40 = vadd.f32 %v9075_v37, %v5847_v33  ;;  %v9076_v37 = vld [vmem:[#allocation7 + $0x25] ss:$0 sm:$0xff] }
0x2a3f   : > { %v5855_v49 = vmin.f32 %v5853_v40, 20.0  ;;  %vm5854_vm11 = vcmp.gt.f32.partialorder %v5853_v40, 20.0 }
0x2a41   : > { %v5856_v35 = vmul.f32 1.442695, %v5855_v49 }
0x2a43   : > { %10892 = vpow2.f32 %v5856_v35 }
0x2a4d   : > { %v10893_v38 = vpop.eup %10892 }
0x2a4e   : > { %v5858_v30 = vadd.f32 1.0, %v10893_v38  ;;  %v5861_v50 = vmul.f32 -0.5, %v10893_v38  ;;  %v5864_v14 = vand.u32 2147483647, %v10893_v38 }
0x2a50   : > { %10894 = vlog2.f32 %v5858_v30  ;;  %v5862_v55 = vadd.f32 1.0, %v5861_v50  ;;  %vm5865_vm7 = vcmp.lt.f32.partialorder %v5864_v14, 0.0004427343 }
0x2a52   : > { %v5863_v52 = vmul.f32 %v10893_v38, %v5862_v55 }
0x2a5a   : > { %v10895_v39 = vpop.eup %10894 }
0x2a5b   : > { %v5860_v41 = vmul.f32 0.6931472, %v10895_v39 }
0x2a5d   : > { %v5866_v19 = vsel %vm5865_vm7, %v5863_v52, %v5860_v41 }
0x2a5e   : > { %v5867_v43 = vsel %vm5854_vm11, %v5853_v40, %v5866_v19 }
0x2a5f   : > { %10896 = vtanh.f32 %v5867_v43 }
0x2a69   : > { %v10897_v56 = vpop.eup %10896 }
0x2a6a   : > { %v5869_v57 = vmul.f32 %v10897_v56, %v5853_v40 }
0x2a6c   : > { %v5874_v48 = vmul.f32 %v5873_v29, %v5869_v57 }
0x2a6e   : > { %v5879_v1 = vadd.f32 %v5878_v11, %v5874_v48 }
0x2a70   : > { %v5881_v5 = vrot.slane %v5879_v1, 6 }
0x2a72   : > { %v5883_v8 = vsel %vm1219_vm2, 0.0, %v5881_v5  ;;  %v5884_v9 = vsel %vm1219_vm2, %v5881_v5, 0.0 }
0x2a73   : > { %v5903_v10 = vrot.slane %v5883_v8, 4  ;;  %v5904_v13 = vrot.slane %v5884_v9, 4  ;;  %v5887_v59 = vrot.slane %v5883_v8, 1  ;;  %v5888_v45 = vrot.slane %v5884_v9, 1 }
0x2a74   : > { %v5897_v58 = vrot.slane %v5883_v8, 3  ;;  %v5898_v15 = vrot.slane %v5884_v9, 3  ;;  %v5893_v25 = vrot.slane %v5883_v8, 2  ;;  %v5894_v51 = vrot.slane %v5884_v9, 2 }
0x2a75   : > { %v5905_v61 = vsel %vm835_vm6, %v5903_v10, %v5904_v13  ;;  %v5889_v20 = vsel %vm1230_vm4, %v5887_v59, %v5888_v45 }
0x2a76   : > { %v5951_v46 = vpack.c.bf16 %v5905_v61, %v5905_v61  ;;  %v5899_v18 = vsel %vm836_vm5, %v5897_v58, %v5898_v15  ;;  %v5895_v23 = vsel %vm1242_vm3, %v5893_v25, %v5894_v51  ;;  %v10674_v15 = vld [vmem:[#allocation4 + $0x690] sm:$0xff]   ;;  %v10684_v25 = vld [vmem:[#allocation4 + $0x720] sm:$0xff]  }
0x2a77   : > { %v10433_v54 = vpack.i.bf16 %v5889_v20, %v5899_v18  ;;  %v10675_v61 = vld [vmem:[#allocation4 + $0x650] sm:$0xff]   ;;  %v10678_v18 = vld [vmem:[#allocation4 + $0x698] sm:$0xff]   ;;  %v10685_v51 = vld [vmem:[#allocation4 + $0x6e0] sm:$0xff]  }
0x2a78   : > { %10060 = vmatmul.mubr.msk.bf16.vlgmr.msra.gmra.mrb[96].mxu1 %vm1606_vm15, %v5951_v46  ;;  %v10676_v20 = vld [vmem:[#allocation4 + $0x710] sm:$0xff]  }
0x2a79   : > { %10434 = vrot.lane.b32.xlu1 %v10433_v54, %s11144_s16  ;;  %10064 = vmatpush3.bf16.msra.mxu1 %v10960_v21  ;;  %v10677_v46 = vld [vmem:[#allocation4 + $0x6d0] sm:$0xff]   ;;  %v10679_v54 = vld [vmem:[#allocation4 + $0x658] sm:$0xff]  }
0x2a7a   : > { %10065 = vmatprep.subr.bf16.mxu1 %v11135_v0  ;;  %10071 = vmatprep.mubr.msk.bf16.mxu1 %vm11136_vm0, %v11135_v0 }
0x2a7d   : > { %10066 = vmatpush3.bf16.msra.mxu1 %v10961_v60 }
0x2a7e   : > { %10067 = vmatprep.subr.bf16.mxu1 %v11135_v0 }
0x2a81   : > { %10068 = vmatpush3.bf16.msra.mxu1 %v10962_v22 }
0x2a82   : > { %10069 = vmatprep.subr.bf16.mxu1 %v11135_v0 }
0x2a85   : > { %10070 = vmatpush3.bf16.msra.mxu1 %v10963_v24 }
0x2a86   : > { %9568 = vmatprep.subr.bf16.mxu1 %v10674_v15 }
0x2aeb   : > { %v10435_v3 = vpop.permute.xlu1 %10434 }
0x2aec   : > { %v10437_v2 = vunpack.i.h.bf16 %v10435_v3  ;;  %v10436_v7 = vunpack.i.l.bf16 %v10435_v3  ;;  %v10686_v3 = vld [vmem:[#allocation4 + $0x6a8] sm:$0xff]  }
0x2aee   : > { %v5907_v26 = vsel %vm1606_vm15, %v5883_v8, %v10437_v2  ;;  %v5908_v31 = vsel %vm1606_vm15, %v5895_v23, %v10436_v7  ;;  %v10687_v2 = vld [vmem:[#allocation4 + $0x668] sm:$0xff]  }
0x2aef   : > { %v5949_v53 = vpack.c.bf16 %v5907_v26, %v5907_v26  ;;  %v5950_v27 = vpack.c.bf16 %v5908_v31, %v5908_v31  ;;  %v10688_v7 = vld [vmem:[#allocation4 + $0x728] sm:$0xff]   ;;  %v10690_v26 = vld [vmem:[#allocation4 + $0x6b0] sm:$0xff]  }
0x2af0   : > { %v10689_v23 = vld [vmem:[#allocation4 + $0x6e8] sm:$0xff]   ;;  %v10692_v31 = vld [vmem:[#allocation4 + $0x730] sm:$0xff]  }
0x2af1   : > { %6112 = vmatprep.mubr.bf16.mxu0 %v5950_v27  ;;  %v10693_v27 = vld [vmem:[#allocation4 + $0x6f0] sm:$0xff]  }
0x2af2   : > { %6113 = vmatmul.mubr.bf16.vlgmr.msra.gmra.mrb[116].mxu0 %v5949_v53  ;;  %v10691_v53 = vld [vmem:[#allocation4 + $0x670] sm:$0xff]  }
0x2af3   : > { %10076 = vmatpush3.bf16.msra.mxu0 %v10960_v21  ;;  %10083 = vmatprep.mubr.msk.bf16.mxu0 %vm11136_vm0, %v11135_v0  ;;  %v10680_v21 = vld [vmem:[#allocation4 + $0x718] sm:$0xff]  }
0x2af4   : > { %10077 = vmatprep.subr.bf16.mxu0 %v11135_v0 }
0x2af7   : > { %10078 = vmatpush3.bf16.msra.mxu0 %v10961_v60  ;;  %v10681_v60 = vld [vmem:[#allocation4 + $0x6d8] sm:$0xff]  }
0x2af8   : > { %10079 = vmatprep.subr.bf16.mxu0 %v11135_v0 }
0x2afb   : > { %10080 = vmatpush3.bf16.msra.mxu0 %v10962_v22  ;;  %v10682_v22 = vld [vmem:[#allocation4 + $0x6a0] sm:$0xff]  }
0x2afc   : > { %10081 = vmatprep.subr.bf16.mxu0 %v11135_v0 }
0x2aff   : > { %10082 = vmatpush3.bf16.msra.mxu0 %v10963_v24  ;;  %v10683_v24 = vld [vmem:[#allocation4 + $0x660] sm:$0xff]  }
0x2b00   : > { %9590 = vmatprep.subr.bf16.mxu0 %v10676_v20 }
0x2b4b   : > { %v6154_v28 = vpop.f32.mrb[96].mxu1 }
0x2b4c   : > { %v10061_v34 = vpop.f32.mrb[97].mxu1 }
0x2b4d   : > { %v6157_v36 = vpop.f32.mrb[98].mxu1  ;;  %v10696_v34 = vld [vmem:[#allocation4 + $0x738] sm:$0xff]  }
0x2b4e   : > { %v10062_v47 = vpop.f32.mrb[99].mxu1  ;;  %v10695_v36 = vld [vmem:[#allocation4 + $0x678] sm:$0xff]  }
0x2b4f   : > { %v10697_v47 = vld [vmem:[#allocation4 + $0x6f8] sm:$0xff]  }
0x2bc5   : > { %v9547_v32 = vpop.f32.mrb[116].mxu0 }
0x2bc6   : > { %v9548_v33 = vpop.f32.mrb[117].mxu0 }
0x2bc7   : > { %v9549_v40 = vadd.f32 %v9548_v33, %v9547_v32  ;;  %v9550_v49 = vpop.f32.mrb[118].mxu0  ;;  %v10698_v32 = vld [vmem:[#allocation4 + $0x6c0] sm:$0xff]  }
0x2bc8   : > { %v9551_v35 = vpop.f32.mrb[119].mxu0  ;;  %v10699_v33 = vld [vmem:[#allocation4 + $0x680] sm:$0xff]   ;;  %v10702_v49 = vld [vmem:[#allocation4 + $0x6c8] sm:$0xff]  }
0x2bc9   : > { %v6115_v38 = vadd.f32 %v9549_v40, %v9076_v37  ;;  %v10700_v37 = vld [vmem:[#allocation4 + $0x740] sm:$0xff]   ;;  %v10704_v35 = vld [vmem:[#allocation4 + $0x748] sm:$0xff]  }
0x2bca   : > { %v10701_v40 = vld [vmem:[#allocation4 + $0x700] sm:$0xff]  }
0x2bcb   : > { %v6155_v30 = vadd.f32 %v6154_v28, %v6115_v38  ;;  %v10694_v28 = vld [vmem:[#allocation4 + $0x6b8] sm:$0xff]   ;;  %v10703_v38 = vld [vmem:[#allocation4 + $0x688] sm:$0xff]  }
0x2bcd   : > { %v6160_v50 = vsel %vm1606_vm15, %v6155_v30, 0.0 }
0x2bce   : > { %v6161_v55 = vrot.slane %v6160_v50, 4 }
0x2bd0   : > { %v6162_v14 = vadd.f32 %v6161_v55, %v6160_v50 }
0x2bd2   : > { %v6163_v39 = vrot.slane %v6162_v14, 2 }
0x2bd4   : > { %v6164_v41 = vadd.f32 %v6163_v39, %v6162_v14 }
0x2bd6   : > { %v6165_v52 = vrot.slane %v6164_v41, 1 }
0x2bd8   : > { %v6166_v19 = vadd.f32 %v6165_v52, %v6164_v41 }
0x2bda   : > { %v6167_v43 = vpack.c.bf16 %v6166_v19, %v6166_v19 }
0x2bdc   : > { %10072 = vmatmul.mubr.msk.bf16.vlgmr.msra.gmra.mrb[100].mxu1 %vm1606_vm15, %v6167_v43 }
0x2bdd   : > { %9569 = vmatpush3.bf16.msra.mxu1 %v10675_v61 }
0x2bde   : > { %9570 = vmatprep.subr.bf16.mxu1 %v10678_v18  ;;  %v6307_v18 = vpop.permute.xlu0 %6306 }
0x2be1   : > { %9571 = vmatpush3.bf16.msra.mxu1 %v10679_v54 }
0x2be2   : > { %9572 = vmatprep.subr.bf16.mxu1 %v10682_v22 }
0x2be5   : > { %9573 = vmatpush3.bf16.msra.mxu1 %v10683_v24 }
0x2be6   : > { %9574 = vmatprep.subr.bf16.mxu1 %v10686_v3 }
0x2be9   : > { %9575 = vmatpush3.bf16.msra.mxu1 %v10687_v2 }
0x2bea   : > { %9576 = vmatprep.subr.bf16.mxu1 %v10690_v26 }
0x2bed   : > { %9577 = vmatpush3.bf16.msra.mxu1 %v10691_v53 }
0x2bee   : > { %9578 = vmatprep.subr.bf16.mxu1 %v10694_v28 }
0x2bf1   : > { %9579 = vmatpush3.bf16.msra.mxu1 %v10695_v36  ;;  %v10707_v36 = vld [vmem:[#allocation4 + $0x758] sm:$0xff]  }
0x2bf2   : > { %9580 = vmatprep.subr.bf16.mxu1 %v10698_v32  ;;  %v10708_v32 = vld [vmem:[#allocation4 + $0x760] sm:$0xff]  }
0x2bf5   : > { %9581 = vmatpush3.bf16.msra.mxu1 %v10699_v33  ;;  %v10709_v33 = vld [vmem:[#allocation4 + $0x768] sm:$0xff]  }
0x2bf6   : > { %9582 = vmatprep.subr.bf16.mxu1 %v10702_v49  ;;  %v10711_v49 = vld [vmem:[#allocation4 + $0x778] sm:$0xff]  }
0x2bf9   : > { %9583 = vmatpush3.bf16.msra.mxu1 %v10703_v38 }
0x2bfa   : > { %10087 = vmatprep.subr.bf16.mxu1 %v11135_v0 }
0x2caf   : > { %v6205_v56 = vpop.f32.mrb[100].mxu1 }
0x2cb0   : > { %v6211_v29 = vmul.f32 0.015625, %v6205_v56  ;;  %v10073_v57 = vpop.f32.mrb[101].mxu1  ;;  %v9100_v56 = vld [vmem:[#allocation7 + $0x26] ss:$0 sm:$0xff] }
0x2cb1   : > { %v6208_v11 = vpop.f32.mrb[102].mxu1  ;;  %v9101_v57 = vld [vmem:[#allocation7 + $0x27] ss:$0 sm:$0xff] }
0x2cb2   : > { %v6215_v48 = vrot.slane %v6211_v29, %v11530_v42  ;;  %v10074_v63 = vpop.f32.mrb[103].mxu1 }
0x2cb4   : > { %v12127_v12 = vsub.f32 %v6155_v30, %v6215_v48  ;;  %v10705_v30 = vld [vmem:[#allocation4 + $0x708] sm:$0xff]  }
0x2cb6   : > { %v6217_v1 = vmul.f32 %v12127_v12, %v12127_v12 }
0x2cb8   : > { %v6218_v5 = vsel %vm1606_vm15, %v6217_v1, 0.0 }
0x2cb9   : > { %v6219_v8 = vrot.slane %v6218_v5, 4 }
0x2cbb   : > { %v6220_v9 = vadd.f32 %v6219_v8, %v6218_v5 }
0x2cbd   : > { %v6221_v10 = vrot.slane %v6220_v9, 2 }
0x2cbf   : > { %v6222_v13 = vadd.f32 %v6221_v10, %v6220_v9 }
0x2cc1   : > { %v6223_v59 = vrot.slane %v6222_v13, 1 }
0x2cc3   : > { %v6224_v45 = vadd.f32 %v6223_v59, %v6222_v13 }
0x2cc5   : > { %v6225_v58 = vpack.c.bf16 %v6224_v45, %v6224_v45 }
0x2cc7   : > { %10084 = vmatmul.mubr.msk.bf16.vlgmr.msra.gmra.mrb[120].mxu0 %vm1606_vm15, %v6225_v58 }
0x2cc8   : > { %9591 = vmatpush3.bf16.msra.mxu0 %v10677_v46 }
0x2cc9   : > { %9592 = vmatprep.subr.bf16.mxu0 %v10680_v21 }
0x2ccc   : > { %9593 = vmatpush3.bf16.msra.mxu0 %v10681_v60 }
0x2ccd   : > { %9594 = vmatprep.subr.bf16.mxu0 %v10684_v25 }
0x2cd0   : > { %9595 = vmatpush3.bf16.msra.mxu0 %v10685_v51 }
0x2cd1   : > { %9596 = vmatprep.subr.bf16.mxu0 %v10688_v7 }
0x2cd4   : > { %9597 = vmatpush3.bf16.msra.mxu0 %v10689_v23 }
0x2cd5   : > { %9598 = vmatprep.subr.bf16.mxu0 %v10692_v31 }
0x2cd8   : > { %9599 = vmatpush3.bf16.msra.mxu0 %v10693_v27  ;;  %v10706_v27 = vld [vmem:[#allocation4 + $0x750] sm:$0xff]  }
0x2cd9   : > { %9600 = vmatprep.subr.bf16.mxu0 %v10696_v34 }
0x2cdc   : > { %9601 = vmatpush3.bf16.msra.mxu0 %v10697_v47  ;;  %v12151_v47 = vld [vmem:[#allocation4] sm:$0xff]  }
0x2cdd   : > { %9602 = vmatprep.subr.bf16.mxu0 %v10700_v37  ;;  %v12158_v37 = vld [vmem:[#allocation4 + $0x8] sm:$0xff]  }
0x2ce0   : > { %9603 = vmatpush3.bf16.msra.mxu0 %v10701_v40  ;;  %v10710_v40 = vld [vmem:[#allocation4 + $0x770] sm:$0xff]  }
0x2ce1   : > { %9604 = vmatprep.subr.bf16.mxu0 %v10704_v35  ;;  %v10712_v35 = vld [vmem:[#allocation4 + $0x780] sm:$0xff]  }
0x2ce4   : > { %9605 = vmatpush3.bf16.msra.mxu0 %v10705_v30 }
0x2ce5   : > { %10107 = vmatprep.subr.bf16.mxu0 %v11135_v0 }
0x2d9a   : > { %v6263_v50 = vpop.f32.mrb[120].mxu0 }
0x2d9b   : > { %v6269_v55 = vmul.f32 0.015625, %v6263_v50  ;;  %v10085_v14 = vpop.f32.mrb[121].mxu0  ;;  %v10713_v50 = vld [vmem:[#allocation4 + $0x788] sm:$0xff]  }
0x2d9c   : > { %v6266_v39 = vpop.f32.mrb[122].mxu0 }
0x2d9d   : > { %v6270_v41 = vadd.f32 1e-05, %v6269_v55  ;;  %v10086_v52 = vpop.f32.mrb[123].mxu0 }
0x2d9e   : > { %v9102_v52 = vld [vmem:[#allocation7 + $0x28] ss:$0 sm:$0xff] }
0x2d9f   : > { %10898 = vrsqrt.f32 %v6270_v41 }
0x2da9   : > { %v10899_v19 = vpop.eup %10898 }
0x2daa   : > { %v6275_v43 = vrot.slane %v10899_v19, %v11530_v42 }
0x2dac   : > { %v6276_v29 = vmul.f32 %v6275_v43, %v12127_v12 }
0x2dae   : > { %v6282_v11 = vmul.f32 %v9100_v56, %v6276_v29 }
0x2db0   : > { %v6288_v48 = vadd.f32 %v9101_v57, %v6282_v11 }
0x2db2   : > { %v6290_v63 = vmin.f32 %v6288_v48, 20.0  ;;  %vm6289_vm13 = vcmp.gt.f32.partialorder %v6288_v48, 20.0 }
0x2db4   : > { %v6291_v1 = vmul.f32 1.442695, %v6290_v63 }
0x2db6   : > { %10900 = vpow2.f32 %v6291_v1 }
0x2dc0   : > { %v10901_v5 = vpop.eup %10900 }
0x2dc1   : > { %v6293_v8 = vadd.f32 1.0, %v10901_v5  ;;  %v6296_v9 = vmul.f32 -0.5, %v10901_v5  ;;  %v6299_v13 = vand.u32 2147483647, %v10901_v5 }
0x2dc3   : > { %10902 = vlog2.f32 %v6293_v8  ;;  %v6297_v10 = vadd.f32 1.0, %v6296_v9  ;;  %vm6300_vm12 = vcmp.lt.f32.partialorder %v6299_v13, 0.0004427343 }
0x2dc5   : > { %v6298_v58 = vmul.f32 %v10901_v5, %v6297_v10 }
0x2dcd   : > { %v10903_v59 = vpop.eup %10902 }
0x2dce   : > { %v6295_v45 = vmul.f32 0.6931472, %v10903_v59 }
0x2dd0   : > { %v6301_v15 = vsel %vm6300_vm12, %v6298_v58, %v6295_v45 }
0x2dd1   : > { %v6302_v61 = vsel %vm6289_vm13, %v6288_v48, %v6301_v15 }
0x2dd2   : > { %10904 = vtanh.f32 %v6302_v61 }
0x2ddc   : > { %v10905_v12 = vpop.eup %10904 }
0x2ddd   : > { %v6304_v20 = vmul.f32 %v10905_v12, %v6288_v48 }
0x2ddf   : > { %v6305_v46 = vadd.f32 %v6304_v20, %v12052_v62 }
0x2de1   : > { %v12139_v54 = vsel %vm1606_vm15, %v6305_v46, %v6307_v18 }
0x2de2   : > { %v6311_v21 = vrot.slane %v12139_v54, 6 }
0x2de4   : > { %v6313_v60 = vsel %vm1219_vm2, 0.0, %v6311_v21  ;;  %v6314_v22 = vsel %vm1219_vm2, %v6311_v21, 0.0  ;;  %v9146_v28 = vpack.c.bf16 %v6311_v21, %v6311_v21 }
0x2de5   : > { %v6317_v24 = vrot.slane %v6313_v60, 1  ;;  %v6318_v25 = vrot.slane %v6314_v22, 1  ;;  %v6325_v51 = vrot.slane %v6313_v60, 3  ;;  %v6326_v3 = vrot.slane %v6314_v22, 3 }
0x2de6   : > { %v6321_v2 = vrot.slane %v6313_v60, 2  ;;  %v6322_v7 = vrot.slane %v6314_v22, 2  ;;  %v6329_v38 = vrot.slane %v6313_v60, 4  ;;  %v6330_v30 = vrot.slane %v6314_v22, 4 }
0x2de7   : > { %v6319_v62 = vsel %vm1230_vm4, %v6317_v24, %v6318_v25  ;;  %v6327_v23 = vsel %vm836_vm5, %v6325_v51, %v6326_v3 }
0x2de8   : > { %v6414_v26 = vpack.c.bf16 %v6319_v62, %v6319_v62  ;;  %v6416_v31 = vpack.c.bf16 %v6327_v23, %v6327_v23  ;;  %v6323_v53 = vsel %vm1242_vm3, %v6321_v2, %v6322_v7  ;;  %v6331_v55 = vsel %vm835_vm6, %v6329_v38, %v6330_v30  ;;  %v10721_v38 = vld [vmem:[#allocation4 + $0x7c8] sm:$0xff]  }
0x2de9   : > { %v6415_v34 = vpack.c.bf16 %v6323_v53, %v6323_v53  ;;  %v6417_v14 = vpack.c.bf16 %v6331_v55, %v6331_v55 }
0x2dea   : > { %6695 = vmatprep.mubr.bf16.mxu1 %v6414_v26  ;;  %6735 = vmatprep.mubr.bf16.mxu0 %v6416_v31 }
0x2deb   : > { %9147 = vmatmul.mubr.msk.bf16.vlgmr.msra.gmra.mrb[104].mxu1 %vm9145_vm10, %v9146_v28  ;;  %6736 = vmatmul.mubr.bf16.vlgmr.msra.gmra.mrb[124].mxu0 %v6415_v34  ;;  %v10714_v34 = vld [vmem:[#allocation4 + $0x790] sm:$0xff]  }
0x2dec   : > { %10088 = vmatpush3.bf16.msra.mxu1 %v10706_v27  ;;  %10103 = vmatprep.mubr.msk.bf16.mxu1 %vm11136_vm0, %v11135_v0 }
0x2ded   : > { %10089 = vmatprep.subr.bf16.mxu1 %v11135_v0  ;;  %10108 = vmatpush3.bf16.msra.mxu0 %v12151_v47 }
0x2dee   : > { %10109 = vmatprep.subr.bf16.mxu0 %v11135_v0  ;;  %10111 = vmatprep.mubr.msk.bf16.mxu0 %vm11136_vm0, %v11135_v0 }
0x2df0   : > { %10090 = vmatpush3.bf16.msra.mxu1 %v10707_v36  ;;  %v10715_v36 = vld [vmem:[#allocation4 + $0x798] sm:$0xff]  }
0x2df1   : > { %10091 = vmatprep.subr.bf16.mxu1 %v11135_v0  ;;  %10110 = vmatpush3.bf16.msra.mxu0 %v12158_v37 }
0x2df2   : > { %10115 = vmatprep.subr.bf16.mxu0 %v11135_v0 }
0x2df4   : > { %10092 = vmatpush3.bf16.msra.mxu1 %v10708_v32  ;;  %v10716_v32 = vld [vmem:[#allocation4 + $0x7a0] sm:$0xff]  }
0x2df5   : > { %10093 = vmatprep.subr.bf16.mxu1 %v11135_v0 }
0x2df8   : > { %10094 = vmatpush3.bf16.msra.mxu1 %v10709_v33  ;;  %v10717_v33 = vld [vmem:[#allocation4 + $0x7a8] sm:$0xff]  }
0x2df9   : > { %10095 = vmatprep.subr.bf16.mxu1 %v11135_v0 }
0x2dfc   : > { %10096 = vmatpush3.bf16.msra.mxu1 %v10710_v40  ;;  %v10718_v40 = vld [vmem:[#allocation4 + $0x7b0] sm:$0xff]  }
0x2dfd   : > { %10097 = vmatprep.subr.bf16.mxu1 %v11135_v0 }
0x2e00   : > { %10098 = vmatpush3.bf16.msra.mxu1 %v10711_v49  ;;  %v10719_v49 = vld [vmem:[#allocation4 + $0x7b8] sm:$0xff]  }
0x2e01   : > { %10099 = vmatprep.subr.bf16.mxu1 %v11135_v0 }
0x2e04   : > { %10100 = vmatpush3.bf16.msra.mxu1 %v10712_v35  ;;  %v10720_v35 = vld [vmem:[#allocation4 + $0x7c0] sm:$0xff]  }
0x2e05   : > { %10101 = vmatprep.subr.bf16.mxu1 %v11135_v0 }
0x2e08   : > { %10102 = vmatpush3.bf16.msra.mxu1 %v10713_v50 }
0x2e09   : > { %10123 = vmatprep.subr.bf16.mxu1 %v11135_v0 }
0x2e0b   : > { %10104 = vmatmul.mubr.bf16.vlgmr.msra.gmra.mrb[108].mxu1 %v6417_v14 }
0x2e0c   : > { %10124 = vmatpush3.bf16.msra.mxu1 %v12151_v47  ;;  %10127 = vmatprep.mubr.msk.bf16.mxu1 %vm11136_vm0, %v11135_v0 }
0x2e0d   : > { %10125 = vmatprep.subr.bf16.mxu1 %v11135_v0 }
0x2e10   : > { %10126 = vmatpush3.bf16.msra.mxu1 %v12158_v37 }
0x2e11   : > { %10131 = vmatprep.subr.bf16.mxu1 %v11135_v0 }
0x2ebe   : > { %v9584_v39 = vpop.f32.mrb[104].mxu1  ;;  %v9606_v41 = vpop.f32.mrb[124].mxu0 }
0x2ebf   : > { %v9585_v19 = vpop.f32.mrb[105].mxu1  ;;  %v9607_v43 = vpop.f32.mrb[125].mxu0 }
0x2ec0   : > { %v9586_v56 = vadd.f32 %v9585_v19, %v9584_v39  ;;  %v9608_v29 = vadd.f32 %v9607_v43, %v9606_v41  ;;  %v9587_v57 = vpop.f32.mrb[106].mxu1  ;;  %v9609_v11 = vpop.f32.mrb[126].mxu0  ;;  %v9150_v43 = vld [vmem:[#allocation7 + $0x29] ss:$0 sm:$0xff] }
0x2ec1   : > { %v9588_v48 = vpop.f32.mrb[107].mxu1  ;;  %v9610_v63 = vpop.f32.mrb[127].mxu0 }
0x2ec2   : > { %v6698_v1 = vadd.f32 %v9586_v56, %v9102_v52 }
0x2ec4   : > { %v6738_v5 = vadd.f32 %v9608_v29, %v6698_v1  ;;  %v9151_v29 = vld [vmem:[#allocation7 + $0x2a] ss:$0 sm:$0xff] }
0x2ede   : > { %v6777_v8 = vpop.f32.mrb[108].mxu1 }
0x2edf   : > { %v6778_v9 = vadd.f32 %v6777_v8, %v6738_v5  ;;  %v10105_v10 = vpop.f32.mrb[109].mxu1 }
0x2ee0   : > { %v6780_v13 = vpop.f32.mrb[110].mxu1 }
0x2ee1   : > { %v6783_v59 = vsel %vm364_vm1, %v6778_v9, 0.0  ;;  %v10106_v45 = vpop.f32.mrb[111].mxu1 }
0x2ee2   : > { %v6784_v58 = vrot.slane %v6783_v59, 4 }
0x2ee4   : > { %v6785_v15 = vadd.f32 %v6784_v58, %v6783_v59 }
0x2ee6   : > { %v6786_v61 = vrot.slane %v6785_v15, 2 }
0x2ee8   : > { %v6787_v12 = vadd.f32 %v6786_v61, %v6785_v15  ;;  %v10722_v61 = vld [vmem:[#allocation4 + $0x7d0] sm:$0xff]  }
0x2eea   : > { %v6788_v20 = vrot.slane %v6787_v12, 1 }
0x2eec   : > { %v6789_v46 = vadd.f32 %v6788_v20, %v6787_v12  ;;  %v6931_v20 = vrot.slane %v11523_v16, %v11530_v42 }
0x2eee   : > { %v6790_v18 = vpack.c.bf16 %v6789_v46, %v6789_v46 }
0x2ef0   : > { %10112 = vmatmul.mubr.msk.bf16.vlgmr.msra.gmra.mrb[128].mxu0 %vm364_vm1, %v6790_v18  ;;  %v6936_v18 = vrot.slane %v11525_v17, %v11530_v42 }
0x2ef1   : > { %10116 = vmatpush3.bf16.msra.mxu0 %v12151_v47  ;;  %10119 = vmatprep.mubr.msk.bf16.mxu0 %vm11136_vm0, %v11135_v0 }
0x2ef2   : > { %10117 = vmatprep.subr.bf16.mxu0 %v11135_v0 }
0x2ef5   : > { %10118 = vmatpush3.bf16.msra.mxu0 %v12158_v37 }
0x2ef6   : > { %7060 = vmatprep.subr.bf16.mxu0 %v11143_v44 }
0x2fc3   : > { %v6828_v21 = vpop.f32.mrb[128].mxu0 }
0x2fc4   : > { %v6834_v60 = vmul.f32 0.03125, %v6828_v21  ;;  %v10113_v22 = vpop.f32.mrb[129].mxu0 }
0x2fc5   : > { %v6831_v24 = vpop.f32.mrb[130].mxu0 }
0x2fc6   : > { %v6838_v25 = vrot.slane %v6834_v60, %v11530_v42  ;;  %v10114_v51 = vpop.f32.mrb[131].mxu0  ;;  %v10723_v60 = vld [vmem:[#allocation4 + $0x7d8] sm:$0xff]  }
0x2fc8   : > { %v6839_v3 = vsub.f32 %v6778_v9, %v6838_v25 }
0x2fca   : > { %v6840_v2 = vmul.f32 %v6839_v3, %v6839_v3 }
0x2fcc   : > { %v6841_v7 = vsel %vm364_vm1, %v6840_v2, 0.0 }
0x2fcd   : > { %v6842_v62 = vrot.slane %v6841_v7, 4 }
0x2fcf   : > { %v6843_v23 = vadd.f32 %v6842_v62, %v6841_v7 }
0x2fd1   : > { %v6844_v26 = vrot.slane %v6843_v23, 2 }
0x2fd3   : > { %v6845_v31 = vadd.f32 %v6844_v26, %v6843_v23 }
0x2fd5   : > { %v6846_v53 = vrot.slane %v6845_v31, 1 }
0x2fd7   : > { %v6847_v27 = vadd.f32 %v6846_v53, %v6845_v31 }
0x2fd9   : > { %v6848_v28 = vpack.c.bf16 %v6847_v27, %v6847_v27 }
0x2fdb   : > { %10120 = vmatmul.mubr.msk.bf16.vlgmr.msra.gmra.mrb[132].mxu0 %vm364_vm1, %v6848_v28 }
0x2fdc   : > { %7061 = vmatpush1.bf16.msra.mxu0 %v10714_v34 }
0x2fdd   : > { %7062 = vmatprep.subr.bf16.mxu0 %v11143_v44 }
0x2fe0   : > { %7063 = vmatpush1.bf16.msra.mxu0 %v10715_v36 }
0x2fe1   : > { %7064 = vmatprep.subr.bf16.mxu0 %v11143_v44 }
0x2fe4   : > { %7065 = vmatpush1.bf16.msra.mxu0 %v10716_v32 }
0x2fe5   : > { %7066 = vmatprep.subr.bf16.mxu0 %v11143_v44 }
0x2fe8   : > { %7067 = vmatpush1.bf16.msra.mxu0 %v10717_v33 }
0x2fe9   : > { %7068 = vmatprep.subr.bf16.mxu0 %v11143_v44 }
0x2fec   : > { %7069 = vmatpush1.bf16.msra.mxu0 %v10718_v40 }
0x2fed   : > { %7070 = vmatprep.subr.bf16.mxu0 %v11143_v44 }
0x2ff0   : > { %7071 = vmatpush1.bf16.msra.mxu0 %v10719_v49 }
0x2ff1   : > { %7072 = vmatprep.subr.bf16.mxu0 %v11143_v44 }
0x2ff4   : > { %7073 = vmatpush1.bf16.msra.mxu0 %v10720_v35 }
0x2ff5   : > { %7074 = vmatprep.subr.bf16.mxu0 %v11143_v44 }
0x2ff8   : > { %7075 = vmatpush1.bf16.msra.mxu0 %v10721_v38 }
0x2ff9   : > { %7076 = vmatprep.subr.bf16.mxu0 %v11143_v44 }
0x2ffc   : > { %7077 = vmatpush1.bf16.msra.mxu0 %v10722_v61 }
0x2ffd   : > { %7078 = vmatprep.subr.bf16.mxu0 %v11143_v44 }
0x3000   : > { %7079 = vmatpush1.bf16.msra.mxu0 %v10723_v60  ;;  %v10725_v60 = vld [vmem:[#allocation4 + $0x7e8] sm:$0xff]  }
0x3001   : > { %7478 = vmatprep.subr.bf16.mxu0 %v11143_v44 }
0x30ae   : > { %v6886_v30 = vpop.f32.mrb[132].mxu0 }
0x30af   : > { %v6892_v50 = vmul.f32 0.03125, %v6886_v30  ;;  %v10121_v55 = vpop.f32.mrb[133].mxu0  ;;  %v9152_v30 = vld [vmem:[#allocation7 + $0x2b] ss:$0 sm:$0xff] }
0x30b0   : > { %v6889_v14 = vpop.f32.mrb[134].mxu0 }
0x30b1   : > { %v6893_v39 = vadd.f32 1e-05, %v6892_v50  ;;  %v10122_v41 = vpop.f32.mrb[135].mxu0 }
0x30b3   : > { %10906 = vrsqrt.f32 %v6893_v39 }
0x30bd   : > { %v10907_v52 = vpop.eup %10906 }
0x30be   : > { %v6898_v19 = vrot.slane %v10907_v52, %v11530_v42 }
0x30c0   : > { %v6899_v56 = vmul.f32 %v6898_v19, %v6839_v3 }
0x30c2   : > { %v6905_v57 = vmul.f32 %v9150_v43, %v6899_v56 }
0x30c4   : > { %v6911_v11 = vadd.f32 %v9151_v29, %v6905_v57 }
0x30c6   : > { %v6913_v48 = vmin.f32 %v6911_v11, 20.0  ;;  %vm6912_vm11 = vcmp.gt.f32.partialorder %v6911_v11, 20.0 }
0x30c8   : > { %v6914_v63 = vmul.f32 1.442695, %v6913_v48 }
0x30ca   : > { %10908 = vpow2.f32 %v6914_v63 }
0x30d4   : > { %v10909_v1 = vpop.eup %10908 }
0x30d5   : > { %v6916_v5 = vadd.f32 1.0, %v10909_v1  ;;  %v6919_v8 = vmul.f32 -0.5, %v10909_v1  ;;  %v6922_v10 = vand.u32 2147483647, %v10909_v1 }
0x30d7   : > { %10910 = vlog2.f32 %v6916_v5  ;;  %v6920_v9 = vadd.f32 1.0, %v6919_v8  ;;  %vm6923_vm7 = vcmp.lt.f32.partialorder %v6922_v10, 0.0004427343 }
0x30d9   : > { %v6921_v45 = vmul.f32 %v10909_v1, %v6920_v9 }
0x30e1   : > { %v10911_v13 = vpop.eup %10910 }
0x30e2   : > { %v6918_v59 = vmul.f32 0.6931472, %v10911_v13 }
0x30e4   : > { %v6924_v58 = vsel %vm6923_vm7, %v6921_v45, %v6918_v59 }
0x30e5   : > { %v6925_v15 = vsel %vm6912_vm11, %v6911_v11, %v6924_v58 }
0x30e6   : > { %10912 = vtanh.f32 %v6925_v15 }
0x30f0   : > { %v10913_v12 = vpop.eup %10912 }
0x30f1   : > { %v6927_v46 = vmul.f32 %v10913_v12, %v6911_v11 }
0x30f3   : > { %v6932_v21 = vmul.f32 %v6931_v20, %v6927_v46 }
0x30f5   : > { %v6937_v22 = vadd.f32 %v6936_v18, %v6932_v21  ;;  %v10724_v18 = vld [vmem:[#allocation4 + $0x7e0] sm:$0xff]  }
0x30f7   : > { %v6939_v24 = vrot.slane %v6937_v22, 6  ;;  %v10726_v22 = vld [vmem:[#allocation4 + $0x7f0] sm:$0xff]  }
0x30f9   : > { %v6941_v25 = vsel %vm1219_vm2, 0.0, %v6939_v24  ;;  %v6942_v51 = vsel %vm1219_vm2, %v6939_v24, 0.0  ;;  %v10727_v24 = vld [vmem:[#allocation4 + $0x7f8] sm:$0xff]  }
0x30fa   : > { %v6951_v3 = vrot.slane %v6941_v25, 2  ;;  %v6952_v16 = vrot.slane %v6942_v51, 2  ;;  %v6945_v2 = vrot.slane %v6941_v25, 1  ;;  %v6946_v7 = vrot.slane %v6942_v51, 1 }
0x30fb   : > { %v6963_v62 = vrot.slane %v6941_v25, 4  ;;  %v6964_v23 = vrot.slane %v6942_v51, 4  ;;  %v6957_v31 = vrot.slane %v6941_v25, 3  ;;  %v6958_v53 = vrot.slane %v6942_v51, 3  ;;  %v10729_v51 = vld [vmem:[#allocation4 + $0x808] sm:$0xff]  }
0x30fc   : > { %v6953_v26 = vsel %vm1242_vm3, %v6951_v3, %v6952_v16  ;;  %v6947_v17 = vsel %vm1230_vm4, %v6945_v2, %v6946_v7  ;;  %v10730_v3 = vld [vmem:[#allocation4 + $0x810] sm:$0xff]   ;;  %v10731_v16 = vld [vmem:[#allocation4 + $0x818] sm:$0xff]   ;;  %v7261_v2 = vpack.c.bf16 %v12139_v54, %v12139_v54  ;;  %v10732_v7 = vld [vmem:[#allocation4 + $0x820] sm:$0xff]  }
0x30fd   : > { %6954 = vrot.lane.b32.xlu0 %v6953_v26, %s11144_s16  ;;  %6948 = vrot.lane.b32.xlu1 %v6947_v17, %s11137_s8  ;;  %v6965_v27 = vsel %vm835_vm6, %v6963_v62, %v6964_v23  ;;  %v6959_v34 = vsel %vm836_vm5, %v6957_v31, %v6958_v53  ;;  %v10733_v62 = vld [vmem:[#allocation4 + $0x828] sm:$0xff]   ;;  %v10734_v54 = vld [vmem:[#allocation4 + $0x830] sm:$0xff]   ;;  %v10735_v23 = vld [vmem:[#allocation4 + $0x838] sm:$0xff]  }
0x30fe   : > { %v6991_v28 = vpack.c.bf16 %v6965_v27, %v6965_v27  ;;  %v10736_v26 = vld [vmem:[#allocation4 + $0x840] sm:$0xff]   ;;  %v10737_v17 = vld [vmem:[#allocation4 + $0x848] sm:$0xff]   ;;  %v10738_v31 = vld [vmem:[#allocation4 + $0x850] sm:$0xff]  }
0x30ff   : > { %v10739_v53 = vld [vmem:[#allocation4 + $0x858] sm:$0xff]  }
0x3100   : > { %9163 = vmatprep.mubr.msk.bf16.mxu0 %vm364_vm1, %v6991_v28 }
0x3101   : > { %6960 = vrot.lane.b32.xlu1 %v6959_v34, %s11145_s17 }
0x316f   : > { %v6949_v36 = vpop.permute.xlu1 %6948  ;;  %v6955_v32 = vpop.permute.xlu0 %6954 }
0x3170   : > { %v6967_v33 = vsel %vm364_vm1, %v6941_v25, %v6949_v36  ;;  %v10728_v25 = vld [vmem:[#allocation4 + $0x800] sm:$0xff]  }
0x3171   : > { %v6968_v40 = vsel %vm1606_vm15, %v6967_v33, %v6955_v32 }
0x3173   : > { %v6961_v49 = vpop.permute.xlu1 %6960 }
0x3174   : > { %v6969_v35 = vsel %vm1609_vm8, %v6968_v40, %v6961_v49 }
0x3175   : > { %v6990_v38 = vpack.c.bf16 %v6969_v35, %v6969_v35  ;;  %v9166_v35 = vld [vmem:[#allocation7 + $0x2c] ss:$0 sm:$0xff] }
0x3177   : > { %7093 = vmatmul.mubr.bf16.vlgmr.msra.gmra.mrb[136].mxu0 %v6990_v38 }
0x3178   : > { %7479 = vmatpush1.bf16.msra.mxu0 %v10732_v7 }
0x3179   : > { %7480 = vmatprep.subr.bf16.mxu0 %v11143_v44 }
0x317c   : > { %7481 = vmatpush1.bf16.msra.mxu0 %v10733_v62 }
0x317d   : > { %7482 = vmatprep.subr.bf16.mxu0 %v11143_v44 }
0x3180   : > { %7483 = vmatpush1.bf16.msra.mxu0 %v10734_v54 }
0x3181   : > { %7484 = vmatprep.subr.bf16.mxu0 %v11143_v44 }
0x3184   : > { %7485 = vmatpush1.bf16.msra.mxu0 %v10735_v23 }
0x3185   : > { %7486 = vmatprep.subr.bf16.mxu0 %v11143_v44 }
0x3188   : > { %7487 = vmatpush1.bf16.msra.mxu0 %v10736_v26 }
0x3189   : > { %7488 = vmatprep.subr.bf16.mxu0 %v11143_v44 }
0x318c   : > { %7489 = vmatpush1.bf16.msra.mxu0 %v10737_v17 }
0x318d   : > { %7490 = vmatprep.subr.bf16.mxu0 %v11143_v44 }
0x3190   : > { %7491 = vmatpush1.bf16.msra.mxu0 %v10738_v31 }
0x3191   : > { %7492 = vmatprep.subr.bf16.mxu0 %v11143_v44 }
0x3194   : > { %7493 = vmatpush1.bf16.msra.mxu0 %v10739_v53 }
0x3195   : > { %7494 = vmatprep.subr.bf16.mxu0 %v11143_v44 }
0x324a   : > { %v7094_v50 = vpop.f32.mrb[136].mxu0 }
0x324b   : > { %v7095_v55 = vadd.f32 %v9152_v30, %v7094_v50  ;;  %v7096_v14 = vpop.f32.mrb[137].mxu0  ;;  %v9167_v30 = vld [vmem:[#allocation7 + $0x2d] ss:$0 sm:$0xff] }
0x324c   : > { %v7097_v39 = vpop.f32.mrb[138].mxu0 }
0x324d   : > { %v7100_v41 = vsel %vm364_vm1, %v7095_v55, 0.0  ;;  %v7098_v52 = vpop.f32.mrb[139].mxu0 }
0x324e   : > { %v7101_v19 = vrot.slane %v7100_v41, 4 }
0x3250   : > { %v7102_v43 = vadd.f32 %v7101_v19, %v7100_v41 }
0x3252   : > { %v7103_v56 = vrot.slane %v7102_v43, 2 }
0x3254   : > { %v7104_v29 = vadd.f32 %v7103_v56, %v7102_v43 }
0x3256   : > { %v7105_v57 = vrot.slane %v7104_v29, 1 }
0x3258   : > { %v7106_v11 = vadd.f32 %v7105_v57, %v7104_v29 }
0x325a   : > { %v7107_v48 = vpack.c.bf16 %v7106_v11, %v7106_v11 }
0x325c   : > { %10128 = vmatmul.mubr.msk.bf16.vlgmr.msra.gmra.mrb[112].mxu1 %vm364_vm1, %v7107_v48 }
0x325d   : > { %10132 = vmatpush3.bf16.msra.mxu1 %v12151_v47  ;;  %10135 = vmatprep.mubr.msk.bf16.mxu1 %vm11136_vm0, %v11135_v0 }
0x325e   : > { %10133 = vmatprep.subr.bf16.mxu1 %v11135_v0 }
0x3261   : > { %10134 = vmatpush3.bf16.msra.mxu1 %v12158_v37 }
0x3262   : > { %10139 = vmatprep.subr.bf16.mxu1 %v11135_v0 }
0x332f   : > { %v7145_v63 = vpop.f32.mrb[112].mxu1 }
0x3330   : > { %v7151_v1 = vmul.f32 0.03125, %v7145_v63  ;;  %v10129_v5 = vpop.f32.mrb[113].mxu1 }
0x3331   : > { %v7148_v8 = vpop.f32.mrb[114].mxu1 }
0x3332   : > { %v7155_v9 = vrot.slane %v7151_v1, %v11530_v42  ;;  %v10130_v10 = vpop.f32.mrb[115].mxu1 }
0x3333   : > { %v10740_v10 = vld [vmem:[#allocation4 + $0x860] sm:$0xff]  }
0x3334   : > { %v12223_v13 = vsub.f32 %v7095_v55, %v7155_v9  ;;  %7495 = vmatpush1.bf16.msra.mxu0 %v10740_v10 }
0x3335   : > { %7496 = vmatprep.subr.bf16.mxu0 %v11143_v44 }
0x3336   : > { %v7157_v59 = vmul.f32 %v12223_v13, %v12223_v13 }
0x3338   : > { %v7158_v45 = vsel %vm364_vm1, %v7157_v59, 0.0 }
0x3339   : > { %v7159_v58 = vrot.slane %v7158_v45, 4 }
0x333b   : > { %v7160_v15 = vadd.f32 %v7159_v58, %v7158_v45 }
0x333d   : > { %v7161_v61 = vrot.slane %v7160_v15, 2 }
0x333f   : > { %v7162_v12 = vadd.f32 %v7161_v61, %v7160_v15  ;;  %v10741_v15 = vld [vmem:[#allocation4 + $0x868] sm:$0xff]  }
0x3340   : > { %7497 = vmatpush1.bf16.msra.mxu0 %v10741_v15  ;;  %v10744_v15 = vld [vmem:[#allocation4 + $0x880] sm:$0xff]  }
0x3341   : > { %v7163_v20 = vrot.slane %v7162_v12, 1  ;;  %10175 = vmatprep.subr.bf16.mxu0 %v11135_v0 }
0x3343   : > { %v7164_v46 = vadd.f32 %v7163_v20, %v7162_v12 }
0x3345   : > { %v7165_v21 = vpack.c.bf16 %v7164_v46, %v7164_v46 }
0x3347   : > { %10136 = vmatmul.mubr.msk.bf16.vlgmr.msra.gmra.mrb[116].mxu1 %vm364_vm1, %v7165_v21 }
0x3348   : > { %10140 = vmatpush3.bf16.msra.mxu1 %v10724_v18  ;;  %10155 = vmatprep.mubr.msk.bf16.mxu1 %vm11136_vm0, %v11135_v0 }
0x3349   : > { %10141 = vmatprep.subr.bf16.mxu1 %v11135_v0 }
0x334c   : > { %10142 = vmatpush3.bf16.msra.mxu1 %v10725_v60 }
0x334d   : > { %10143 = vmatprep.subr.bf16.mxu1 %v11135_v0 }
0x3350   : > { %10144 = vmatpush3.bf16.msra.mxu1 %v10726_v22 }
0x3351   : > { %10145 = vmatprep.subr.bf16.mxu1 %v11135_v0 }
0x3354   : > { %10146 = vmatpush3.bf16.msra.mxu1 %v10727_v24 }
0x3355   : > { %10147 = vmatprep.subr.bf16.mxu1 %v11135_v0 }
0x3358   : > { %10148 = vmatpush3.bf16.msra.mxu1 %v10728_v25 }
0x3359   : > { %10149 = vmatprep.subr.bf16.mxu1 %v11135_v0 }
0x335c   : > { %10150 = vmatpush3.bf16.msra.mxu1 %v10729_v51 }
0x335d   : > { %10151 = vmatprep.subr.bf16.mxu1 %v11135_v0 }
0x3360   : > { %10152 = vmatpush3.bf16.msra.mxu1 %v10730_v3 }
0x3361   : > { %10153 = vmatprep.subr.bf16.mxu1 %v11135_v0 }
0x3364   : > { %10154 = vmatpush3.bf16.msra.mxu1 %v10731_v16 }
0x3365   : > { %10159 = vmatprep.subr.bf16.mxu1 %v11135_v0 }
0x3367   : > { %10156 = vmatmul.mubr.bf16.vlgmr.msra.gmra.mrb[120].mxu1 %v7261_v2 }
0x3368   : > { %10160 = vmatpush3.bf16.msra.mxu1 %v12151_v47  ;;  %10163 = vmatprep.mubr.msk.bf16.mxu1 %vm11136_vm0, %v11135_v0 }
0x3369   : > { %10161 = vmatprep.subr.bf16.mxu1 %v11135_v0 }
0x336c   : > { %10162 = vmatpush3.bf16.msra.mxu1 %v12158_v37 }
0x336d   : > { %10167 = vmatprep.subr.bf16.mxu1 %v11135_v0 }
0x341a   : > { %v7203_v27 = vpop.f32.mrb[116].mxu1 }
0x341b   : > { %v7209_v28 = vmul.f32 0.03125, %v7203_v27  ;;  %v10137_v34 = vpop.f32.mrb[117].mxu1 }
0x341c   : > { %v7206_v36 = vpop.f32.mrb[118].mxu1  ;;  %v9177_v34 = vld [vmem:[#allocation7 + $0x2f] ss:$0 sm:$0xff] }
0x341d   : > { %v7210_v32 = vadd.f32 1e-05, %v7209_v28  ;;  %v10138_v33 = vpop.f32.mrb[119].mxu1 }
0x341f   : > { %10914 = vrsqrt.f32 %v7210_v32 }
0x3429   : > { %v10915_v40 = vpop.eup %10914 }
0x342a   : > { %v7215_v49 = vrot.slane %v10915_v40, %v11530_v42 }
0x342c   : > { %v7216_v38 = vmul.f32 %v7215_v49, %v12223_v13  ;;  %v9168_v13 = vld [vmem:[#allocation7 + $0x2e] ss:$0 sm:$0xff] }
0x342e   : > { %v7222_v50 = vmul.f32 %v9166_v35, %v7216_v38 }
0x3430   : > { %v7228_v55 = vadd.f32 %v9167_v30, %v7222_v50 }
0x3432   : > { %v7230_v14 = vmin.f32 %v7228_v55, 20.0  ;;  %vm7229_vm13 = vcmp.gt.f32.partialorder %v7228_v55, 20.0 }
0x3434   : > { %v7231_v39 = vmul.f32 1.442695, %v7230_v14 }
0x3436   : > { %10916 = vpow2.f32 %v7231_v39 }
0x343a   : > { %v7349_v41 = vpop.f32.mrb[120].mxu1 }
0x343b   : > { %v10157_v52 = vpop.f32.mrb[121].mxu1  ;;  %v7350_v58 = vadd.f32 %v9168_v13, %v7349_v41 }
0x343c   : > { %v7352_v19 = vpop.f32.mrb[122].mxu1 }
0x343d   : > { %v10158_v43 = vpop.f32.mrb[123].mxu1 }
0x3440   : > { %v10917_v56 = vpop.eup %10916 }
0x3441   : > { %v7233_v29 = vadd.f32 1.0, %v10917_v56  ;;  %v7236_v57 = vmul.f32 -0.5, %v10917_v56  ;;  %v7239_v48 = vand.u32 2147483647, %v10917_v56 }
0x3443   : > { %10918 = vlog2.f32 %v7233_v29  ;;  %v7237_v11 = vadd.f32 1.0, %v7236_v57  ;;  %vm7240_vm12 = vcmp.lt.f32.partialorder %v7239_v48, 0.0004427343 }
0x3445   : > { %v7238_v5 = vmul.f32 %v10917_v56, %v7237_v11 }
0x344d   : > { %v10919_v63 = vpop.eup %10918 }
0x344e   : > { %v7235_v1 = vmul.f32 0.6931472, %v10919_v63 }
0x3450   : > { %v7241_v8 = vsel %vm7240_vm12, %v7238_v5, %v7235_v1 }
0x3451   : > { %v7242_v9 = vsel %vm7229_vm13, %v7228_v55, %v7241_v8 }
0x3452   : > { %10920 = vtanh.f32 %v7242_v9 }
0x345c   : > { %v10921_v59 = vpop.eup %10920 }
0x345d   : > { %v7244_v45 = vmul.f32 %v10921_v59, %v7228_v55 }
0x345f   : > { %v12258_v61 = vadd.f32 %v7350_v58, %v7244_v45  ;;  %v10742_v45 = vld [vmem:[#allocation4 + $0x870] sm:$0xff]   ;;  %v10743_v58 = vld [vmem:[#allocation4 + $0x878] sm:$0xff]  }
0x3461   : > { %v7357_v12 = vrot.slane %v12258_v61, 6 }
0x3463   : > { %v7359_v20 = vsel %vm1219_vm2, 0.0, %v7357_v12  ;;  %v7360_v46 = vsel %vm1219_vm2, %v7357_v12, 0.0  ;;  %v10745_v12 = vld [vmem:[#allocation4 + $0x888] sm:$0xff]  }
0x3464   : > { %v7382_v18 = vrot.slane %v7360_v46, 4  ;;  %v7369_v21 = vrot.slane %v7359_v20, 2  ;;  %v7370_v60 = vrot.slane %v7360_v46, 2  ;;  %v7363_v22 = vrot.slane %v7359_v20, 1 }
0x3465   : > { %v7364_v24 = vrot.slane %v7360_v46, 1  ;;  %v7381_v25 = vrot.slane %v7359_v20, 4  ;;  %v7375_v2 = vrot.slane %v7359_v20, 3  ;;  %v7376_v7 = vrot.slane %v7360_v46, 3  ;;  %v10747_v46 = vld [vmem:[#allocation4 + $0x898] sm:$0xff]  }
0x3466   : > { %v7371_v51 = vsel %vm1242_vm3, %v7369_v21, %v7370_v60  ;;  %v10749_v21 = vld [vmem:[#allocation4 + $0x8a8] sm:$0xff]  }
0x3467   : > { %7372 = vrot.lane.b32.xlu1 %v7371_v51, %s11144_s16  ;;  %v7365_v3 = vsel %vm1230_vm4, %v7363_v22, %v7364_v24  ;;  %v7383_v16 = vsel %vm835_vm6, %v7381_v25, %v7382_v18  ;;  %v7377_v54 = vsel %vm836_vm5, %v7375_v2, %v7376_v7  ;;  %v10748_v18 = vld [vmem:[#allocation4 + $0x8a0] sm:$0xff]  }
0x3468   : > { %7366 = vrot.lane.b32.xlu0 %v7365_v3, %s11137_s8  ;;  %v7409_v62 = vpack.c.bf16 %v7383_v16, %v7383_v16  ;;  %v9191_v7 = vld [vmem:[#allocation7 + $0x30] ss:$0 sm:$0xff] }
0x346a   : > { %9188 = vmatprep.mubr.msk.bf16.mxu0 %vm364_vm1, %v7409_v62 }
0x346c   : > { %7378 = vrot.lane.b32.xlu0 %v7377_v54, %s11145_s17  ;;  %v9192_v54 = vld [vmem:[#allocation7 + $0x31] ss:$0 sm:$0xff] }
0x34d9   : > { %v7373_v26 = vpop.permute.xlu1 %7372 }
0x34da   : > { %v7367_v23 = vpop.permute.xlu0 %7366 }
0x34db   : > { %v7385_v17 = vsel %vm364_vm1, %v7359_v20, %v7367_v23  ;;  %v10746_v20 = vld [vmem:[#allocation4 + $0x890] sm:$0xff]  }
0x34dc   : > { %v7386_v31 = vsel %vm1606_vm15, %v7385_v17, %v7373_v26 }
0x34de   : > { %v7379_v53 = vpop.permute.xlu0 %7378 }
0x34df   : > { %v7387_v27 = vsel %vm1609_vm8, %v7386_v31, %v7379_v53 }
0x34e0   : > { %v7408_v28 = vpack.c.bf16 %v7387_v27, %v7387_v27 }
0x34e2   : > { %7511 = vmatmul.mubr.bf16.vlgmr.msra.gmra.mrb[140].mxu0 %v7408_v28 }
0x34e3   : > { %10176 = vmatpush3.bf16.msra.mxu0 %v12151_v47  ;;  %10179 = vmatprep.mubr.msk.bf16.mxu0 %vm11136_vm0, %v11135_v0 }
0x34e4   : > { %10177 = vmatprep.subr.bf16.mxu0 %v11135_v0 }
0x34e7   : > { %10178 = vmatpush3.bf16.msra.mxu0 %v12158_v37 }
0x34e8   : > { %10183 = vmatprep.subr.bf16.mxu0 %v11135_v0 }
0x35b5   : > { %v7512_v36 = vpop.f32.mrb[140].mxu0 }
0x35b6   : > { %v7513_v32 = vadd.f32 %v9177_v34, %v7512_v36  ;;  %v7514_v33 = vpop.f32.mrb[141].mxu0 }
0x35b7   : > { %v7515_v40 = vpop.f32.mrb[142].mxu0 }
0x35b8   : > { %v7518_v49 = vsel %vm364_vm1, %v7513_v32, 0.0  ;;  %v7516_v35 = vpop.f32.mrb[143].mxu0 }
0x35b9   : > { %v7519_v38 = vrot.slane %v7518_v49, 4 }
0x35bb   : > { %v7520_v30 = vadd.f32 %v7519_v38, %v7518_v49  ;;  %v10750_v38 = vld [vmem:[#allocation4 + $0x8b0] sm:$0xff]  }
0x35bd   : > { %v7521_v50 = vrot.slane %v7520_v30, 2 }
0x35bf   : > { %v7522_v55 = vadd.f32 %v7521_v50, %v7520_v30  ;;  %v7666_v50 = vrot.slane %v11513_v4, %v11530_v42 }
0x35c1   : > { %v7523_v14 = vrot.slane %v7522_v55, 1 }
0x35c3   : > { %v7524_v39 = vadd.f32 %v7523_v14, %v7522_v55  ;;  %v7671_v14 = vrot.slane %v11517_v6, %v11530_v42 }
0x35c5   : > { %v7525_v41 = vpack.c.bf16 %v7524_v39, %v7524_v39 }
0x35c7   : > { %10164 = vmatmul.mubr.msk.bf16.vlgmr.msra.gmra.mrb[124].mxu1 %vm364_vm1, %v7525_v41  ;;  %v10751_v41 = vld [vmem:[#allocation4 + $0x8b8] sm:$0xff]  }
0x35c8   : > { %10168 = vmatpush3.bf16.msra.mxu1 %v12151_v47  ;;  %10171 = vmatprep.mubr.msk.bf16.mxu1 %vm11136_vm0, %v11135_v0 }
0x35c9   : > { %10169 = vmatprep.subr.bf16.mxu1 %v11135_v0 }
0x35cc   : > { %10170 = vmatpush3.bf16.msra.mxu1 %v12158_v37 }
0x35cd   : > { %7795 = vmatprep.subr.bf16.mxu1 %v11143_v44 }
0x369a   : > { %v7563_v52 = vpop.f32.mrb[124].mxu1 }
0x369b   : > { %v7569_v19 = vmul.f32 0.03125, %v7563_v52  ;;  %v10165_v43 = vpop.f32.mrb[125].mxu1 }
0x369c   : > { %v7566_v56 = vpop.f32.mrb[126].mxu1 }
0x369d   : > { %v7573_v29 = vrot.slane %v7569_v19, %v11530_v42  ;;  %v10166_v57 = vpop.f32.mrb[127].mxu1 }
0x369f   : > { %v7574_v11 = vsub.f32 %v7513_v32, %v7573_v29 }
0x36a1   : > { %v7575_v48 = vmul.f32 %v7574_v11, %v7574_v11 }
0x36a3   : > { %v7576_v63 = vsel %vm364_vm1, %v7575_v48, 0.0 }
0x36a4   : > { %v7577_v1 = vrot.slane %v7576_v63, 4 }
0x36a6   : > { %v7578_v5 = vadd.f32 %v7577_v1, %v7576_v63 }
0x36a8   : > { %v7579_v8 = vrot.slane %v7578_v5, 2 }
0x36aa   : > { %v7580_v9 = vadd.f32 %v7579_v8, %v7578_v5 }
0x36ac   : > { %v7581_v10 = vrot.slane %v7580_v9, 1 }
0x36ae   : > { %v7582_v13 = vadd.f32 %v7581_v10, %v7580_v9 }
0x36b0   : > { %v7583_v59 = vpack.c.bf16 %v7582_v13, %v7582_v13 }
0x36b2   : > { %10172 = vmatmul.mubr.msk.bf16.vlgmr.msra.gmra.mrb[128].mxu1 %vm364_vm1, %v7583_v59 }
0x36b3   : > { %7796 = vmatpush1.bf16.msra.mxu1 %v10742_v45 }
0x36b4   : > { %7797 = vmatprep.subr.bf16.mxu1 %v11143_v44 }
0x36b7   : > { %7798 = vmatpush1.bf16.msra.mxu1 %v10743_v58 }
0x36b8   : > { %7799 = vmatprep.subr.bf16.mxu1 %v11143_v44 }
0x36bb   : > { %7800 = vmatpush1.bf16.msra.mxu1 %v10744_v15 }
0x36bc   : > { %7801 = vmatprep.subr.bf16.mxu1 %v11143_v44 }
0x36bf   : > { %7802 = vmatpush1.bf16.msra.mxu1 %v10745_v12 }
0x36c0   : > { %7803 = vmatprep.subr.bf16.mxu1 %v11143_v44 }
0x36c3   : > { %7804 = vmatpush1.bf16.msra.mxu1 %v10746_v20 }
0x36c4   : > { %7805 = vmatprep.subr.bf16.mxu1 %v11143_v44 }
0x36c7   : > { %7806 = vmatpush1.bf16.msra.mxu1 %v10747_v46 }
0x36c8   : > { %7807 = vmatprep.subr.bf16.mxu1 %v11143_v44 }
0x36cb   : > { %7808 = vmatpush1.bf16.msra.mxu1 %v10748_v18  ;;  %v9193_v18 = vld [vmem:[#allocation7 + $0x32] ss:$0 sm:$0xff] }
0x36cc   : > { %7809 = vmatprep.subr.bf16.mxu1 %v11143_v44 }
0x36cf   : > { %7810 = vmatpush1.bf16.msra.mxu1 %v10749_v21 }
0x36d0   : > { %7811 = vmatprep.subr.bf16.mxu1 %v11143_v44 }
0x36d3   : > { %7812 = vmatpush1.bf16.msra.mxu1 %v10750_v38 }
0x36d4   : > { %7813 = vmatprep.subr.bf16.mxu1 %v11143_v44 }
0x36d7   : > { %7814 = vmatpush1.bf16.msra.mxu1 %v10751_v41 }
0x36d8   : > { %8351 = vmatprep.subr.bf16.mxu1 %v11143_v44 }
0x3785   : > { %v7621_v60 = vpop.f32.mrb[128].mxu1 }
0x3786   : > { %v7627_v22 = vmul.f32 0.03125, %v7621_v60  ;;  %v10173_v24 = vpop.f32.mrb[129].mxu1 }
0x3787   : > { %v7624_v25 = vpop.f32.mrb[130].mxu1 }
0x3788   : > { %v7628_v51 = vadd.f32 1e-05, %v7627_v22  ;;  %v10174_v3 = vpop.f32.mrb[131].mxu1 }
0x378a   : > { %10922 = vrsqrt.f32 %v7628_v51 }
0x3794   : > { %v10923_v16 = vpop.eup %10922 }
0x3795   : > { %v7633_v2 = vrot.slane %v10923_v16, %v11530_v42 }
0x3797   : > { %v7634_v62 = vmul.f32 %v7633_v2, %v7574_v11 }
0x3799   : > { %v7640_v23 = vmul.f32 %v9191_v7, %v7634_v62 }
0x379b   : > { %v7646_v26 = vadd.f32 %v9192_v54, %v7640_v23 }
0x379d   : > { %v7648_v17 = vmin.f32 %v7646_v26, 20.0  ;;  %vm7647_vm10 = vcmp.gt.f32.partialorder %v7646_v26, 20.0 }
0x379f   : > { %v7649_v31 = vmul.f32 1.442695, %v7648_v17 }
0x37a1   : > { %10924 = vpow2.f32 %v7649_v31 }
0x37ab   : > { %v10925_v53 = vpop.eup %10924 }
0x37ac   : > { %v7651_v27 = vadd.f32 1.0, %v10925_v53  ;;  %v7654_v28 = vmul.f32 -0.5, %v10925_v53  ;;  %v7657_v36 = vand.u32 2147483647, %v10925_v53 }
0x37ae   : > { %10926 = vlog2.f32 %v7651_v27  ;;  %v7655_v34 = vadd.f32 1.0, %v7654_v28  ;;  %vm7658_vm9 = vcmp.lt.f32.partialorder %v7657_v36, 0.0004427343 }
0x37b0   : > { %v7656_v40 = vmul.f32 %v10925_v53, %v7655_v34 }
0x37b8   : > { %v10927_v32 = vpop.eup %10926 }
0x37b9   : > { %v7653_v33 = vmul.f32 0.6931472, %v10927_v32 }
0x37bb   : > { %v7659_v49 = vsel %vm7658_vm9, %v7656_v40, %v7653_v33 }
0x37bc   : > { %v7660_v35 = vsel %vm7647_vm10, %v7646_v26, %v7659_v49 }
0x37bd   : > { %10928 = vtanh.f32 %v7660_v35 }
0x37c7   : > { %v10929_v30 = vpop.eup %10928 }
0x37c8   : > { %v7662_v55 = vmul.f32 %v10929_v30, %v7646_v26 }
0x37ca   : > { %v7667_v39 = vmul.f32 %v7666_v50, %v7662_v55 }
0x37cc   : > { %v7672_v52 = vadd.f32 %v7671_v14, %v7667_v39 }
0x37ce   : > { %v7674_v19 = vrot.slane %v7672_v52, 6 }
0x37d0   : > { %v7676_v43 = vsel %vm1219_vm2, 0.0, %v7674_v19  ;;  %v7677_v56 = vsel %vm1219_vm2, %v7674_v19, 0.0 }
0x37d1   : > { %v7686_v29 = vrot.slane %v7676_v43, 2  ;;  %v7687_v4 = vrot.slane %v7677_v56, 2  ;;  %v7680_v57 = vrot.slane %v7676_v43, 1  ;;  %v7681_v11 = vrot.slane %v7677_v56, 1 }
0x37d2   : > { %v7698_v48 = vrot.slane %v7676_v43, 4  ;;  %v7699_v63 = vrot.slane %v7677_v56, 4  ;;  %v7692_v5 = vrot.slane %v7676_v43, 3  ;;  %v7693_v8 = vrot.slane %v7677_v56, 3  ;;  %v9207_v56 = vld [vmem:[#allocation7 + $0x33] ss:$0 sm:$0xff] }
0x37d3   : > { %v7688_v1 = vsel %vm1242_vm3, %v7686_v29, %v7687_v4  ;;  %v7682_v6 = vsel %vm1230_vm4, %v7680_v57, %v7681_v11  ;;  %v9208_v4 = vld [vmem:[#allocation7 + $0x34] ss:$0 sm:$0xff] }
0x37d4   : > { %7689 = vrot.lane.b32.xlu0 %v7688_v1, %s11144_s16  ;;  %7683 = vrot.lane.b32.xlu1 %v7682_v6, %s11137_s8  ;;  %v7700_v9 = vsel %vm835_vm6, %v7698_v48, %v7699_v63  ;;  %v7694_v13 = vsel %vm836_vm5, %v7692_v5, %v7693_v8 }
0x37d5   : > { %v7726_v10 = vpack.c.bf16 %v7700_v9, %v7700_v9 }
0x37d7   : > { %9204 = vmatprep.mubr.msk.bf16.mxu1 %vm364_vm1, %v7726_v10 }
0x37d8   : > { %7695 = vrot.lane.b32.xlu1 %v7694_v13, %s11145_s17 }
0x3846   : > { %v7684_v59 = vpop.permute.xlu1 %7683  ;;  %v7690_v45 = vpop.permute.xlu0 %7689 }
0x3847   : > { %v7702_v58 = vsel %vm364_vm1, %v7676_v43, %v7684_v59 }
0x3848   : > { %v7703_v15 = vsel %vm1606_vm15, %v7702_v58, %v7690_v45 }
0x384a   : > { %v7696_v12 = vpop.permute.xlu1 %7695 }
0x384b   : > { %v7704_v20 = vsel %vm1609_vm8, %v7703_v15, %v7696_v12 }
0x384c   : > { %v7725_v46 = vpack.c.bf16 %v7704_v20, %v7704_v20 }
0x384e   : > { %7828 = vmatmul.mubr.bf16.vlgmr.msra.gmra.mrb[132].mxu1 %v7725_v46 }
0x3921   : > { %v7829_v21 = vpop.f32.mrb[132].mxu1 }
0x3922   : > { %v7830_v60 = vadd.f32 %v9193_v18, %v7829_v21  ;;  %v7831_v22 = vpop.f32.mrb[133].mxu1  ;;  %v10753_v21 = vld [vmem:[#allocation4 + $0x3c] ss:$0 sps:$4 sm:$0x33]  }
0x3923   : > { %v7832_v24 = vpop.f32.mrb[134].mxu1  ;;  %v10755_v22 = vld [vmem:[#allocation4 + $0x8f8] sm:$0xff]  }
0x3924   : > { %v7835_v25 = vsel %vm364_vm1, %v7830_v60, 0.0  ;;  %v7833_v51 = vpop.f32.mrb[135].mxu1  ;;  %v10757_v24 = vld [vmem:[#allocation4 + $0x908] sm:$0xff]  }
0x3925   : > { %v7836_v3 = vrot.slane %v7835_v25, 4  ;;  %v10759_v51 = vld [vmem:[#allocation4 + $0x918] sm:$0xff]  }
0x3927   : > { %v7837_v16 = vadd.f32 %v7836_v3, %v7835_v25  ;;  %v10758_v25 = vld [vmem:[#allocation4 + $0x910] sm:$0xff]   ;;  %v10760_v3 = vld [vmem:[#allocation4 + $0x920] sm:$0xff]  }
0x3929   : > { %v7838_v2 = vrot.slane %v7837_v16, 2 }
0x392b   : > { %v7839_v7 = vadd.f32 %v7838_v2, %v7837_v16 }
0x392d   : > { %v7840_v62 = vrot.slane %v7839_v7, 1 }
0x392f   : > { %v7841_v54 = vadd.f32 %v7840_v62, %v7839_v7  ;;  %v10761_v7 = vld [vmem:[#allocation4 + $0x928] sm:$0xff]  }
0x3931   : > { %v7842_v23 = vpack.c.bf16 %v7841_v54, %v7841_v54 }
0x3933   : > { %10180 = vmatmul.mubr.msk.bf16.vlgmr.msra.gmra.mrb[144].mxu0 %vm364_vm1, %v7842_v23 }
0x3934   : > { %10184 = vmatpush3.bf16.msra.mxu0 %v12151_v47  ;;  %10187 = vmatprep.mubr.msk.bf16.mxu0 %vm11136_vm0, %v11135_v0 }
0x3935   : > { %10185 = vmatprep.subr.bf16.mxu0 %v11135_v0 }
0x3938   : > { %10186 = vmatpush3.bf16.msra.mxu0 %v12158_v37  ;;  %v10752_v37 = vld [vmem:[#allocation4 + $0x34] sm:$0xff]  }
0x3a06   : > { %v7880_v26 = vpop.f32.mrb[144].mxu0 }
0x3a07   : > { %v7886_v17 = vmul.f32 0.03125, %v7880_v26  ;;  %v10181_v31 = vpop.f32.mrb[145].mxu0 }
0x3a08   : > { %v7883_v53 = vpop.f32.mrb[146].mxu0 }
0x3a09   : > { %v7890_v27 = vrot.slane %v7886_v17, %v11530_v42  ;;  %v10182_v28 = vpop.f32.mrb[147].mxu0 }
0x3a0b   : > { %v7891_v34 = vsub.f32 %v7830_v60, %v7890_v27  ;;  %v10754_v60 = vld [vmem:[#allocation4 + $0x8f0] sm:$0xff]  }
0x3a0d   : > { %v7892_v36 = vmul.f32 %v7891_v34, %v7891_v34 }
0x3a0f   : > { %v7893_v32 = vsel %vm364_vm1, %v7892_v36, 0.0 }
0x3a10   : > { %v7894_v33 = vrot.slane %v7893_v32, 4 }
0x3a12   : > { %v7895_v47 = vadd.f32 %v7894_v33, %v7893_v32 }
0x3a14   : > { %v7896_v40 = vrot.slane %v7895_v47, 2 }
0x3a16   : > { %v7897_v49 = vadd.f32 %v7896_v40, %v7895_v47 }
0x3a18   : > { %v7898_v35 = vrot.slane %v7897_v49, 1 }
0x3a1a   : > { %v7899_v38 = vadd.f32 %v7898_v35, %v7897_v49 }
0x3a1c   : > { %v7900_v30 = vpack.c.bf16 %v7899_v38, %v7899_v38 }
0x3a1e   : > { %10188 = vmatmul.mubr.msk.bf16.vlgmr.msra.gmra.mrb[148].mxu0 %vm364_vm1, %v7900_v30 }
0x3a1f   : > { %10193 = vmatprep.mubr.msk.bf16.mxu0 %vm1279_vm14, %v10752_v37 }
0x3af1   : > { %v7938_v50 = vpop.f32.mrb[148].mxu0 }
0x3af2   : > { %v7944_v55 = vmul.f32 0.03125, %v7938_v50  ;;  %v10189_v14 = vpop.f32.mrb[149].mxu0 }
0x3af3   : > { %v7941_v39 = vpop.f32.mrb[150].mxu0 }
0x3af4   : > { %v7945_v41 = vadd.f32 1e-05, %v7944_v55  ;;  %v10190_v52 = vpop.f32.mrb[151].mxu0 }
0x3af6   : > { %10930 = vrsqrt.f32 %v7945_v41 }
0x3b00   : > { %v10931_v19 = vpop.eup %10930 }
0x3b01   : > { %v7950_v43 = vrot.slane %v10931_v19, %v11530_v42 }
0x3b03   : > { %v7951_v29 = vmul.f32 %v7950_v43, %v7891_v34 }
0x3b05   : > { %v7957_v57 = vmul.f32 %v9207_v56, %v7951_v29 }
0x3b07   : > { %v7963_v11 = vadd.f32 %v9208_v4, %v7957_v57 }
0x3b09   : > { %v7965_v48 = vmin.f32 %v7963_v11, 20.0  ;;  %vm7964_vm11 = vcmp.gt.f32.partialorder %v7963_v11, 20.0 }
0x3b0b   : > { %v7966_v63 = vmul.f32 1.442695, %v7965_v48 }
0x3b0d   : > { %10932 = vpow2.f32 %v7966_v63 }
0x3b17   : > { %v10933_v1 = vpop.eup %10932 }
0x3b18   : > { %v7968_v6 = vadd.f32 1.0, %v10933_v1  ;;  %v7971_v5 = vmul.f32 -0.5, %v10933_v1  ;;  %v7974_v9 = vand.u32 2147483647, %v10933_v1 }
0x3b1a   : > { %10934 = vlog2.f32 %v7968_v6  ;;  %v7972_v8 = vadd.f32 1.0, %v7971_v5  ;;  %vm7975_vm7 = vcmp.lt.f32.partialorder %v7974_v9, 0.0004427343  ;;  %v12362_v6 = vld [vmem:[#allocation4] sm:$0xff]   ;;  %v12368_v5 = vld [vmem:[#allocation4 + $0x8] sm:$0xff]   ;;  %v10763_v9 = vld [vmem:[#allocation4 + $0x938] sm:$0xff]  }
0x3b1c   : > { %v7973_v59 = vmul.f32 %v10933_v1, %v7972_v8  ;;  %v10762_v8 = vld [vmem:[#allocation4 + $0x930] sm:$0xff]  }
0x3b1d   : > { %8352 = vmatpush1.bf16.msra.mxu1 %v10762_v8 }
0x3b1e   : > { %8353 = vmatprep.subr.bf16.mxu1 %v11143_v44 }
0x3b21   : > { %8354 = vmatpush1.bf16.msra.mxu1 %v10763_v9 }
0x3b22   : > { %8355 = vmatprep.subr.bf16.mxu1 %v11143_v44 }
0x3b24   : > { %v10935_v10 = vpop.eup %10934 }
0x3b25   : > { %v7970_v13 = vmul.f32 0.6931472, %v10935_v10  ;;  %v10764_v10 = vld [vmem:[#allocation4 + $0x940] sm:$0xff]  }
0x3b26   : > { %8356 = vmatpush1.bf16.msra.mxu1 %v10764_v10  ;;  %v9222_v10 = vld [vmem:[#allocation7 + $0x37] ss:$0 sm:$0xff] }
0x3b27   : > { %v7976_v45 = vsel %vm7975_vm7, %v7973_v59, %v7970_v13  ;;  %v10765_v13 = vld [vmem:[#allocation4 + $0x948] sm:$0xff]   ;;  %8357 = vmatprep.subr.bf16.mxu1 %v11143_v44  ;;  %v10766_v59 = vld [vmem:[#allocation4 + $0x950] sm:$0xff]  }
0x3b28   : > { %v7977_v58 = vsel %vm7964_vm11, %v7963_v11, %v7976_v45  ;;  %v10767_v45 = vld [vmem:[#allocation4 + $0x958] sm:$0xff]  }
0x3b29   : > { %10936 = vtanh.f32 %v7977_v58  ;;  %v10768_v58 = vld [vmem:[#allocation4 + $0x960] sm:$0xff]  }
0x3b2a   : > { %8358 = vmatpush1.bf16.msra.mxu1 %v10765_v13 }
0x3b2b   : > { %8359 = vmatprep.subr.bf16.mxu1 %v11143_v44 }
0x3b2e   : > { %8360 = vmatpush1.bf16.msra.mxu1 %v10766_v59 }
0x3b2f   : > { %8361 = vmatprep.subr.bf16.mxu1 %v11143_v44 }
0x3b32   : > { %8362 = vmatpush1.bf16.msra.mxu1 %v10767_v45 }
0x3b33   : > { %v10937_v15 = vpop.eup %10936  ;;  %8363 = vmatprep.subr.bf16.mxu1 %v11143_v44 }
0x3b34   : > { %v7979_v12 = vmul.f32 %v10937_v15, %v7963_v11  ;;  %v10769_v15 = vld [vmem:[#allocation4 + $0x968] sm:$0xff]  }
0x3b36   : > { %v7980_v20 = vadd.f32 %v7979_v12, %v12258_v61  ;;  %v10756_v61 = vld [vmem:[#allocation4 + $0x900] sm:$0xff]   ;;  %8364 = vmatpush1.bf16.msra.mxu1 %v10768_v58 }
0x3b37   : > { %8365 = vmatprep.subr.bf16.mxu1 %v11143_v44  ;;  %v9213_v12 = vld [vmem:[#allocation7 + $0x36] ss:$0 sm:$0xff] }
0x3b38   : > { %v7984_v46 = vpack.c.bf16 %v7980_v20, %v7980_v20 }
0x3b3a   : > { %10241 = vmatprep.subr.msk.bf16.mxu0 %vm835_vm6, %v7984_v46  ;;  %v8000_v18 = vsel %vm835_vm6, %v7984_v46, 0  ;;  %8366 = vmatpush1.bf16.msra.mxu1 %v10769_v15 }
0x3b3b   : > { %10192 = vmatpush3.bf16.msra.mxu0 %v8000_v18  ;;  %8367 = vmatprep.subr.bf16.mxu1 %v11143_v44 }
0x3b3c   : > { %10197 = vmatprep.subr.bf16.mxu0 %v11135_v0 }
0x3b3e   : > { %10194 = vmatmul.mubr.msk.bf16.vlgmr.msra.gmra.mrb[152].mxu0 %vm1279_vm14, %v10753_v21 }
0x3b3f   : > { %10213 = vmatprep.mubr.msk.bf16.mxu0 %vm11136_vm0, %v11135_v0  ;;  %10198 = vmatpush3.bf16.msra.mxu0 %v10754_v60 }
0x3b40   : > { %10199 = vmatprep.subr.bf16.mxu0 %v11135_v0 }
0x3b43   : > { %10200 = vmatpush3.bf16.msra.mxu0 %v10755_v22 }
0x3b44   : > { %10201 = vmatprep.subr.bf16.mxu0 %v11135_v0 }
0x3b47   : > { %10202 = vmatpush3.bf16.msra.mxu0 %v10756_v61 }
0x3b48   : > { %10203 = vmatprep.subr.bf16.mxu0 %v11135_v0 }
0x3b4b   : > { %10204 = vmatpush3.bf16.msra.mxu0 %v10757_v24  ;;  %v10770_v24 = vld [vmem:[#allocation4 + $0x970] sm:$0xff]  }
0x3b4c   : > { %10205 = vmatprep.subr.bf16.mxu0 %v11135_v0  ;;  %8368 = vmatpush1.bf16.msra.mxu1 %v10770_v24 }
0x3b4d   : > { %8369 = vmatprep.subr.bf16.mxu1 %v11143_v44 }
0x3b4f   : > { %10206 = vmatpush3.bf16.msra.mxu0 %v10758_v25 }
0x3b50   : > { %10207 = vmatprep.subr.bf16.mxu0 %v11135_v0 }
0x3b53   : > { %10208 = vmatpush3.bf16.msra.mxu0 %v10759_v51 }
0x3b54   : > { %10209 = vmatprep.subr.bf16.mxu0 %v11135_v0 }
0x3b57   : > { %10210 = vmatpush3.bf16.msra.mxu0 %v10760_v3 }
0x3b58   : > { %10211 = vmatprep.subr.bf16.mxu0 %v11135_v0 }
0x3b5b   : > { %10212 = vmatpush3.bf16.msra.mxu0 %v10761_v7  ;;  %v10771_v7 = vld [vmem:[#allocation4 + $0x978] sm:$0xff]  }
0x3b5c   : > { %10217 = vmatprep.subr.bf16.mxu0 %v11135_v0  ;;  %8370 = vmatpush1.bf16.msra.mxu1 %v10771_v7 }
0x3c11   : > { %v10195_v16 = vpop.f32.mrb[152].mxu0 }
0x3c12   : > { %v8036_v2 = vpop.f32.mrb[153].mxu0  ;;  %v8056_v54 = vrot.slane %v10195_v16, 1  ;;  %v8067_v23 = vrot.slane %v10195_v16, 2  ;;  %v8078_v34 = vrot.slane %v10195_v16, 3 }
0x3c13   : > { %v10196_v62 = vpop.f32.mrb[154].mxu0  ;;  %v8053_v26 = vrot.slane %v8036_v2, 1  ;;  %v8064_v31 = vrot.slane %v8036_v2, 2  ;;  %v8075_v36 = vrot.slane %v8036_v2, 3 }
0x3c14   : > { %v8039_v17 = vpop.f32.mrb[155].mxu0 }
0x3c15   : > { %v8054_v53 = vrot.slane %v8039_v17, 1  ;;  %v8065_v27 = vrot.slane %v8039_v17, 2  ;;  %v8076_v28 = vrot.slane %v8039_v17, 3 }
0x3c17   : > { %v8055_v32 = vsel %vm1230_vm4, %v8053_v26, %v8054_v53  ;;  %v8057_v33 = vsel %vm1230_vm4, %v8054_v53, %v8056_v54  ;;  %v8066_v47 = vsel %vm1242_vm3, %v8064_v31, %v8065_v27  ;;  %v8068_v40 = vsel %vm1242_vm3, %v8065_v27, %v8067_v23 }
0x3c18   : > { %v10438_v49 = vpack.i.bf16 %v8057_v33, %v8055_v32  ;;  %v10443_v35 = vpack.i.bf16 %v8068_v40, %v8066_v47  ;;  %v8077_v38 = vsel %vm836_vm5, %v8075_v36, %v8076_v28  ;;  %v8079_v30 = vsel %vm836_vm5, %v8076_v28, %v8078_v34 }
0x3c19   : > { %v10448_v37 = vpack.i.bf16 %v8079_v30, %v8077_v38 }
0x3c1a   : > { %10439 = vrot.lane.b32.xlu0 %v10438_v49, %s11137_s8  ;;  %10444 = vrot.lane.b32.xlu1 %v10443_v35, %s11144_s16 }
0x3c1e   : > { %10449 = vrot.lane.b32.xlu0 %v10448_v37, %s11145_s17 }
0x3c8c   : > { %v10440_v50 = vpop.permute.xlu0 %10439  ;;  %v10445_v55 = vpop.permute.xlu1 %10444 }
0x3c8d   : > { %v10442_v14 = vunpack.i.h.bf16 %v10440_v50  ;;  %v10441_v39 = vunpack.i.l.bf16 %v10440_v50  ;;  %v10447_v41 = vunpack.i.h.bf16 %v10445_v55  ;;  %v10446_v52 = vunpack.i.l.bf16 %v10445_v55 }
0x3c8f   : > { %v8087_v19 = vsel %vm364_vm1, %v8039_v17, %v10442_v14  ;;  %v8086_v43 = vsel %vm364_vm1, %v8036_v2, %v10441_v39 }
0x3c90   : > { %v10450_v56 = vpop.permute.xlu0 %10449  ;;  %v8088_v57 = vsel %vm1606_vm15, %v8086_v43, %v10446_v52  ;;  %v8089_v11 = vsel %vm1606_vm15, %v8087_v19, %v10447_v41 }
0x3c91   : > { %v10452_v29 = vunpack.i.h.bf16 %v10450_v56  ;;  %v10451_v4 = vunpack.i.l.bf16 %v10450_v56 }
0x3c93   : > { %v8090_v48 = vsel %vm1609_vm8, %v8088_v57, %v10451_v4  ;;  %v8091_v63 = vsel %vm1609_vm8, %v8089_v11, %v10452_v29 }
0x3c94   : > { %v8108_v1 = vpack.c.bf16 %v8091_v63, %v8090_v48 }
0x3c96   : > { %10214 = vmatmul.mubr.bf16.vlgmr.msra.gmra.mrb[156].mxu0 %v8108_v1 }
0x3c97   : > { %10218 = vmatpush3.bf16.msra.mxu0 %v12362_v6  ;;  %10221 = vmatprep.mubr.msk.bf16.mxu0 %vm11136_vm0, %v11135_v0 }
0x3c98   : > { %10219 = vmatprep.subr.bf16.mxu0 %v11135_v0 }
0x3c9b   : > { %10220 = vmatpush3.bf16.msra.mxu0 %v12368_v5 }
0x3c9c   : > { %10225 = vmatprep.subr.bf16.mxu0 %v11135_v0 }
0x3d69   : > { %v8196_v20 = vpop.f32.mrb[156].mxu0 }
0x3d6a   : > { %v8197_v46 = vadd.f32 %v9213_v12, %v8196_v20  ;;  %v10215_v18 = vpop.f32.mrb[157].mxu0 }
0x3d6b   : > { %v8199_v21 = vpop.f32.mrb[158].mxu0 }
0x3d6c   : > { %v8205_v60 = vrot.slane %v8197_v46, 6  ;;  %v8200_v22 = vadd.f32 %v9213_v12, %v8199_v21  ;;  %v10216_v61 = vpop.f32.mrb[159].mxu0 }
0x3d6e   : > { %v8211_v25 = vsel %vm1219_vm2, 0.0, %v8205_v60  ;;  %v8206_v51 = vrot.slane %v8200_v22, 6 }
0x3d6f   : > { %v8215_v3 = vrot.slane %v8211_v25, 1  ;;  %v8248_v62 = vrot.slane %v8211_v25, 4  ;;  %v8226_v17 = vrot.slane %v8211_v25, 2  ;;  %v8237_v40 = vrot.slane %v8211_v25, 3 }
0x3d70   : > { %v8207_v16 = vsel %vm1219_vm2, %v8205_v60, %v8206_v51  ;;  %v8212_v2 = vsel %vm1219_vm2, %v8206_v51, 0.0 }
0x3d71   : > { %v8218_v54 = vrot.slane %v8212_v2, 1  ;;  %v8229_v23 = vrot.slane %v8212_v2, 2  ;;  %v8249_v26 = vrot.slane %v8207_v16, 4  ;;  %v8251_v31 = vrot.slane %v8212_v2, 4 }
0x3d72   : > { %v8227_v53 = vrot.slane %v8207_v16, 2  ;;  %v8216_v27 = vrot.slane %v8207_v16, 1  ;;  %v8240_v28 = vrot.slane %v8212_v2, 3  ;;  %v8238_v36 = vrot.slane %v8207_v16, 3 }
0x3d73   : > { %v8250_v34 = vsel %vm835_vm6, %v8248_v62, %v8249_v26  ;;  %v8252_v44 = vsel %vm835_vm6, %v8249_v26, %v8251_v31 }
0x3d74   : > { %v8228_v32 = vsel %vm1242_vm3, %v8226_v17, %v8227_v53  ;;  %v8230_v33 = vsel %vm1242_vm3, %v8227_v53, %v8229_v23  ;;  %v8217_v47 = vsel %vm1230_vm4, %v8215_v3, %v8216_v27  ;;  %v8282_v49 = vpack.c.bf16 %v8252_v44, %v8250_v34 }
0x3d75   : > { %v10458_v35 = vpack.i.bf16 %v8230_v33, %v8228_v32  ;;  %v8219_v38 = vsel %vm1230_vm4, %v8216_v27, %v8218_v54  ;;  %v8239_v37 = vsel %vm836_vm5, %v8237_v40, %v8238_v36  ;;  %v8241_v50 = vsel %vm836_vm5, %v8238_v36, %v8240_v28  ;;  %v10773_v40 = vld [vmem:[#allocation4 + $0x988] sm:$0xff]  }
0x3d76   : > { %v10453_v30 = vpack.i.bf16 %v8219_v38, %v8217_v47  ;;  %9233 = vmatprep.mubr.msk.bf16.mxu1 %vm364_vm1, %v8282_v49  ;;  %v10463_v55 = vpack.i.bf16 %v8241_v50, %v8239_v37  ;;  %v10772_v47 = vld [vmem:[#allocation4 + $0x980] sm:$0xff]  }
0x3d77   : > { %10459 = vrot.lane.b32.xlu0 %v10458_v35, %s11144_s16 }
0x3d78   : > { %10454 = vrot.lane.b32.xlu1 %v10453_v30, %s11137_s8 }
0x3d7c   : > { %10464 = vrot.lane.b32.xlu1 %v10463_v55, %s11145_s17 }
0x3de9   : > { %v10460_v14 = vpop.permute.xlu0 %10459 }
0x3dea   : > { %v10455_v39 = vpop.permute.xlu1 %10454  ;;  %v10462_v19 = vunpack.i.h.bf16 %v10460_v14  ;;  %v10461_v43 = vunpack.i.l.bf16 %v10460_v14 }
0x3deb   : > { %v10457_v41 = vunpack.i.h.bf16 %v10455_v39  ;;  %v10456_v52 = vunpack.i.l.bf16 %v10455_v39  ;;  %v9236_v39 = vld [vmem:[#allocation7 + $0x38] ss:$0 sm:$0xff] }
0x3ded   : > { %v8256_v56 = vsel %vm364_vm1, %v8207_v16, %v10457_v41  ;;  %v8255_v29 = vsel %vm364_vm1, %v8211_v25, %v10456_v52 }
0x3dee   : > { %v10465_v4 = vpop.permute.xlu1 %10464  ;;  %v8257_v48 = vsel %vm1606_vm15, %v8255_v29, %v10461_v43  ;;  %v8258_v63 = vsel %vm1606_vm15, %v8256_v56, %v10462_v19  ;;  %v9237_v19 = vld [vmem:[#allocation7 + $0x39] ss:$0 sm:$0xff] }
0x3def   : > { %v10467_v57 = vunpack.i.h.bf16 %v10465_v4  ;;  %v10466_v11 = vunpack.i.l.bf16 %v10465_v4 }
0x3df1   : > { %v8259_v1 = vsel %vm1609_vm8, %v8257_v48, %v10466_v11  ;;  %v8260_v8 = vsel %vm1609_vm8, %v8258_v63, %v10467_v57 }
0x3df2   : > { %v8281_v9 = vpack.c.bf16 %v8260_v8, %v8259_v1 }
0x3df4   : > { %8384 = vmatmul.mubr.bf16.vlgmr.msra.gmra.mrb[136].mxu1 %v8281_v9 }
0x3ec7   : > { %v8385_v13 = vpop.f32.mrb[136].mxu1 }
0x3ec8   : > { %v8386_v59 = vadd.f32 %v9222_v10, %v8385_v13  ;;  %v8387_v45 = vpop.f32.mrb[137].mxu1 }
0x3ec9   : > { %v8388_v58 = vpop.f32.mrb[138].mxu1 }
0x3eca   : > { %v8389_v15 = vadd.f32 %v9222_v10, %v8388_v58  ;;  %v8390_v12 = vpop.f32.mrb[139].mxu1  ;;  %v8392_v20 = vsel %vm364_vm1, %v8386_v59, 0.0 }
0x3ecc   : > { %v8393_v46 = vsel %vm364_vm1, %v8389_v15, 0.0 }
0x3ecd   : > { %v8394_v18 = vadd.f32 %v8393_v46, %v8392_v20 }
0x3ecf   : > { %v8395_v21 = vrot.slane %v8394_v18, 4 }
0x3ed1   : > { %v8396_v60 = vadd.f32 %v8395_v21, %v8394_v18 }
0x3ed3   : > { %v8397_v22 = vrot.slane %v8396_v60, 2 }
0x3ed5   : > { %v8398_v61 = vadd.f32 %v8397_v22, %v8396_v60 }
0x3ed7   : > { %v8399_v24 = vrot.slane %v8398_v61, 1 }
0x3ed9   : > { %v8400_v25 = vadd.f32 %v8399_v24, %v8398_v61 }
0x3edb   : > { %v8401_v51 = vpack.c.bf16 %v8400_v25, %v8400_v25 }
0x3edd   : > { %10222 = vmatmul.mubr.msk.bf16.vlgmr.msra.gmra.mrb[160].mxu0 %vm364_vm1, %v8401_v51 }
0x3ede   : > { %10226 = vmatpush3.bf16.msra.mxu0 %v12362_v6  ;;  %10229 = vmatprep.mubr.msk.bf16.mxu0 %vm11136_vm0, %v11135_v0 }
0x3edf   : > { %10227 = vmatprep.subr.bf16.mxu0 %v11135_v0 }
0x3ee2   : > { %10228 = vmatpush3.bf16.msra.mxu0 %v12368_v5 }
0x3ee3   : > { %10233 = vmatprep.subr.bf16.mxu0 %v11135_v0 }
0x3fb0   : > { %v8439_v3 = vpop.f32.mrb[160].mxu0 }
0x3fb1   : > { %v8445_v16 = vmul.f32 0.015625, %v8439_v3  ;;  %v10223_v2 = vpop.f32.mrb[161].mxu0 }
0x3fb2   : > { %v8442_v7 = vpop.f32.mrb[162].mxu0 }
0x3fb3   : > { %v8449_v62 = vrot.slane %v8445_v16, %v11530_v42  ;;  %v10224_v54 = vpop.f32.mrb[163].mxu0  ;;  %v9238_v7 = vld [vmem:[#allocation7 + $0x3a] ss:$0 sm:$0xff] }
0x3fb5   : > { %v8450_v23 = vsub.f32 %v8386_v59, %v8449_v62  ;;  %v8451_v26 = vsub.f32 %v8389_v15, %v8449_v62 }
0x3fb7   : > { %v8452_v17 = vmul.f32 %v8450_v23, %v8450_v23  ;;  %v8453_v6 = vmul.f32 %v8451_v26, %v8451_v26 }
0x3fb9   : > { %v8454_v31 = vsel %vm364_vm1, %v8452_v17, 0.0  ;;  %v8455_v53 = vsel %vm364_vm1, %v8453_v6, 0.0 }
0x3fba   : > { %v8456_v27 = vadd.f32 %v8455_v53, %v8454_v31 }
0x3fbc   : > { %v8457_v28 = vrot.slane %v8456_v27, 4 }
0x3fbe   : > { %v8458_v5 = vadd.f32 %v8457_v28, %v8456_v27 }
0x3fc0   : > { %v8459_v34 = vrot.slane %v8458_v5, 2 }
0x3fc2   : > { %v8460_v36 = vadd.f32 %v8459_v34, %v8458_v5 }
0x3fc4   : > { %v8461_v44 = vrot.slane %v8460_v36, 1 }
0x3fc6   : > { %v8462_v32 = vadd.f32 %v8461_v44, %v8460_v36 }
0x3fc8   : > { %v8463_v33 = vpack.c.bf16 %v8462_v32, %v8462_v32 }
0x3fca   : > { %10230 = vmatmul.mubr.msk.bf16.vlgmr.msra.gmra.mrb[164].mxu0 %vm364_vm1, %v8463_v33 }
0x3fcb   : > { %10237 = vmatprep.mubr.msk.bf16.mxu0 %vm11136_vm0, %v11135_v0  ;;  %10234 = vmatpush3.bf16.msra.mxu0 %v10772_v47 }
0x3fcc   : > { %10235 = vmatprep.subr.bf16.mxu0 %v11135_v0 }
0x3fcf   : > { %10236 = vmatpush3.bf16.msra.mxu0 %v10773_v40 }
0x409d   : > { %v8501_v49 = vpop.f32.mrb[164].mxu0 }
0x409e   : > { %v8507_v35 = vmul.f32 0.015625, %v8501_v49  ;;  %v10231_v38 = vpop.f32.mrb[165].mxu0 }
0x409f   : > { %v8504_v30 = vpop.f32.mrb[166].mxu0 }
0x40a0   : > { %v8508_v37 = vadd.f32 1e-05, %v8507_v35  ;;  %v10232_v50 = vpop.f32.mrb[167].mxu0 }
0x40a2   : > { %10938 = vrsqrt.f32 %v8508_v37 }
0x40ac   : > { %v10939_v55 = vpop.eup %10938 }
0x40ad   : > { %v8513_v14 = vrot.slane %v10939_v55, %v11530_v42 }
0x40af   : > { %v8514_v41 = vmul.f32 %v8513_v14, %v8450_v23  ;;  %v8515_v52 = vmul.f32 %v8513_v14, %v8451_v26 }
0x40b1   : > { %v8521_v43 = vmul.f32 %v9236_v39, %v8514_v41  ;;  %v8522_v56 = vmul.f32 %v9236_v39, %v8515_v52 }
0x40b3   : > { %v8528_v29 = vadd.f32 %v9237_v19, %v8521_v43  ;;  %v8529_v4 = vadd.f32 %v9237_v19, %v8522_v56 }
0x40b5   : > { %v8532_v0 = vmin.f32 %v8528_v29, 20.0  ;;  %v8533_v57 = vmin.f32 %v8529_v4, 20.0  ;;  %vm8530_vm2 = vcmp.gt.f32.partialorder %v8528_v29, 20.0  ;;  %vm8531_vm4 = vcmp.gt.f32.partialorder %v8529_v4, 20.0 }
0x40b7   : > { %v8534_v11 = vmul.f32 1.442695, %v8532_v0  ;;  %v8536_v48 = vmul.f32 1.442695, %v8533_v57 }
0x40b9   : > { %10940 = vpow2.f32 %v8534_v11 }
0x40ba   : > { %10942 = vpow2.f32 %v8536_v48 }
0x40c3   : > { %v10941_v63 = vpop.eup %10940 }
0x40c4   : > { %v10943_v1 = vpop.eup %10942  ;;  %v8538_v8 = vadd.f32 1.0, %v10941_v63  ;;  %v8541_v42 = vmul.f32 -0.5, %v10941_v63  ;;  %v8544_v59 = vand.u32 2147483647, %v10941_v63 }
0x40c5   : > { %v8547_v9 = vadd.f32 1.0, %v10943_v1  ;;  %v8550_v10 = vmul.f32 -0.5, %v10943_v1  ;;  %v8553_v58 = vand.u32 2147483647, %v10943_v1 }
0x40c6   : > { %10944 = vlog2.f32 %v8538_v8  ;;  %v8542_v13 = vadd.f32 1.0, %v8541_v42  ;;  %vm8545_vm0 = vcmp.lt.f32.partialorder %v8544_v59, 0.0004427343 }
0x40c7   : > { %10946 = vlog2.f32 %v8547_v9  ;;  %v8551_v45 = vadd.f32 1.0, %v8550_v10  ;;  %vm8554_vm3 = vcmp.lt.f32.partialorder %v8553_v58, 0.0004427343 }
0x40c8   : > { %v8543_v46 = vmul.f32 %v10941_v63, %v8542_v13 }
0x40c9   : > { %v8552_v21 = vmul.f32 %v10943_v1, %v8551_v45 }
0x40d0   : > { %v10945_v15 = vpop.eup %10944 }
0x40d1   : > { %v10947_v12 = vpop.eup %10946  ;;  %v8540_v20 = vmul.f32 0.6931472, %v10945_v15 }
0x40d2   : > { %v8549_v18 = vmul.f32 0.6931472, %v10947_v12 }
0x40d3   : > { %v8546_v60 = vsel %vm8545_vm0, %v8543_v46, %v8540_v20 }
0x40d4   : > { %v8555_v22 = vsel %vm8554_vm3, %v8552_v21, %v8549_v18  ;;  %v8556_v61 = vsel %vm8530_vm2, %v8528_v29, %v8546_v60 }
0x40d5   : > { %v8557_v24 = vsel %vm8531_vm4, %v8529_v4, %v8555_v22  ;;  %10948 = vtanh.f32 %v8556_v61 }
0x40d6   : > { %10950 = vtanh.f32 %v8557_v24 }
0x40df   : > { %v10949_v25 = vpop.eup %10948 }
0x40e0   : > { %v10951_v51 = vpop.eup %10950  ;;  %v8560_v3 = vmul.f32 %v10949_v25, %v8528_v29 }
0x40e1   : > { %v8561_v16 = vmul.f32 %v10951_v51, %v8529_v4 }
0x40e3   : > { %v8566_v2 = vpack.c.bf16 %v8561_v16, %v8560_v3 }
0x40e5   : > { %10238 = vmatmul.mubr.msk.bf16.vlgmr.msra.gmra.mrb[168].mxu0 %vm364_vm1, %v8566_v2 }
0x41b8   : > { %v8621_v62 = vpop.f32.mrb[168].mxu0 }
0x41b9   : > { %v8622_v54 = vadd.f32 %v9238_v7, %v8621_v62  ;;  %v10239_v23 = vpop.f32.mrb[169].mxu0 }
0x41ba   : > { %v8624_v26 = vpop.f32.mrb[170].mxu0 }
0x41bb   : > { %8628 = vst [vmem:[%s343_s7] sm:$0xff] %v8622_v54  ;;  %v8625_v17 = vadd.f32 %v9238_v7, %v8624_v26  ;;  %v10240_v6 = vpop.f32.mrb[171].mxu0 }
0x41bd   : > { %8629 = vst [vmem:[%s343_s7 + $0x8] sm:$0xff] %v8625_v17 }
0x41be PF: > { %p18_p1 = scmp.ge.s32.totalorder %s11292_s15, 4   ;;  %s12459_s21 = smov %s11116_s22 }
0x41bf   : > { %s12460_s22 = smov %s11120_s23  ;;  %s12461_s23 = smov %s11301_s19 }
0x41c0   : > { %s12462_s24 = smov %s11292_s15  ;;  %20 = sbr.rel (!%p18_p1) target bundleno = 5 (0x5), region = 102 }
0x41c7   :  { %8651 = vsyncpa [#allocation3], 1 }
0x41c8   :  { %8653 = vsyncpa [#allocation3 + $0x1], 1 }
0x41c9   :  { %8654 = vsyncpa [#allocation5], 1 }
0x41ca   :  { %8655 = vsyncpa [#allocation8], 1 }

</bundles_post_ra>
